<compile_context>
chip_gen: v6e
topology: v6e:2x2x1
jax: 0.10.0
libtpu: 0.0.40
codegen_flags: <defaults>
</compile_context>

<pallas_src>
import numpy as np

import jax
import jax.numpy as jnp
from jax import lax
from jax.experimental import pallas as pl
from jax.experimental.pallas import tpu as pltpu


_LAYERS = [
    # (cin, cout, stride, leaky, norm)
    (3,   64,  2, True,  False),
    (64,  128, 2, True,  True),
    (128, 256, 2, True,  True),
    (256, 512, 2, True,  True),
    (512, 1,   1, False, False),
]

_EPS = 1e-5
_NEG_SLOPE = 0.2


def _out_hw(h, w, stride):
    # 3x3 conv, padding = 1
    return (h + 2 - 3) // stride + 1, (w + 2 - 3) // stride + 1


def _gather_mats(h_in, w_in, stride):
    """(9, P_out, P_in) 0/1 matrices.

    G[t] @ x_flat selects, for tap t = (kh, kw), the input pixel feeding each
    output position; rows are all-zero where the tap falls into the zero
    padding, which reproduces padding=1 exactly.
    """
    h_out, w_out = _out_hw(h_in, w_in, stride)
    g = np.zeros((9, h_out * w_out, h_in * w_in), np.float32)
    for kh in range(3):
        for kw in range(3):
            t = kh * 3 + kw
            for ho in range(h_out):
                hi = stride * ho + kh - 1
                if not 0 <= hi < h_in:
                    continue
                for wo in range(w_out):
                    wi = stride * wo + kw - 1
                    if 0 <= wi < w_in:
                        g[t, ho * w_out + wo, hi * w_in + wi] = 1.0
    return g


# ----------------------------------------------------------------------------
# Fused kernel: whole Discriminator for one batch sample per grid step.
# Activations are (P, C) slabs (channels on lanes).  All matmuls are bf16
# operands with f32 accumulation; elementwise math stays f32.
# ----------------------------------------------------------------------------
def _discriminator_kernel(taps1_ref, w1_ref, b1_ref,
                          g2_ref, w2_ref, b2_ref,
                          g3_ref, w3_ref, b3_ref,
                          g4_ref, w4_ref, b4_ref,
                          g5_ref, w5_ref, b5_ref,
                          out_ref):
    f32 = jnp.float32
    bf16 = jnp.bfloat16

    # ---- layer 1: conv(3->64, s=2) + LeakyReLU (no norm) --------------------
    y = jnp.dot(taps1_ref[0], w1_ref[...], preferred_element_type=f32)
    y = y + b1_ref[...]
    y = jnp.maximum(y, _NEG_SLOPE * y)            # LeakyReLU(0.2), one VPU op

    # ---- layers 2..4: conv(s=2) + LeakyReLU + InstanceNorm ------------------
    for g_ref, w_ref, b_ref in ((g2_ref, w2_ref, b2_ref),
                                (g3_ref, w3_ref, b3_ref),
                                (g4_ref, w4_ref, b4_ref)):
        x = y.astype(bf16)
        p_out = g_ref.shape[1]
        c_out = w_ref.shape[2]
        acc = jnp.zeros((p_out, c_out), f32)
        for t in range(9):                        # 3x3 taps, fully unrolled
            # G_t @ x is an exact row-selection (0/1 matrix) -> no bf16 loss.
            tap = jnp.dot(g_ref[t], x, preferred_element_type=f32).astype(bf16)
            acc = acc + jnp.dot(tap, w_ref[t], preferred_element_type=f32)
        acc = acc + b_ref[...]
        acc = jnp.maximum(acc, _NEG_SLOPE * acc)  # LeakyReLU(0.2)
        # InstanceNorm2d (affine=False, eps=1e-5): stats over spatial (axis 0),
        # one reduction sweep via E[x^2] - mean^2 (f32 keeps it safe).
        mean = jnp.mean(acc, axis=0, keepdims=True)
        var = jnp.mean(acc * acc, axis=0, keepdims=True) - mean * mean
        y = (acc - mean) * lax.rsqrt(var + _EPS)

    # ---- layer 5: conv(512->1, s=1).  Cout == 1 -> VPU mult + lane reduce ---
    x = y.astype(bf16)
    p_out = g5_ref.shape[1]
    c_in = w5_ref.shape[2]
    acc = jnp.zeros((p_out, c_in), f32)
    for t in range(9):
        tap = jnp.dot(g5_ref[t], x, preferred_element_type=f32)   # (P5, 512)
        acc = acc + tap * w5_ref[t].astype(f32)                   # (1,512) bcast
    out = jnp.sum(acc, axis=1, keepdims=True) + b5_ref[...]       # (P5, 1)
    out_ref[0] = out.astype(out_ref.dtype)


# ----------------------------------------------------------------------------
# Wrapper: one-time layout prep + constant gather matrices, single pallas_call.
# ----------------------------------------------------------------------------
def discriminator_forward(img, params):
    """img: (N, C, H, W) NCHW f32; params: list of (w (Cout,Cin,3,3), b (Cout,))."""
    n, cin, h, w = img.shape
    assert cin == _LAYERS[0][0]

    # One-time XLA layout work: NCHW -> NHWC, pad, and stack layer-1's 9 taps
    # into a tiny (N, P1, 9*Cin) slab (K = (kh,kw,ci) matches the weight pack).
    h1, w1o = _out_hw(h, w, _LAYERS[0][2])
    x = jnp.transpose(img, (0, 2, 3, 1))
    xp = jnp.pad(x, ((0, 0), (1, 1), (1, 1), (0, 0)))
    taps = []
    for kh in range(3):
        for kw in range(3):
            taps.append(xp[:, kh:kh + 2 * h1 - 1:2, kw:kw + 2 * w1o - 1:2, :])
    taps1 = jnp.stack(taps, axis=3).reshape(n, h1 * w1o, 9 * cin)
    taps1 = taps1.astype(jnp.bfloat16)

    # Per-layer output spatial sizes (spatial[k] = output of layer k+1).
    spatial = [(h1, w1o)]
    for (_, _, stride, _, _) in _LAYERS[1:]:
        spatial.append(_out_hw(*spatial[-1], stride))
    p_last = spatial[-1][0] * spatial[-1][1]

    def const_spec(shape):
        nd = len(shape)
        return pl.BlockSpec(shape, lambda i, nd=nd: (0,) * nd)

    args = [taps1]
    in_specs = [pl.BlockSpec((1, h1 * w1o, 9 * cin), lambda i: (i, 0, 0))]

    # Layer 1 weights: (Cout,Cin,3,3) -> (9*Cin, Cout), order (kh, kw, ci).
    w1, b1 = params[0]
    w1m = jnp.asarray(w1).transpose(2, 3, 1, 0).reshape(9 * cin, -1)
    w1m = w1m.astype(jnp.bfloat16)
    b1m = jnp.asarray(b1).reshape(1, -1).astype(jnp.float32)
    args += [w1m, b1m]
    in_specs += [const_spec(w1m.shape), const_spec(b1m.shape)]

    # Layers 2..5: constant tap-gather matrices + per-tap weight matrices.
    for li in range(1, 5):
        wl, bl = params[li]
        c_in, c_out, stride = _LAYERS[li][0], _LAYERS[li][1], _LAYERS[li][2]
        g = jnp.asarray(_gather_mats(*spatial[li - 1], stride), jnp.bfloat16)
        if li < 4:
            wm = jnp.asarray(wl).transpose(2, 3, 1, 0).reshape(9, c_in, c_out)
        else:
            # Final layer (Cout=1): store per-tap weight rows (9, 1, Cin) for
            # the VPU multiply + lane-reduce path (avoids 1-lane matmul/store).
            wm = jnp.asarray(wl).transpose(2, 3, 0, 1).reshape(9, 1, c_in)
        wm = wm.astype(jnp.bfloat16)
        bm = jnp.asarray(bl).reshape(1, -1).astype(jnp.float32)
        args += [g, wm, bm]
        in_specs += [const_spec(g.shape), const_spec(wm.shape),
                     const_spec(bm.shape)]

    out = pl.pallas_call(
        _discriminator_kernel,
        out_shape=jax.ShapeDtypeStruct((n, p_last, 1), jnp.float32),
        grid=(n,),
        in_specs=in_specs,
        out_specs=pl.BlockSpec((1, p_last, 1), lambda i: (i, 0, 0)),
        compiler_params=pltpu.CompilerParams(
            # One sample per grid step; 2 steps shard across v7x's 2 TCs.
            dimension_semantics=("parallel",)),
    )(*args)

    h5, w5 = spatial[-1]
    return out.reshape(n, h5, w5, 1).transpose(0, 3, 1, 2)   # back to NCHW


# ----------------------------------------------------------------------------
# Params + pure-JAX reference (same bf16 operand precision, f32 accumulation).
# ----------------------------------------------------------------------------
def init_params(key):
    params = []
    for cin, cout, _, _, _ in _LAYERS:
        key, kw, kb = jax.random.split(key, 3)
        w = jax.random.normal(kw, (cout, cin, 3, 3), jnp.float32) * 0.05
        b = jax.random.normal(kb, (cout,), jnp.float32) * 0.01
        params.append((w, b))
    return params


def discriminator_reference(img, params, operand_dtype=jnp.bfloat16):
    x = img
    for (wl, bl), (_, _, stride, leaky, norm) in zip(params, _LAYERS):
        y = lax.conv_general_dilated(
            x.astype(operand_dtype), jnp.asarray(wl).astype(operand_dtype),
            window_strides=(stride, stride), padding=((1, 1), (1, 1)),
            dimension_numbers=("NCHW", "OIHW", "NCHW"),
            preferred_element_type=jnp.float32)
        y = y + jnp.asarray(bl).reshape(1, -1, 1, 1)
        if leaky:
            y = jnp.where(y > 0, y, _NEG_SLOPE * y)
        if norm:
            mean = jnp.mean(y, axis=(2, 3), keepdims=True)
            var = jnp.mean(jnp.square(y - mean), axis=(2, 3), keepdims=True)
            y = (y - mean) * lax.rsqrt(var + _EPS)
        x = y
    return x


if __name__ == "__main__":
    key = jax.random.PRNGKey(0)
    key, k_img = jax.random.split(key)
    # batch=2, channels=3, 32x32 image (small PixelDA-style input)
    img = jax.random.normal(k_img, (2, 3, 32, 32), jnp.float32)
    params = init_params(key)

    fwd = jax.jit(discriminator_forward)
    out = jax.block_until_ready(fwd(img, params))
    assert out.shape == (2, 1, 2, 2), out.shape

    ref = jax.block_until_ready(discriminator_reference(img, params))
    max_err = float(jnp.max(jnp.abs(out - ref)))
    assert jnp.allclose(out, ref, rtol=2e-2, atol=2e-2), max_err

    print("KERNEL_OK")
</pallas_src>

<mosaic_0001>
module attributes {stable_mosaic.version = 11 : i64} {
  func.func @_discriminator_kernel(%arg0: i32, %arg1: memref<1x256x27xbf16, #tpu.memory_space<vmem>>, %arg2: memref<27x64xbf16, #tpu.memory_space<vmem>>, %arg3: memref<1x64xf32, #tpu.memory_space<vmem>>, %arg4: memref<9x64x256xbf16, #tpu.memory_space<vmem>>, %arg5: memref<9x64x128xbf16, #tpu.memory_space<vmem>>, %arg6: memref<1x128xf32, #tpu.memory_space<vmem>>, %arg7: memref<9x16x64xbf16, #tpu.memory_space<vmem>>, %arg8: memref<9x128x256xbf16, #tpu.memory_space<vmem>>, %arg9: memref<1x256xf32, #tpu.memory_space<vmem>>, %arg10: memref<9x4x16xbf16, #tpu.memory_space<vmem>>, %arg11: memref<9x256x512xbf16, #tpu.memory_space<vmem>>, %arg12: memref<1x512xf32, #tpu.memory_space<vmem>>, %arg13: memref<9x4x4xbf16, #tpu.memory_space<vmem>>, %arg14: memref<9x1x512xbf16, #tpu.memory_space<vmem>>, %arg15: memref<1x1xf32, #tpu.memory_space<vmem>>, %arg16: memref<1x4x1xf32, #tpu.memory_space<vmem>>) attributes {dimension_semantics = [#tpu.dimension_semantics<parallel>], iteration_bounds = array<i64: 2>, scalar_prefetch = 0 : i64, scratch_operands = 0 : i64, tpu.core_type = #tpu.core_type<tc>, window_params = [{transform_indices = @transform_0, window_bounds = array<i64: 1, 256, 27>}, {pipeline_mode = #tpu.pipeline_mode<synchronous>, transform_indices = @transform_1, window_bounds = array<i64: 27, 64>}, {pipeline_mode = #tpu.pipeline_mode<synchronous>, transform_indices = @transform_2, window_bounds = array<i64: 1, 64>}, {pipeline_mode = #tpu.pipeline_mode<synchronous>, transform_indices = @transform_3, window_bounds = array<i64: 9, 64, 256>}, {pipeline_mode = #tpu.pipeline_mode<synchronous>, transform_indices = @transform_4, window_bounds = array<i64: 9, 64, 128>}, {pipeline_mode = #tpu.pipeline_mode<synchronous>, transform_indices = @transform_5, window_bounds = array<i64: 1, 128>}, {pipeline_mode = #tpu.pipeline_mode<synchronous>, transform_indices = @transform_6, window_bounds = array<i64: 9, 16, 64>}, {pipeline_mode = #tpu.pipeline_mode<synchronous>, transform_indices = @transform_7, window_bounds = array<i64: 9, 128, 256>}, {pipeline_mode = #tpu.pipeline_mode<synchronous>, transform_indices = @transform_8, window_bounds = array<i64: 1, 256>}, {pipeline_mode = #tpu.pipeline_mode<synchronous>, transform_indices = @transform_9, window_bounds = array<i64: 9, 4, 16>}, {pipeline_mode = #tpu.pipeline_mode<synchronous>, transform_indices = @transform_10, window_bounds = array<i64: 9, 256, 512>}, {pipeline_mode = #tpu.pipeline_mode<synchronous>, transform_indices = @transform_11, window_bounds = array<i64: 1, 512>}, {pipeline_mode = #tpu.pipeline_mode<synchronous>, transform_indices = @transform_12, window_bounds = array<i64: 9, 4, 4>}, {pipeline_mode = #tpu.pipeline_mode<synchronous>, transform_indices = @transform_13, window_bounds = array<i64: 9, 1, 512>}, {pipeline_mode = #tpu.pipeline_mode<synchronous>, transform_indices = @transform_14, window_bounds = array<i64: 1, 1>}, {transform_indices = @transform_15, window_bounds = array<i64: 1, 4, 1>}]} {
    %c0 = arith.constant 0 : index
    %c0_0 = arith.constant 0 : index
    %c0_1 = arith.constant 0 : index
    %0 = vector.load %arg1[%c0, %c0_0, %c0_1] : memref<1x256x27xbf16, #tpu.memory_space<vmem>>, vector<1x256x27xbf16>
    %1 = vector.shape_cast %0 : vector<1x256x27xbf16> to vector<256x27xbf16>
    %c0_2 = arith.constant 0 : index
    %c0_3 = arith.constant 0 : index
    %2 = vector.load %arg2[%c0_2, %c0_3] : memref<27x64xbf16, #tpu.memory_space<vmem>>, vector<27x64xbf16>
    %cst = arith.constant dense<0.000000e+00> : vector<256x64xf32>
    %3 = tpu.matmul %1, %2, %cst {dimension_numbers = #tpu.dot_dimension_numbers<[1], [0], [0], [1], [0, 0, 1, 1], [], []>} : vector<256x27xbf16>, vector<27x64xbf16>, vector<256x64xf32> -> vector<256x64xf32>
    %c0_4 = arith.constant 0 : index
    %c0_5 = arith.constant 0 : index
    %4 = vector.load %arg3[%c0_4, %c0_5] : memref<1x64xf32, #tpu.memory_space<vmem>>, vector<1x64xf32>
    %5 = vector.broadcast %4 : vector<1x64xf32> to vector<256x64xf32>
    %6 = arith.addf %3, %5 : vector<256x64xf32>
    %cst_6 = arith.constant 2.000000e-01 : f32
    %7 = vector.broadcast %cst_6 : f32 to vector<256x64xf32>
    %8 = arith.mulf %7, %6 : vector<256x64xf32>
    %9 = arith.maximumf %6, %8 : vector<256x64xf32>
    %10 = arith.truncf %9 : vector<256x64xf32> to vector<256x64xbf16>
    %cst_7 = arith.constant 0.000000e+00 : f32
    %11 = vector.broadcast %cst_7 : f32 to vector<64x128xf32>
    %c0_8 = arith.constant 0 : index
    %c0_9 = arith.constant 0 : index
    %c0_10 = arith.constant 0 : index
    %12 = vector.load %arg4[%c0_8, %c0_9, %c0_10] : memref<9x64x256xbf16, #tpu.memory_space<vmem>>, vector<1x64x256xbf16>
    %13 = vector.shape_cast %12 : vector<1x64x256xbf16> to vector<64x256xbf16>
    %cst_11 = arith.constant dense<0.000000e+00> : vector<64x64xf32>
    %14 = tpu.matmul %13, %10, %cst_11 {dimension_numbers = #tpu.dot_dimension_numbers<[1], [0], [0], [1], [0, 0, 1, 1], [], []>} : vector<64x256xbf16>, vector<256x64xbf16>, vector<64x64xf32> -> vector<64x64xf32>
    %15 = arith.truncf %14 : vector<64x64xf32> to vector<64x64xbf16>
    %c0_12 = arith.constant 0 : index
    %c0_13 = arith.constant 0 : index
    %c0_14 = arith.constant 0 : index
    %16 = vector.load %arg5[%c0_12, %c0_13, %c0_14] : memref<9x64x128xbf16, #tpu.memory_space<vmem>>, vector<1x64x128xbf16>
    %17 = vector.shape_cast %16 : vector<1x64x128xbf16> to vector<64x128xbf16>
    %cst_15 = arith.constant dense<0.000000e+00> : vector<64x128xf32>
    %18 = tpu.matmul %15, %17, %cst_15 {dimension_numbers = #tpu.dot_dimension_numbers<[1], [0], [0], [1], [0, 0, 1, 1], [], []>} : vector<64x64xbf16>, vector<64x128xbf16>, vector<64x128xf32> -> vector<64x128xf32>
    %19 = arith.addf %11, %18 : vector<64x128xf32>
    %c1 = arith.constant 1 : index
    %c0_16 = arith.constant 0 : index
    %c0_17 = arith.constant 0 : index
    %20 = vector.load %arg4[%c1, %c0_16, %c0_17] : memref<9x64x256xbf16, #tpu.memory_space<vmem>>, vector<1x64x256xbf16>
    %21 = vector.shape_cast %20 : vector<1x64x256xbf16> to vector<64x256xbf16>
    %cst_18 = arith.constant dense<0.000000e+00> : vector<64x64xf32>
    %22 = tpu.matmul %21, %10, %cst_18 {dimension_numbers = #tpu.dot_dimension_numbers<[1], [0], [0], [1], [0, 0, 1, 1], [], []>} : vector<64x256xbf16>, vector<256x64xbf16>, vector<64x64xf32> -> vector<64x64xf32>
    %23 = arith.truncf %22 : vector<64x64xf32> to vector<64x64xbf16>
    %c1_19 = arith.constant 1 : index
    %c0_20 = arith.constant 0 : index
    %c0_21 = arith.constant 0 : index
    %24 = vector.load %arg5[%c1_19, %c0_20, %c0_21] : memref<9x64x128xbf16, #tpu.memory_space<vmem>>, vector<1x64x128xbf16>
    %25 = vector.shape_cast %24 : vector<1x64x128xbf16> to vector<64x128xbf16>
    %cst_22 = arith.constant dense<0.000000e+00> : vector<64x128xf32>
    %26 = tpu.matmul %23, %25, %cst_22 {dimension_numbers = #tpu.dot_dimension_numbers<[1], [0], [0], [1], [0, 0, 1, 1], [], []>} : vector<64x64xbf16>, vector<64x128xbf16>, vector<64x128xf32> -> vector<64x128xf32>
    %27 = arith.addf %19, %26 : vector<64x128xf32>
    %c2 = arith.constant 2 : index
    %c0_23 = arith.constant 0 : index
    %c0_24 = arith.constant 0 : index
    %28 = vector.load %arg4[%c2, %c0_23, %c0_24] : memref<9x64x256xbf16, #tpu.memory_space<vmem>>, vector<1x64x256xbf16>
    %29 = vector.shape_cast %28 : vector<1x64x256xbf16> to vector<64x256xbf16>
    %cst_25 = arith.constant dense<0.000000e+00> : vector<64x64xf32>
    %30 = tpu.matmul %29, %10, %cst_25 {dimension_numbers = #tpu.dot_dimension_numbers<[1], [0], [0], [1], [0, 0, 1, 1], [], []>} : vector<64x256xbf16>, vector<256x64xbf16>, vector<64x64xf32> -> vector<64x64xf32>
    %31 = arith.truncf %30 : vector<64x64xf32> to vector<64x64xbf16>
    %c2_26 = arith.constant 2 : index
    %c0_27 = arith.constant 0 : index
    %c0_28 = arith.constant 0 : index
    %32 = vector.load %arg5[%c2_26, %c0_27, %c0_28] : memref<9x64x128xbf16, #tpu.memory_space<vmem>>, vector<1x64x128xbf16>
    %33 = vector.shape_cast %32 : vector<1x64x128xbf16> to vector<64x128xbf16>
    %cst_29 = arith.constant dense<0.000000e+00> : vector<64x128xf32>
    %34 = tpu.matmul %31, %33, %cst_29 {dimension_numbers = #tpu.dot_dimension_numbers<[1], [0], [0], [1], [0, 0, 1, 1], [], []>} : vector<64x64xbf16>, vector<64x128xbf16>, vector<64x128xf32> -> vector<64x128xf32>
    %35 = arith.addf %27, %34 : vector<64x128xf32>
    %c3 = arith.constant 3 : index
    %c0_30 = arith.constant 0 : index
    %c0_31 = arith.constant 0 : index
    %36 = vector.load %arg4[%c3, %c0_30, %c0_31] : memref<9x64x256xbf16, #tpu.memory_space<vmem>>, vector<1x64x256xbf16>
    %37 = vector.shape_cast %36 : vector<1x64x256xbf16> to vector<64x256xbf16>
    %cst_32 = arith.constant dense<0.000000e+00> : vector<64x64xf32>
    %38 = tpu.matmul %37, %10, %cst_32 {dimension_numbers = #tpu.dot_dimension_numbers<[1], [0], [0], [1], [0, 0, 1, 1], [], []>} : vector<64x256xbf16>, vector<256x64xbf16>, vector<64x64xf32> -> vector<64x64xf32>
    %39 = arith.truncf %38 : vector<64x64xf32> to vector<64x64xbf16>
    %c3_33 = arith.constant 3 : index
    %c0_34 = arith.constant 0 : index
    %c0_35 = arith.constant 0 : index
    %40 = vector.load %arg5[%c3_33, %c0_34, %c0_35] : memref<9x64x128xbf16, #tpu.memory_space<vmem>>, vector<1x64x128xbf16>
    %41 = vector.shape_cast %40 : vector<1x64x128xbf16> to vector<64x128xbf16>
    %cst_36 = arith.constant dense<0.000000e+00> : vector<64x128xf32>
    %42 = tpu.matmul %39, %41, %cst_36 {dimension_numbers = #tpu.dot_dimension_numbers<[1], [0], [0], [1], [0, 0, 1, 1], [], []>} : vector<64x64xbf16>, vector<64x128xbf16>, vector<64x128xf32> -> vector<64x128xf32>
    %43 = arith.addf %35, %42 : vector<64x128xf32>
    %c4 = arith.constant 4 : index
    %c0_37 = arith.constant 0 : index
    %c0_38 = arith.constant 0 : index
    %44 = vector.load %arg4[%c4, %c0_37, %c0_38] : memref<9x64x256xbf16, #tpu.memory_space<vmem>>, vector<1x64x256xbf16>
    %45 = vector.shape_cast %44 : vector<1x64x256xbf16> to vector<64x256xbf16>
    %cst_39 = arith.constant dense<0.000000e+00> : vector<64x64xf32>
    %46 = tpu.matmul %45, %10, %cst_39 {dimension_numbers = #tpu.dot_dimension_numbers<[1], [0], [0], [1], [0, 0, 1, 1], [], []>} : vector<64x256xbf16>, vector<256x64xbf16>, vector<64x64xf32> -> vector<64x64xf32>
    %47 = arith.truncf %46 : vector<64x64xf32> to vector<64x64xbf16>
    %c4_40 = arith.constant 4 : index
    %c0_41 = arith.constant 0 : index
    %c0_42 = arith.constant 0 : index
    %48 = vector.load %arg5[%c4_40, %c0_41, %c0_42] : memref<9x64x128xbf16, #tpu.memory_space<vmem>>, vector<1x64x128xbf16>
    %49 = vector.shape_cast %48 : vector<1x64x128xbf16> to vector<64x128xbf16>
    %cst_43 = arith.constant dense<0.000000e+00> : vector<64x128xf32>
    %50 = tpu.matmul %47, %49, %cst_43 {dimension_numbers = #tpu.dot_dimension_numbers<[1], [0], [0], [1], [0, 0, 1, 1], [], []>} : vector<64x64xbf16>, vector<64x128xbf16>, vector<64x128xf32> -> vector<64x128xf32>
    %51 = arith.addf %43, %50 : vector<64x128xf32>
    %c5 = arith.constant 5 : index
    %c0_44 = arith.constant 0 : index
    %c0_45 = arith.constant 0 : index
    %52 = vector.load %arg4[%c5, %c0_44, %c0_45] : memref<9x64x256xbf16, #tpu.memory_space<vmem>>, vector<1x64x256xbf16>
    %53 = vector.shape_cast %52 : vector<1x64x256xbf16> to vector<64x256xbf16>
    %cst_46 = arith.constant dense<0.000000e+00> : vector<64x64xf32>
    %54 = tpu.matmul %53, %10, %cst_46 {dimension_numbers = #tpu.dot_dimension_numbers<[1], [0], [0], [1], [0, 0, 1, 1], [], []>} : vector<64x256xbf16>, vector<256x64xbf16>, vector<64x64xf32> -> vector<64x64xf32>
    %55 = arith.truncf %54 : vector<64x64xf32> to vector<64x64xbf16>
    %c5_47 = arith.constant 5 : index
    %c0_48 = arith.constant 0 : index
    %c0_49 = arith.constant 0 : index
    %56 = vector.load %arg5[%c5_47, %c0_48, %c0_49] : memref<9x64x128xbf16, #tpu.memory_space<vmem>>, vector<1x64x128xbf16>
    %57 = vector.shape_cast %56 : vector<1x64x128xbf16> to vector<64x128xbf16>
    %cst_50 = arith.constant dense<0.000000e+00> : vector<64x128xf32>
    %58 = tpu.matmul %55, %57, %cst_50 {dimension_numbers = #tpu.dot_dimension_numbers<[1], [0], [0], [1], [0, 0, 1, 1], [], []>} : vector<64x64xbf16>, vector<64x128xbf16>, vector<64x128xf32> -> vector<64x128xf32>
    %59 = arith.addf %51, %58 : vector<64x128xf32>
    %c6 = arith.constant 6 : index
    %c0_51 = arith.constant 0 : index
    %c0_52 = arith.constant 0 : index
    %60 = vector.load %arg4[%c6, %c0_51, %c0_52] : memref<9x64x256xbf16, #tpu.memory_space<vmem>>, vector<1x64x256xbf16>
    %61 = vector.shape_cast %60 : vector<1x64x256xbf16> to vector<64x256xbf16>
    %cst_53 = arith.constant dense<0.000000e+00> : vector<64x64xf32>
    %62 = tpu.matmul %61, %10, %cst_53 {dimension_numbers = #tpu.dot_dimension_numbers<[1], [0], [0], [1], [0, 0, 1, 1], [], []>} : vector<64x256xbf16>, vector<256x64xbf16>, vector<64x64xf32> -> vector<64x64xf32>
    %63 = arith.truncf %62 : vector<64x64xf32> to vector<64x64xbf16>
    %c6_54 = arith.constant 6 : index
    %c0_55 = arith.constant 0 : index
    %c0_56 = arith.constant 0 : index
    %64 = vector.load %arg5[%c6_54, %c0_55, %c0_56] : memref<9x64x128xbf16, #tpu.memory_space<vmem>>, vector<1x64x128xbf16>
    %65 = vector.shape_cast %64 : vector<1x64x128xbf16> to vector<64x128xbf16>
    %cst_57 = arith.constant dense<0.000000e+00> : vector<64x128xf32>
    %66 = tpu.matmul %63, %65, %cst_57 {dimension_numbers = #tpu.dot_dimension_numbers<[1], [0], [0], [1], [0, 0, 1, 1], [], []>} : vector<64x64xbf16>, vector<64x128xbf16>, vector<64x128xf32> -> vector<64x128xf32>
    %67 = arith.addf %59, %66 : vector<64x128xf32>
    %c7 = arith.constant 7 : index
    %c0_58 = arith.constant 0 : index
    %c0_59 = arith.constant 0 : index
    %68 = vector.load %arg4[%c7, %c0_58, %c0_59] : memref<9x64x256xbf16, #tpu.memory_space<vmem>>, vector<1x64x256xbf16>
    %69 = vector.shape_cast %68 : vector<1x64x256xbf16> to vector<64x256xbf16>
    %cst_60 = arith.constant dense<0.000000e+00> : vector<64x64xf32>
    %70 = tpu.matmul %69, %10, %cst_60 {dimension_numbers = #tpu.dot_dimension_numbers<[1], [0], [0], [1], [0, 0, 1, 1], [], []>} : vector<64x256xbf16>, vector<256x64xbf16>, vector<64x64xf32> -> vector<64x64xf32>
    %71 = arith.truncf %70 : vector<64x64xf32> to vector<64x64xbf16>
    %c7_61 = arith.constant 7 : index
    %c0_62 = arith.constant 0 : index
    %c0_63 = arith.constant 0 : index
    %72 = vector.load %arg5[%c7_61, %c0_62, %c0_63] : memref<9x64x128xbf16, #tpu.memory_space<vmem>>, vector<1x64x128xbf16>
    %73 = vector.shape_cast %72 : vector<1x64x128xbf16> to vector<64x128xbf16>
    %cst_64 = arith.constant dense<0.000000e+00> : vector<64x128xf32>
    %74 = tpu.matmul %71, %73, %cst_64 {dimension_numbers = #tpu.dot_dimension_numbers<[1], [0], [0], [1], [0, 0, 1, 1], [], []>} : vector<64x64xbf16>, vector<64x128xbf16>, vector<64x128xf32> -> vector<64x128xf32>
    %75 = arith.addf %67, %74 : vector<64x128xf32>
    %c8 = arith.constant 8 : index
    %c0_65 = arith.constant 0 : index
    %c0_66 = arith.constant 0 : index
    %76 = vector.load %arg4[%c8, %c0_65, %c0_66] : memref<9x64x256xbf16, #tpu.memory_space<vmem>>, vector<1x64x256xbf16>
    %77 = vector.shape_cast %76 : vector<1x64x256xbf16> to vector<64x256xbf16>
    %cst_67 = arith.constant dense<0.000000e+00> : vector<64x64xf32>
    %78 = tpu.matmul %77, %10, %cst_67 {dimension_numbers = #tpu.dot_dimension_numbers<[1], [0], [0], [1], [0, 0, 1, 1], [], []>} : vector<64x256xbf16>, vector<256x64xbf16>, vector<64x64xf32> -> vector<64x64xf32>
    %79 = arith.truncf %78 : vector<64x64xf32> to vector<64x64xbf16>
    %c8_68 = arith.constant 8 : index
    %c0_69 = arith.constant 0 : index
    %c0_70 = arith.constant 0 : index
    %80 = vector.load %arg5[%c8_68, %c0_69, %c0_70] : memref<9x64x128xbf16, #tpu.memory_space<vmem>>, vector<1x64x128xbf16>
    %81 = vector.shape_cast %80 : vector<1x64x128xbf16> to vector<64x128xbf16>
    %cst_71 = arith.constant dense<0.000000e+00> : vector<64x128xf32>
    %82 = tpu.matmul %79, %81, %cst_71 {dimension_numbers = #tpu.dot_dimension_numbers<[1], [0], [0], [1], [0, 0, 1, 1], [], []>} : vector<64x64xbf16>, vector<64x128xbf16>, vector<64x128xf32> -> vector<64x128xf32>
    %83 = arith.addf %75, %82 : vector<64x128xf32>
    %c0_72 = arith.constant 0 : index
    %c0_73 = arith.constant 0 : index
    %84 = vector.load %arg6[%c0_72, %c0_73] : memref<1x128xf32, #tpu.memory_space<vmem>>, vector<1x128xf32>
    %85 = vector.broadcast %84 : vector<1x128xf32> to vector<64x128xf32>
    %86 = arith.addf %83, %85 : vector<64x128xf32>
    %cst_74 = arith.constant 2.000000e-01 : f32
    %87 = vector.broadcast %cst_74 : f32 to vector<64x128xf32>
    %88 = arith.mulf %87, %86 : vector<64x128xf32>
    %89 = arith.maximumf %86, %88 : vector<64x128xf32>
    %cst_75 = arith.constant dense<0.000000e+00> : vector<128xf32>
    %90 = vector.multi_reduction <add>, %89, %cst_75 [0] : vector<64x128xf32> to vector<128xf32>
    %91 = vector.shape_cast %90 : vector<128xf32> to vector<1x128xf32>
    %cst_76 = arith.constant 6.400000e+01 : f32
    %92 = vector.broadcast %cst_76 : f32 to vector<1x128xf32>
    %93 = arith.divf %91, %92 : vector<1x128xf32>
    %94 = arith.mulf %89, %89 : vector<64x128xf32>
    %cst_77 = arith.constant dense<0.000000e+00> : vector<128xf32>
    %95 = vector.multi_reduction <add>, %94, %cst_77 [0] : vector<64x128xf32> to vector<128xf32>
    %96 = vector.shape_cast %95 : vector<128xf32> to vector<1x128xf32>
    %cst_78 = arith.constant 6.400000e+01 : f32
    %97 = vector.broadcast %cst_78 : f32 to vector<1x128xf32>
    %98 = arith.divf %96, %97 : vector<1x128xf32>
    %99 = arith.mulf %93, %93 : vector<1x128xf32>
    %100 = arith.subf %98, %99 : vector<1x128xf32>
    %101 = vector.broadcast %93 : vector<1x128xf32> to vector<64x128xf32>
    %102 = arith.subf %89, %101 : vector<64x128xf32>
    %cst_79 = arith.constant 9.99999974E-6 : f32
    %103 = vector.broadcast %cst_79 : f32 to vector<1x128xf32>
    %104 = arith.addf %100, %103 : vector<1x128xf32>
    %105 = math.rsqrt %104 : vector<1x128xf32>
    %106 = vector.broadcast %105 : vector<1x128xf32> to vector<64x128xf32>
    %107 = arith.mulf %102, %106 : vector<64x128xf32>
    %108 = arith.truncf %107 : vector<64x128xf32> to vector<64x128xbf16>
    %cst_80 = arith.constant 0.000000e+00 : f32
    %109 = vector.broadcast %cst_80 : f32 to vector<16x256xf32>
    %c0_81 = arith.constant 0 : index
    %c0_82 = arith.constant 0 : index
    %c0_83 = arith.constant 0 : index
    %110 = vector.load %arg7[%c0_81, %c0_82, %c0_83] : memref<9x16x64xbf16, #tpu.memory_space<vmem>>, vector<1x16x64xbf16>
    %111 = vector.shape_cast %110 : vector<1x16x64xbf16> to vector<16x64xbf16>
    %cst_84 = arith.constant dense<0.000000e+00> : vector<16x128xf32>
    %112 = tpu.matmul %111, %108, %cst_84 {dimension_numbers = #tpu.dot_dimension_numbers<[1], [0], [0], [1], [0, 0, 1, 1], [], []>} : vector<16x64xbf16>, vector<64x128xbf16>, vector<16x128xf32> -> vector<16x128xf32>
    %113 = arith.truncf %112 : vector<16x128xf32> to vector<16x128xbf16>
    %c0_85 = arith.constant 0 : index
    %c0_86 = arith.constant 0 : index
    %c0_87 = arith.constant 0 : index
    %114 = vector.load %arg8[%c0_85, %c0_86, %c0_87] : memref<9x128x256xbf16, #tpu.memory_space<vmem>>, vector<1x128x256xbf16>
    %115 = vector.shape_cast %114 : vector<1x128x256xbf16> to vector<128x256xbf16>
    %cst_88 = arith.constant dense<0.000000e+00> : vector<16x256xf32>
    %116 = tpu.matmul %113, %115, %cst_88 {dimension_numbers = #tpu.dot_dimension_numbers<[1], [0], [0], [1], [0, 0, 1, 1], [], []>} : vector<16x128xbf16>, vector<128x256xbf16>, vector<16x256xf32> -> vector<16x256xf32>
    %117 = arith.addf %109, %116 : vector<16x256xf32>
    %c1_89 = arith.constant 1 : index
    %c0_90 = arith.constant 0 : index
    %c0_91 = arith.constant 0 : index
    %118 = vector.load %arg7[%c1_89, %c0_90, %c0_91] : memref<9x16x64xbf16, #tpu.memory_space<vmem>>, vector<1x16x64xbf16>
    %119 = vector.shape_cast %118 : vector<1x16x64xbf16> to vector<16x64xbf16>
    %cst_92 = arith.constant dense<0.000000e+00> : vector<16x128xf32>
    %120 = tpu.matmul %119, %108, %cst_92 {dimension_numbers = #tpu.dot_dimension_numbers<[1], [0], [0], [1], [0, 0, 1, 1], [], []>} : vector<16x64xbf16>, vector<64x128xbf16>, vector<16x128xf32> -> vector<16x128xf32>
    %121 = arith.truncf %120 : vector<16x128xf32> to vector<16x128xbf16>
    %c1_93 = arith.constant 1 : index
    %c0_94 = arith.constant 0 : index
    %c0_95 = arith.constant 0 : index
    %122 = vector.load %arg8[%c1_93, %c0_94, %c0_95] : memref<9x128x256xbf16, #tpu.memory_space<vmem>>, vector<1x128x256xbf16>
    %123 = vector.shape_cast %122 : vector<1x128x256xbf16> to vector<128x256xbf16>
    %cst_96 = arith.constant dense<0.000000e+00> : vector<16x256xf32>
    %124 = tpu.matmul %121, %123, %cst_96 {dimension_numbers = #tpu.dot_dimension_numbers<[1], [0], [0], [1], [0, 0, 1, 1], [], []>} : vector<16x128xbf16>, vector<128x256xbf16>, vector<16x256xf32> -> vector<16x256xf32>
    %125 = arith.addf %117, %124 : vector<16x256xf32>
    %c2_97 = arith.constant 2 : index
    %c0_98 = arith.constant 0 : index
    %c0_99 = arith.constant 0 : index
    %126 = vector.load %arg7[%c2_97, %c0_98, %c0_99] : memref<9x16x64xbf16, #tpu.memory_space<vmem>>, vector<1x16x64xbf16>
    %127 = vector.shape_cast %126 : vector<1x16x64xbf16> to vector<16x64xbf16>
    %cst_100 = arith.constant dense<0.000000e+00> : vector<16x128xf32>
    %128 = tpu.matmul %127, %108, %cst_100 {dimension_numbers = #tpu.dot_dimension_numbers<[1], [0], [0], [1], [0, 0, 1, 1], [], []>} : vector<16x64xbf16>, vector<64x128xbf16>, vector<16x128xf32> -> vector<16x128xf32>
    %129 = arith.truncf %128 : vector<16x128xf32> to vector<16x128xbf16>
    %c2_101 = arith.constant 2 : index
    %c0_102 = arith.constant 0 : index
    %c0_103 = arith.constant 0 : index
    %130 = vector.load %arg8[%c2_101, %c0_102, %c0_103] : memref<9x128x256xbf16, #tpu.memory_space<vmem>>, vector<1x128x256xbf16>
    %131 = vector.shape_cast %130 : vector<1x128x256xbf16> to vector<128x256xbf16>
    %cst_104 = arith.constant dense<0.000000e+00> : vector<16x256xf32>
    %132 = tpu.matmul %129, %131, %cst_104 {dimension_numbers = #tpu.dot_dimension_numbers<[1], [0], [0], [1], [0, 0, 1, 1], [], []>} : vector<16x128xbf16>, vector<128x256xbf16>, vector<16x256xf32> -> vector<16x256xf32>
    %133 = arith.addf %125, %132 : vector<16x256xf32>
    %c3_105 = arith.constant 3 : index
    %c0_106 = arith.constant 0 : index
    %c0_107 = arith.constant 0 : index
    %134 = vector.load %arg7[%c3_105, %c0_106, %c0_107] : memref<9x16x64xbf16, #tpu.memory_space<vmem>>, vector<1x16x64xbf16>
    %135 = vector.shape_cast %134 : vector<1x16x64xbf16> to vector<16x64xbf16>
    %cst_108 = arith.constant dense<0.000000e+00> : vector<16x128xf32>
    %136 = tpu.matmul %135, %108, %cst_108 {dimension_numbers = #tpu.dot_dimension_numbers<[1], [0], [0], [1], [0, 0, 1, 1], [], []>} : vector<16x64xbf16>, vector<64x128xbf16>, vector<16x128xf32> -> vector<16x128xf32>
    %137 = arith.truncf %136 : vector<16x128xf32> to vector<16x128xbf16>
    %c3_109 = arith.constant 3 : index
    %c0_110 = arith.constant 0 : index
    %c0_111 = arith.constant 0 : index
    %138 = vector.load %arg8[%c3_109, %c0_110, %c0_111] : memref<9x128x256xbf16, #tpu.memory_space<vmem>>, vector<1x128x256xbf16>
    %139 = vector.shape_cast %138 : vector<1x128x256xbf16> to vector<128x256xbf16>
    %cst_112 = arith.constant dense<0.000000e+00> : vector<16x256xf32>
    %140 = tpu.matmul %137, %139, %cst_112 {dimension_numbers = #tpu.dot_dimension_numbers<[1], [0], [0], [1], [0, 0, 1, 1], [], []>} : vector<16x128xbf16>, vector<128x256xbf16>, vector<16x256xf32> -> vector<16x256xf32>
    %141 = arith.addf %133, %140 : vector<16x256xf32>
    %c4_113 = arith.constant 4 : index
    %c0_114 = arith.constant 0 : index
    %c0_115 = arith.constant 0 : index
    %142 = vector.load %arg7[%c4_113, %c0_114, %c0_115] : memref<9x16x64xbf16, #tpu.memory_space<vmem>>, vector<1x16x64xbf16>
    %143 = vector.shape_cast %142 : vector<1x16x64xbf16> to vector<16x64xbf16>
    %cst_116 = arith.constant dense<0.000000e+00> : vector<16x128xf32>
    %144 = tpu.matmul %143, %108, %cst_116 {dimension_numbers = #tpu.dot_dimension_numbers<[1], [0], [0], [1], [0, 0, 1, 1], [], []>} : vector<16x64xbf16>, vector<64x128xbf16>, vector<16x128xf32> -> vector<16x128xf32>
    %145 = arith.truncf %144 : vector<16x128xf32> to vector<16x128xbf16>
    %c4_117 = arith.constant 4 : index
    %c0_118 = arith.constant 0 : index
    %c0_119 = arith.constant 0 : index
    %146 = vector.load %arg8[%c4_117, %c0_118, %c0_119] : memref<9x128x256xbf16, #tpu.memory_space<vmem>>, vector<1x128x256xbf16>
    %147 = vector.shape_cast %146 : vector<1x128x256xbf16> to vector<128x256xbf16>
    %cst_120 = arith.constant dense<0.000000e+00> : vector<16x256xf32>
    %148 = tpu.matmul %145, %147, %cst_120 {dimension_numbers = #tpu.dot_dimension_numbers<[1], [0], [0], [1], [0, 0, 1, 1], [], []>} : vector<16x128xbf16>, vector<128x256xbf16>, vector<16x256xf32> -> vector<16x256xf32>
    %149 = arith.addf %141, %148 : vector<16x256xf32>
    %c5_121 = arith.constant 5 : index
    %c0_122 = arith.constant 0 : index
    %c0_123 = arith.constant 0 : index
    %150 = vector.load %arg7[%c5_121, %c0_122, %c0_123] : memref<9x16x64xbf16, #tpu.memory_space<vmem>>, vector<1x16x64xbf16>
    %151 = vector.shape_cast %150 : vector<1x16x64xbf16> to vector<16x64xbf16>
    %cst_124 = arith.constant dense<0.000000e+00> : vector<16x128xf32>
    %152 = tpu.matmul %151, %108, %cst_124 {dimension_numbers = #tpu.dot_dimension_numbers<[1], [0], [0], [1], [0, 0, 1, 1], [], []>} : vector<16x64xbf16>, vector<64x128xbf16>, vector<16x128xf32> -> vector<16x128xf32>
    %153 = arith.truncf %152 : vector<16x128xf32> to vector<16x128xbf16>
    %c5_125 = arith.constant 5 : index
    %c0_126 = arith.constant 0 : index
    %c0_127 = arith.constant 0 : index
    %154 = vector.load %arg8[%c5_125, %c0_126, %c0_127] : memref<9x128x256xbf16, #tpu.memory_space<vmem>>, vector<1x128x256xbf16>
    %155 = vector.shape_cast %154 : vector<1x128x256xbf16> to vector<128x256xbf16>
    %cst_128 = arith.constant dense<0.000000e+00> : vector<16x256xf32>
    %156 = tpu.matmul %153, %155, %cst_128 {dimension_numbers = #tpu.dot_dimension_numbers<[1], [0], [0], [1], [0, 0, 1, 1], [], []>} : vector<16x128xbf16>, vector<128x256xbf16>, vector<16x256xf32> -> vector<16x256xf32>
    %157 = arith.addf %149, %156 : vector<16x256xf32>
    %c6_129 = arith.constant 6 : index
    %c0_130 = arith.constant 0 : index
    %c0_131 = arith.constant 0 : index
    %158 = vector.load %arg7[%c6_129, %c0_130, %c0_131] : memref<9x16x64xbf16, #tpu.memory_space<vmem>>, vector<1x16x64xbf16>
    %159 = vector.shape_cast %158 : vector<1x16x64xbf16> to vector<16x64xbf16>
    %cst_132 = arith.constant dense<0.000000e+00> : vector<16x128xf32>
    %160 = tpu.matmul %159, %108, %cst_132 {dimension_numbers = #tpu.dot_dimension_numbers<[1], [0], [0], [1], [0, 0, 1, 1], [], []>} : vector<16x64xbf16>, vector<64x128xbf16>, vector<16x128xf32> -> vector<16x128xf32>
    %161 = arith.truncf %160 : vector<16x128xf32> to vector<16x128xbf16>
    %c6_133 = arith.constant 6 : index
    %c0_134 = arith.constant 0 : index
    %c0_135 = arith.constant 0 : index
    %162 = vector.load %arg8[%c6_133, %c0_134, %c0_135] : memref<9x128x256xbf16, #tpu.memory_space<vmem>>, vector<1x128x256xbf16>
    %163 = vector.shape_cast %162 : vector<1x128x256xbf16> to vector<128x256xbf16>
    %cst_136 = arith.constant dense<0.000000e+00> : vector<16x256xf32>
    %164 = tpu.matmul %161, %163, %cst_136 {dimension_numbers = #tpu.dot_dimension_numbers<[1], [0], [0], [1], [0, 0, 1, 1], [], []>} : vector<16x128xbf16>, vector<128x256xbf16>, vector<16x256xf32> -> vector<16x256xf32>
    %165 = arith.addf %157, %164 : vector<16x256xf32>
    %c7_137 = arith.constant 7 : index
    %c0_138 = arith.constant 0 : index
    %c0_139 = arith.constant 0 : index
    %166 = vector.load %arg7[%c7_137, %c0_138, %c0_139] : memref<9x16x64xbf16, #tpu.memory_space<vmem>>, vector<1x16x64xbf16>
    %167 = vector.shape_cast %166 : vector<1x16x64xbf16> to vector<16x64xbf16>
    %cst_140 = arith.constant dense<0.000000e+00> : vector<16x128xf32>
    %168 = tpu.matmul %167, %108, %cst_140 {dimension_numbers = #tpu.dot_dimension_numbers<[1], [0], [0], [1], [0, 0, 1, 1], [], []>} : vector<16x64xbf16>, vector<64x128xbf16>, vector<16x128xf32> -> vector<16x128xf32>
    %169 = arith.truncf %168 : vector<16x128xf32> to vector<16x128xbf16>
    %c7_141 = arith.constant 7 : index
    %c0_142 = arith.constant 0 : index
    %c0_143 = arith.constant 0 : index
    %170 = vector.load %arg8[%c7_141, %c0_142, %c0_143] : memref<9x128x256xbf16, #tpu.memory_space<vmem>>, vector<1x128x256xbf16>
    %171 = vector.shape_cast %170 : vector<1x128x256xbf16> to vector<128x256xbf16>
    %cst_144 = arith.constant dense<0.000000e+00> : vector<16x256xf32>
    %172 = tpu.matmul %169, %171, %cst_144 {dimension_numbers = #tpu.dot_dimension_numbers<[1], [0], [0], [1], [0, 0, 1, 1], [], []>} : vector<16x128xbf16>, vector<128x256xbf16>, vector<16x256xf32> -> vector<16x256xf32>
    %173 = arith.addf %165, %172 : vector<16x256xf32>
    %c8_145 = arith.constant 8 : index
    %c0_146 = arith.constant 0 : index
    %c0_147 = arith.constant 0 : index
    %174 = vector.load %arg7[%c8_145, %c0_146, %c0_147] : memref<9x16x64xbf16, #tpu.memory_space<vmem>>, vector<1x16x64xbf16>
    %175 = vector.shape_cast %174 : vector<1x16x64xbf16> to vector<16x64xbf16>
    %cst_148 = arith.constant dense<0.000000e+00> : vector<16x128xf32>
    %176 = tpu.matmul %175, %108, %cst_148 {dimension_numbers = #tpu.dot_dimension_numbers<[1], [0], [0], [1], [0, 0, 1, 1], [], []>} : vector<16x64xbf16>, vector<64x128xbf16>, vector<16x128xf32> -> vector<16x128xf32>
    %177 = arith.truncf %176 : vector<16x128xf32> to vector<16x128xbf16>
    %c8_149 = arith.constant 8 : index
    %c0_150 = arith.constant 0 : index
    %c0_151 = arith.constant 0 : index
    %178 = vector.load %arg8[%c8_149, %c0_150, %c0_151] : memref<9x128x256xbf16, #tpu.memory_space<vmem>>, vector<1x128x256xbf16>
    %179 = vector.shape_cast %178 : vector<1x128x256xbf16> to vector<128x256xbf16>
    %cst_152 = arith.constant dense<0.000000e+00> : vector<16x256xf32>
    %180 = tpu.matmul %177, %179, %cst_152 {dimension_numbers = #tpu.dot_dimension_numbers<[1], [0], [0], [1], [0, 0, 1, 1], [], []>} : vector<16x128xbf16>, vector<128x256xbf16>, vector<16x256xf32> -> vector<16x256xf32>
    %181 = arith.addf %173, %180 : vector<16x256xf32>
    %c0_153 = arith.constant 0 : index
    %c0_154 = arith.constant 0 : index
    %182 = vector.load %arg9[%c0_153, %c0_154] : memref<1x256xf32, #tpu.memory_space<vmem>>, vector<1x256xf32>
    %183 = vector.broadcast %182 : vector<1x256xf32> to vector<16x256xf32>
    %184 = arith.addf %181, %183 : vector<16x256xf32>
    %cst_155 = arith.constant 2.000000e-01 : f32
    %185 = vector.broadcast %cst_155 : f32 to vector<16x256xf32>
    %186 = arith.mulf %185, %184 : vector<16x256xf32>
    %187 = arith.maximumf %184, %186 : vector<16x256xf32>
    %cst_156 = arith.constant dense<0.000000e+00> : vector<256xf32>
    %188 = vector.multi_reduction <add>, %187, %cst_156 [0] : vector<16x256xf32> to vector<256xf32>
    %189 = vector.shape_cast %188 : vector<256xf32> to vector<1x256xf32>
    %cst_157 = arith.constant 1.600000e+01 : f32
    %190 = vector.broadcast %cst_157 : f32 to vector<1x256xf32>
    %191 = arith.divf %189, %190 : vector<1x256xf32>
    %192 = arith.mulf %187, %187 : vector<16x256xf32>
    %cst_158 = arith.constant dense<0.000000e+00> : vector<256xf32>
    %193 = vector.multi_reduction <add>, %192, %cst_158 [0] : vector<16x256xf32> to vector<256xf32>
    %194 = vector.shape_cast %193 : vector<256xf32> to vector<1x256xf32>
    %cst_159 = arith.constant 1.600000e+01 : f32
    %195 = vector.broadcast %cst_159 : f32 to vector<1x256xf32>
    %196 = arith.divf %194, %195 : vector<1x256xf32>
    %197 = arith.mulf %191, %191 : vector<1x256xf32>
    %198 = arith.subf %196, %197 : vector<1x256xf32>
    %199 = vector.broadcast %191 : vector<1x256xf32> to vector<16x256xf32>
    %200 = arith.subf %187, %199 : vector<16x256xf32>
    %cst_160 = arith.constant 9.99999974E-6 : f32
    %201 = vector.broadcast %cst_160 : f32 to vector<1x256xf32>
    %202 = arith.addf %198, %201 : vector<1x256xf32>
    %203 = math.rsqrt %202 : vector<1x256xf32>
    %204 = vector.broadcast %203 : vector<1x256xf32> to vector<16x256xf32>
    %205 = arith.mulf %200, %204 : vector<16x256xf32>
    %206 = arith.truncf %205 : vector<16x256xf32> to vector<16x256xbf16>
    %cst_161 = arith.constant 0.000000e+00 : f32
    %207 = vector.broadcast %cst_161 : f32 to vector<4x512xf32>
    %c0_162 = arith.constant 0 : index
    %c0_163 = arith.constant 0 : index
    %c0_164 = arith.constant 0 : index
    %208 = vector.load %arg10[%c0_162, %c0_163, %c0_164] : memref<9x4x16xbf16, #tpu.memory_space<vmem>>, vector<1x4x16xbf16>
    %209 = vector.shape_cast %208 : vector<1x4x16xbf16> to vector<4x16xbf16>
    %cst_165 = arith.constant dense<0.000000e+00> : vector<4x256xf32>
    %210 = tpu.matmul %209, %206, %cst_165 {dimension_numbers = #tpu.dot_dimension_numbers<[1], [0], [0], [1], [0, 0, 1, 1], [], []>} : vector<4x16xbf16>, vector<16x256xbf16>, vector<4x256xf32> -> vector<4x256xf32>
    %211 = arith.truncf %210 : vector<4x256xf32> to vector<4x256xbf16>
    %c0_166 = arith.constant 0 : index
    %c0_167 = arith.constant 0 : index
    %c0_168 = arith.constant 0 : index
    %212 = vector.load %arg11[%c0_166, %c0_167, %c0_168] : memref<9x256x512xbf16, #tpu.memory_space<vmem>>, vector<1x256x512xbf16>
    %213 = vector.shape_cast %212 : vector<1x256x512xbf16> to vector<256x512xbf16>
    %cst_169 = arith.constant dense<0.000000e+00> : vector<4x512xf32>
    %214 = tpu.matmul %211, %213, %cst_169 {dimension_numbers = #tpu.dot_dimension_numbers<[1], [0], [0], [1], [0, 0, 1, 1], [], []>} : vector<4x256xbf16>, vector<256x512xbf16>, vector<4x512xf32> -> vector<4x512xf32>
    %215 = arith.addf %207, %214 : vector<4x512xf32>
    %c1_170 = arith.constant 1 : index
    %c0_171 = arith.constant 0 : index
    %c0_172 = arith.constant 0 : index
    %216 = vector.load %arg10[%c1_170, %c0_171, %c0_172] : memref<9x4x16xbf16, #tpu.memory_space<vmem>>, vector<1x4x16xbf16>
    %217 = vector.shape_cast %216 : vector<1x4x16xbf16> to vector<4x16xbf16>
    %cst_173 = arith.constant dense<0.000000e+00> : vector<4x256xf32>
    %218 = tpu.matmul %217, %206, %cst_173 {dimension_numbers = #tpu.dot_dimension_numbers<[1], [0], [0], [1], [0, 0, 1, 1], [], []>} : vector<4x16xbf16>, vector<16x256xbf16>, vector<4x256xf32> -> vector<4x256xf32>
    %219 = arith.truncf %218 : vector<4x256xf32> to vector<4x256xbf16>
    %c1_174 = arith.constant 1 : index
    %c0_175 = arith.constant 0 : index
    %c0_176 = arith.constant 0 : index
    %220 = vector.load %arg11[%c1_174, %c0_175, %c0_176] : memref<9x256x512xbf16, #tpu.memory_space<vmem>>, vector<1x256x512xbf16>
    %221 = vector.shape_cast %220 : vector<1x256x512xbf16> to vector<256x512xbf16>
    %cst_177 = arith.constant dense<0.000000e+00> : vector<4x512xf32>
    %222 = tpu.matmul %219, %221, %cst_177 {dimension_numbers = #tpu.dot_dimension_numbers<[1], [0], [0], [1], [0, 0, 1, 1], [], []>} : vector<4x256xbf16>, vector<256x512xbf16>, vector<4x512xf32> -> vector<4x512xf32>
    %223 = arith.addf %215, %222 : vector<4x512xf32>
    %c2_178 = arith.constant 2 : index
    %c0_179 = arith.constant 0 : index
    %c0_180 = arith.constant 0 : index
    %224 = vector.load %arg10[%c2_178, %c0_179, %c0_180] : memref<9x4x16xbf16, #tpu.memory_space<vmem>>, vector<1x4x16xbf16>
    %225 = vector.shape_cast %224 : vector<1x4x16xbf16> to vector<4x16xbf16>
    %cst_181 = arith.constant dense<0.000000e+00> : vector<4x256xf32>
    %226 = tpu.matmul %225, %206, %cst_181 {dimension_numbers = #tpu.dot_dimension_numbers<[1], [0], [0], [1], [0, 0, 1, 1], [], []>} : vector<4x16xbf16>, vector<16x256xbf16>, vector<4x256xf32> -> vector<4x256xf32>
    %227 = arith.truncf %226 : vector<4x256xf32> to vector<4x256xbf16>
    %c2_182 = arith.constant 2 : index
    %c0_183 = arith.constant 0 : index
    %c0_184 = arith.constant 0 : index
    %228 = vector.load %arg11[%c2_182, %c0_183, %c0_184] : memref<9x256x512xbf16, #tpu.memory_space<vmem>>, vector<1x256x512xbf16>
    %229 = vector.shape_cast %228 : vector<1x256x512xbf16> to vector<256x512xbf16>
    %cst_185 = arith.constant dense<0.000000e+00> : vector<4x512xf32>
    %230 = tpu.matmul %227, %229, %cst_185 {dimension_numbers = #tpu.dot_dimension_numbers<[1], [0], [0], [1], [0, 0, 1, 1], [], []>} : vector<4x256xbf16>, vector<256x512xbf16>, vector<4x512xf32> -> vector<4x512xf32>
    %231 = arith.addf %223, %230 : vector<4x512xf32>
    %c3_186 = arith.constant 3 : index
    %c0_187 = arith.constant 0 : index
    %c0_188 = arith.constant 0 : index
    %232 = vector.load %arg10[%c3_186, %c0_187, %c0_188] : memref<9x4x16xbf16, #tpu.memory_space<vmem>>, vector<1x4x16xbf16>
    %233 = vector.shape_cast %232 : vector<1x4x16xbf16> to vector<4x16xbf16>
    %cst_189 = arith.constant dense<0.000000e+00> : vector<4x256xf32>
    %234 = tpu.matmul %233, %206, %cst_189 {dimension_numbers = #tpu.dot_dimension_numbers<[1], [0], [0], [1], [0, 0, 1, 1], [], []>} : vector<4x16xbf16>, vector<16x256xbf16>, vector<4x256xf32> -> vector<4x256xf32>
    %235 = arith.truncf %234 : vector<4x256xf32> to vector<4x256xbf16>
    %c3_190 = arith.constant 3 : index
    %c0_191 = arith.constant 0 : index
    %c0_192 = arith.constant 0 : index
    %236 = vector.load %arg11[%c3_190, %c0_191, %c0_192] : memref<9x256x512xbf16, #tpu.memory_space<vmem>>, vector<1x256x512xbf16>
    %237 = vector.shape_cast %236 : vector<1x256x512xbf16> to vector<256x512xbf16>
    %cst_193 = arith.constant dense<0.000000e+00> : vector<4x512xf32>
    %238 = tpu.matmul %235, %237, %cst_193 {dimension_numbers = #tpu.dot_dimension_numbers<[1], [0], [0], [1], [0, 0, 1, 1], [], []>} : vector<4x256xbf16>, vector<256x512xbf16>, vector<4x512xf32> -> vector<4x512xf32>
    %239 = arith.addf %231, %238 : vector<4x512xf32>
    %c4_194 = arith.constant 4 : index
    %c0_195 = arith.constant 0 : index
    %c0_196 = arith.constant 0 : index
    %240 = vector.load %arg10[%c4_194, %c0_195, %c0_196] : memref<9x4x16xbf16, #tpu.memory_space<vmem>>, vector<1x4x16xbf16>
    %241 = vector.shape_cast %240 : vector<1x4x16xbf16> to vector<4x16xbf16>
    %cst_197 = arith.constant dense<0.000000e+00> : vector<4x256xf32>
    %242 = tpu.matmul %241, %206, %cst_197 {dimension_numbers = #tpu.dot_dimension_numbers<[1], [0], [0], [1], [0, 0, 1, 1], [], []>} : vector<4x16xbf16>, vector<16x256xbf16>, vector<4x256xf32> -> vector<4x256xf32>
    %243 = arith.truncf %242 : vector<4x256xf32> to vector<4x256xbf16>
    %c4_198 = arith.constant 4 : index
    %c0_199 = arith.constant 0 : index
    %c0_200 = arith.constant 0 : index
    %244 = vector.load %arg11[%c4_198, %c0_199, %c0_200] : memref<9x256x512xbf16, #tpu.memory_space<vmem>>, vector<1x256x512xbf16>
    %245 = vector.shape_cast %244 : vector<1x256x512xbf16> to vector<256x512xbf16>
    %cst_201 = arith.constant dense<0.000000e+00> : vector<4x512xf32>
    %246 = tpu.matmul %243, %245, %cst_201 {dimension_numbers = #tpu.dot_dimension_numbers<[1], [0], [0], [1], [0, 0, 1, 1], [], []>} : vector<4x256xbf16>, vector<256x512xbf16>, vector<4x512xf32> -> vector<4x512xf32>
    %247 = arith.addf %239, %246 : vector<4x512xf32>
    %c5_202 = arith.constant 5 : index
    %c0_203 = arith.constant 0 : index
    %c0_204 = arith.constant 0 : index
    %248 = vector.load %arg10[%c5_202, %c0_203, %c0_204] : memref<9x4x16xbf16, #tpu.memory_space<vmem>>, vector<1x4x16xbf16>
    %249 = vector.shape_cast %248 : vector<1x4x16xbf16> to vector<4x16xbf16>
    %cst_205 = arith.constant dense<0.000000e+00> : vector<4x256xf32>
    %250 = tpu.matmul %249, %206, %cst_205 {dimension_numbers = #tpu.dot_dimension_numbers<[1], [0], [0], [1], [0, 0, 1, 1], [], []>} : vector<4x16xbf16>, vector<16x256xbf16>, vector<4x256xf32> -> vector<4x256xf32>
    %251 = arith.truncf %250 : vector<4x256xf32> to vector<4x256xbf16>
    %c5_206 = arith.constant 5 : index
    %c0_207 = arith.constant 0 : index
    %c0_208 = arith.constant 0 : index
    %252 = vector.load %arg11[%c5_206, %c0_207, %c0_208] : memref<9x256x512xbf16, #tpu.memory_space<vmem>>, vector<1x256x512xbf16>
    %253 = vector.shape_cast %252 : vector<1x256x512xbf16> to vector<256x512xbf16>
    %cst_209 = arith.constant dense<0.000000e+00> : vector<4x512xf32>
    %254 = tpu.matmul %251, %253, %cst_209 {dimension_numbers = #tpu.dot_dimension_numbers<[1], [0], [0], [1], [0, 0, 1, 1], [], []>} : vector<4x256xbf16>, vector<256x512xbf16>, vector<4x512xf32> -> vector<4x512xf32>
    %255 = arith.addf %247, %254 : vector<4x512xf32>
    %c6_210 = arith.constant 6 : index
    %c0_211 = arith.constant 0 : index
    %c0_212 = arith.constant 0 : index
    %256 = vector.load %arg10[%c6_210, %c0_211, %c0_212] : memref<9x4x16xbf16, #tpu.memory_space<vmem>>, vector<1x4x16xbf16>
    %257 = vector.shape_cast %256 : vector<1x4x16xbf16> to vector<4x16xbf16>
    %cst_213 = arith.constant dense<0.000000e+00> : vector<4x256xf32>
    %258 = tpu.matmul %257, %206, %cst_213 {dimension_numbers = #tpu.dot_dimension_numbers<[1], [0], [0], [1], [0, 0, 1, 1], [], []>} : vector<4x16xbf16>, vector<16x256xbf16>, vector<4x256xf32> -> vector<4x256xf32>
    %259 = arith.truncf %258 : vector<4x256xf32> to vector<4x256xbf16>
    %c6_214 = arith.constant 6 : index
    %c0_215 = arith.constant 0 : index
    %c0_216 = arith.constant 0 : index
    %260 = vector.load %arg11[%c6_214, %c0_215, %c0_216] : memref<9x256x512xbf16, #tpu.memory_space<vmem>>, vector<1x256x512xbf16>
    %261 = vector.shape_cast %260 : vector<1x256x512xbf16> to vector<256x512xbf16>
    %cst_217 = arith.constant dense<0.000000e+00> : vector<4x512xf32>
    %262 = tpu.matmul %259, %261, %cst_217 {dimension_numbers = #tpu.dot_dimension_numbers<[1], [0], [0], [1], [0, 0, 1, 1], [], []>} : vector<4x256xbf16>, vector<256x512xbf16>, vector<4x512xf32> -> vector<4x512xf32>
    %263 = arith.addf %255, %262 : vector<4x512xf32>
    %c7_218 = arith.constant 7 : index
    %c0_219 = arith.constant 0 : index
    %c0_220 = arith.constant 0 : index
    %264 = vector.load %arg10[%c7_218, %c0_219, %c0_220] : memref<9x4x16xbf16, #tpu.memory_space<vmem>>, vector<1x4x16xbf16>
    %265 = vector.shape_cast %264 : vector<1x4x16xbf16> to vector<4x16xbf16>
    %cst_221 = arith.constant dense<0.000000e+00> : vector<4x256xf32>
    %266 = tpu.matmul %265, %206, %cst_221 {dimension_numbers = #tpu.dot_dimension_numbers<[1], [0], [0], [1], [0, 0, 1, 1], [], []>} : vector<4x16xbf16>, vector<16x256xbf16>, vector<4x256xf32> -> vector<4x256xf32>
    %267 = arith.truncf %266 : vector<4x256xf32> to vector<4x256xbf16>
    %c7_222 = arith.constant 7 : index
    %c0_223 = arith.constant 0 : index
    %c0_224 = arith.constant 0 : index
    %268 = vector.load %arg11[%c7_222, %c0_223, %c0_224] : memref<9x256x512xbf16, #tpu.memory_space<vmem>>, vector<1x256x512xbf16>
    %269 = vector.shape_cast %268 : vector<1x256x512xbf16> to vector<256x512xbf16>
    %cst_225 = arith.constant dense<0.000000e+00> : vector<4x512xf32>
    %270 = tpu.matmul %267, %269, %cst_225 {dimension_numbers = #tpu.dot_dimension_numbers<[1], [0], [0], [1], [0, 0, 1, 1], [], []>} : vector<4x256xbf16>, vector<256x512xbf16>, vector<4x512xf32> -> vector<4x512xf32>
    %271 = arith.addf %263, %270 : vector<4x512xf32>
    %c8_226 = arith.constant 8 : index
    %c0_227 = arith.constant 0 : index
    %c0_228 = arith.constant 0 : index
    %272 = vector.load %arg10[%c8_226, %c0_227, %c0_228] : memref<9x4x16xbf16, #tpu.memory_space<vmem>>, vector<1x4x16xbf16>
    %273 = vector.shape_cast %272 : vector<1x4x16xbf16> to vector<4x16xbf16>
    %cst_229 = arith.constant dense<0.000000e+00> : vector<4x256xf32>
    %274 = tpu.matmul %273, %206, %cst_229 {dimension_numbers = #tpu.dot_dimension_numbers<[1], [0], [0], [1], [0, 0, 1, 1], [], []>} : vector<4x16xbf16>, vector<16x256xbf16>, vector<4x256xf32> -> vector<4x256xf32>
    %275 = arith.truncf %274 : vector<4x256xf32> to vector<4x256xbf16>
    %c8_230 = arith.constant 8 : index
    %c0_231 = arith.constant 0 : index
    %c0_232 = arith.constant 0 : index
    %276 = vector.load %arg11[%c8_230, %c0_231, %c0_232] : memref<9x256x512xbf16, #tpu.memory_space<vmem>>, vector<1x256x512xbf16>
    %277 = vector.shape_cast %276 : vector<1x256x512xbf16> to vector<256x512xbf16>
    %cst_233 = arith.constant dense<0.000000e+00> : vector<4x512xf32>
    %278 = tpu.matmul %275, %277, %cst_233 {dimension_numbers = #tpu.dot_dimension_numbers<[1], [0], [0], [1], [0, 0, 1, 1], [], []>} : vector<4x256xbf16>, vector<256x512xbf16>, vector<4x512xf32> -> vector<4x512xf32>
    %279 = arith.addf %271, %278 : vector<4x512xf32>
    %c0_234 = arith.constant 0 : index
    %c0_235 = arith.constant 0 : index
    %280 = vector.load %arg12[%c0_234, %c0_235] : memref<1x512xf32, #tpu.memory_space<vmem>>, vector<1x512xf32>
    %281 = vector.broadcast %280 : vector<1x512xf32> to vector<4x512xf32>
    %282 = arith.addf %279, %281 : vector<4x512xf32>
    %cst_236 = arith.constant 2.000000e-01 : f32
    %283 = vector.broadcast %cst_236 : f32 to vector<4x512xf32>
    %284 = arith.mulf %283, %282 : vector<4x512xf32>
    %285 = arith.maximumf %282, %284 : vector<4x512xf32>
    %cst_237 = arith.constant dense<0.000000e+00> : vector<512xf32>
    %286 = vector.multi_reduction <add>, %285, %cst_237 [0] : vector<4x512xf32> to vector<512xf32>
    %287 = vector.shape_cast %286 : vector<512xf32> to vector<1x512xf32>
    %cst_238 = arith.constant 4.000000e+00 : f32
    %288 = vector.broadcast %cst_238 : f32 to vector<1x512xf32>
    %289 = arith.divf %287, %288 : vector<1x512xf32>
    %290 = arith.mulf %285, %285 : vector<4x512xf32>
    %cst_239 = arith.constant dense<0.000000e+00> : vector<512xf32>
    %291 = vector.multi_reduction <add>, %290, %cst_239 [0] : vector<4x512xf32> to vector<512xf32>
    %292 = vector.shape_cast %291 : vector<512xf32> to vector<1x512xf32>
    %cst_240 = arith.constant 4.000000e+00 : f32
    %293 = vector.broadcast %cst_240 : f32 to vector<1x512xf32>
    %294 = arith.divf %292, %293 : vector<1x512xf32>
    %295 = arith.mulf %289, %289 : vector<1x512xf32>
    %296 = arith.subf %294, %295 : vector<1x512xf32>
    %297 = vector.broadcast %289 : vector<1x512xf32> to vector<4x512xf32>
    %298 = arith.subf %285, %297 : vector<4x512xf32>
    %cst_241 = arith.constant 9.99999974E-6 : f32
    %299 = vector.broadcast %cst_241 : f32 to vector<1x512xf32>
    %300 = arith.addf %296, %299 : vector<1x512xf32>
    %301 = math.rsqrt %300 : vector<1x512xf32>
    %302 = vector.broadcast %301 : vector<1x512xf32> to vector<4x512xf32>
    %303 = arith.mulf %298, %302 : vector<4x512xf32>
    %304 = arith.truncf %303 : vector<4x512xf32> to vector<4x512xbf16>
    %cst_242 = arith.constant 0.000000e+00 : f32
    %305 = vector.broadcast %cst_242 : f32 to vector<4x512xf32>
    %c0_243 = arith.constant 0 : index
    %c0_244 = arith.constant 0 : index
    %c0_245 = arith.constant 0 : index
    %306 = vector.load %arg13[%c0_243, %c0_244, %c0_245] : memref<9x4x4xbf16, #tpu.memory_space<vmem>>, vector<1x4x4xbf16>
    %307 = vector.shape_cast %306 : vector<1x4x4xbf16> to vector<4x4xbf16>
    %cst_246 = arith.constant dense<0.000000e+00> : vector<4x512xf32>
    %308 = tpu.matmul %307, %304, %cst_246 {dimension_numbers = #tpu.dot_dimension_numbers<[1], [0], [0], [1], [0, 0, 1, 1], [], []>} : vector<4x4xbf16>, vector<4x512xbf16>, vector<4x512xf32> -> vector<4x512xf32>
    %c0_247 = arith.constant 0 : index
    %c0_248 = arith.constant 0 : index
    %c0_249 = arith.constant 0 : index
    %309 = vector.load %arg14[%c0_247, %c0_248, %c0_249] : memref<9x1x512xbf16, #tpu.memory_space<vmem>>, vector<1x1x512xbf16>
    %310 = vector.shape_cast %309 : vector<1x1x512xbf16> to vector<1x512xbf16>
    %311 = arith.extf %310 : vector<1x512xbf16> to vector<1x512xf32>
    %312 = vector.broadcast %311 : vector<1x512xf32> to vector<4x512xf32>
    %313 = arith.mulf %308, %312 : vector<4x512xf32>
    %314 = arith.addf %305, %313 : vector<4x512xf32>
    %c1_250 = arith.constant 1 : index
    %c0_251 = arith.constant 0 : index
    %c0_252 = arith.constant 0 : index
    %315 = vector.load %arg13[%c1_250, %c0_251, %c0_252] : memref<9x4x4xbf16, #tpu.memory_space<vmem>>, vector<1x4x4xbf16>
    %316 = vector.shape_cast %315 : vector<1x4x4xbf16> to vector<4x4xbf16>
    %cst_253 = arith.constant dense<0.000000e+00> : vector<4x512xf32>
    %317 = tpu.matmul %316, %304, %cst_253 {dimension_numbers = #tpu.dot_dimension_numbers<[1], [0], [0], [1], [0, 0, 1, 1], [], []>} : vector<4x4xbf16>, vector<4x512xbf16>, vector<4x512xf32> -> vector<4x512xf32>
    %c1_254 = arith.constant 1 : index
    %c0_255 = arith.constant 0 : index
    %c0_256 = arith.constant 0 : index
    %318 = vector.load %arg14[%c1_254, %c0_255, %c0_256] : memref<9x1x512xbf16, #tpu.memory_space<vmem>>, vector<1x1x512xbf16>
    %319 = vector.shape_cast %318 : vector<1x1x512xbf16> to vector<1x512xbf16>
    %320 = arith.extf %319 : vector<1x512xbf16> to vector<1x512xf32>
    %321 = vector.broadcast %320 : vector<1x512xf32> to vector<4x512xf32>
    %322 = arith.mulf %317, %321 : vector<4x512xf32>
    %323 = arith.addf %314, %322 : vector<4x512xf32>
    %c2_257 = arith.constant 2 : index
    %c0_258 = arith.constant 0 : index
    %c0_259 = arith.constant 0 : index
    %324 = vector.load %arg13[%c2_257, %c0_258, %c0_259] : memref<9x4x4xbf16, #tpu.memory_space<vmem>>, vector<1x4x4xbf16>
    %325 = vector.shape_cast %324 : vector<1x4x4xbf16> to vector<4x4xbf16>
    %cst_260 = arith.constant dense<0.000000e+00> : vector<4x512xf32>
    %326 = tpu.matmul %325, %304, %cst_260 {dimension_numbers = #tpu.dot_dimension_numbers<[1], [0], [0], [1], [0, 0, 1, 1], [], []>} : vector<4x4xbf16>, vector<4x512xbf16>, vector<4x512xf32> -> vector<4x512xf32>
    %c2_261 = arith.constant 2 : index
    %c0_262 = arith.constant 0 : index
    %c0_263 = arith.constant 0 : index
    %327 = vector.load %arg14[%c2_261, %c0_262, %c0_263] : memref<9x1x512xbf16, #tpu.memory_space<vmem>>, vector<1x1x512xbf16>
    %328 = vector.shape_cast %327 : vector<1x1x512xbf16> to vector<1x512xbf16>
    %329 = arith.extf %328 : vector<1x512xbf16> to vector<1x512xf32>
    %330 = vector.broadcast %329 : vector<1x512xf32> to vector<4x512xf32>
    %331 = arith.mulf %326, %330 : vector<4x512xf32>
    %332 = arith.addf %323, %331 : vector<4x512xf32>
    %c3_264 = arith.constant 3 : index
    %c0_265 = arith.constant 0 : index
    %c0_266 = arith.constant 0 : index
    %333 = vector.load %arg13[%c3_264, %c0_265, %c0_266] : memref<9x4x4xbf16, #tpu.memory_space<vmem>>, vector<1x4x4xbf16>
    %334 = vector.shape_cast %333 : vector<1x4x4xbf16> to vector<4x4xbf16>
    %cst_267 = arith.constant dense<0.000000e+00> : vector<4x512xf32>
    %335 = tpu.matmul %334, %304, %cst_267 {dimension_numbers = #tpu.dot_dimension_numbers<[1], [0], [0], [1], [0, 0, 1, 1], [], []>} : vector<4x4xbf16>, vector<4x512xbf16>, vector<4x512xf32> -> vector<4x512xf32>
    %c3_268 = arith.constant 3 : index
    %c0_269 = arith.constant 0 : index
    %c0_270 = arith.constant 0 : index
    %336 = vector.load %arg14[%c3_268, %c0_269, %c0_270] : memref<9x1x512xbf16, #tpu.memory_space<vmem>>, vector<1x1x512xbf16>
    %337 = vector.shape_cast %336 : vector<1x1x512xbf16> to vector<1x512xbf16>
    %338 = arith.extf %337 : vector<1x512xbf16> to vector<1x512xf32>
    %339 = vector.broadcast %338 : vector<1x512xf32> to vector<4x512xf32>
    %340 = arith.mulf %335, %339 : vector<4x512xf32>
    %341 = arith.addf %332, %340 : vector<4x512xf32>
    %c4_271 = arith.constant 4 : index
    %c0_272 = arith.constant 0 : index
    %c0_273 = arith.constant 0 : index
    %342 = vector.load %arg13[%c4_271, %c0_272, %c0_273] : memref<9x4x4xbf16, #tpu.memory_space<vmem>>, vector<1x4x4xbf16>
    %343 = vector.shape_cast %342 : vector<1x4x4xbf16> to vector<4x4xbf16>
    %cst_274 = arith.constant dense<0.000000e+00> : vector<4x512xf32>
    %344 = tpu.matmul %343, %304, %cst_274 {dimension_numbers = #tpu.dot_dimension_numbers<[1], [0], [0], [1], [0, 0, 1, 1], [], []>} : vector<4x4xbf16>, vector<4x512xbf16>, vector<4x512xf32> -> vector<4x512xf32>
    %c4_275 = arith.constant 4 : index
    %c0_276 = arith.constant 0 : index
    %c0_277 = arith.constant 0 : index
    %345 = vector.load %arg14[%c4_275, %c0_276, %c0_277] : memref<9x1x512xbf16, #tpu.memory_space<vmem>>, vector<1x1x512xbf16>
    %346 = vector.shape_cast %345 : vector<1x1x512xbf16> to vector<1x512xbf16>
    %347 = arith.extf %346 : vector<1x512xbf16> to vector<1x512xf32>
    %348 = vector.broadcast %347 : vector<1x512xf32> to vector<4x512xf32>
    %349 = arith.mulf %344, %348 : vector<4x512xf32>
    %350 = arith.addf %341, %349 : vector<4x512xf32>
    %c5_278 = arith.constant 5 : index
    %c0_279 = arith.constant 0 : index
    %c0_280 = arith.constant 0 : index
    %351 = vector.load %arg13[%c5_278, %c0_279, %c0_280] : memref<9x4x4xbf16, #tpu.memory_space<vmem>>, vector<1x4x4xbf16>
    %352 = vector.shape_cast %351 : vector<1x4x4xbf16> to vector<4x4xbf16>
    %cst_281 = arith.constant dense<0.000000e+00> : vector<4x512xf32>
    %353 = tpu.matmul %352, %304, %cst_281 {dimension_numbers = #tpu.dot_dimension_numbers<[1], [0], [0], [1], [0, 0, 1, 1], [], []>} : vector<4x4xbf16>, vector<4x512xbf16>, vector<4x512xf32> -> vector<4x512xf32>
    %c5_282 = arith.constant 5 : index
    %c0_283 = arith.constant 0 : index
    %c0_284 = arith.constant 0 : index
    %354 = vector.load %arg14[%c5_282, %c0_283, %c0_284] : memref<9x1x512xbf16, #tpu.memory_space<vmem>>, vector<1x1x512xbf16>
    %355 = vector.shape_cast %354 : vector<1x1x512xbf16> to vector<1x512xbf16>
    %356 = arith.extf %355 : vector<1x512xbf16> to vector<1x512xf32>
    %357 = vector.broadcast %356 : vector<1x512xf32> to vector<4x512xf32>
    %358 = arith.mulf %353, %357 : vector<4x512xf32>
    %359 = arith.addf %350, %358 : vector<4x512xf32>
    %c6_285 = arith.constant 6 : index
    %c0_286 = arith.constant 0 : index
    %c0_287 = arith.constant 0 : index
    %360 = vector.load %arg13[%c6_285, %c0_286, %c0_287] : memref<9x4x4xbf16, #tpu.memory_space<vmem>>, vector<1x4x4xbf16>
    %361 = vector.shape_cast %360 : vector<1x4x4xbf16> to vector<4x4xbf16>
    %cst_288 = arith.constant dense<0.000000e+00> : vector<4x512xf32>
    %362 = tpu.matmul %361, %304, %cst_288 {dimension_numbers = #tpu.dot_dimension_numbers<[1], [0], [0], [1], [0, 0, 1, 1], [], []>} : vector<4x4xbf16>, vector<4x512xbf16>, vector<4x512xf32> -> vector<4x512xf32>
    %c6_289 = arith.constant 6 : index
    %c0_290 = arith.constant 0 : index
    %c0_291 = arith.constant 0 : index
    %363 = vector.load %arg14[%c6_289, %c0_290, %c0_291] : memref<9x1x512xbf16, #tpu.memory_space<vmem>>, vector<1x1x512xbf16>
    %364 = vector.shape_cast %363 : vector<1x1x512xbf16> to vector<1x512xbf16>
    %365 = arith.extf %364 : vector<1x512xbf16> to vector<1x512xf32>
    %366 = vector.broadcast %365 : vector<1x512xf32> to vector<4x512xf32>
    %367 = arith.mulf %362, %366 : vector<4x512xf32>
    %368 = arith.addf %359, %367 : vector<4x512xf32>
    %c7_292 = arith.constant 7 : index
    %c0_293 = arith.constant 0 : index
    %c0_294 = arith.constant 0 : index
    %369 = vector.load %arg13[%c7_292, %c0_293, %c0_294] : memref<9x4x4xbf16, #tpu.memory_space<vmem>>, vector<1x4x4xbf16>
    %370 = vector.shape_cast %369 : vector<1x4x4xbf16> to vector<4x4xbf16>
    %cst_295 = arith.constant dense<0.000000e+00> : vector<4x512xf32>
    %371 = tpu.matmul %370, %304, %cst_295 {dimension_numbers = #tpu.dot_dimension_numbers<[1], [0], [0], [1], [0, 0, 1, 1], [], []>} : vector<4x4xbf16>, vector<4x512xbf16>, vector<4x512xf32> -> vector<4x512xf32>
    %c7_296 = arith.constant 7 : index
    %c0_297 = arith.constant 0 : index
    %c0_298 = arith.constant 0 : index
    %372 = vector.load %arg14[%c7_296, %c0_297, %c0_298] : memref<9x1x512xbf16, #tpu.memory_space<vmem>>, vector<1x1x512xbf16>
    %373 = vector.shape_cast %372 : vector<1x1x512xbf16> to vector<1x512xbf16>
    %374 = arith.extf %373 : vector<1x512xbf16> to vector<1x512xf32>
    %375 = vector.broadcast %374 : vector<1x512xf32> to vector<4x512xf32>
    %376 = arith.mulf %371, %375 : vector<4x512xf32>
    %377 = arith.addf %368, %376 : vector<4x512xf32>
    %c8_299 = arith.constant 8 : index
    %c0_300 = arith.constant 0 : index
    %c0_301 = arith.constant 0 : index
    %378 = vector.load %arg13[%c8_299, %c0_300, %c0_301] : memref<9x4x4xbf16, #tpu.memory_space<vmem>>, vector<1x4x4xbf16>
    %379 = vector.shape_cast %378 : vector<1x4x4xbf16> to vector<4x4xbf16>
    %cst_302 = arith.constant dense<0.000000e+00> : vector<4x512xf32>
    %380 = tpu.matmul %379, %304, %cst_302 {dimension_numbers = #tpu.dot_dimension_numbers<[1], [0], [0], [1], [0, 0, 1, 1], [], []>} : vector<4x4xbf16>, vector<4x512xbf16>, vector<4x512xf32> -> vector<4x512xf32>
    %c8_303 = arith.constant 8 : index
    %c0_304 = arith.constant 0 : index
    %c0_305 = arith.constant 0 : index
    %381 = vector.load %arg14[%c8_303, %c0_304, %c0_305] : memref<9x1x512xbf16, #tpu.memory_space<vmem>>, vector<1x1x512xbf16>
    %382 = vector.shape_cast %381 : vector<1x1x512xbf16> to vector<1x512xbf16>
    %383 = arith.extf %382 : vector<1x512xbf16> to vector<1x512xf32>
    %384 = vector.broadcast %383 : vector<1x512xf32> to vector<4x512xf32>
    %385 = arith.mulf %380, %384 : vector<4x512xf32>
    %386 = arith.addf %377, %385 : vector<4x512xf32>
    %cst_306 = arith.constant dense<0.000000e+00> : vector<4xf32>
    %387 = vector.multi_reduction <add>, %386, %cst_306 [1] : vector<4x512xf32> to vector<4xf32>
    %388 = vector.shape_cast %387 : vector<4xf32> to vector<4x1xf32>
    %c0_307 = arith.constant 0 : index
    %c0_308 = arith.constant 0 : index
    %389 = vector.load %arg15[%c0_307, %c0_308] : memref<1x1xf32, #tpu.memory_space<vmem>>, vector<1x1xf32>
    %390 = vector.broadcast %389 : vector<1x1xf32> to vector<4x1xf32>
    %391 = arith.addf %388, %390 : vector<4x1xf32>
    %c0_309 = arith.constant 0 : index
    %c0_310 = arith.constant 0 : index
    %c0_311 = arith.constant 0 : index
    %392 = vector.load %arg16[%c0_309, %c0_310, %c0_311] : memref<1x4x1xf32, #tpu.memory_space<vmem>>, vector<1x4x1xf32>
    %393 = vector.shape_cast %392 : vector<1x4x1xf32> to vector<4x1xf32>
    %394 = vector.shape_cast %391 : vector<4x1xf32> to vector<1x4x1xf32>
    tpu.vector_store %arg16[%c0_309, %c0_310, %c0_311], %394 {strides = array<i32>} : memref<1x4x1xf32, #tpu.memory_space<vmem>>, vector<1x4x1xf32>,
    return
  }
  func.func @transform_0(%arg0: i32) -> (i32, i32, i32) {
    %c0_i32 = arith.constant 0 : i32
    %c0_i32_0 = arith.constant 0 : i32
    %c0_i32_1 = arith.constant 0 : i32
    return %arg0, %c0_i32, %c0_i32_0 : i32, i32, i32
  }
  func.func @transform_1(%arg0: i32) -> (i32, i32) {
    %c0_i32 = arith.constant 0 : i32
    %c0_i32_0 = arith.constant 0 : i32
    %c0_i32_1 = arith.constant 0 : i32
    return %c0_i32, %c0_i32_0 : i32, i32
  }
  func.func @transform_2(%arg0: i32) -> (i32, i32) {
    %c0_i32 = arith.constant 0 : i32
    %c0_i32_0 = arith.constant 0 : i32
    %c0_i32_1 = arith.constant 0 : i32
    return %c0_i32, %c0_i32_0 : i32, i32
  }
  func.func @transform_3(%arg0: i32) -> (i32, i32, i32) {
    %c0_i32 = arith.constant 0 : i32
    %c0_i32_0 = arith.constant 0 : i32
    %c0_i32_1 = arith.constant 0 : i32
    %c0_i32_2 = arith.constant 0 : i32
    return %c0_i32, %c0_i32_0, %c0_i32_1 : i32, i32, i32
  }
  func.func @transform_4(%arg0: i32) -> (i32, i32, i32) {
    %c0_i32 = arith.constant 0 : i32
    %c0_i32_0 = arith.constant 0 : i32
    %c0_i32_1 = arith.constant 0 : i32
    %c0_i32_2 = arith.constant 0 : i32
    return %c0_i32, %c0_i32_0, %c0_i32_1 : i32, i32, i32
  }
  func.func @transform_5(%arg0: i32) -> (i32, i32) {
    %c0_i32 = arith.constant 0 : i32
    %c0_i32_0 = arith.constant 0 : i32
    %c0_i32_1 = arith.constant 0 : i32
    return %c0_i32, %c0_i32_0 : i32, i32
  }
  func.func @transform_6(%arg0: i32) -> (i32, i32, i32) {
    %c0_i32 = arith.constant 0 : i32
    %c0_i32_0 = arith.constant 0 : i32
    %c0_i32_1 = arith.constant 0 : i32
    %c0_i32_2 = arith.constant 0 : i32
    return %c0_i32, %c0_i32_0, %c0_i32_1 : i32, i32, i32
  }
  func.func @transform_7(%arg0: i32) -> (i32, i32, i32) {
    %c0_i32 = arith.constant 0 : i32
    %c0_i32_0 = arith.constant 0 : i32
    %c0_i32_1 = arith.constant 0 : i32
    %c0_i32_2 = arith.constant 0 : i32
    return %c0_i32, %c0_i32_0, %c0_i32_1 : i32, i32, i32
  }
  func.func @transform_8(%arg0: i32) -> (i32, i32) {
    %c0_i32 = arith.constant 0 : i32
    %c0_i32_0 = arith.constant 0 : i32
    %c0_i32_1 = arith.constant 0 : i32
    return %c0_i32, %c0_i32_0 : i32, i32
  }
  func.func @transform_9(%arg0: i32) -> (i32, i32, i32) {
    %c0_i32 = arith.constant 0 : i32
    %c0_i32_0 = arith.constant 0 : i32
    %c0_i32_1 = arith.constant 0 : i32
    %c0_i32_2 = arith.constant 0 : i32
    return %c0_i32, %c0_i32_0, %c0_i32_1 : i32, i32, i32
  }
  func.func @transform_10(%arg0: i32) -> (i32, i32, i32) {
    %c0_i32 = arith.constant 0 : i32
    %c0_i32_0 = arith.constant 0 : i32
    %c0_i32_1 = arith.constant 0 : i32
    %c0_i32_2 = arith.constant 0 : i32
    return %c0_i32, %c0_i32_0, %c0_i32_1 : i32, i32, i32
  }
  func.func @transform_11(%arg0: i32) -> (i32, i32) {
    %c0_i32 = arith.constant 0 : i32
    %c0_i32_0 = arith.constant 0 : i32
    %c0_i32_1 = arith.constant 0 : i32
    return %c0_i32, %c0_i32_0 : i32, i32
  }
  func.func @transform_12(%arg0: i32) -> (i32, i32, i32) {
    %c0_i32 = arith.constant 0 : i32
    %c0_i32_0 = arith.constant 0 : i32
    %c0_i32_1 = arith.constant 0 : i32
    %c0_i32_2 = arith.constant 0 : i32
    return %c0_i32, %c0_i32_0, %c0_i32_1 : i32, i32, i32
  }
  func.func @transform_13(%arg0: i32) -> (i32, i32, i32) {
    %c0_i32 = arith.constant 0 : i32
    %c0_i32_0 = arith.constant 0 : i32
    %c0_i32_1 = arith.constant 0 : i32
    %c0_i32_2 = arith.constant 0 : i32
    return %c0_i32, %c0_i32_0, %c0_i32_1 : i32, i32, i32
  }
  func.func @transform_14(%arg0: i32) -> (i32, i32) {
    %c0_i32 = arith.constant 0 : i32
    %c0_i32_0 = arith.constant 0 : i32
    %c0_i32_1 = arith.constant 0 : i32
    return %c0_i32, %c0_i32_0 : i32, i32
  }
  func.func @transform_15(%arg0: i32) -> (i32, i32, i32) {
    %c0_i32 = arith.constant 0 : i32
    %c0_i32_0 = arith.constant 0 : i32
    %c0_i32_1 = arith.constant 0 : i32
    return %arg0, %c0_i32, %c0_i32_0 : i32, i32, i32
  }
}

</mosaic_0001>

<bundles_post_ra>
// kernel: discriminator_forward.1
= control target key start
LH: loop header
LB: loop body
LE: loop exit
PB: predicated region body
PF: predicated region fallthrough
CT: control target
= control target key end

     0   :  { %s14999_s20 = smov 0   ;;  %s18731_s0 = inlined_call_operand.vmem [shape: bf16[2,256,27], index: 0, kind: input, shape index: {}]   ;;  %s18732_s1 = inlined_call_operand.vmem [shape: bf16[27,64], index: 1, kind: input, shape index: {}]   ;;  %s18733_s2 = inlined_call_operand.vmem [shape: f32[1,64], index: 2, kind: input, shape index: {}]   ;;  %s18734_s3 = inlined_call_operand.vmem [shape: bf16[9,64,256], index: 3, kind: input, shape index: {}]   ;;  %s18735_s4 = inlined_call_operand.vmem [shape: bf16[9,64,128], index: 4, kind: input, shape index: {}]   ;;  %s18736_s5 = inlined_call_operand.vmem [shape: f32[1,128], index: 5, kind: input, shape index: {}]   ;;  %s18737_s6 = inlined_call_operand.vmem [shape: bf16[9,16,64], index: 6, kind: input, shape index: {}]   ;;  %s18738_s7 = inlined_call_operand.vmem [shape: bf16[9,128,256], index: 7, kind: input, shape index: {}]   ;;  %s18739_s8 = inlined_call_operand.vmem [shape: f32[1,256], index: 8, kind: input, shape index: {}]   ;;  %s18740_s9 = inlined_call_operand.vmem [shape: bf16[9,4,16], index: 9, kind: input, shape index: {}]   ;;  %s18741_s10 = inlined_call_operand.vmem [shape: bf16[9,256,512], index: 10, kind: input, shape index: {}]   ;;  %s18742_s11 = inlined_call_operand.vmem [shape: f32[1,512], index: 11, kind: input, shape index: {}]   ;;  %s18743_s12 = inlined_call_operand.vmem [shape: bf16[9,4,4], index: 12, kind: input, shape index: {}]   ;;  %s18744_s13 = inlined_call_operand.vmem [shape: bf16[9,1,512], index: 13, kind: input, shape index: {}]   ;;  %s18745_s14 = inlined_call_operand.<no memory space> [shape: f32[1,1], index: 14, kind: input, shape index: {}]   ;;  %s18746_s15 = inlined_call_operand.vmem [shape: f32[2,4,1], index: 15, kind: output, shape index: {}]  }
   0x1   :  { %v20_v0 = vstv %s18745_s14 }
   0x2   :  { %21 = vst [vmem:[#allocation2] sm:$0x1] %v20_v0 }
   0x3 LB: > { %s11061_s21 = sadd.s32 4294967295, %s14910_s20   ;;  %p11065_p0 = scmp.ge.s32.totalorder %s14910_s20, 1  ;;  %s14910_s20 = sphi %s14999_s20, %s27_s20  }
   0x4   : > { %p439_p1 = scmp.lt.s32.totalorder %s14910_s20, 3 }
   0x6   : > { %p440_p2 = pnand %p11065_p0, %p439_p1 }
   0x8   : > { %443 = sbr.rel (%p440_p2) target bundleno = 5384 (0x1508), region = 80 }
   0xd   : > { %v13639_v1 = vld [vmem:[%s18732_s1 + $0x8] sm:$0x3f]   ;;  %vm679_vm0 = vcmask 1044480   ;;  %vm680_vm1 = vcmask 1045504   ;;  %v14912_v2 = vmov 65535   ;;  %v13640_v4 = vld [vmem:[%s18732_s1] sm:$0xff]  }
   0xe   : > { %v681_v3 = vsel %vm679_vm0, 4294967295, %v14912_v2  ;;  %p486_p3 = scmp.lt.s32.totalorder %s11061_s21, 1  ;;  %vm630_vm2 = vcmask 220160   ;;  %v13659_v23 = vld [vmem:[%s18734_s3 + $0x4] ss:$8 sps:$4 sm:$0xff]   ;;  %vm1203_vm3 = vcmask 523264  }
   0xf   : > { %v682_v5 = vsel %vm680_vm1, %v681_v3, 0  ;;  %1007 = vmatprep.mubr.bf16.mxu1 %v13659_v23  ;;  %v15059_v24 = vld [vmem:[%s18733_s2] ss:$0 sm:$0xff]  ;;  %vm14914_vm4 = vmmov 0   ;;  %vm4969_vm5 = vcmask 130048   ;;  %vm9664_vm6 = vcmask 1043456  }
  0x10   : > { %v684_v6 = vand.u32 %v13639_v1, %v682_v5  ;;  %s18764_s21 = smov (!%p486_p3, %s11061_s21), 1  ;;  %vm9767_vm7 = vcmask 1041408   ;;  %vm9763_vm8 = vcmask 31744   ;;  %vm11006_vm9 = vcmask 3072  }
  0x11   : > { %s12843_s25 = sshll.u32 %s18764_s21, 7  ;;  %s11068_s22 = sshll.u32 %s18764_s21, 2 }
  0x12   : > { %13339 = vmatprep.subr.bf16.mxu0 %v684_v6  ;;  %s15019_s28 = scalar_lea.vmem %s18731_s0, %s12843_s25  ;;  %s494_s24 = scalar_lea.vmem %s18746_s15, %s11068_s22 }
  0x13   : > { %13340 = vmatpush3.bf16.msra.mxu0 %v684_v6  ;;  %v13641_v7 = vld [vmem:[%s15019_s28] sm:$0xff]   ;;  %v13642_v8 = vld [vmem:[%s15019_s28 + $0x8] sm:$0xff]   ;;  %v13643_v9 = vld [vmem:[%s15019_s28 + $0x10] sm:$0xff]  }
  0x14   : > { %13341 = vmatprep.subr.bf16.mxu0 %v13640_v4  ;;  %13343 = vmatprep.mubr.msk.bf16.mxu0 %vm630_vm2, %v13641_v7  ;;  %v13644_v10 = vld [vmem:[%s15019_s28 + $0x18] sm:$0xff]   ;;  %v13645_v11 = vld [vmem:[%s15019_s28 + $0x20] sm:$0xff]   ;;  %v13646_v12 = vld [vmem:[%s15019_s28 + $0x28] sm:$0xff]  }
  0x15   : > { %v13647_v13 = vld [vmem:[%s15019_s28 + $0x30] sm:$0xff]   ;;  %v13648_v14 = vld [vmem:[%s15019_s28 + $0x38] sm:$0xff]   ;;  %v13649_v15 = vld [vmem:[%s15019_s28 + $0x40] sm:$0xff]  }
  0x16   : > { %v13650_v16 = vld [vmem:[%s15019_s28 + $0x48] sm:$0xff]   ;;  %v13651_v17 = vld [vmem:[%s15019_s28 + $0x50] sm:$0xff]   ;;  %v13652_v18 = vld [vmem:[%s15019_s28 + $0x58] sm:$0xff]  }
  0x17   : > { %13342 = vmatpush3.bf16.msra.mxu0 %v13640_v4  ;;  %v13653_v19 = vld [vmem:[%s15019_s28 + $0x60] sm:$0xff]   ;;  %v13654_v20 = vld [vmem:[%s15019_s28 + $0x68] sm:$0xff]   ;;  %v13655_v21 = vld [vmem:[%s15019_s28 + $0x70] sm:$0xff]  }
  0x18   : > { %v13656_v22 = vld [vmem:[%s15019_s28 + $0x78] sm:$0xff]  }
  0x1a   : > { %13344 = vmatmul.mubr.msk.bf16.vlgmr.msra.gmra.mxu0 %vm630_vm2, %v13642_v8 }
  0x1b   : > { %13347 = vmatprep.mubr.msk.bf16.mxu0 %vm630_vm2, %v13643_v9 }
  0x22   : > { %13348 = vmatmul.mubr.msk.bf16.gmra.mxu0 %vm630_vm2, %v13644_v10 }
  0x23   : > { %13351 = vmatprep.mubr.msk.bf16.mxu0 %vm630_vm2, %v13645_v11 }
  0x2a   : > { %13352 = vmatmul.mubr.msk.bf16.gmra.mxu0 %vm630_vm2, %v13646_v12 }
  0x2b   : > { %13355 = vmatprep.mubr.msk.bf16.mxu0 %vm630_vm2, %v13647_v13 }
  0x32   : > { %13356 = vmatmul.mubr.msk.bf16.gmra.mxu0 %vm630_vm2, %v13648_v14 }
  0x33   : > { %13359 = vmatprep.mubr.msk.bf16.mxu0 %vm630_vm2, %v13649_v15 }
  0x3a   : > { %13360 = vmatmul.mubr.msk.bf16.gmra.mxu0 %vm630_vm2, %v13650_v16 }
  0x3b   : > { %13363 = vmatprep.mubr.msk.bf16.mxu0 %vm630_vm2, %v13651_v17 }
  0x42   : > { %13364 = vmatmul.mubr.msk.bf16.gmra.mxu0 %vm630_vm2, %v13652_v18 }
  0x43   : > { %13367 = vmatprep.mubr.msk.bf16.mxu0 %vm630_vm2, %v13653_v19 }
  0x4a   : > { %13368 = vmatmul.mubr.msk.bf16.gmra.mxu0 %vm630_vm2, %v13654_v20 }
  0x4b   : > { %13371 = vmatprep.mubr.msk.bf16.mxu0 %vm630_vm2, %v13655_v21 }
  0x52   : > { %13372 = vmatmul.mubr.msk.bf16.gmra.mxu0 %vm630_vm2, %v13656_v22 }
  0xda   : > { %v13345_v25 = vpop.f32.mrf.mxu0 }
  0xdb   : > { %v729_v26 = vadd.f32 %v13345_v25, %v15059_v24 }
  0xdc   : > { %v15062_v27 = vpop.f32.mrf.mxu0 }
  0xdd   : > { %v849_v29 = vmul.f32 0.2, %v729_v26 }
  0xde   : > { %v13346_v28 = vpop.f32.mrf.mxu0 }
  0xdf   : > { %v732_v30 = vadd.f32 %v13346_v28, %v15059_v24  ;;  %v881_v34 = vmax.f32 %v729_v26, %v849_v29 }
  0xe0   : > { %v15065_v31 = vpop.f32.mrf.mxu0 }
  0xe1   : > { %v850_v32 = vmul.f32 0.2, %v732_v30 }
  0xe2   : > { %v13349_v33 = vpop.f32.mrf.mxu0 }
  0xe3   : > { %v882_v35 = vmax.f32 %v732_v30, %v850_v32  ;;  %v745_v36 = vadd.f32 %v13349_v33, %v15059_v24 }
  0xe4   : > { %v15068_v37 = vpop.f32.mrf.mxu0 }
  0xe5   : > { %v15070_v38 = vpack.c.bf16 %v882_v35, %v881_v34  ;;  %v853_v40 = vmul.f32 0.2, %v745_v36 }
  0xe6   : > { %v13350_v39 = vpop.f32.mrf.mxu0 }
  0xe7   : > { %v748_v41 = vadd.f32 %v13350_v39, %v15059_v24  ;;  %v885_v45 = vmax.f32 %v745_v36, %v853_v40 }
  0xe8   : > { %v15073_v42 = vpop.f32.mrf.mxu0 }
  0xe9   : > { %v854_v43 = vmul.f32 0.2, %v748_v41 }
  0xea   : > { %v13353_v44 = vpop.f32.mrf.mxu0 }
  0xeb   : > { %v886_v46 = vmax.f32 %v748_v41, %v854_v43  ;;  %v761_v33 = vadd.f32 %v13353_v44, %v15059_v24 }
  0xec   : > { %v15075_v47 = vpop.f32.mrf.mxu0 }
  0xed   : > { %v15077_v48 = vpack.c.bf16 %v886_v46, %v885_v45 }
  0xee   : > { %v13354_v49 = vpop.f32.mrf.mxu0 }
  0xef   : > { %v764_v23 = vadd.f32 %v13354_v49, %v15059_v24 }
  0xf0   : > { %v755_v50 = vpop.f32.mrf.mxu0 }
  0xf1   : > { %v858_v45 = vmul.f32 0.2, %v764_v23  ;;  %v756_v46 = vadd.f32 %v15059_v24, %v755_v50 }
  0xf2   : > { %v13357_v51 = vpop.f32.mrf.mxu0 }
  0xf3   : > { %v777_v3 = vadd.f32 %v13357_v51, %v15059_v24 }
  0xf4   : > { %v768_v52 = vpop.f32.mrf.mxu0 }
  0xf5   : > { %v861_v9 = vmul.f32 0.2, %v777_v3  ;;  %v769_v17 = vadd.f32 %v15059_v24, %v768_v52 }
  0xf6   : > { %v13358_v53 = vpop.f32.mrf.mxu0 }
  0xf7   : > { %v780_v4 = vadd.f32 %v13358_v53, %v15059_v24  ;;  %v893_v34 = vmax.f32 %v777_v3, %v861_v9  ;;  %v859_v35 = vmul.f32 0.2, %v769_v17 }
  0xf8   : > { %v771_v54 = vpop.f32.mrf.mxu0 }
  0xf9   : > { %v772_v5 = vadd.f32 %v15059_v24, %v771_v54  ;;  %v862_v10 = vmul.f32 0.2, %v780_v4 }
  0xfa   : > { %v15079_v55 = vpop.f32.mrf.mxu0 }
  0xfb   : > { %v860_v12 = vmul.f32 0.2, %v772_v5  ;;  %v894_v25 = vmax.f32 %v780_v4, %v862_v10  ;;  %v856_v4 = vmul.f32 0.2, %v756_v46 }
  0xfc   : > { %v15081_v56 = vpop.f32.mrf.mxu0 }
  0xfd   : > { %v15106_v49 = vpack.c.bf16 %v894_v25, %v893_v34  ;;  %v892_v51 = vmax.f32 %v772_v5, %v860_v12 }
  0xfe   : > { %v15083_v57 = vpop.f32.mrf.mxu0 }
 0x100   : > { %v15085_v58 = vpop.f32.mrf.mxu0 }
 0x101   : > { %v788_v25 = vadd.f32 %v15059_v24, %v15085_v58 }
 0x102   : > { %v13365_v59 = vpop.f32.mrf.mxu0 }
 0x103   : > { %v809_v50 = vadd.f32 %v13365_v59, %v15059_v24 }
 0x104   : > { %v15087_v60 = vpop.f32.mrf.mxu0 }
 0x105   : > { %v801_v59 = vadd.f32 %v15059_v24, %v15087_v60 }
 0x106   : > { %v13366_v61 = vpop.f32.mrf.mxu0 }
 0x107   : > { %v812_v52 = vadd.f32 %v13366_v61, %v15059_v24  ;;  %v890_v61 = vmax.f32 %v764_v23, %v858_v45 }
 0x108   : > { %v803_v62 = vpop.f32.mrf.mxu0 }
 0x10a   : > { %v13369_v63 = vpop.f32.mrf.mxu0 }
 0x10b   : > { %v825_v18 = vadd.f32 %v13369_v63, %v15059_v24  ;;  %v857_v63 = vmul.f32 0.2, %v761_v33 }
 0x10c   : > { %v816_v0 = vpop.f32.mrf.mxu0 }
 0x10d   : > { %v873_v36 = vmul.f32 0.2, %v825_v18  ;;  %v817_v39 = vadd.f32 %v15059_v24, %v816_v0  ;;  %v753_v0 = vadd.f32 %v15059_v24, %v15075_v47  ;;  %v889_v47 = vmax.f32 %v761_v33, %v857_v63 }
 0x10e   : > { %v13370_v1 = vpop.f32.mrf.mxu0 }
 0x10f   : > { %v828_v13 = vadd.f32 %v13370_v1, %v15059_v24  ;;  %v891_v1 = vmax.f32 %v769_v17, %v859_v35  ;;  %v871_v3 = vmul.f32 0.2, %v817_v39  ;;  %v855_v10 = vmul.f32 0.2, %v753_v0 }
 0x110   : > { %v819_v2 = vpop.f32.mrf.mxu0  ;;  %v864_v35 = vmul.f32 0.2, %v788_v25 }
 0x111   : > { %v874_v26 = vmul.f32 0.2, %v828_v13  ;;  %v820_v28 = vadd.f32 %v15059_v24, %v819_v2  ;;  %v905_v2 = vmax.f32 %v825_v18, %v873_v36  ;;  %v15117_v5 = vpack.c.bf16 %v892_v51, %v891_v1  ;;  %v13662_v1 = vld [vmem:[%s18734_s3 + $0x10] ss:$8 sps:$4 sm:$0xff]  }
 0x112   : > { %v13373_v6 = vpop.f32.mrf.mxu0  ;;  %v903_v12 = vmax.f32 %v817_v39, %v871_v3  ;;  %v887_v60 = vmax.f32 %v753_v0, %v855_v10  ;;  %v721_v36 = vadd.f32 %v15059_v24, %v15062_v27  ;;  %v13660_v0 = vld [vmem:[%s18734_s3 + $0x14] ss:$8 sps:$4 sm:$0xff]   ;;  %v13677_v10 = vld [vmem:[%s18734_s3 + $0x60] ss:$8 sps:$4 sm:$0xff]  }
 0x113   : > { %v841_v7 = vadd.f32 %v13373_v6, %v15059_v24  ;;  %v906_v53 = vmax.f32 %v828_v13, %v874_v26  ;;  %v872_v54 = vmul.f32 0.2, %v820_v28  ;;  %v870_v6 = vmul.f32 0.2, %v812_v52  ;;  %v13666_v3 = vld [vmem:[%s18734_s3 + $0x34] ss:$8 sps:$4 sm:$0xff]  }
 0x114   : > { %v832_v8 = vpop.f32.mrf.mxu0  ;;  %v740_v13 = vadd.f32 %v15059_v24, %v15073_v42  ;;  %v847_v51 = vmul.f32 0.2, %v721_v36 }
 0x115   : > { %v833_v11 = vadd.f32 %v15059_v24, %v832_v8  ;;  %v877_v15 = vmul.f32 0.2, %v841_v7  ;;  %v15120_v8 = vpack.c.bf16 %v906_v53, %v905_v2  ;;  %v904_v9 = vmax.f32 %v820_v28, %v872_v54  ;;  %v13657_v54 = vld [vmem:[%s18734_s3] ss:$8 sps:$4 sm:$0xff]  }
 0x116   : > { %v13374_v14 = vpop.f32.mrf.mxu0  ;;  %v879_v53 = vmax.f32 %v721_v36, %v847_v51  ;;  %v13665_v2 = vld [vmem:[%s18734_s3 + $0x20] ss:$8 sps:$4 sm:$0xff]  }
 0x117   : > { %v844_v16 = vadd.f32 %v13374_v14, %v15059_v24  ;;  %v875_v19 = vmul.f32 0.2, %v833_v11  ;;  %v909_v29 = vmax.f32 %v841_v7, %v877_v15  ;;  %v804_v7 = vadd.f32 %v15059_v24, %v803_v62 }
 0x118   : > { %v835_v20 = vpop.f32.mrf.mxu0  ;;  %v15128_v14 = vpack.c.bf16 %v890_v61, %v889_v47  ;;  %v888_v62 = vmax.f32 %v756_v46, %v856_v4  ;;  %v796_v15 = vadd.f32 %v15083_v57, %v15059_v24  ;;  %v15132_v18 = vpack.c.bf16 %v904_v9, %v903_v12  ;;  %v13668_v61 = vld [vmem:[%s18734_s3 + $0x30] ss:$8 sps:$4 sm:$0xff]   ;;  %v13671_v4 = vld [vmem:[%s18734_s3 + $0x44] ss:$8 sps:$4 sm:$0xff]  }
 0x119   : > { %v878_v21 = vmul.f32 0.2, %v844_v16  ;;  %v836_v22 = vadd.f32 %v15059_v24, %v835_v20  ;;  %v907_v40 = vmax.f32 %v833_v11, %v875_v19  ;;  %v869_v11 = vmul.f32 0.2, %v809_v50  ;;  %v13674_v9 = vld [vmem:[%s18734_s3 + $0x50] ss:$8 sps:$4 sm:$0xff]  }
 0x11a   : > { %v868_v17 = vmul.f32 0.2, %v804_v7  ;;  %v737_v19 = vadd.f32 %v15059_v24, %v15068_v37  ;;  %v793_v20 = vadd.f32 %v15079_v55, %v15059_v24  ;;  %v15140_v23 = vpack.c.bf16 %v888_v62, %v887_v60  ;;  %v13675_v47 = vld [vmem:[%s18734_s3 + $0x64] ss:$8 sps:$4 sm:$0xff]   ;;  %v13684_v62 = vld [vmem:[%s18734_s3 + $0x94] ss:$8 sps:$4 sm:$0xff]  }
 0x11b   : > { %v910_v30 = vmax.f32 %v844_v16, %v878_v21  ;;  %v876_v32 = vmul.f32 0.2, %v836_v22  ;;  %v902_v16 = vmax.f32 %v812_v52, %v870_v6  ;;  %v901_v42 = vmax.f32 %v809_v50, %v869_v11  ;;  %v13663_v50 = vld [vmem:[%s18734_s3 + $0x24] ss:$8 sps:$4 sm:$0xff]   ;;  %v13669_v6 = vld [vmem:[%s18734_s3 + $0x40] ss:$8 sps:$4 sm:$0xff]  }
 0x11c   : > { %v867_v21 = vmul.f32 0.2, %v801_v59  ;;  %v866_v57 = vmul.f32 0.2, %v796_v15  ;;  %v900_v37 = vmax.f32 %v804_v7, %v868_v17  ;;  %v851_v28 = vmul.f32 0.2, %v737_v19 }
 0x11d   : > { %v15103_v41 = vpack.c.bf16 %v910_v30, %v909_v29  ;;  %v908_v43 = vmax.f32 %v836_v22, %v876_v32  ;;  %v852_v22 = vmul.f32 0.2, %v740_v13  ;;  %v15144_v26 = vpack.c.bf16 %v902_v16, %v901_v42  ;;  %v13672_v7 = vld [vmem:[%s18734_s3 + $0x54] ss:$8 sps:$4 sm:$0xff]   ;;  %v13683_v12 = vld [vmem:[%s18734_s3 + $0x84] ss:$8 sps:$4 sm:$0xff]  }
 0x11e   : > { %v865_v29 = vmul.f32 0.2, %v793_v20  ;;  %v785_v55 = vadd.f32 %v15059_v24, %v15081_v56  ;;  %v899_v30 = vmax.f32 %v801_v59, %v867_v21  ;;  %v724_v32 = vadd.f32 %v15059_v24, %v15065_v31  ;;  %v13678_v11 = vld [vmem:[%s18734_s3 + $0x74] ss:$8 sps:$4 sm:$0xff]   ;;  %v13680_v59 = vld [vmem:[%s18734_s3 + $0x70] ss:$8 sps:$4 sm:$0xff]  }
 0x11f   : > { %v15109_v44 = vpack.c.bf16 %v908_v43, %v907_v40  ;;  %12862 = vmatprep.subr.bf16.mxu1 %v15103_v41  ;;  %v884_v33 = vmax.f32 %v740_v13, %v852_v22  ;;  %v898_v34 = vmax.f32 %v796_v15, %v866_v57  ;;  %v883_v39 = vmax.f32 %v737_v19, %v851_v28  ;;  %v13681_v13 = vld [vmem:[%s18734_s3 + $0x80] ss:$8 sps:$4 sm:$0xff]   ;;  %v13686_v15 = vld [vmem:[%s18734_s3 + $0x90] ss:$8 sps:$4 sm:$0xff]   ;;  %v13687_v16 = vld [vmem:[%s18734_s3 + $0xa4] ss:$8 sps:$4 sm:$0xff]  }
 0x120   : > { %12863 = vmatpush3.bf16.msra.mxu1 %v15106_v49  ;;  %v15152_v58 = vpack.c.bf16 %v900_v37, %v899_v30  ;;  %v897_v40 = vmax.f32 %v793_v20, %v865_v29  ;;  %v863_v43 = vmul.f32 0.2, %v785_v55  ;;  %v848_v56 = vmul.f32 0.2, %v724_v32  ;;  %v13689_v17 = vld [vmem:[%s18734_s3 + $0xa0] ss:$8 sps:$4 sm:$0xff]  }
 0x121   : > { %12864 = vmatprep.subr.bf16.mxu1 %v15109_v44  ;;  %v15158_v45 = vpack.c.bf16 %v884_v33, %v883_v39  ;;  %v896_v31 = vmax.f32 %v788_v25, %v864_v35  ;;  %v13690_v19 = vld [vmem:[%s18734_s3 + $0xb4] ss:$8 sps:$4 sm:$0xff]   ;;  %v13692_v20 = vld [vmem:[%s18734_s3 + $0xb0] ss:$8 sps:$4 sm:$0xff]   ;;  %v13695_v42 = vld [vmem:[%s18734_s3 + $0xc4] ss:$8 sps:$4 sm:$0xff]  }
 0x122   : > { %v15160_v46 = vpack.c.bf16 %v898_v34, %v897_v40  ;;  %v895_v52 = vmax.f32 %v785_v55, %v863_v43  ;;  %v880_v24 = vmax.f32 %v724_v32, %v848_v56  ;;  %v13705_v60 = vld [vmem:[%s18735_s4 + $0x38] sm:$0xff]   ;;  %v13693_v21 = vld [vmem:[%s18734_s3 + $0xc0] ss:$8 sps:$4 sm:$0xff]   ;;  %v13706_v57 = vld [vmem:[%s18735_s4 + $0x30] sm:$0xff]  }
 0x123   : > { %13375 = vmatprep.subr.bf16.mxu0 %v13705_v60  ;;  %v13696_v22 = vld [vmem:[%s18734_s3 + $0xd4] ss:$8 sps:$4 sm:$0xff]   ;;  %v13698_v25 = vld [vmem:[%s18734_s3 + $0xd0] ss:$8 sps:$4 sm:$0xff]   ;;  %v13699_v37 = vld [vmem:[%s18734_s3 + $0xe4] ss:$8 sps:$4 sm:$0xff]  }
 0x124   : > { %12865 = vmatpush3.bf16.msra.mxu1 %v15117_v5  ;;  %v15164_v27 = vpack.c.bf16 %v896_v31, %v895_v52  ;;  %v15171_v63 = vpack.c.bf16 %v880_v24, %v879_v53  ;;  %13376 = vmatpush3.bf16.msra.mxu0 %v13705_v60  ;;  %v13707_v28 = vld [vmem:[%s18735_s4 + $0x28] sm:$0xff]   ;;  %v13702_v55 = vld [vmem:[%s18734_s3 + $0xf4] ss:$8 sps:$4 sm:$0xff]   ;;  %v13708_v30 = vld [vmem:[%s18735_s4 + $0x20] sm:$0xff]  }
 0x125   : > { %12866 = vmatprep.subr.bf16.mxu1 %v15120_v8  ;;  %13377 = vmatprep.subr.bf16.mxu0 %v13706_v57  ;;  %v13701_v29 = vld [vmem:[%s18734_s3 + $0xe0] ss:$8 sps:$4 sm:$0xff]   ;;  %v13704_v32 = vld [vmem:[%s18734_s3 + $0xf0] ss:$8 sps:$4 sm:$0xff]  }
 0x126   : > { %v13709_v33 = vld [vmem:[%s18735_s4 + $0x18] sm:$0xff]   ;;  %v13711_v60 = vld [vmem:[%s18735_s4 + $0x8] sm:$0xff]  }
 0x128   : > { %12867 = vmatpush3.bf16.msra.mxu1 %v15128_v14  ;;  %13378 = vmatpush3.bf16.msra.mxu0 %v13706_v57 }
 0x129   : > { %12868 = vmatprep.subr.bf16.mxu1 %v15132_v18  ;;  %13379 = vmatprep.subr.bf16.mxu0 %v13707_v28 }
 0x12c   : > { %12869 = vmatpush3.bf16.msra.mxu1 %v15140_v23  ;;  %13380 = vmatpush3.bf16.msra.mxu0 %v13707_v28 }
 0x12d   : > { %12870 = vmatprep.subr.bf16.mxu1 %v15144_v26  ;;  %13381 = vmatprep.subr.bf16.mxu0 %v13708_v30 }
 0x130   : > { %12871 = vmatpush3.bf16.msra.mxu1 %v15077_v48  ;;  %13382 = vmatpush3.bf16.msra.mxu0 %v13708_v30 }
 0x131   : > { %12872 = vmatprep.subr.bf16.mxu1 %v15152_v58  ;;  %13391 = vmatprep.subr.bf16.mxu0 %v13709_v33 }
 0x134   : > { %12873 = vmatpush3.bf16.msra.mxu1 %v15158_v45 }
 0x135   : > { %12874 = vmatprep.subr.bf16.mxu1 %v15160_v46 }
 0x138   : > { %12875 = vmatpush3.bf16.msra.mxu1 %v15070_v38 }
 0x139   : > { %12876 = vmatprep.subr.bf16.mxu1 %v15164_v27 }
 0x13c   : > { %12877 = vmatpush3.bf16.msra.mxu1 %v15171_v63 }
 0x13d   : > { %12902 = vmatprep.subr.bf16.mxu1 %v15103_v41 }
 0x13f   : > { %1008 = vmatmul.mubr.bf16.vlgmr.msra.gmra.mxu1 %v13657_v54 }
 0x140   : > { %12903 = vmatpush3.bf16.msra.mxu1 %v15106_v49  ;;  %1015 = vmatprep.mubr.bf16.mxu1 %v13660_v0 }
 0x141   : > { %12904 = vmatprep.subr.bf16.mxu1 %v15109_v44 }
 0x144   : > { %12905 = vmatpush3.bf16.msra.mxu1 %v15117_v5 }
 0x145   : > { %12906 = vmatprep.subr.bf16.mxu1 %v15120_v8 }
 0x147   : > { %1016 = vmatmul.mubr.bf16.gmra.mxu1 %v13662_v1 }
 0x148   : > { %12907 = vmatpush3.bf16.msra.mxu1 %v15128_v14  ;;  %1023 = vmatprep.mubr.bf16.mxu1 %v13663_v50 }
 0x149   : > { %12908 = vmatprep.subr.bf16.mxu1 %v15132_v18 }
 0x14c   : > { %12909 = vmatpush3.bf16.msra.mxu1 %v15140_v23 }
 0x14d   : > { %12910 = vmatprep.subr.bf16.mxu1 %v15144_v26 }
 0x14f   : > { %1024 = vmatmul.mubr.bf16.gmra.mxu1 %v13665_v2 }
 0x150   : > { %12911 = vmatpush3.bf16.msra.mxu1 %v15077_v48  ;;  %1031 = vmatprep.mubr.bf16.mxu1 %v13666_v3 }
 0x151   : > { %12912 = vmatprep.subr.bf16.mxu1 %v15152_v58 }
 0x154   : > { %12913 = vmatpush3.bf16.msra.mxu1 %v15158_v45 }
 0x155   : > { %12914 = vmatprep.subr.bf16.mxu1 %v15160_v46 }
 0x157   : > { %1032 = vmatmul.mubr.bf16.gmra.mxu1 %v13668_v61 }
 0x158   : > { %12915 = vmatpush3.bf16.msra.mxu1 %v15070_v38  ;;  %1133 = vmatprep.mubr.bf16.mxu1 %v13671_v4 }
 0x159   : > { %12916 = vmatprep.subr.bf16.mxu1 %v15164_v27 }
 0x15c   : > { %12917 = vmatpush3.bf16.msra.mxu1 %v15171_v63 }
 0x15d   : > { %12958 = vmatprep.subr.bf16.mxu1 %v15103_v41 }
 0x15f   : > { %1134 = vmatmul.mubr.bf16.vlgmr.msra.gmra.mxu1 %v13669_v6 }
 0x160   : > { %12959 = vmatpush3.bf16.msra.mxu1 %v15106_v49  ;;  %1141 = vmatprep.mubr.bf16.mxu1 %v13672_v7 }
 0x161   : > { %12960 = vmatprep.subr.bf16.mxu1 %v15109_v44 }
 0x164   : > { %12961 = vmatpush3.bf16.msra.mxu1 %v15117_v5 }
 0x165   : > { %12962 = vmatprep.subr.bf16.mxu1 %v15120_v8 }
 0x167   : > { %1142 = vmatmul.mubr.bf16.gmra.mxu1 %v13674_v9 }
 0x168   : > { %12963 = vmatpush3.bf16.msra.mxu1 %v15128_v14  ;;  %1149 = vmatprep.mubr.bf16.mxu1 %v13675_v47 }
 0x169   : > { %12964 = vmatprep.subr.bf16.mxu1 %v15132_v18 }
 0x16c   : > { %12965 = vmatpush3.bf16.msra.mxu1 %v15140_v23 }
 0x16d   : > { %12966 = vmatprep.subr.bf16.mxu1 %v15144_v26 }
 0x16f   : > { %1150 = vmatmul.mubr.bf16.gmra.mxu1 %v13677_v10 }
 0x170   : > { %12967 = vmatpush3.bf16.msra.mxu1 %v15077_v48  ;;  %1157 = vmatprep.mubr.bf16.mxu1 %v13678_v11 }
 0x171   : > { %12968 = vmatprep.subr.bf16.mxu1 %v15152_v58 }
 0x174   : > { %12969 = vmatpush3.bf16.msra.mxu1 %v15158_v45 }
 0x175   : > { %12970 = vmatprep.subr.bf16.mxu1 %v15160_v46 }
 0x177   : > { %1158 = vmatmul.mubr.bf16.gmra.mxu1 %v13680_v59 }
 0x178   : > { %12971 = vmatpush3.bf16.msra.mxu1 %v15070_v38  ;;  %1463 = vmatprep.mubr.bf16.mxu1 %v13683_v12 }
 0x179   : > { %12972 = vmatprep.subr.bf16.mxu1 %v15164_v27 }
 0x17c   : > { %12973 = vmatpush3.bf16.msra.mxu1 %v15171_v63 }
 0x17d   : > { %13006 = vmatprep.subr.bf16.mxu1 %v15103_v41 }
 0x17f   : > { %1464 = vmatmul.mubr.bf16.vlgmr.msra.gmra.mxu1 %v13681_v13 }
 0x180   : > { %13007 = vmatpush3.bf16.msra.mxu1 %v15106_v49  ;;  %1471 = vmatprep.mubr.bf16.mxu1 %v13684_v62 }
 0x181   : > { %13008 = vmatprep.subr.bf16.mxu1 %v15109_v44 }
 0x184   : > { %13009 = vmatpush3.bf16.msra.mxu1 %v15117_v5 }
 0x185   : > { %13010 = vmatprep.subr.bf16.mxu1 %v15120_v8 }
 0x187   : > { %1472 = vmatmul.mubr.bf16.gmra.mxu1 %v13686_v15 }
 0x188   : > { %13011 = vmatpush3.bf16.msra.mxu1 %v15128_v14  ;;  %1479 = vmatprep.mubr.bf16.mxu1 %v13687_v16  ;;  %v13710_v16 = vld [vmem:[%s18735_s4 + $0x10] sm:$0xff]  }
 0x189   : > { %13012 = vmatprep.subr.bf16.mxu1 %v15132_v18 }
 0x18c   : > { %13013 = vmatpush3.bf16.msra.mxu1 %v15140_v23 }
 0x18d   : > { %13014 = vmatprep.subr.bf16.mxu1 %v15144_v26 }
 0x18f   : > { %1480 = vmatmul.mubr.bf16.gmra.mxu1 %v13689_v17 }
 0x190   : > { %13015 = vmatpush3.bf16.msra.mxu1 %v15077_v48  ;;  %1487 = vmatprep.mubr.bf16.mxu1 %v13690_v19 }
 0x191   : > { %13016 = vmatprep.subr.bf16.mxu1 %v15152_v58 }
 0x194   : > { %13017 = vmatpush3.bf16.msra.mxu1 %v15158_v45 }
 0x195   : > { %13018 = vmatprep.subr.bf16.mxu1 %v15160_v46 }
 0x197   : > { %1488 = vmatmul.mubr.bf16.gmra.mxu1 %v13692_v20 }
 0x198   : > { %13019 = vmatpush3.bf16.msra.mxu1 %v15070_v38  ;;  %1699 = vmatprep.mubr.bf16.mxu1 %v13695_v42 }
 0x199   : > { %13020 = vmatprep.subr.bf16.mxu1 %v15164_v27 }
 0x19c   : > { %13021 = vmatpush3.bf16.msra.mxu1 %v15171_v63 }
 0x19f   : > { %1700 = vmatmul.mubr.bf16.vlgmr.msra.gmra.mxu1 %v13693_v21 }
 0x1a0   : > { %1707 = vmatprep.mubr.bf16.mxu1 %v13696_v22 }
 0x1a7   : > { %1708 = vmatmul.mubr.bf16.gmra.mxu1 %v13698_v25  ;;  %v13712_v25 = vld [vmem:[%s18735_s4] sm:$0xff]  }
 0x1a8   : > { %1715 = vmatprep.mubr.bf16.mxu1 %v13699_v37 }
 0x1af   : > { %1716 = vmatmul.mubr.bf16.gmra.mxu1 %v13701_v29  ;;  %v13713_v29 = vld [vmem:[%s18735_s4 + $0x58] sm:$0xff]  }
 0x1b0   : > { %1723 = vmatprep.mubr.bf16.mxu1 %v13702_v55 }
 0x1b7   : > { %1724 = vmatmul.mubr.bf16.gmra.mxu1 %v13704_v32 }
 0x1ff   : > { %v12878_v34 = vpop.f32.mrf.mxu1 }
 0x201   : > { %v12879_v35 = vpop.f32.mrf.mxu1 }
 0x203   : > { %v12881_v36 = vpop.f32.mrf.mxu1 }
 0x205   : > { %v12882_v39 = vpop.f32.mrf.mxu1 }
 0x206   : > { %v12883_v55 = vadd.f32 %v12882_v39, %v12881_v36 }
 0x207   : > { %v15327_v40 = vpop.f32.mrf.mxu1 }
 0x209   : > { %v15329_v43 = vpop.f32.mrf.mxu1 }
 0x20a   : > { %v12886_v36 = vadd.f32 %v15329_v43, %v15327_v40  ;;  %v13715_v43 = vld [vmem:[%s18735_s4 + $0x48] sm:$0xff]  }
 0x20b   : > { %v12887_v56 = vpop.f32.mrf.mxu1 }
 0x20d   : > { %v12888_v31 = vpop.f32.mrf.mxu1 }
 0x20f   : > { %v15331_v51 = vpop.f32.mrf.mxu1 }
 0x211   : > { %v15333_v52 = vpop.f32.mrf.mxu1 }
 0x213   : > { %v12893_v24 = vpop.f32.mrf.mxu1 }
 0x215   : > { %v12894_v53 = vpop.f32.mrf.mxu1 }
 0x217   : > { %v15335_v54 = vpop.f32.mrf.mxu1 }
 0x219   : > { %v15337_v0 = vpop.f32.mrf.mxu1 }
 0x21b   : > { %v15339_v1 = vpop.f32.mrf.mxu1 }
 0x21d   : > { %v15341_v50 = vpop.f32.mrf.mxu1 }
 0x21e   : > { %v12901_v40 = vadd.f32 %v15341_v50, %v15339_v1 }
 0x21f   : > { %v12918_v2 = vpop.f32.mrf.mxu1 }
 0x221   : > { %v12919_v3 = vpop.f32.mrf.mxu1 }
 0x222   : > { %v12920_v6 = vadd.f32 %v12919_v3, %v12918_v2  ;;  %v12880_v2 = vadd.f32 %v12879_v35, %v12878_v34  ;;  %v12892_v34 = vadd.f32 %v15333_v52, %v15331_v51  ;;  %v12898_v52 = vadd.f32 %v15337_v0, %v15335_v54  ;;  %v13717_v54 = vld [vmem:[%s18735_s4 + $0x78] sm:$0xff]  }
 0x223   : > { %v12921_v61 = vpop.f32.mrf.mxu1 }
 0x225   : > { %v12922_v4 = vpop.f32.mrf.mxu1 }
 0x226   : > { %v12923_v7 = vadd.f32 %v12922_v4, %v12921_v61  ;;  %v1040_v4 = vpack.c.bf16 %v12883_v55, %v12880_v2 }
 0x227   : > { %v12924_v9 = vpop.f32.mrf.mxu1 }
 0x228   : > { %v1166_v47 = vpack.c.bf16 %v12923_v7, %v12920_v6 }
 0x229   : > { %v12925_v10 = vpop.f32.mrf.mxu1 }
 0x22a   : > { %13383 = vmatprep.mubr.msk.bf16.mxu0 %vm1203_vm3, %v1166_v47  ;;  %v12926_v12 = vadd.f32 %v12925_v10, %v12924_v9  ;;  %v12889_v9 = vadd.f32 %v12888_v31, %v12887_v56  ;;  %v12895_v47 = vadd.f32 %v12894_v53, %v12893_v24 }
 0x22b   : > { %v12927_v11 = vpop.f32.mrf.mxu1 }
 0x22c   : > { %v1041_v39 = vpack.c.bf16 %v12889_v9, %v12886_v36 }
 0x22d   : > { %v12928_v59 = vpop.f32.mrf.mxu1 }
 0x22e   : > { %v12929_v13 = vadd.f32 %v12928_v59, %v12927_v11  ;;  %v13714_v11 = vld [vmem:[%s18735_s4 + $0x50] sm:$0xff]   ;;  %v1042_v59 = vpack.c.bf16 %v12895_v47, %v12892_v34 }
 0x22f   : > { %v12930_v62 = vpop.f32.mrf.mxu1 }
 0x230   : > { %v1167_v15 = vpack.c.bf16 %v12929_v13, %v12926_v12  ;;  %v1043_v13 = vpack.c.bf16 %v12901_v40, %v12898_v52 }
 0x231   : > { %v12931_v17 = vpop.f32.mrf.mxu1 }
 0x232   : > { %13384 = vmatmul.mubr.msk.bf16.vlgmr.msra.gmra.mxu0 %vm1203_vm3, %v1167_v15  ;;  %v12932_v42 = vadd.f32 %v12931_v17, %v12930_v62  ;;  %v13716_v62 = vld [vmem:[%s18735_s4 + $0x40] sm:$0xff]  }
 0x233   : > { %v12933_v19 = vpop.f32.mrf.mxu1  ;;  %13392 = vmatpush3.bf16.msra.mxu0 %v13709_v33 }
 0x234   : > { %13393 = vmatprep.subr.bf16.mxu0 %v13710_v16 }
 0x235   : > { %v12934_v20 = vpop.f32.mrf.mxu1 }
 0x236   : > { %v12935_v21 = vadd.f32 %v12934_v20, %v12933_v19 }
 0x237   : > { %v12936_v22 = vpop.f32.mrf.mxu1  ;;  %13394 = vmatpush3.bf16.msra.mxu0 %v13710_v16 }
 0x238   : > { %v1168_v57 = vpack.c.bf16 %v12935_v21, %v12932_v42  ;;  %13395 = vmatprep.subr.bf16.mxu0 %v13711_v60 }
 0x239   : > { %v12937_v37 = vpop.f32.mrf.mxu1 }
 0x23a   : > { %13387 = vmatprep.mubr.msk.bf16.mxu0 %vm1203_vm3, %v1168_v57  ;;  %v12938_v32 = vadd.f32 %v12937_v37, %v12936_v22  ;;  %v13718_v22 = vld [vmem:[%s18735_s4 + $0x70] sm:$0xff]   ;;  %v13719_v37 = vld [vmem:[%s18735_s4 + $0x68] sm:$0xff]  }
 0x23b   : > { %v12939_v28 = vpop.f32.mrf.mxu1  ;;  %13396 = vmatpush3.bf16.msra.mxu0 %v13711_v60 }
 0x23c   : > { %13397 = vmatprep.subr.bf16.mxu0 %v13712_v25 }
 0x23d   : > { %v12940_v30 = vpop.f32.mrf.mxu1 }
 0x23e   : > { %v12941_v33 = vadd.f32 %v12940_v30, %v12939_v28 }
 0x23f   : > { %v12974_v3 = vpop.f32.mrf.mxu1  ;;  %13398 = vmatpush3.bf16.msra.mxu0 %v13712_v25 }
 0x240   : > { %v1169_v61 = vpack.c.bf16 %v12941_v33, %v12938_v32  ;;  %13407 = vmatprep.subr.bf16.mxu0 %v13713_v29  ;;  %v13720_v33 = vld [vmem:[%s18735_s4 + $0x60] sm:$0xff]  }
 0x241   : > { %v12975_v6 = vpop.f32.mrf.mxu1 }
 0x242   : > { %13388 = vmatmul.mubr.msk.bf16.gmra.mxu0 %vm1203_vm3, %v1169_v61  ;;  %v12976_v24 = vadd.f32 %v12975_v6, %v12974_v3 }
 0x243   : > { %13399 = vmatprep.mubr.msk.bf16.mxu0 %vm1203_vm3, %v1040_v4  ;;  %v12977_v7 = vpop.f32.mrf.mxu1 }
 0x245   : > { %v12978_v10 = vpop.f32.mrf.mxu1 }
 0x246   : > { %v12979_v31 = vadd.f32 %v12978_v10, %v12977_v7 }
 0x247   : > { %v12980_v35 = vpop.f32.mrf.mxu1 }
 0x248   : > { %v1496_v1 = vpack.c.bf16 %v12979_v31, %v12976_v24 }
 0x249   : > { %v12981_v12 = vpop.f32.mrf.mxu1 }
 0x24a   : > { %13400 = vmatmul.mubr.msk.bf16.vlgmr.msra.gmra.mxu0 %vm1203_vm3, %v1041_v39  ;;  %v12982_v17 = vadd.f32 %v12981_v12, %v12980_v35 }
 0x24b   : > { %13408 = vmatpush3.bf16.msra.mxu0 %v13713_v29  ;;  %13403 = vmatprep.mubr.msk.bf16.mxu0 %vm1203_vm3, %v1042_v59  ;;  %v12983_v56 = vpop.f32.mrf.mxu1 }
 0x24c   : > { %13409 = vmatprep.subr.bf16.mxu0 %v13714_v11 }
 0x24d   : > { %v12984_v51 = vpop.f32.mrf.mxu1 }
 0x24e   : > { %v12985_v16 = vadd.f32 %v12984_v51, %v12983_v56 }
 0x24f   : > { %13410 = vmatpush3.bf16.msra.mxu0 %v13714_v11  ;;  %v12986_v53 = vpop.f32.mrf.mxu1 }
 0x250   : > { %13411 = vmatprep.subr.bf16.mxu0 %v13715_v43  ;;  %v1497_v42 = vpack.c.bf16 %v12985_v16, %v12982_v17  ;;  %v13724_v16 = vld [vmem:[%s18734_s3 + $0x114] ss:$8 sps:$4 sm:$0xff]   ;;  %v13729_v17 = vld [vmem:[%s18734_s3 + $0x120] ss:$8 sps:$4 sm:$0xff]  }
 0x251   : > { %v12987_v50 = vpop.f32.mrf.mxu1 }
 0x252   : > { %13404 = vmatmul.mubr.msk.bf16.gmra.mxu0 %vm1203_vm3, %v1043_v13  ;;  %v12988_v19 = vadd.f32 %v12987_v50, %v12986_v53 }
 0x253   : > { %13412 = vmatpush3.bf16.msra.mxu0 %v13715_v43  ;;  %v12989_v15 = vpop.f32.mrf.mxu1  ;;  %13415 = vmatprep.mubr.msk.bf16.mxu0 %vm1203_vm3, %v1496_v1  ;;  %v13723_v1 = vld [vmem:[%s18734_s3 + $0x104] ss:$8 sps:$4 sm:$0xff]  }
 0x254   : > { %13413 = vmatprep.subr.bf16.mxu0 %v13716_v62 }
 0x255   : > { %v12990_v0 = vpop.f32.mrf.mxu1 }
 0x256   : > { %v12991_v60 = vadd.f32 %v12990_v0, %v12989_v15  ;;  %v13721_v15 = vld [vmem:[%s18734_s3 + $0x100] ss:$8 sps:$4 sm:$0xff]   ;;  %v13727_v0 = vld [vmem:[%s18734_s3 + $0x124] ss:$8 sps:$4 sm:$0xff]  }
 0x257   : > { %13414 = vmatpush3.bf16.msra.mxu0 %v13716_v62  ;;  %v12992_v20 = vpop.f32.mrf.mxu1 }
 0x258   : > { %v1498_v21 = vpack.c.bf16 %v12991_v60, %v12988_v19  ;;  %13423 = vmatprep.subr.bf16.mxu0 %v13717_v54  ;;  %v13730_v19 = vld [vmem:[%s18734_s3 + $0x134] ss:$8 sps:$4 sm:$0xff]   ;;  %v13732_v60 = vld [vmem:[%s18734_s3 + $0x130] ss:$8 sps:$4 sm:$0xff]  }
 0x259   : > { %v12993_v57 = vpop.f32.mrf.mxu1 }
 0x25a   : > { %13416 = vmatmul.mubr.msk.bf16.vlgmr.msra.gmra.mxu0 %vm1203_vm3, %v1497_v42  ;;  %v12994_v29 = vadd.f32 %v12993_v57, %v12992_v20  ;;  %v13735_v20 = vld [vmem:[%s18734_s3 + $0x144] ss:$8 sps:$4 sm:$0xff]   ;;  %v13733_v42 = vld [vmem:[%s18734_s3 + $0x140] ss:$8 sps:$4 sm:$0xff]  }
 0x25b   : > { %13424 = vmatpush3.bf16.msra.mxu0 %v13717_v54  ;;  %v12995_v25 = vpop.f32.mrf.mxu1  ;;  %13419 = vmatprep.mubr.msk.bf16.mxu0 %vm1203_vm3, %v1498_v21  ;;  %v13726_v54 = vld [vmem:[%s18734_s3 + $0x110] ss:$8 sps:$4 sm:$0xff]   ;;  %v13736_v21 = vld [vmem:[%s18734_s3 + $0x154] ss:$8 sps:$4 sm:$0xff]   ;;  %v13739_v57 = vld [vmem:[%s18734_s3 + $0x164] ss:$8 sps:$4 sm:$0xff]  }
 0x25c   : > { %13425 = vmatprep.subr.bf16.mxu0 %v13718_v22 }
 0x25d   : > { %v12996_v28 = vpop.f32.mrf.mxu1 }
 0x25e   : > { %v12997_v55 = vadd.f32 %v12996_v28, %v12995_v25  ;;  %v13741_v25 = vld [vmem:[%s18734_s3 + $0x160] ss:$8 sps:$4 sm:$0xff]   ;;  %v13744_v28 = vld [vmem:[%s18734_s3 + $0x170] ss:$8 sps:$4 sm:$0xff]  }
 0x25f   : > { %13426 = vmatpush3.bf16.msra.mxu0 %v13718_v22  ;;  %v13022_v30 = vpop.f32.mrf.mxu1  ;;  %v13738_v22 = vld [vmem:[%s18734_s3 + $0x150] ss:$8 sps:$4 sm:$0xff]  }
 0x260   : > { %v1499_v32 = vpack.c.bf16 %v12997_v55, %v12994_v29  ;;  %13427 = vmatprep.subr.bf16.mxu0 %v13719_v37  ;;  %v13745_v29 = vld [vmem:[%s18735_s4 + $0x98] sm:$0xff]   ;;  %v13746_v55 = vld [vmem:[%s18735_s4 + $0x90] sm:$0xff]  }
 0x261   : > { %v13023_v2 = vpop.f32.mrf.mxu1  ;;  %13439 = vmatprep.subr.bf16.mxu1 %v13745_v29 }
 0x262   : > { %13420 = vmatmul.mubr.msk.bf16.gmra.mxu0 %vm1203_vm3, %v1499_v32  ;;  %v13024_v4 = vadd.f32 %v13023_v2, %v13022_v30  ;;  %13440 = vmatpush3.bf16.msra.mxu1 %v13745_v29  ;;  %v13747_v30 = vld [vmem:[%s18735_s4 + $0x88] sm:$0xff]   ;;  %v13748_v32 = vld [vmem:[%s18735_s4 + $0x80] sm:$0xff]  }
 0x263   : > { %13428 = vmatpush3.bf16.msra.mxu0 %v13719_v37  ;;  %v13025_v3 = vpop.f32.mrf.mxu1  ;;  %v13742_v37 = vld [vmem:[%s18734_s3 + $0x174] ss:$8 sps:$4 sm:$0xff]   ;;  %13441 = vmatprep.subr.bf16.mxu1 %v13746_v55 }
 0x264   : > { %13429 = vmatprep.subr.bf16.mxu0 %v13720_v33 }
 0x265   : > { %v13026_v61 = vpop.f32.mrf.mxu1 }
 0x266   : > { %v13027_v6 = vadd.f32 %v13026_v61, %v13025_v3  ;;  %13442 = vmatpush3.bf16.msra.mxu1 %v13746_v55 }
 0x267   : > { %13430 = vmatpush3.bf16.msra.mxu0 %v13720_v33  ;;  %v13028_v7 = vpop.f32.mrf.mxu1  ;;  %13443 = vmatprep.subr.bf16.mxu1 %v13747_v30  ;;  %v15495_v33 = vld [vmem:[%s18735_s4 + $0xb8] sm:$0xff]  }
 0x268   : > { %v1732_v9 = vpack.c.bf16 %v13027_v6, %v13024_v4  ;;  %13054 = vmatprep.subr.bf16.mxu0 %v15103_v41 }
 0x269   : > { %v13029_v47 = vpop.f32.mrf.mxu1 }
 0x26a   : > { %13431 = vmatprep.mubr.msk.bf16.mxu0 %vm1203_vm3, %v1732_v9  ;;  %v13030_v34 = vadd.f32 %v13029_v47, %v13028_v7  ;;  %13444 = vmatpush3.bf16.msra.mxu1 %v13747_v30 }
 0x26b   : > { %v13031_v10 = vpop.f32.mrf.mxu1  ;;  %13445 = vmatprep.subr.bf16.mxu1 %v13748_v32 }
 0x26d   : > { %v13032_v36 = vpop.f32.mrf.mxu1 }
 0x26e   : > { %v13033_v35 = vadd.f32 %v13032_v36, %v13031_v10  ;;  %13446 = vmatpush3.bf16.msra.mxu1 %v13748_v32 }
 0x26f   : > { %v13034_v39 = vpop.f32.mrf.mxu1  ;;  %13455 = vmatprep.subr.bf16.mxu1 %v15495_v33 }
 0x270   : > { %v1733_v11 = vpack.c.bf16 %v13033_v35, %v13030_v34 }
 0x271   : > { %v13035_v59 = vpop.f32.mrf.mxu1 }
 0x272   : > { %13432 = vmatmul.mubr.msk.bf16.vlgmr.msra.gmra.mxu0 %vm1203_vm3, %v1733_v11  ;;  %v13036_v56 = vadd.f32 %v13035_v59, %v13034_v39 }
 0x273   : > { %13055 = vmatpush3.bf16.msra.mxu0 %v15106_v49  ;;  %v13037_v12 = vpop.f32.mrf.mxu1 }
 0x274   : > { %13056 = vmatprep.subr.bf16.mxu0 %v15109_v44 }
 0x275   : > { %v13038_v40 = vpop.f32.mrf.mxu1 }
 0x276   : > { %v13039_v43 = vadd.f32 %v13038_v40, %v13037_v12 }
 0x277   : > { %13057 = vmatpush3.bf16.msra.mxu0 %v15117_v5  ;;  %v13040_v31 = vpop.f32.mrf.mxu1 }
 0x278   : > { %v1734_v51 = vpack.c.bf16 %v13039_v43, %v13036_v56  ;;  %13058 = vmatprep.subr.bf16.mxu0 %v15120_v8 }
 0x279   : > { %v13041_v52 = vpop.f32.mrf.mxu1 }
 0x27a   : > { %13435 = vmatprep.mubr.msk.bf16.mxu0 %vm1203_vm3, %v1734_v51  ;;  %v13042_v53 = vadd.f32 %v13041_v52, %v13040_v31 }
 0x27b   : > { %13059 = vmatpush3.bf16.msra.mxu0 %v15128_v14  ;;  %v13043_v24 = vpop.f32.mrf.mxu1 }
 0x27c   : > { %13060 = vmatprep.subr.bf16.mxu0 %v15132_v18 }
 0x27d   : > { %v13044_v13 = vpop.f32.mrf.mxu1 }
 0x27e   : > { %v13045_v62 = vadd.f32 %v13044_v13, %v13043_v24 }
 0x27f   : > { %13061 = vmatpush3.bf16.msra.mxu0 %v15140_v23 }
 0x280   : > { %v1735_v50 = vpack.c.bf16 %v13045_v62, %v13042_v53  ;;  %13062 = vmatprep.subr.bf16.mxu0 %v15144_v26 }
 0x282   : > { %13436 = vmatmul.mubr.msk.bf16.gmra.mxu0 %vm1203_vm3, %v1735_v50 }
 0x283   : > { %13063 = vmatpush3.bf16.msra.mxu0 %v15077_v48  ;;  %1935 = vmatprep.mubr.bf16.mxu0 %v13723_v1 }
 0x284   : > { %13064 = vmatprep.subr.bf16.mxu0 %v15152_v58 }
 0x287   : > { %13065 = vmatpush3.bf16.msra.mxu0 %v15158_v45 }
 0x288   : > { %13066 = vmatprep.subr.bf16.mxu0 %v15160_v46 }
 0x28b   : > { %13067 = vmatpush3.bf16.msra.mxu0 %v15070_v38 }
 0x28c   : > { %13068 = vmatprep.subr.bf16.mxu0 %v15164_v27 }
 0x28f   : > { %13069 = vmatpush3.bf16.msra.mxu0 %v15171_v63 }
 0x290   : > { %13102 = vmatprep.subr.bf16.mxu0 %v15103_v41 }
 0x292   : > { %1936 = vmatmul.mubr.bf16.vlgmr.msra.gmra.mxu0 %v13721_v15 }
 0x293   : > { %13103 = vmatpush3.bf16.msra.mxu0 %v15106_v49  ;;  %1943 = vmatprep.mubr.bf16.mxu0 %v13724_v16 }
 0x294   : > { %13104 = vmatprep.subr.bf16.mxu0 %v15109_v44 }
 0x297   : > { %13105 = vmatpush3.bf16.msra.mxu0 %v15117_v5 }
 0x298   : > { %13106 = vmatprep.subr.bf16.mxu0 %v15120_v8 }
 0x29a   : > { %1944 = vmatmul.mubr.bf16.gmra.mxu0 %v13726_v54 }
 0x29b   : > { %13107 = vmatpush3.bf16.msra.mxu0 %v15128_v14  ;;  %1951 = vmatprep.mubr.bf16.mxu0 %v13727_v0 }
 0x29c   : > { %13108 = vmatprep.subr.bf16.mxu0 %v15132_v18 }
 0x29f   : > { %13109 = vmatpush3.bf16.msra.mxu0 %v15140_v23 }
 0x2a0   : > { %13110 = vmatprep.subr.bf16.mxu0 %v15144_v26 }
 0x2a2   : > { %1952 = vmatmul.mubr.bf16.gmra.mxu0 %v13729_v17 }
 0x2a3   : > { %13111 = vmatpush3.bf16.msra.mxu0 %v15077_v48  ;;  %1959 = vmatprep.mubr.bf16.mxu0 %v13730_v19 }
 0x2a4   : > { %13112 = vmatprep.subr.bf16.mxu0 %v15152_v58 }
 0x2a7   : > { %13113 = vmatpush3.bf16.msra.mxu0 %v15158_v45 }
 0x2a8   : > { %13114 = vmatprep.subr.bf16.mxu0 %v15160_v46 }
 0x2aa   : > { %1960 = vmatmul.mubr.bf16.gmra.mxu0 %v13732_v60 }
 0x2ab   : > { %13115 = vmatpush3.bf16.msra.mxu0 %v15070_v38  ;;  %2171 = vmatprep.mubr.bf16.mxu0 %v13735_v20 }
 0x2ac   : > { %13116 = vmatprep.subr.bf16.mxu0 %v15164_v27 }
 0x2af   : > { %13117 = vmatpush3.bf16.msra.mxu0 %v15171_v63 }
 0x2b2   : > { %2172 = vmatmul.mubr.bf16.vlgmr.msra.gmra.mxu0 %v13733_v42 }
 0x2b3   : > { %2179 = vmatprep.mubr.bf16.mxu0 %v13736_v21 }
 0x2ba   : > { %2180 = vmatmul.mubr.bf16.gmra.mxu0 %v13738_v22 }
 0x2bb   : > { %2187 = vmatprep.mubr.bf16.mxu0 %v13739_v57 }
 0x2c2   : > { %2188 = vmatmul.mubr.bf16.gmra.mxu0 %v13741_v25 }
 0x2c3   : > { %2195 = vmatprep.mubr.bf16.mxu0 %v13742_v37 }
 0x2ca   : > { %2196 = vmatmul.mubr.bf16.gmra.mxu0 %v13744_v28 }
 0x2f2   : > { %v13385_v2 = vpop.f32.mrf.mxu0 }
 0x2f4   : > { %v1250_v3 = vpop.f32.mrf.mxu0 }
 0x2f6   : > { %v13386_v61 = vpop.f32.mrf.mxu0 }
 0x2f8   : > { %v15498_v4 = vpop.f32.mrf.mxu0 }
 0x302   : > { %v13389_v6 = vpop.f32.mrf.mxu0 }
 0x304   : > { %v1266_v7 = vpop.f32.mrf.mxu0 }
 0x306   : > { %v13390_v9 = vpop.f32.mrf.mxu0 }
 0x308   : > { %v15500_v47 = vpop.f32.mrf.mxu0 }
 0x30a   : > { %v13401_v10 = vpop.f32.mrf.mxu0 }
 0x30b   : > { %v1360_v36 = vadd.f32 %v13401_v10, %v13385_v2 }
 0x30c   : > { %v1351_v34 = vpop.f32.mrf.mxu0 }
 0x30d   : > { %v1352_v35 = vadd.f32 %v1351_v34, %v1250_v3 }
 0x30e   : > { %v13402_v39 = vpop.f32.mrf.mxu0 }
 0x30f   : > { %v1363_v11 = vadd.f32 %v13402_v39, %v13386_v61 }
 0x310   : > { %v15502_v59 = vpop.f32.mrf.mxu0 }
 0x312   : > { %v13405_v12 = vpop.f32.mrf.mxu0 }
 0x313   : > { %v1376_v56 = vadd.f32 %v13405_v12, %v13389_v6 }
 0x314   : > { %v1367_v40 = vpop.f32.mrf.mxu0 }
 0x315   : > { %v1368_v43 = vadd.f32 %v1367_v40, %v1266_v7 }
 0x316   : > { %v13406_v31 = vpop.f32.mrf.mxu0 }
 0x317   : > { %v1379_v51 = vadd.f32 %v13406_v31, %v13390_v9 }
 0x318   : > { %v15504_v52 = vpop.f32.mrf.mxu0 }
 0x31a   : > { %v13417_v24 = vpop.f32.mrf.mxu0 }
 0x31b   : > { %v1612_v53 = vadd.f32 %v13417_v24, %v1360_v36  ;;  %v13750_v24 = vld [vmem:[%s18735_s4 + $0xb0] sm:$0xff]  }
 0x31c   : > { %v1579_v13 = vpop.f32.mrf.mxu0 }
 0x31d   : > { %v1610_v62 = vadd.f32 %v1579_v13, %v1352_v35 }
 0x31e   : > { %v13418_v1 = vpop.f32.mrf.mxu0 }
 0x31f   : > { %v1613_v50 = vadd.f32 %v13418_v1, %v1363_v11 }
 0x320   : > { %v15506_v15 = vpop.f32.mrf.mxu0 }
 0x322   : > { %v13421_v16 = vpop.f32.mrf.mxu0 }
 0x323   : > { %v1616_v54 = vadd.f32 %v13421_v16, %v1376_v56 }
 0x324   : > { %v1595_v0 = vpop.f32.mrf.mxu0 }
 0x325   : > { %v1614_v17 = vadd.f32 %v1595_v0, %v1368_v43 }
 0x326   : > { %v13422_v19 = vpop.f32.mrf.mxu0 }
 0x327   : > { %v1617_v60 = vadd.f32 %v13422_v19, %v1379_v51 }
 0x328   : > { %v15508_v20 = vpop.f32.mrf.mxu0 }
 0x332   : > { %v13433_v42 = vpop.f32.mrf.mxu0 }
 0x333   : > { %v15510_v21 = vadd.f32 %v13433_v42, %v1612_v53 }
 0x334   : > { %v1815_v22 = vpop.f32.mrf.mxu0 }
 0x335   : > { %v15512_v57 = vadd.f32 %v1815_v22, %v1610_v62  ;;  %v13751_v62 = vld [vmem:[%s18735_s4 + $0xa8] sm:$0xff]  }
 0x336   : > { %v13434_v25 = vpop.f32.mrf.mxu0 }
 0x337   : > { %v15514_v37 = vadd.f32 %v13434_v25, %v1613_v50 }
 0x338   : > { %v15516_v28 = vpop.f32.mrf.mxu0 }
 0x342   : > { %v13437_v29 = vpop.f32.mrf.mxu0 }
 0x343   : > { %v15518_v55 = vadd.f32 %v13437_v29, %v1616_v54 }
 0x344   : > { %v1831_v30 = vpop.f32.mrf.mxu0 }
 0x345   : > { %v15520_v32 = vadd.f32 %v1831_v30, %v1614_v17  ;;  %v13752_v17 = vld [vmem:[%s18735_s4 + $0xa0] sm:$0xff]  }
 0x346   : > { %v13438_v2 = vpop.f32.mrf.mxu0 }
 0x347   : > { %v15522_v3 = vadd.f32 %v13438_v2, %v1617_v60 }
 0x348   : > { %v15524_v61 = vpop.f32.mrf.mxu0 }
 0x352   : > { %v13070_v6 = vpop.f32.mrf.mxu0 }
 0x354   : > { %v13071_v7 = vpop.f32.mrf.mxu0 }
 0x355   : > { %v13072_v36 = vadd.f32 %v13071_v7, %v13070_v6 }
 0x356   : > { %v13073_v9 = vpop.f32.mrf.mxu0 }
 0x358   : > { %v13074_v10 = vpop.f32.mrf.mxu0 }
 0x359   : > { %v13075_v34 = vadd.f32 %v13074_v10, %v13073_v9 }
 0x35a   : > { %v13076_v35 = vpop.f32.mrf.mxu0 }
 0x35b   : > { %v1968_v39 = vpack.c.bf16 %v13075_v34, %v13072_v36 }
 0x35c   : > { %v13077_v11 = vpop.f32.mrf.mxu0 }
 0x35d   : > { %13447 = vmatprep.mubr.msk.bf16.mxu1 %vm1203_vm3, %v1968_v39  ;;  %v13078_v40 = vadd.f32 %v13077_v11, %v13076_v35 }
 0x35e   : > { %v13079_v12 = vpop.f32.mrf.mxu0 }
 0x360   : > { %v13080_v56 = vpop.f32.mrf.mxu0 }
 0x361   : > { %v13081_v43 = vadd.f32 %v13080_v56, %v13079_v12 }
 0x362   : > { %v13082_v31 = vpop.f32.mrf.mxu0 }
 0x363   : > { %v1969_v51 = vpack.c.bf16 %v13081_v43, %v13078_v40 }
 0x364   : > { %v13083_v53 = vpop.f32.mrf.mxu0 }
 0x365   : > { %13448 = vmatmul.mubr.msk.bf16.vlgmr.msra.gmra.mxu1 %vm1203_vm3, %v1969_v51  ;;  %v13084_v50 = vadd.f32 %v13083_v53, %v13082_v31 }
 0x366   : > { %13456 = vmatpush3.bf16.msra.mxu1 %v15495_v33  ;;  %v13085_v13 = vpop.f32.mrf.mxu0 }
 0x367   : > { %13457 = vmatprep.subr.bf16.mxu1 %v13750_v24 }
 0x368   : > { %v13086_v1 = vpop.f32.mrf.mxu0 }
 0x369   : > { %v13087_v16 = vadd.f32 %v13086_v1, %v13085_v13 }
 0x36a   : > { %13458 = vmatpush3.bf16.msra.mxu1 %v13750_v24  ;;  %v13088_v54 = vpop.f32.mrf.mxu0 }
 0x36b   : > { %v1970_v0 = vpack.c.bf16 %v13087_v16, %v13084_v50  ;;  %13459 = vmatprep.subr.bf16.mxu1 %v13751_v62 }
 0x36c   : > { %v13089_v19 = vpop.f32.mrf.mxu0 }
 0x36d   : > { %13451 = vmatprep.mubr.msk.bf16.mxu1 %vm1203_vm3, %v1970_v0  ;;  %v13090_v42 = vadd.f32 %v13089_v19, %v13088_v54 }
 0x36e   : > { %13460 = vmatpush3.bf16.msra.mxu1 %v13751_v62  ;;  %v13091_v33 = vpop.f32.mrf.mxu0 }
 0x36f   : > { %13461 = vmatprep.subr.bf16.mxu1 %v13752_v17 }
 0x370   : > { %v13092_v60 = vpop.f32.mrf.mxu0 }
 0x371   : > { %v13093_v22 = vadd.f32 %v13092_v60, %v13091_v33  ;;  %v13753_v33 = vld [vmem:[%s18734_s3 + $0x180] ss:$8 sps:$4 sm:$0xff]   ;;  %v13756_v60 = vld [vmem:[%s18734_s3 + $0x194] ss:$8 sps:$4 sm:$0xff]  }
 0x372   : > { %13462 = vmatpush3.bf16.msra.mxu1 %v13752_v17  ;;  %v13118_v25 = vpop.f32.mrf.mxu0  ;;  %v13755_v17 = vld [vmem:[%s18734_s3 + $0x184] ss:$8 sps:$4 sm:$0xff]  }
 0x373   : > { %v1971_v29 = vpack.c.bf16 %v13093_v22, %v13090_v42  ;;  %13150 = vmatprep.subr.bf16.mxu1 %v15103_v41  ;;  %v13758_v42 = vld [vmem:[%s18734_s3 + $0x190] ss:$8 sps:$4 sm:$0xff]   ;;  %v13759_v22 = vld [vmem:[%s18734_s3 + $0x1a4] ss:$8 sps:$4 sm:$0xff]  }
 0x374   : > { %v13119_v30 = vpop.f32.mrf.mxu0 }
 0x375   : > { %13452 = vmatmul.mubr.msk.bf16.gmra.mxu1 %vm1203_vm3, %v1971_v29  ;;  %v13120_v7 = vadd.f32 %v13119_v30, %v13118_v25  ;;  %v13761_v25 = vld [vmem:[%s18734_s3 + $0x1a0] ss:$8 sps:$4 sm:$0xff]   ;;  %v13762_v29 = vld [vmem:[%s18734_s3 + $0x1b4] ss:$8 sps:$4 sm:$0xff]   ;;  %v13764_v30 = vld [vmem:[%s18734_s3 + $0x1b0] ss:$8 sps:$4 sm:$0xff]  }
 0x376   : > { %v13121_v2 = vpop.f32.mrf.mxu0 }
 0x378   : > { %v13122_v6 = vpop.f32.mrf.mxu0 }
 0x379   : > { %v13123_v9 = vadd.f32 %v13122_v6, %v13121_v2  ;;  %v13767_v2 = vld [vmem:[%s18734_s3 + $0x1c4] ss:$8 sps:$4 sm:$0xff]   ;;  %v13765_v6 = vld [vmem:[%s18734_s3 + $0x1c0] ss:$8 sps:$4 sm:$0xff]  }
 0x37a   : > { %v13124_v10 = vpop.f32.mrf.mxu0 }
 0x37b   : > { %v2204_v36 = vpack.c.bf16 %v13123_v9, %v13120_v7  ;;  %v13768_v7 = vld [vmem:[%s18734_s3 + $0x1d4] ss:$8 sps:$4 sm:$0xff]   ;;  %v13770_v9 = vld [vmem:[%s18734_s3 + $0x1d0] ss:$8 sps:$4 sm:$0xff]  }
 0x37c   : > { %v13125_v34 = vpop.f32.mrf.mxu0 }
 0x37d   : > { %13463 = vmatprep.mubr.msk.bf16.mxu1 %vm1203_vm3, %v2204_v36  ;;  %v13126_v11 = vadd.f32 %v13125_v34, %v13124_v10  ;;  %v13771_v10 = vld [vmem:[%s18734_s3 + $0x1e4] ss:$8 sps:$4 sm:$0xff]   ;;  %v13773_v36 = vld [vmem:[%s18734_s3 + $0x1e0] ss:$8 sps:$4 sm:$0xff]   ;;  %v13774_v34 = vld [vmem:[%s18734_s3 + $0x1f4] ss:$8 sps:$4 sm:$0xff]  }
 0x37e   : > { %v13127_v35 = vpop.f32.mrf.mxu0 }
 0x380   : > { %v13128_v39 = vpop.f32.mrf.mxu0 }
 0x381   : > { %v13129_v12 = vadd.f32 %v13128_v39, %v13127_v35  ;;  %v13776_v35 = vld [vmem:[%s18734_s3 + $0x1f0] ss:$8 sps:$4 sm:$0xff]  }
 0x382   : > { %v13130_v56 = vpop.f32.mrf.mxu0  ;;  %v13777_v39 = vld [vmem:[%s18735_s4 + $0xd8] sm:$0xff]  }
 0x383   : > { %v2205_v40 = vpack.c.bf16 %v13129_v12, %v13126_v11  ;;  %13471 = vmatprep.subr.bf16.mxu0 %v13777_v39  ;;  %v13778_v11 = vld [vmem:[%s18735_s4 + $0xd0] sm:$0xff]   ;;  %v13779_v12 = vld [vmem:[%s18735_s4 + $0xc8] sm:$0xff]  }
 0x384   : > { %v13131_v43 = vpop.f32.mrf.mxu0  ;;  %13472 = vmatpush3.bf16.msra.mxu0 %v13777_v39 }
 0x385   : > { %13464 = vmatmul.mubr.msk.bf16.vlgmr.msra.gmra.mxu1 %vm1203_vm3, %v2205_v40  ;;  %v13132_v51 = vadd.f32 %v13131_v43, %v13130_v56  ;;  %13473 = vmatprep.subr.bf16.mxu0 %v13778_v11  ;;  %v13780_v56 = vld [vmem:[%s18735_s4 + $0xc0] sm:$0xff]   ;;  %v13781_v40 = vld [vmem:[%s18735_s4 + $0xf8] sm:$0xff]  }
 0x386   : > { %13151 = vmatpush3.bf16.msra.mxu1 %v15106_v49  ;;  %v13133_v31 = vpop.f32.mrf.mxu0 }
 0x387   : > { %13152 = vmatprep.subr.bf16.mxu1 %v15109_v44 }
 0x388   : > { %v13134_v24 = vpop.f32.mrf.mxu0  ;;  %13474 = vmatpush3.bf16.msra.mxu0 %v13778_v11 }
 0x389   : > { %v13135_v53 = vadd.f32 %v13134_v24, %v13133_v31  ;;  %13475 = vmatprep.subr.bf16.mxu0 %v13779_v12 }
 0x38a   : > { %13153 = vmatpush3.bf16.msra.mxu1 %v15117_v5  ;;  %v13136_v13 = vpop.f32.mrf.mxu0 }
 0x38b   : > { %v2206_v62 = vpack.c.bf16 %v13135_v53, %v13132_v51  ;;  %13154 = vmatprep.subr.bf16.mxu1 %v15120_v8 }
 0x38c   : > { %v13137_v1 = vpop.f32.mrf.mxu0  ;;  %13476 = vmatpush3.bf16.msra.mxu0 %v13779_v12 }
 0x38d   : > { %13467 = vmatprep.mubr.msk.bf16.mxu1 %vm1203_vm3, %v2206_v62  ;;  %v13138_v16 = vadd.f32 %v13137_v1, %v13136_v13  ;;  %13477 = vmatprep.subr.bf16.mxu0 %v13780_v56 }
 0x38e   : > { %13155 = vmatpush3.bf16.msra.mxu1 %v15128_v14  ;;  %v13139_v50 = vpop.f32.mrf.mxu0 }
 0x38f   : > { %13156 = vmatprep.subr.bf16.mxu1 %v15132_v18 }
 0x390   : > { %v13140_v54 = vpop.f32.mrf.mxu0  ;;  %13478 = vmatpush3.bf16.msra.mxu0 %v13780_v56 }
 0x391   : > { %v13141_v0 = vadd.f32 %v13140_v54, %v13139_v50  ;;  %13487 = vmatprep.subr.bf16.mxu0 %v13781_v40 }
 0x392   : > { %13157 = vmatpush3.bf16.msra.mxu1 %v15140_v23 }
 0x393   : > { %v2207_v19 = vpack.c.bf16 %v13141_v0, %v13138_v16  ;;  %13158 = vmatprep.subr.bf16.mxu1 %v15144_v26 }
 0x395   : > { %13468 = vmatmul.mubr.msk.bf16.gmra.mxu1 %vm1203_vm3, %v2207_v19 }
 0x396   : > { %13159 = vmatpush3.bf16.msra.mxu1 %v15077_v48  ;;  %2407 = vmatprep.mubr.bf16.mxu1 %v13755_v17 }
 0x397   : > { %13160 = vmatprep.subr.bf16.mxu1 %v15152_v58 }
 0x39a   : > { %13161 = vmatpush3.bf16.msra.mxu1 %v15158_v45 }
 0x39b   : > { %13162 = vmatprep.subr.bf16.mxu1 %v15160_v46 }
 0x39e   : > { %13163 = vmatpush3.bf16.msra.mxu1 %v15070_v38 }
 0x39f   : > { %13164 = vmatprep.subr.bf16.mxu1 %v15164_v27 }
 0x3a2   : > { %13165 = vmatpush3.bf16.msra.mxu1 %v15171_v63 }
 0x3a3   : > { %13198 = vmatprep.subr.bf16.mxu1 %v15103_v41 }
 0x3a5   : > { %2408 = vmatmul.mubr.bf16.vlgmr.msra.gmra.mxu1 %v13753_v33 }
 0x3a6   : > { %13199 = vmatpush3.bf16.msra.mxu1 %v15106_v49  ;;  %2415 = vmatprep.mubr.bf16.mxu1 %v13756_v60 }
 0x3a7   : > { %13200 = vmatprep.subr.bf16.mxu1 %v15109_v44 }
 0x3aa   : > { %13201 = vmatpush3.bf16.msra.mxu1 %v15117_v5 }
 0x3ab   : > { %13202 = vmatprep.subr.bf16.mxu1 %v15120_v8 }
 0x3ad   : > { %2416 = vmatmul.mubr.bf16.gmra.mxu1 %v13758_v42 }
 0x3ae   : > { %13203 = vmatpush3.bf16.msra.mxu1 %v15128_v14  ;;  %2423 = vmatprep.mubr.bf16.mxu1 %v13759_v22 }
 0x3af   : > { %13204 = vmatprep.subr.bf16.mxu1 %v15132_v18 }
 0x3b2   : > { %13205 = vmatpush3.bf16.msra.mxu1 %v15140_v23 }
 0x3b3   : > { %13206 = vmatprep.subr.bf16.mxu1 %v15144_v26 }
 0x3b5   : > { %2424 = vmatmul.mubr.bf16.gmra.mxu1 %v13761_v25 }
 0x3b6   : > { %13207 = vmatpush3.bf16.msra.mxu1 %v15077_v48  ;;  %2431 = vmatprep.mubr.bf16.mxu1 %v13762_v29 }
 0x3b7   : > { %13208 = vmatprep.subr.bf16.mxu1 %v15152_v58 }
 0x3ba   : > { %13209 = vmatpush3.bf16.msra.mxu1 %v15158_v45 }
 0x3bb   : > { %13210 = vmatprep.subr.bf16.mxu1 %v15160_v46 }
 0x3bd   : > { %2432 = vmatmul.mubr.bf16.gmra.mxu1 %v13764_v30 }
 0x3be   : > { %13211 = vmatpush3.bf16.msra.mxu1 %v15070_v38  ;;  %2643 = vmatprep.mubr.bf16.mxu1 %v13767_v2 }
 0x3bf   : > { %13212 = vmatprep.subr.bf16.mxu1 %v15164_v27 }
 0x3c2   : > { %13213 = vmatpush3.bf16.msra.mxu1 %v15171_v63 }
 0x3c5   : > { %2644 = vmatmul.mubr.bf16.vlgmr.msra.gmra.mxu1 %v13765_v6 }
 0x3c6   : > { %2651 = vmatprep.mubr.bf16.mxu1 %v13768_v7 }
 0x3cd   : > { %2652 = vmatmul.mubr.bf16.gmra.mxu1 %v13770_v9 }
 0x3ce   : > { %2659 = vmatprep.mubr.bf16.mxu1 %v13771_v10 }
 0x3d5   : > { %2660 = vmatmul.mubr.bf16.gmra.mxu1 %v13773_v36 }
 0x3d6   : > { %2667 = vmatprep.mubr.bf16.mxu1 %v13774_v34 }
 0x3dd   : > { %2668 = vmatmul.mubr.bf16.gmra.mxu1 %v13776_v35 }
 0x425   : > { %v13449_v43 = vpop.f32.mrf.mxu1 }
 0x426   : > { %v2084_v31 = vadd.f32 %v13449_v43, %v15510_v21 }
 0x427   : > { %v2051_v51 = vpop.f32.mrf.mxu1 }
 0x428   : > { %v2082_v24 = vadd.f32 %v2051_v51, %v15512_v57 }
 0x429   : > { %v13450_v53 = vpop.f32.mrf.mxu1 }
 0x42a   : > { %v2085_v13 = vadd.f32 %v13450_v53, %v15514_v37  ;;  %v13782_v53 = vld [vmem:[%s18735_s4 + $0xf0] sm:$0xff]  }
 0x42b   : > { %v15642_v62 = vpop.f32.mrf.mxu1 }
 0x435   : > { %v13453_v1 = vpop.f32.mrf.mxu1 }
 0x436   : > { %v2088_v50 = vadd.f32 %v13453_v1, %v15518_v55 }
 0x437   : > { %v2067_v16 = vpop.f32.mrf.mxu1 }
 0x438   : > { %v2086_v54 = vadd.f32 %v2067_v16, %v15520_v32 }
 0x439   : > { %v13454_v0 = vpop.f32.mrf.mxu1 }
 0x43a   : > { %v2089_v17 = vadd.f32 %v13454_v0, %v15522_v3 }
 0x43b   : > { %v15647_v19 = vpop.f32.mrf.mxu1 }
 0x445   : > { %v13465_v21 = vpop.f32.mrf.mxu1 }
 0x446   : > { %v15649_v33 = vadd.f32 %v13465_v21, %v2084_v31 }
 0x447   : > { %v2287_v57 = vpop.f32.mrf.mxu1 }
 0x448   : > { %v15651_v60 = vadd.f32 %v2287_v57, %v2082_v24  ;;  %v13784_v57 = vld [vmem:[%s18735_s4 + $0xe0] sm:$0xff]  }
 0x449   : > { %v13466_v37 = vpop.f32.mrf.mxu1 }
 0x44a   : > { %v15653_v42 = vadd.f32 %v13466_v37, %v2085_v13 }
 0x44b   : > { %v15655_v22 = vpop.f32.mrf.mxu1 }
 0x455   : > { %v13469_v55 = vpop.f32.mrf.mxu1 }
 0x456   : > { %v15657_v25 = vadd.f32 %v13469_v55, %v2088_v50  ;;  %v13783_v50 = vld [vmem:[%s18735_s4 + $0xe8] sm:$0xff]  }
 0x457   : > { %v2303_v32 = vpop.f32.mrf.mxu1 }
 0x458   : > { %v15659_v29 = vadd.f32 %v2303_v32, %v2086_v54 }
 0x459   : > { %v13470_v3 = vpop.f32.mrf.mxu1 }
 0x45a   : > { %v15661_v30 = vadd.f32 %v13470_v3, %v2089_v17 }
 0x45b   : > { %v15663_v2 = vpop.f32.mrf.mxu1 }
 0x465   : > { %v13166_v6 = vpop.f32.mrf.mxu1 }
 0x467   : > { %v13167_v7 = vpop.f32.mrf.mxu1 }
 0x468   : > { %v13168_v36 = vadd.f32 %v13167_v7, %v13166_v6 }
 0x469   : > { %v13169_v9 = vpop.f32.mrf.mxu1 }
 0x46b   : > { %v13170_v10 = vpop.f32.mrf.mxu1 }
 0x46c   : > { %v13171_v34 = vadd.f32 %v13170_v10, %v13169_v9 }
 0x46d   : > { %v13172_v35 = vpop.f32.mrf.mxu1 }
 0x46e   : > { %v2440_v39 = vpack.c.bf16 %v13171_v34, %v13168_v36 }
 0x46f   : > { %v13173_v11 = vpop.f32.mrf.mxu1 }
 0x470   : > { %13479 = vmatprep.mubr.msk.bf16.mxu0 %vm1203_vm3, %v2440_v39  ;;  %v13174_v43 = vadd.f32 %v13173_v11, %v13172_v35 }
 0x471   : > { %v13175_v12 = vpop.f32.mrf.mxu1 }
 0x473   : > { %v13176_v56 = vpop.f32.mrf.mxu1 }
 0x474   : > { %v13177_v31 = vadd.f32 %v13176_v56, %v13175_v12 }
 0x475   : > { %v13178_v51 = vpop.f32.mrf.mxu1 }
 0x476   : > { %v2441_v24 = vpack.c.bf16 %v13177_v31, %v13174_v43 }
 0x477   : > { %v13179_v13 = vpop.f32.mrf.mxu1 }
 0x478   : > { %13480 = vmatmul.mubr.msk.bf16.vlgmr.msra.gmra.mxu0 %vm1203_vm3, %v2441_v24  ;;  %v13180_v54 = vadd.f32 %v13179_v13, %v13178_v51 }
 0x479   : > { %13488 = vmatpush3.bf16.msra.mxu0 %v13781_v40  ;;  %v13181_v1 = vpop.f32.mrf.mxu1 }
 0x47a   : > { %13489 = vmatprep.subr.bf16.mxu0 %v13782_v53 }
 0x47b   : > { %v13182_v16 = vpop.f32.mrf.mxu1 }
 0x47c   : > { %v13183_v0 = vadd.f32 %v13182_v16, %v13181_v1 }
 0x47d   : > { %13490 = vmatpush3.bf16.msra.mxu0 %v13782_v53  ;;  %v13184_v17 = vpop.f32.mrf.mxu1 }
 0x47e   : > { %v2442_v21 = vpack.c.bf16 %v13183_v0, %v13180_v54  ;;  %13491 = vmatprep.subr.bf16.mxu0 %v13783_v50 }
 0x47f   : > { %v13185_v37 = vpop.f32.mrf.mxu1 }
 0x480   : > { %13483 = vmatprep.mubr.msk.bf16.mxu0 %vm1203_vm3, %v2442_v21  ;;  %v13186_v32 = vadd.f32 %v13185_v37, %v13184_v17 }
 0x481   : > { %13492 = vmatpush3.bf16.msra.mxu0 %v13783_v50  ;;  %v13187_v40 = vpop.f32.mrf.mxu1 }
 0x482   : > { %13493 = vmatprep.subr.bf16.mxu0 %v13784_v57 }
 0x483   : > { %v13188_v55 = vpop.f32.mrf.mxu1 }
 0x484   : > { %v13189_v3 = vadd.f32 %v13188_v55, %v13187_v40 }
 0x485   : > { %13494 = vmatpush3.bf16.msra.mxu0 %v13784_v57  ;;  %v13214_v6 = vpop.f32.mrf.mxu1 }
 0x486   : > { %v2443_v7 = vpack.c.bf16 %v13189_v3, %v13186_v32  ;;  %13246 = vmatprep.subr.bf16.mxu0 %v15103_v41 }
 0x487   : > { %v13215_v9 = vpop.f32.mrf.mxu1 }
 0x488   : > { %13484 = vmatmul.mubr.msk.bf16.gmra.mxu0 %vm1203_vm3, %v2443_v7  ;;  %v13216_v34 = vadd.f32 %v13215_v9, %v13214_v6 }
 0x489   : > { %v13217_v10 = vpop.f32.mrf.mxu1 }
 0x48b   : > { %v13218_v36 = vpop.f32.mrf.mxu1 }
 0x48c   : > { %v13219_v35 = vadd.f32 %v13218_v36, %v13217_v10 }
 0x48d   : > { %v13220_v39 = vpop.f32.mrf.mxu1 }
 0x48e   : > { %v2676_v11 = vpack.c.bf16 %v13219_v35, %v13216_v34 }
 0x48f   : > { %v13221_v12 = vpop.f32.mrf.mxu1 }
 0x490   : > { %13495 = vmatprep.mubr.msk.bf16.mxu0 %vm1203_vm3, %v2676_v11  ;;  %v13222_v31 = vadd.f32 %v13221_v12, %v13220_v39 }
 0x491   : > { %v13223_v56 = vpop.f32.mrf.mxu1 }
 0x493   : > { %v13224_v43 = vpop.f32.mrf.mxu1 }
 0x494   : > { %v13225_v51 = vadd.f32 %v13224_v43, %v13223_v56 }
 0x495   : > { %v13226_v24 = vpop.f32.mrf.mxu1 }
 0x496   : > { %v2677_v53 = vpack.c.bf16 %v13225_v51, %v13222_v31 }
 0x497   : > { %v13227_v13 = vpop.f32.mrf.mxu1 }
 0x498   : > { %13496 = vmatmul.mubr.msk.bf16.vlgmr.msra.gmra.mxu0 %vm1203_vm3, %v2677_v53  ;;  %v13228_v1 = vadd.f32 %v13227_v13, %v13226_v24 }
 0x499   : > { %13247 = vmatpush3.bf16.msra.mxu0 %v15106_v49  ;;  %v13229_v41 = vpop.f32.mrf.mxu1 }
 0x49a   : > { %13248 = vmatprep.subr.bf16.mxu0 %v15109_v44  ;;  %v13787_v44 = vld [vmem:[%s18734_s3 + $0x204] ss:$8 sps:$4 sm:$0xff]  }
 0x49b   : > { %v13230_v50 = vpop.f32.mrf.mxu1 }
 0x49c   : > { %v13231_v16 = vadd.f32 %v13230_v50, %v13229_v41 }
 0x49d   : > { %13249 = vmatpush3.bf16.msra.mxu0 %v15117_v5  ;;  %v13232_v54 = vpop.f32.mrf.mxu1 }
 0x49e   : > { %v2678_v0 = vpack.c.bf16 %v13231_v16, %v13228_v1  ;;  %13250 = vmatprep.subr.bf16.mxu0 %v15120_v8  ;;  %v13785_v8 = vld [vmem:[%s18734_s3 + $0x200] ss:$8 sps:$4 sm:$0xff]  }
 0x49f   : > { %v13233_v17 = vpop.f32.mrf.mxu1 }
 0x4a0   : > { %13499 = vmatprep.mubr.msk.bf16.mxu0 %vm1203_vm3, %v2678_v0  ;;  %v13234_v57 = vadd.f32 %v13233_v17, %v13232_v54 }
 0x4a1   : > { %13251 = vmatpush3.bf16.msra.mxu0 %v15128_v14  ;;  %v13235_v21 = vpop.f32.mrf.mxu1  ;;  %v13788_v14 = vld [vmem:[%s18734_s3 + $0x210] ss:$8 sps:$4 sm:$0xff]  }
 0x4a2   : > { %13252 = vmatprep.subr.bf16.mxu0 %v15132_v18  ;;  %v13791_v18 = vld [vmem:[%s18734_s3 + $0x220] ss:$8 sps:$4 sm:$0xff]  }
 0x4a3   : > { %v13236_v49 = vpop.f32.mrf.mxu1 }
 0x4a4   : > { %v13237_v37 = vadd.f32 %v13236_v49, %v13235_v21 }
 0x4a5   : > { %13253 = vmatpush3.bf16.msra.mxu0 %v15140_v23  ;;  %v13796_v23 = vld [vmem:[%s18734_s3 + $0x234] ss:$8 sps:$4 sm:$0xff]  }
 0x4a6   : > { %v2679_v5 = vpack.c.bf16 %v13237_v37, %v13234_v57  ;;  %13254 = vmatprep.subr.bf16.mxu0 %v15144_v26  ;;  %v13794_v26 = vld [vmem:[%s18734_s3 + $0x230] ss:$8 sps:$4 sm:$0xff]  }
 0x4a8   : > { %13500 = vmatmul.mubr.msk.bf16.gmra.mxu0 %vm1203_vm3, %v2679_v5 }
 0x4a9   : > { %13255 = vmatpush3.bf16.msra.mxu0 %v15077_v48  ;;  %2879 = vmatprep.mubr.bf16.mxu0 %v13787_v44  ;;  %v13790_v48 = vld [vmem:[%s18734_s3 + $0x214] ss:$8 sps:$4 sm:$0xff]  }
 0x4aa   : > { %13256 = vmatprep.subr.bf16.mxu0 %v15152_v58  ;;  %v13797_v58 = vld [vmem:[%s18735_s4 + $0x118] sm:$0xff]  }
 0x4ab   : > { %13503 = vmatprep.subr.bf16.mxu1 %v13797_v58 }
 0x4ac   : > { %13504 = vmatpush3.bf16.msra.mxu1 %v13797_v58 }
 0x4ad   : > { %13257 = vmatpush3.bf16.msra.mxu0 %v15158_v45  ;;  %v13798_v45 = vld [vmem:[%s18735_s4 + $0x110] sm:$0xff]  }
 0x4ae   : > { %13258 = vmatprep.subr.bf16.mxu0 %v15160_v46  ;;  %13505 = vmatprep.subr.bf16.mxu1 %v13798_v45  ;;  %v13799_v46 = vld [vmem:[%s18735_s4 + $0x108] sm:$0xff]  }
 0x4b0   : > { %13506 = vmatpush3.bf16.msra.mxu1 %v13798_v45 }
 0x4b1   : > { %13259 = vmatpush3.bf16.msra.mxu0 %v15070_v38  ;;  %v13793_v38 = vld [vmem:[%s18734_s3 + $0x224] ss:$8 sps:$4 sm:$0xff]   ;;  %13507 = vmatprep.subr.bf16.mxu1 %v13799_v46 }
 0x4b2   : > { %13260 = vmatprep.subr.bf16.mxu0 %v15164_v27  ;;  %v13800_v27 = vld [vmem:[%s18735_s4 + $0x100] sm:$0xff]  }
 0x4b4   : > { %13508 = vmatpush3.bf16.msra.mxu1 %v13799_v46 }
 0x4b5   : > { %13261 = vmatpush3.bf16.msra.mxu0 %v15171_v63  ;;  %13509 = vmatprep.subr.bf16.mxu1 %v13800_v27 }
 0x4b8   : > { %2880 = vmatmul.mubr.bf16.vlgmr.msra.gmra.mxu0 %v13785_v8  ;;  %13510 = vmatpush3.bf16.msra.mxu1 %v13800_v27 }
 0x4b9   : > { %2887 = vmatprep.mubr.bf16.mxu0 %v13790_v48 }
 0x4c0   : > { %2888 = vmatmul.mubr.bf16.gmra.mxu0 %v13788_v14 }
 0x4c1   : > { %2895 = vmatprep.mubr.bf16.mxu0 %v13793_v38 }
 0x4c8   : > { %2896 = vmatmul.mubr.bf16.gmra.mxu0 %v13791_v18 }
 0x4c9   : > { %2903 = vmatprep.mubr.bf16.mxu0 %v13796_v23 }
 0x4d0   : > { %2904 = vmatmul.mubr.bf16.gmra.mxu0 %v13794_v26 }
 0x538   : > { %v13481_v63 = vpop.f32.mrf.mxu0 }
 0x539   : > { %v2556_v40 = vadd.f32 %v13481_v63, %v15649_v33 }
 0x53a   : > { %v2523_v55 = vpop.f32.mrf.mxu0 }
 0x53b   : > { %v2554_v32 = vadd.f32 %v2523_v55, %v15651_v60 }
 0x53c   : > { %v13482_v3 = vpop.f32.mrf.mxu0 }
 0x53d   : > { %v2557_v6 = vadd.f32 %v13482_v3, %v15653_v42  ;;  %v14913_v3 = vmov 0.0  }
 0x53e   : > { %v15737_v7 = vpop.f32.mrf.mxu0  ;;  %13519 = vmatprep.subr.bf16.mxu1 %v14913_v3  ;;  %13531 = vmatprep.subr.bf16.mxu0 %v14913_v3 }
 0x53f   : > { %13539 = vmatprep.mubr.msk.bf16.mxu0 %vm14914_vm4, %v14913_v3 }
 0x548   : > { %v13485_v9 = vpop.f32.mrf.mxu0 }
 0x549   : > { %v2560_v10 = vadd.f32 %v13485_v9, %v15657_v25 }
 0x54a   : > { %v2539_v36 = vpop.f32.mrf.mxu0 }
 0x54b   : > { %v2558_v34 = vadd.f32 %v2539_v36, %v15659_v29 }
 0x54c   : > { %v13486_v35 = vpop.f32.mrf.mxu0 }
 0x54d   : > { %v2561_v39 = vadd.f32 %v13486_v35, %v15661_v30 }
 0x54e   : > { %v15742_v11 = vpop.f32.mrf.mxu0 }
 0x558   : > { %v13497_v33 = vpop.f32.mrf.mxu0 }
 0x559   : > { %v2792_v12 = vadd.f32 %v13497_v33, %v2556_v40  ;;  %v11376_v33 = vld [vmem:[%s18736_s5] ss:$0 sm:$0xff] }
 0x55a   : > { %v2759_v56 = vpop.f32.mrf.mxu0 }
 0x55b   : > { %v2790_v60 = vadd.f32 %v2759_v56, %v2554_v32 }
 0x55c   : > { %v13498_v43 = vpop.f32.mrf.mxu0 }
 0x55d   : > { %v2793_v31 = vadd.f32 %v13498_v43, %v2557_v6  ;;  %v1355_v6 = vadd.f32 %v15502_v59, %v15498_v4 }
 0x55e   : > { %v2762_v42 = vpop.f32.mrf.mxu0 }
 0x55f   : > { %v1611_v9 = vadd.f32 %v15506_v15, %v1355_v6 }
 0x568   : > { %v13501_v51 = vpop.f32.mrf.mxu0 }
 0x569   : > { %v15744_v24 = vadd.f32 %v13501_v51, %v2560_v10  ;;  %v1847_v10 = vadd.f32 %v15516_v28, %v1611_v9 }
 0x56a   : > { %v2775_v53 = vpop.f32.mrf.mxu0 }
 0x56b   : > { %v15746_v25 = vadd.f32 %v2775_v53, %v2558_v34  ;;  %v2083_v36 = vadd.f32 %v15642_v62, %v1847_v10 }
 0x56c   : > { %v13502_v13 = vpop.f32.mrf.mxu0 }
 0x56d   : > { %v15748_v29 = vadd.f32 %v13502_v13, %v2561_v39  ;;  %v2319_v35 = vadd.f32 %v15655_v22, %v2083_v36  ;;  %v1371_v22 = vadd.f32 %v15504_v52, %v15500_v47 }
 0x56e   : > { %v15750_v41 = vpop.f32.mrf.mxu0 }
 0x56f   : > { %v2555_v43 = vadd.f32 %v15737_v7, %v2319_v35 }
 0x571   : > { %v2791_v4 = vadd.f32 %v2762_v42, %v2555_v43 }
 0x578   : > { %v13262_v30 = vpop.f32.mrf.mxu0 }
 0x57a   : > { %v13263_v1 = vpop.f32.mrf.mxu0 }
 0x57b   : > { %v13264_v54 = vadd.f32 %v13263_v1, %v13262_v30 }
 0x57c   : > { %v13265_v50 = vpop.f32.mrf.mxu0 }
 0x57e   : > { %v13266_v16 = vpop.f32.mrf.mxu0 }
 0x57f   : > { %v13267_v0 = vadd.f32 %v13266_v16, %v13265_v50  ;;  %v1615_v16 = vadd.f32 %v15508_v20, %v1371_v22 }
 0x580   : > { %v13268_v17 = vpop.f32.mrf.mxu0 }
 0x581   : > { %v2912_v21 = vpack.c.bf16 %v13267_v0, %v13264_v54  ;;  %v1851_v42 = vadd.f32 %v15524_v61, %v1615_v16 }
 0x582   : > { %v13269_v57 = vpop.f32.mrf.mxu0 }
 0x583   : > { %13511 = vmatprep.mubr.msk.bf16.mxu1 %vm1203_vm3, %v2912_v21  ;;  %v13270_v44 = vadd.f32 %v13269_v57, %v13268_v17  ;;  %v2087_v17 = vadd.f32 %v15647_v19, %v1851_v42 }
 0x584   : > { %v13271_v49 = vpop.f32.mrf.mxu0 }
 0x585   : > { %v2323_v57 = vadd.f32 %v15663_v2, %v2087_v17 }
 0x586   : > { %v13272_v37 = vpop.f32.mrf.mxu0 }
 0x587   : > { %v13273_v5 = vadd.f32 %v13272_v37, %v13271_v49 }
 0x588   : > { %v13274_v8 = vpop.f32.mrf.mxu0 }
 0x589   : > { %v2913_v48 = vpack.c.bf16 %v13273_v5, %v13270_v44  ;;  %v2559_v5 = vadd.f32 %v15742_v11, %v2323_v57 }
 0x58a   : > { %v13275_v14 = vpop.f32.mrf.mxu0 }
 0x58b   : > { %13512 = vmatmul.mubr.msk.bf16.vlgmr.msra.gmra.mxu1 %vm1203_vm3, %v2913_v48  ;;  %v13276_v23 = vadd.f32 %v13275_v14, %v13274_v8 }
 0x58c   : > { %v13277_v38 = vpop.f32.mrf.mxu0 }
 0x58e   : > { %v13278_v18 = vpop.f32.mrf.mxu0 }
 0x58f   : > { %v13279_v26 = vadd.f32 %v13278_v18, %v13277_v38  ;;  %v2795_v18 = vadd.f32 %v15750_v41, %v2559_v5 }
 0x590   : > { %v13280_v58 = vpop.f32.mrf.mxu0 }
 0x591   : > { %v2914_v45 = vpack.c.bf16 %v13279_v26, %v13276_v23 }
 0x592   : > { %v13281_v46 = vpop.f32.mrf.mxu0 }
 0x593   : > { %13515 = vmatprep.mubr.msk.bf16.mxu1 %vm1203_vm3, %v2914_v45  ;;  %v13282_v40 = vadd.f32 %v13281_v46, %v13280_v58 }
 0x594   : > { %v13283_v27 = vpop.f32.mrf.mxu0 }
 0x596   : > { %v13284_v63 = vpop.f32.mrf.mxu0 }
 0x597   : > { %v13285_v55 = vadd.f32 %v13284_v63, %v13283_v27 }
 0x599   : > { %v2915_v32 = vpack.c.bf16 %v13285_v55, %v13282_v40 }
 0x59b   : > { %13516 = vmatmul.mubr.msk.bf16.gmra.mxu1 %vm1203_vm3, %v2915_v32 }
 0x59c   : > { %13527 = vmatprep.mubr.msk.bf16.mxu1 %vm14914_vm4, %v14913_v3 }
 0x64b   : > { %v13513_v34 = vpop.f32.mrf.mxu1 }
 0x64c   : > { %v3028_v39 = vadd.f32 %v13513_v34, %v2792_v12 }
 0x64d   : > { %v2995_v56 = vpop.f32.mrf.mxu1 }
 0x64e   : > { %v3026_v51 = vadd.f32 %v2995_v56, %v2790_v60  ;;  %v3043_v59 = vadd.f32 %v11376_v33, %v3028_v39 }
 0x64f   : > { %v13514_v53 = vpop.f32.mrf.mxu1 }
 0x650   : > { %v3041_v15 = vadd.f32 %v11376_v33, %v3026_v51  ;;  %v3029_v13 = vadd.f32 %v13514_v53, %v2793_v31  ;;  %v3051_v12 = vmul.f32 0.2, %v3043_v59 }
 0x651   : > { %v2998_v28 = vpop.f32.mrf.mxu1 }
 0x652   : > { %v3049_v30 = vmul.f32 0.2, %v3041_v15  ;;  %v3044_v62 = vadd.f32 %v11376_v33, %v3029_v13  ;;  %v3027_v1 = vadd.f32 %v2998_v28, %v2791_v4  ;;  %v15778_v0 = vmax.f32 %v3043_v59, %v3051_v12 }
 0x654   : > { %v3042_v50 = vadd.f32 %v11376_v33, %v3027_v1  ;;  %v15775_v54 = vmax.f32 %v3041_v15, %v3049_v30  ;;  %v3052_v7 = vmul.f32 0.2, %v3044_v62  ;;  %v3082_v49 = vmul.f32 %v15778_v0, %v15778_v0 }
 0x656   : > { %v3050_v60 = vmul.f32 0.2, %v3042_v50  ;;  %v3080_v21 = vmul.f32 %v15775_v54, %v15775_v54  ;;  %v15785_v47 = vmax.f32 %v3044_v62, %v3052_v7 }
 0x658   : > { %v15780_v31 = vmax.f32 %v3042_v50, %v3050_v60  ;;  %v3083_v48 = vmul.f32 %v15785_v47, %v15785_v47 }
 0x65a   : > { %v3065_v52 = vadd.f32 %v15780_v31, %v15775_v54  ;;  %v3081_v20 = vmul.f32 %v15780_v31, %v15780_v31 }
 0x65b   : > { %v13517_v61 = vpop.f32.mrf.mxu1 }
 0x65c   : > { %v3066_v37 = vadd.f32 %v3065_v52, %v15778_v0  ;;  %v3088_v19 = vadd.f32 %v3081_v20, %v3080_v21  ;;  %v3032_v44 = vadd.f32 %v13517_v61, %v15744_v24 }
 0x65d   : > { %v3011_v8 = vpop.f32.mrf.mxu1 }
 0x65e   : > { %v3089_v14 = vadd.f32 %v3088_v19, %v3082_v49  ;;  %v3030_v38 = vadd.f32 %v3011_v8, %v15746_v25  ;;  %v3067_v2 = vadd.f32 %v3066_v37, %v15785_v47  ;;  %v3047_v26 = vadd.f32 %v11376_v33, %v3032_v44 }
 0x65f   : > { %v13518_v23 = vpop.f32.mrf.mxu1 }
 0x660   : > { %v3045_v58 = vadd.f32 %v11376_v33, %v3030_v38  ;;  %v3090_v45 = vadd.f32 %v3089_v14, %v3083_v48  ;;  %v3033_v46 = vadd.f32 %v13518_v23, %v15748_v29  ;;  %v3055_v40 = vmul.f32 0.2, %v3047_v26 }
 0x661   : > { %v3014_v24 = vpop.f32.mrf.mxu1 }
 0x662   : > { %v3053_v27 = vmul.f32 0.2, %v3045_v58  ;;  %v3048_v11 = vadd.f32 %v11376_v33, %v3033_v46  ;;  %v3031_v63 = vadd.f32 %v3014_v24, %v2795_v18  ;;  %v3063_v36 = vmax.f32 %v3047_v26, %v3055_v40  ;;  %v13808_v24 = vld [vmem:[%s18738_s7 + $0x74] ss:$8 sps:$4 sm:$0xff]   ;;  %v13806_v40 = vld [vmem:[%s18738_s7 + $0x70] ss:$8 sps:$4 sm:$0xff]  }
 0x664   : > { %v3061_v55 = vmax.f32 %v3045_v58, %v3053_v27  ;;  %v3046_v32 = vadd.f32 %v11376_v33, %v3031_v63  ;;  %v3056_v25 = vmul.f32 0.2, %v3048_v11  ;;  %v3086_v43 = vmul.f32 %v3063_v36, %v3063_v36  ;;  %v13801_v27 = vld [vmem:[%s18737_s6 + $0x8] sm:$0xff]   ;;  %v13803_v63 = vld [vmem:[%s18738_s7 + $0xf0] ss:$8 sps:$4 sm:$0xff]  }
 0x666   : > { %v3068_v6 = vadd.f32 %v3067_v2, %v3061_v55  ;;  %v3084_v9 = vmul.f32 %v3061_v55, %v3061_v55  ;;  %v3054_v10 = vmul.f32 0.2, %v3046_v32  ;;  %v3064_v35 = vmax.f32 %v3048_v11, %v3056_v25  ;;  %v13802_v11 = vld [vmem:[%s18737_s6] sm:$0xff]   ;;  %v13817_v25 = vld [vmem:[%s18738_s7 + $0xd4] ss:$8 sps:$4 sm:$0xff]  }
 0x668   : > { %v3091_v34 = vadd.f32 %v3090_v45, %v3084_v9  ;;  %v3062_v41 = vmax.f32 %v3046_v32, %v3054_v10  ;;  %v3087_v53 = vmul.f32 %v3064_v35, %v3064_v35  ;;  %v13814_v32 = vld [vmem:[%s18738_s7 + $0x64] ss:$8 sps:$4 sm:$0xff]   ;;  %v13812_v9 = vld [vmem:[%s18738_s7 + $0x60] ss:$8 sps:$4 sm:$0xff]   ;;  %v13820_v10 = vld [vmem:[%s18738_s7 + $0x54] ss:$8 sps:$4 sm:$0xff]  }
 0x66a   : > { %v3069_v39 = vadd.f32 %v3068_v6, %v3062_v41  ;;  %v3085_v56 = vmul.f32 %v3062_v41, %v3062_v41  ;;  %v13809_v6 = vld [vmem:[%s18738_s7 + $0xe0] ss:$8 sps:$4 sm:$0xff]  }
 0x66c   : > { %v3070_v51 = vadd.f32 %v3069_v39, %v3063_v36  ;;  %v3092_v29 = vadd.f32 %v3091_v34, %v3085_v56  ;;  %v13818_v34 = vld [vmem:[%s18738_s7 + $0x50] ss:$8 sps:$4 sm:$0xff]   ;;  %v13821_v39 = vld [vmem:[%s18738_s7 + $0xc0] ss:$8 sps:$4 sm:$0xff]  }
 0x66d   : > { %v13824_v56 = vld [vmem:[%s18738_s7 + $0x40] ss:$8 sps:$4 sm:$0xff]  }
 0x66e   : > { %v3071_v4 = vadd.f32 %v3070_v51, %v3064_v35  ;;  %v3093_v59 = vadd.f32 %v3092_v29, %v3086_v43  ;;  %v13829_v43 = vld [vmem:[%s18738_s7 + $0xb4] ss:$8 sps:$4 sm:$0xff]   ;;  %v13827_v29 = vld [vmem:[%s18738_s7 + $0xb0] ss:$8 sps:$4 sm:$0xff]  }
 0x66f   : > { %v13832_v51 = vld [vmem:[%s18738_s7 + $0x34] ss:$8 sps:$4 sm:$0xff]  }
 0x670   : > { %v3072_v15 = vrot.slane %v3071_v4, 4  ;;  %v3094_v13 = vadd.f32 %v3093_v59, %v3087_v53  ;;  %v13830_v53 = vld [vmem:[%s18738_s7 + $0x30] ss:$8 sps:$4 sm:$0xff]   ;;  %v13838_v59 = vld [vmem:[%s18738_s7 + $0x24] ss:$8 sps:$4 sm:$0xff]  }
 0x672   : > { %v3073_v28 = vadd.f32 %v3072_v15, %v3071_v4  ;;  %v3095_v33 = vrot.slane %v3094_v13, 4  ;;  %v13835_v4 = vld [vmem:[%s18738_s7 + $0xa4] ss:$8 sps:$4 sm:$0xff]   ;;  %v13833_v15 = vld [vmem:[%s18738_s7 + $0xa0] ss:$8 sps:$4 sm:$0xff]  }
 0x674   : > { %v3074_v30 = vrot.slane %v3073_v28, 2  ;;  %v3096_v62 = vadd.f32 %v3095_v33, %v3094_v13  ;;  %v13836_v13 = vld [vmem:[%s18738_s7 + $0x20] ss:$8 sps:$4 sm:$0xff]   ;;  %v13839_v33 = vld [vmem:[%s18738_s7 + $0x90] ss:$8 sps:$4 sm:$0xff]  }
 0x676   : > { %v3075_v1 = vadd.f32 %v3074_v30, %v3073_v28  ;;  %v3097_v22 = vrot.slane %v3096_v62, 2  ;;  %v13841_v28 = vld [vmem:[%s18738_s7 + $0x94] ss:$8 sps:$4 sm:$0xff]  }
 0x677   : > { %v13844_v30 = vld [vmem:[%s18738_s7 + $0x14] ss:$8 sps:$4 sm:$0xff]  }
 0x678   : > { %v3076_v12 = vrot.slane %v3075_v1, 1  ;;  %v3098_v50 = vadd.f32 %v3097_v22, %v3096_v62  ;;  %v13842_v62 = vld [vmem:[%s18738_s7 + $0x10] ss:$8 sps:$4 sm:$0xff]   ;;  %v13847_v22 = vld [vmem:[%s18738_s7 + $0x84] ss:$8 sps:$4 sm:$0xff]  }
 0x67a   : > { %v3077_v16 = vadd.f32 %v3076_v12, %v3075_v1  ;;  %v3099_v7 = vrot.slane %v3098_v50, 1  ;;  %v13845_v1 = vld [vmem:[%s18738_s7 + $0x80] ss:$8 sps:$4 sm:$0xff]   ;;  %v13850_v12 = vld [vmem:[%s18738_s7 + $0x4] ss:$8 sps:$4 sm:$0xff]  }
 0x67c   : > { %v3079_v60 = vmul.f32 0.015625, %v3077_v16  ;;  %v3100_v42 = vadd.f32 %v3099_v7, %v3098_v50  ;;  %v13848_v50 = vld [vmem:[%s18738_s7] ss:$8 sps:$4 sm:$0xff]   ;;  %v14915_v16 = vmov 0   ;;  %v13855_v7 = vld [vmem:[%s18738_s7 + $0x174] ss:$8 sps:$4 sm:$0xff]  }
 0x67e   : > { %v3101_v17 = vmul.f32 0.015625, %v3100_v42  ;;  %v3102_v21 = vmul.f32 %v3079_v60, %v3079_v60  ;;  %v3108_v52 = vsub.f32 %v3061_v55, %v3079_v60  ;;  %v3110_v20 = vsub.f32 %v3063_v36, %v3079_v60  ;;  %v13811_v55 = vld [vmem:[%s18738_s7 + $0xe4] ss:$8 sps:$4 sm:$0xff]   ;;  %v13815_v36 = vld [vmem:[%s18738_s7 + $0xd0] ss:$8 sps:$4 sm:$0xff]  }
 0x67f   : > { %v3111_v57 = vsub.f32 %v3064_v35, %v3079_v60  ;;  %v3106_v61 = vsub.f32 %v15778_v0, %v3079_v60  ;;  %v3107_v49 = vsub.f32 %v15785_v47, %v3079_v60  ;;  %v3104_v19 = vsub.f32 %v15775_v54, %v3079_v60  ;;  %v13826_v35 = vld [vmem:[%s18738_s7 + $0x44] ss:$8 sps:$4 sm:$0xff]  }
 0x680   : > { %v3103_v37 = vsub.f32 %v3101_v17, %v3102_v21  ;;  %v3109_v5 = vsub.f32 %v3062_v41, %v3079_v60  ;;  %v3105_v48 = vsub.f32 %v15780_v31, %v3079_v60  ;;  %v13805_v31 = vld [vmem:[%s18738_s7 + $0xf4] ss:$8 sps:$4 sm:$0xff]   ;;  %v13823_v41 = vld [vmem:[%s18738_s7 + $0xc4] ss:$8 sps:$4 sm:$0xff]  }
 0x682   : > { %v3112_v44 = vadd.f32 1e-05, %v3103_v37 }
 0x684   : > { %14890 = vrsqrt.f32 %v3112_v44  ;;  %v13858_v44 = vld [vmem:[%s18738_s7 + $0x164] ss:$8 sps:$4 sm:$0xff]  }
 0x691   : > { %v14891_v8 = vpop.eup %14890 }
 0x692   : > { %v3118_v14 = vmul.f32 %v14891_v8, %v3108_v52  ;;  %v3119_v38 = vmul.f32 %v14891_v8, %v3109_v5  ;;  %v3120_v2 = vmul.f32 %v14891_v8, %v3110_v20  ;;  %v3121_v18 = vmul.f32 %v14891_v8, %v3111_v57  ;;  %v13856_v5 = vld [vmem:[%s18738_s7 + $0x160] ss:$8 sps:$4 sm:$0xff]  }
 0x693   : > { %v3116_v23 = vmul.f32 %v14891_v8, %v3106_v61  ;;  %v3117_v26 = vmul.f32 %v14891_v8, %v3107_v49  ;;  %v3114_v58 = vmul.f32 %v14891_v8, %v3104_v19  ;;  %v3115_v45 = vmul.f32 %v14891_v8, %v3105_v48  ;;  %v13853_v49 = vld [vmem:[%s18738_s7 + $0x170] ss:$8 sps:$4 sm:$0xff]   ;;  %v13861_v8 = vld [vmem:[%s18738_s7 + $0x154] ss:$8 sps:$4 sm:$0xff]  }
 0x694   : > { %v15807_v0 = vpack.c.bf16 %v3119_v38, %v3118_v14  ;;  %v15809_v47 = vpack.c.bf16 %v3121_v18, %v3120_v2  ;;  %v13859_v48 = vld [vmem:[%s18738_s7 + $0x150] ss:$8 sps:$4 sm:$0xff]   ;;  %v13864_v14 = vld [vmem:[%s18738_s7 + $0x144] ss:$8 sps:$4 sm:$0xff]   ;;  %v13862_v38 = vld [vmem:[%s18738_s7 + $0x140] ss:$8 sps:$4 sm:$0xff]  }
 0x695   : > { %v15811_v46 = vpack.c.bf16 %v3117_v26, %v3116_v23  ;;  %v15813_v54 = vpack.c.bf16 %v3115_v45, %v3114_v58  ;;  %v13851_v2 = vld [vmem:[%s18737_s6 + $0x10] sm:$0xff]   ;;  %v13852_v18 = vld [vmem:[%s18737_s6 + $0x18] sm:$0xff]  }
 0x696   : > { %13520 = vmatpush3.bf16.msra.mxu1 %v15809_v47  ;;  %13532 = vmatpush3.bf16.msra.mxu0 %v15809_v47  ;;  %v13865_v23 = vld [vmem:[%s18738_s7 + $0x130] ss:$8 sps:$4 sm:$0xff]   ;;  %v13867_v26 = vld [vmem:[%s18738_s7 + $0x134] ss:$8 sps:$4 sm:$0xff]  }
 0x697   : > { %13521 = vmatprep.subr.bf16.mxu1 %v14913_v3  ;;  %13533 = vmatprep.subr.bf16.mxu0 %v14913_v3  ;;  %v13868_v58 = vld [vmem:[%s18738_s7 + $0x1f0] ss:$8 sps:$4 sm:$0xff]   ;;  %v13870_v45 = vld [vmem:[%s18738_s7 + $0x1f4] ss:$8 sps:$4 sm:$0xff]  }
 0x69a   : > { %13522 = vmatpush3.bf16.msra.mxu1 %v15807_v0  ;;  %13534 = vmatpush3.bf16.msra.mxu0 %v15807_v0 }
 0x69b   : > { %13523 = vmatprep.subr.bf16.mxu1 %v14913_v3  ;;  %13535 = vmatprep.subr.bf16.mxu0 %v14913_v3 }
 0x69e   : > { %13524 = vmatpush3.bf16.msra.mxu1 %v15811_v46  ;;  %13536 = vmatpush3.bf16.msra.mxu0 %v15811_v46 }
 0x69f   : > { %13525 = vmatprep.subr.bf16.mxu1 %v14913_v3  ;;  %13537 = vmatprep.subr.bf16.mxu0 %v14913_v3 }
 0x6a2   : > { %13526 = vmatpush3.bf16.msra.mxu1 %v15813_v54  ;;  %13538 = vmatpush3.bf16.msra.mxu0 %v15813_v54 }
 0x6a3   : > { %3344 = vmatprep.subr.bf16.mxu1 %v13805_v31  ;;  %3467 = vmatprep.subr.bf16.mxu0 %v13808_v24  ;;  %v13871_v31 = vld [vmem:[%s18738_s7 + $0x120] ss:$8 sps:$4 sm:$0xff]   ;;  %v13873_v24 = vld [vmem:[%s18738_s7 + $0x124] ss:$8 sps:$4 sm:$0xff]  }
 0x6a5   : > { %13540 = vmatmul.mubr.msk.bf16.vlgmr.msra.gmra.mxu0 %vm1203_vm3, %v13801_v27  ;;  %13528 = vmatmul.mubr.msk.bf16.vlgmr.msra.gmra.mxu1 %vm1203_vm3, %v13802_v11  ;;  %v13874_v27 = vld [vmem:[%s18738_s7 + $0x1e0] ss:$8 sps:$4 sm:$0xff]   ;;  %v13876_v11 = vld [vmem:[%s18738_s7 + $0x1e4] ss:$8 sps:$4 sm:$0xff]  }
 0x6a6   : > { %3345 = vmatpush1.bf16.msra.mxu1 %v13803_v63  ;;  %3468 = vmatpush1.bf16.msra.mxu0 %v13806_v40  ;;  %v13879_v63 = vld [vmem:[%s18738_s7 + $0x114] ss:$8 sps:$4 sm:$0xff]  }
 0x6a7   : > { %3346 = vmatprep.subr.bf16.mxu1 %v13811_v55  ;;  %3469 = vmatprep.subr.bf16.mxu0 %v13814_v32  ;;  %v13882_v40 = vld [vmem:[%s18738_s7 + $0x1d4] ss:$8 sps:$4 sm:$0xff]   ;;  %v13877_v55 = vld [vmem:[%s18738_s7 + $0x110] ss:$8 sps:$4 sm:$0xff]  }
 0x6a8   : > { %3376 = vmatprep.mubr.bf16.mxu1 %v14915_v16  ;;  %3499 = vmatprep.mubr.bf16.mxu0 %v14915_v16  ;;  %v13880_v32 = vld [vmem:[%s18738_s7 + $0x1d0] ss:$8 sps:$4 sm:$0xff]  }
 0x6aa   : > { %3347 = vmatpush1.bf16.msra.mxu1 %v13809_v6  ;;  %3470 = vmatpush1.bf16.msra.mxu0 %v13812_v9  ;;  %v13885_v6 = vld [vmem:[%s18738_s7 + $0x104] ss:$8 sps:$4 sm:$0xff]  }
 0x6ab   : > { %3348 = vmatprep.subr.bf16.mxu1 %v13817_v25  ;;  %3471 = vmatprep.subr.bf16.mxu0 %v13820_v10  ;;  %v13888_v9 = vld [vmem:[%s18738_s7 + $0x1c4] ss:$8 sps:$4 sm:$0xff]   ;;  %v13883_v25 = vld [vmem:[%s18738_s7 + $0x100] ss:$8 sps:$4 sm:$0xff]  }
 0x6ac   : > { %v13886_v10 = vld [vmem:[%s18738_s7 + $0x1c0] ss:$8 sps:$4 sm:$0xff]  }
 0x6ae   : > { %3349 = vmatpush1.bf16.msra.mxu1 %v13815_v36  ;;  %3472 = vmatpush1.bf16.msra.mxu0 %v13818_v34  ;;  %v13889_v36 = vld [vmem:[%s18738_s7 + $0x1b0] ss:$8 sps:$4 sm:$0xff]   ;;  %v13891_v34 = vld [vmem:[%s18738_s7 + $0x1b4] ss:$8 sps:$4 sm:$0xff]  }
 0x6af   : > { %3350 = vmatprep.subr.bf16.mxu1 %v13823_v41  ;;  %3473 = vmatprep.subr.bf16.mxu0 %v13826_v35  ;;  %v13892_v41 = vld [vmem:[%s18738_s7 + $0x1a0] ss:$8 sps:$4 sm:$0xff]   ;;  %v13894_v35 = vld [vmem:[%s18738_s7 + $0x1a4] ss:$8 sps:$4 sm:$0xff]  }
 0x6b2   : > { %3351 = vmatpush1.bf16.msra.mxu1 %v13821_v39  ;;  %3474 = vmatpush1.bf16.msra.mxu0 %v13824_v56  ;;  %v13895_v39 = vld [vmem:[%s18738_s7 + $0x190] ss:$8 sps:$4 sm:$0xff]   ;;  %v13897_v56 = vld [vmem:[%s18738_s7 + $0x194] ss:$8 sps:$4 sm:$0xff]  }
 0x6b3   : > { %3352 = vmatprep.subr.bf16.mxu1 %v13829_v43  ;;  %3475 = vmatprep.subr.bf16.mxu0 %v13832_v51  ;;  %v13900_v43 = vld [vmem:[%s18738_s7 + $0x184] ss:$8 sps:$4 sm:$0xff]   ;;  %v13898_v51 = vld [vmem:[%s18738_s7 + $0x180] ss:$8 sps:$4 sm:$0xff]  }
 0x6b6   : > { %3353 = vmatpush1.bf16.msra.mxu1 %v13827_v29  ;;  %3476 = vmatpush1.bf16.msra.mxu0 %v13830_v53 }
 0x6b7   : > { %3354 = vmatprep.subr.bf16.mxu1 %v13835_v4  ;;  %3477 = vmatprep.subr.bf16.mxu0 %v13838_v59 }
 0x6ba   : > { %3355 = vmatpush1.bf16.msra.mxu1 %v13833_v15  ;;  %3478 = vmatpush1.bf16.msra.mxu0 %v13836_v13 }
 0x6bb   : > { %3356 = vmatprep.subr.bf16.mxu1 %v13841_v28  ;;  %3479 = vmatprep.subr.bf16.mxu0 %v13844_v30 }
 0x6be   : > { %3357 = vmatpush1.bf16.msra.mxu1 %v13839_v33  ;;  %3480 = vmatpush1.bf16.msra.mxu0 %v13842_v62 }
 0x6bf   : > { %3358 = vmatprep.subr.bf16.mxu1 %v13847_v22  ;;  %3481 = vmatprep.subr.bf16.mxu0 %v13850_v12 }
 0x6c2   : > { %3359 = vmatpush1.bf16.msra.mxu1 %v13845_v1  ;;  %3482 = vmatpush1.bf16.msra.mxu0 %v13848_v50 }
 0x6c3   : > { %13543 = vmatprep.subr.bf16.mxu1 %v14913_v3  ;;  %3660 = vmatprep.subr.bf16.mxu0 %v13855_v7 }
 0x765   : > { %v3239_v60 = vpop.f32.mrf.mxu0  ;;  %v3170_v42 = vpop.f32.mrf.mxu1 }
 0x767   : > { %v13541_v17 = vpop.f32.mrf.mxu0  ;;  %v13529_v21 = vpop.f32.mrf.mxu1 }
 0x768   : > { %v13901_v21 = vld [vmem:[%s18737_s6 + $0x20] sm:$0xff]  }
 0x769   : > { %v3242_v52 = vpop.f32.mrf.mxu0  ;;  %v3173_v20 = vpop.f32.mrf.mxu1 }
 0x76a   : > { %v3246_v57 = vpack.c.bf16 %v3242_v52, %v3239_v60  ;;  %v3177_v61 = vpack.c.bf16 %v3173_v20, %v3170_v42  ;;  %v13905_v42 = vld [vmem:[%s18738_s7 + $0x274] ss:$8 sps:$4 sm:$0xff]  }
 0x76b   : > { %v13542_v37 = vpop.f32.mrf.mxu0  ;;  %v13530_v19 = vpop.f32.mrf.mxu1 }
 0x76c   : > { %3377 = vmatmul.mubr.bf16.vlgmr.msra.gmra.mxu1 %v3246_v57  ;;  %3500 = vmatmul.mubr.bf16.vlgmr.msra.gmra.mxu0 %v3177_v61  ;;  %v13903_v57 = vld [vmem:[%s18738_s7 + $0x270] ss:$8 sps:$4 sm:$0xff]   ;;  %v13908_v61 = vld [vmem:[%s18738_s7 + $0x264] ss:$8 sps:$4 sm:$0xff]   ;;  %v13906_v37 = vld [vmem:[%s18738_s7 + $0x260] ss:$8 sps:$4 sm:$0xff]  }
 0x76d   : > { %13544 = vmatpush3.bf16.msra.mxu1 %v15809_v47  ;;  %13551 = vmatprep.mubr.msk.bf16.mxu1 %vm14914_vm4, %v14913_v3  ;;  %v13911_v19 = vld [vmem:[%s18738_s7 + $0x254] ss:$8 sps:$4 sm:$0xff]  }
 0x76e   : > { %13545 = vmatprep.subr.bf16.mxu1 %v14913_v3  ;;  %3661 = vmatpush1.bf16.msra.mxu0 %v13853_v49 }
 0x76f   : > { %3662 = vmatprep.subr.bf16.mxu0 %v13858_v44  ;;  %3692 = vmatprep.mubr.bf16.mxu0 %v14915_v16  ;;  %v13909_v44 = vld [vmem:[%s18738_s7 + $0x250] ss:$8 sps:$4 sm:$0xff]  }
 0x771   : > { %13546 = vmatpush3.bf16.msra.mxu1 %v15807_v0 }
 0x772   : > { %13547 = vmatprep.subr.bf16.mxu1 %v14913_v3  ;;  %3663 = vmatpush1.bf16.msra.mxu0 %v13856_v5  ;;  %v13902_v5 = vld [vmem:[%s18737_s6 + $0x28] sm:$0xff]  }
 0x773   : > { %3664 = vmatprep.subr.bf16.mxu0 %v13861_v8  ;;  %v13914_v8 = vld [vmem:[%s18738_s7 + $0x244] ss:$8 sps:$4 sm:$0xff]  }
 0x775   : > { %13548 = vmatpush3.bf16.msra.mxu1 %v15811_v46 }
 0x776   : > { %13549 = vmatprep.subr.bf16.mxu1 %v14913_v3  ;;  %3665 = vmatpush1.bf16.msra.mxu0 %v13859_v48  ;;  %v13912_v48 = vld [vmem:[%s18738_s7 + $0x240] ss:$8 sps:$4 sm:$0xff]  }
 0x777   : > { %3666 = vmatprep.subr.bf16.mxu0 %v13864_v14  ;;  %v13917_v14 = vld [vmem:[%s18738_s7 + $0x234] ss:$8 sps:$4 sm:$0xff]  }
 0x779   : > { %13550 = vmatpush3.bf16.msra.mxu1 %v15813_v54 }
 0x77a   : > { %13555 = vmatprep.subr.bf16.mxu1 %v14913_v3  ;;  %3667 = vmatpush1.bf16.msra.mxu0 %v13862_v38  ;;  %v13920_v38 = vld [vmem:[%s18738_s7 + $0x2f4] ss:$8 sps:$4 sm:$0xff]  }
 0x77b   : > { %3668 = vmatprep.subr.bf16.mxu0 %v13867_v26  ;;  %v13923_v26 = vld [vmem:[%s18738_s7 + $0x224] ss:$8 sps:$4 sm:$0xff]  }
 0x77c   : > { %13552 = vmatmul.mubr.msk.bf16.vlgmr.msra.gmra.mxu1 %vm1203_vm3, %v13851_v2  ;;  %v13915_v2 = vld [vmem:[%s18738_s7 + $0x230] ss:$8 sps:$4 sm:$0xff]  }
 0x77d   : > { %13556 = vmatpush3.bf16.msra.mxu1 %v15809_v47  ;;  %13563 = vmatprep.mubr.msk.bf16.mxu1 %vm14914_vm4, %v14913_v3 }
 0x77e   : > { %13557 = vmatprep.subr.bf16.mxu1 %v14913_v3  ;;  %3669 = vmatpush1.bf16.msra.mxu0 %v13865_v23  ;;  %v13921_v23 = vld [vmem:[%s18738_s7 + $0x220] ss:$8 sps:$4 sm:$0xff]  }
 0x77f   : > { %3670 = vmatprep.subr.bf16.mxu0 %v13873_v24  ;;  %v13932_v24 = vld [vmem:[%s18738_s7 + $0x2d4] ss:$8 sps:$4 sm:$0xff]  }
 0x781   : > { %13558 = vmatpush3.bf16.msra.mxu1 %v15807_v0 }
 0x782   : > { %13559 = vmatprep.subr.bf16.mxu1 %v14913_v3  ;;  %3671 = vmatpush1.bf16.msra.mxu0 %v13871_v31  ;;  %v13929_v31 = vld [vmem:[%s18738_s7 + $0x214] ss:$8 sps:$4 sm:$0xff]  }
 0x783   : > { %3672 = vmatprep.subr.bf16.mxu0 %v13879_v63  ;;  %v13935_v63 = vld [vmem:[%s18738_s7 + $0x204] ss:$8 sps:$4 sm:$0xff]  }
 0x785   : > { %13560 = vmatpush3.bf16.msra.mxu1 %v15811_v46 }
 0x786   : > { %13561 = vmatprep.subr.bf16.mxu1 %v14913_v3  ;;  %3673 = vmatpush1.bf16.msra.mxu0 %v13877_v55  ;;  %v13933_v55 = vld [vmem:[%s18738_s7 + $0x200] ss:$8 sps:$4 sm:$0xff]  }
 0x787   : > { %3674 = vmatprep.subr.bf16.mxu0 %v13885_v6  ;;  %v13941_v6 = vld [vmem:[%s18738_s7 + $0x2b4] ss:$8 sps:$4 sm:$0xff]  }
 0x789   : > { %13562 = vmatpush3.bf16.msra.mxu1 %v15813_v54 }
 0x78a   : > { %3857 = vmatprep.subr.bf16.mxu1 %v13870_v45  ;;  %3675 = vmatpush1.bf16.msra.mxu0 %v13883_v25  ;;  %v13926_v45 = vld [vmem:[%s18738_s7 + $0x2e4] ss:$8 sps:$4 sm:$0xff]   ;;  %v13942_v25 = vld [vmem:[%s18738_s7 + $0x2a0] ss:$8 sps:$4 sm:$0xff]  }
 0x78b   : > { %13567 = vmatprep.subr.bf16.mxu0 %v14913_v3 }
 0x78c   : > { %13564 = vmatmul.mubr.msk.bf16.vlgmr.msra.gmra.mxu1 %vm1203_vm3, %v13852_v18  ;;  %v13918_v18 = vld [vmem:[%s18738_s7 + $0x2f0] ss:$8 sps:$4 sm:$0xff]  }
 0x78d   : > { %3889 = vmatprep.mubr.bf16.mxu1 %v14915_v16  ;;  %3858 = vmatpush1.bf16.msra.mxu1 %v13868_v58  ;;  %v13924_v58 = vld [vmem:[%s18738_s7 + $0x2e0] ss:$8 sps:$4 sm:$0xff]  }
 0x78e   : > { %3859 = vmatprep.subr.bf16.mxu1 %v13876_v11  ;;  %v13930_v11 = vld [vmem:[%s18738_s7 + $0x2d0] ss:$8 sps:$4 sm:$0xff]  }
 0x791   : > { %3860 = vmatpush1.bf16.msra.mxu1 %v13874_v27  ;;  %v13927_v27 = vld [vmem:[%s18738_s7 + $0x210] ss:$8 sps:$4 sm:$0xff]  }
 0x792   : > { %3861 = vmatprep.subr.bf16.mxu1 %v13882_v40  ;;  %v13938_v40 = vld [vmem:[%s18738_s7 + $0x2c4] ss:$8 sps:$4 sm:$0xff]  }
 0x795   : > { %3862 = vmatpush1.bf16.msra.mxu1 %v13880_v32  ;;  %v13936_v32 = vld [vmem:[%s18738_s7 + $0x2c0] ss:$8 sps:$4 sm:$0xff]  }
 0x796   : > { %3863 = vmatprep.subr.bf16.mxu1 %v13888_v9  ;;  %v13939_v9 = vld [vmem:[%s18738_s7 + $0x2b0] ss:$8 sps:$4 sm:$0xff]  }
 0x799   : > { %3864 = vmatpush1.bf16.msra.mxu1 %v13886_v10  ;;  %v13944_v10 = vld [vmem:[%s18738_s7 + $0x2a4] ss:$8 sps:$4 sm:$0xff]  }
 0x79a   : > { %3865 = vmatprep.subr.bf16.mxu1 %v13891_v34  ;;  %v13947_v34 = vld [vmem:[%s18738_s7 + $0x294] ss:$8 sps:$4 sm:$0xff]  }
 0x79d   : > { %3866 = vmatpush1.bf16.msra.mxu1 %v13889_v36  ;;  %v13945_v36 = vld [vmem:[%s18738_s7 + $0x290] ss:$8 sps:$4 sm:$0xff]  }
 0x79e   : > { %3867 = vmatprep.subr.bf16.mxu1 %v13894_v35  ;;  %v13948_v35 = vld [vmem:[%s18738_s7 + $0x280] ss:$8 sps:$4 sm:$0xff]  }
 0x7a1   : > { %3868 = vmatpush1.bf16.msra.mxu1 %v13892_v41  ;;  %v13950_v41 = vld [vmem:[%s18738_s7 + $0x284] ss:$8 sps:$4 sm:$0xff]  }
 0x7a2   : > { %3869 = vmatprep.subr.bf16.mxu1 %v13897_v56 }
 0x7a5   : > { %3870 = vmatpush1.bf16.msra.mxu1 %v13895_v39 }
 0x7a6   : > { %3871 = vmatprep.subr.bf16.mxu1 %v13900_v43 }
 0x7a9   : > { %3872 = vmatpush1.bf16.msra.mxu1 %v13898_v51 }
 0x7aa   : > { %13579 = vmatprep.subr.bf16.mxu1 %v14913_v3 }
 0x82c   : > { %v3378_v29 = vpop.f32.mrf.mxu1  ;;  %v3501_v53 = vpop.f32.mrf.mxu0 }
 0x82d   : > { %v16063_v4 = vadd.f32 %v3501_v53, %v3378_v29 }
 0x82e   : > { %v3380_v59 = vpop.f32.mrf.mxu1  ;;  %v3503_v15 = vpop.f32.mrf.mxu0 }
 0x82f   : > { %v16065_v13 = vadd.f32 %v3503_v15, %v3380_v59 }
 0x830   : > { %v3382_v28 = vpop.f32.mrf.mxu1  ;;  %v3505_v33 = vpop.f32.mrf.mxu0 }
 0x831   : > { %v16067_v30 = vadd.f32 %v3505_v33, %v3382_v28 }
 0x832   : > { %v16069_v62 = vpop.f32.mrf.mxu1  ;;  %v16197_v39 = vpop.f32.mrf.mxu0 }
 0x83c   : > { %v3555_v1 = vpop.f32.mrf.mxu1 }
 0x83e   : > { %v13553_v22 = vpop.f32.mrf.mxu1 }
 0x840   : > { %v3558_v12 = vpop.f32.mrf.mxu1 }
 0x841   : > { %v3562_v50 = vpack.c.bf16 %v3558_v12, %v3555_v1 }
 0x842   : > { %v13554_v7 = vpop.f32.mrf.mxu1 }
 0x843   : > { %3693 = vmatmul.mubr.bf16.vlgmr.msra.gmra.mxu0 %v3562_v50 }
 0x844   : > { %13568 = vmatpush3.bf16.msra.mxu0 %v15809_v47  ;;  %13575 = vmatprep.mubr.msk.bf16.mxu0 %vm14914_vm4, %v14913_v3 }
 0x845   : > { %13569 = vmatprep.subr.bf16.mxu0 %v14913_v3 }
 0x848   : > { %13570 = vmatpush3.bf16.msra.mxu0 %v15807_v0 }
 0x849   : > { %13571 = vmatprep.subr.bf16.mxu0 %v14913_v3 }
 0x84c   : > { %13572 = vmatpush3.bf16.msra.mxu0 %v15811_v46  ;;  %v3752_v60 = vpop.f32.mrf.mxu1 }
 0x84d   : > { %13573 = vmatprep.subr.bf16.mxu0 %v14913_v3 }
 0x84e   : > { %v13565_v17 = vpop.f32.mrf.mxu1 }
 0x850   : > { %13574 = vmatpush3.bf16.msra.mxu0 %v15813_v54  ;;  %v3755_v52 = vpop.f32.mrf.mxu1 }
 0x851   : > { %v3759_v20 = vpack.c.bf16 %v3755_v52, %v3752_v60  ;;  %4054 = vmatprep.subr.bf16.mxu0 %v13905_v42 }
 0x852   : > { %v13566_v49 = vpop.f32.mrf.mxu1 }
 0x853   : > { %13576 = vmatmul.mubr.msk.bf16.vlgmr.msra.gmra.mxu0 %vm1203_vm3, %v13901_v21  ;;  %3890 = vmatmul.mubr.bf16.vlgmr.msra.gmra.mxu1 %v3759_v20  ;;  %v13955_v21 = vld [vmem:[%s18738_s7 + $0x374] ss:$8 sps:$4 sm:$0xff]   ;;  %v13953_v49 = vld [vmem:[%s18738_s7 + $0x370] ss:$8 sps:$4 sm:$0xff]  }
 0x854   : > { %13580 = vmatpush3.bf16.msra.mxu1 %v15809_v47  ;;  %13587 = vmatprep.mubr.msk.bf16.mxu1 %vm14914_vm4, %v14913_v3  ;;  %v13951_v20 = vld [vmem:[%s18737_s6 + $0x30] sm:$0xff]  }
 0x855   : > { %13581 = vmatprep.subr.bf16.mxu1 %v14913_v3  ;;  %4055 = vmatpush1.bf16.msra.mxu0 %v13903_v57 }
 0x856   : > { %4056 = vmatprep.subr.bf16.mxu0 %v13908_v61  ;;  %4086 = vmatprep.mubr.bf16.mxu0 %v14915_v16 }
 0x858   : > { %13582 = vmatpush3.bf16.msra.mxu1 %v15807_v0 }
 0x859   : > { %13583 = vmatprep.subr.bf16.mxu1 %v14913_v3  ;;  %4057 = vmatpush1.bf16.msra.mxu0 %v13906_v37  ;;  %v13958_v37 = vld [vmem:[%s18738_s7 + $0x364] ss:$8 sps:$4 sm:$0xff]  }
 0x85a   : > { %4058 = vmatprep.subr.bf16.mxu0 %v13911_v19 }
 0x85c   : > { %13584 = vmatpush3.bf16.msra.mxu1 %v15811_v46 }
 0x85d   : > { %13585 = vmatprep.subr.bf16.mxu1 %v14913_v3  ;;  %4059 = vmatpush1.bf16.msra.mxu0 %v13909_v44  ;;  %v13956_v44 = vld [vmem:[%s18738_s7 + $0x360] ss:$8 sps:$4 sm:$0xff]  }
 0x85e   : > { %4060 = vmatprep.subr.bf16.mxu0 %v13914_v8  ;;  %v13959_v8 = vld [vmem:[%s18738_s7 + $0x350] ss:$8 sps:$4 sm:$0xff]  }
 0x860   : > { %13586 = vmatpush3.bf16.msra.mxu1 %v15813_v54 }
 0x861   : > { %4061 = vmatpush1.bf16.msra.mxu0 %v13912_v48  ;;  %4251 = vmatprep.subr.bf16.mxu1 %v13920_v38  ;;  %v13952_v48 = vld [vmem:[%s18737_s6 + $0x38] sm:$0xff]   ;;  %v13962_v38 = vld [vmem:[%s18738_s7 + $0x340] ss:$8 sps:$4 sm:$0xff]  }
 0x862   : > { %4062 = vmatprep.subr.bf16.mxu0 %v13917_v14  ;;  %v13964_v14 = vld [vmem:[%s18738_s7 + $0x344] ss:$8 sps:$4 sm:$0xff]  }
 0x863   : > { %13588 = vmatmul.mubr.msk.bf16.vlgmr.msra.gmra.mxu1 %vm1203_vm3, %v13902_v5  ;;  %v13961_v5 = vld [vmem:[%s18738_s7 + $0x354] ss:$8 sps:$4 sm:$0xff]  }
 0x864   : > { %4283 = vmatprep.mubr.bf16.mxu1 %v14915_v16  ;;  %4252 = vmatpush1.bf16.msra.mxu1 %v13918_v18  ;;  %v13965_v18 = vld [vmem:[%s18738_s7 + $0x330] ss:$8 sps:$4 sm:$0xff]  }
 0x865   : > { %4063 = vmatpush1.bf16.msra.mxu0 %v13915_v2  ;;  %4253 = vmatprep.subr.bf16.mxu1 %v13926_v45  ;;  %v13967_v2 = vld [vmem:[%s18738_s7 + $0x334] ss:$8 sps:$4 sm:$0xff]   ;;  %v13973_v45 = vld [vmem:[%s18738_s7 + $0x324] ss:$8 sps:$4 sm:$0xff]  }
 0x866   : > { %4064 = vmatprep.subr.bf16.mxu0 %v13923_v26  ;;  %v13968_v26 = vld [vmem:[%s18738_s7 + $0x3f0] ss:$8 sps:$4 sm:$0xff]  }
 0x868   : > { %4254 = vmatpush1.bf16.msra.mxu1 %v13924_v58  ;;  %v13971_v58 = vld [vmem:[%s18738_s7 + $0x320] ss:$8 sps:$4 sm:$0xff]  }
 0x869   : > { %4065 = vmatpush1.bf16.msra.mxu0 %v13921_v23  ;;  %4255 = vmatprep.subr.bf16.mxu1 %v13932_v24  ;;  %v13970_v23 = vld [vmem:[%s18738_s7 + $0x3f4] ss:$8 sps:$4 sm:$0xff]   ;;  %v13976_v24 = vld [vmem:[%s18738_s7 + $0x3e4] ss:$8 sps:$4 sm:$0xff]  }
 0x86a   : > { %4066 = vmatprep.subr.bf16.mxu0 %v13929_v31  ;;  %v13974_v31 = vld [vmem:[%s18738_s7 + $0x3e0] ss:$8 sps:$4 sm:$0xff]  }
 0x86c   : > { %4256 = vmatpush1.bf16.msra.mxu1 %v13930_v11  ;;  %v13982_v11 = vld [vmem:[%s18738_s7 + $0x3d4] ss:$8 sps:$4 sm:$0xff]  }
 0x86d   : > { %4067 = vmatpush1.bf16.msra.mxu0 %v13927_v27  ;;  %4257 = vmatprep.subr.bf16.mxu1 %v13938_v40  ;;  %v13979_v27 = vld [vmem:[%s18738_s7 + $0x314] ss:$8 sps:$4 sm:$0xff]   ;;  %v13980_v40 = vld [vmem:[%s18738_s7 + $0x3d0] ss:$8 sps:$4 sm:$0xff]  }
 0x86e   : > { %4068 = vmatprep.subr.bf16.mxu0 %v13935_v63  ;;  %v13977_v63 = vld [vmem:[%s18738_s7 + $0x310] ss:$8 sps:$4 sm:$0xff]  }
 0x870   : > { %4258 = vmatpush1.bf16.msra.mxu1 %v13936_v32  ;;  %v13983_v32 = vld [vmem:[%s18738_s7 + $0x300] ss:$8 sps:$4 sm:$0xff]  }
 0x871   : > { %4069 = vmatpush1.bf16.msra.mxu0 %v13933_v55  ;;  %4259 = vmatprep.subr.bf16.mxu1 %v13941_v6  ;;  %v13985_v55 = vld [vmem:[%s18738_s7 + $0x304] ss:$8 sps:$4 sm:$0xff]  }
 0x872   : > { %13591 = vmatprep.subr.bf16.mxu0 %v14913_v3  ;;  %v13988_v6 = vld [vmem:[%s18738_s7 + $0x3c4] ss:$8 sps:$4 sm:$0xff]  }
 0x874   : > { %4260 = vmatpush1.bf16.msra.mxu1 %v13939_v9  ;;  %v13986_v9 = vld [vmem:[%s18738_s7 + $0x3c0] ss:$8 sps:$4 sm:$0xff]  }
 0x875   : > { %4261 = vmatprep.subr.bf16.mxu1 %v13944_v10  ;;  %v13989_v10 = vld [vmem:[%s18738_s7 + $0x3b0] ss:$8 sps:$4 sm:$0xff]  }
 0x878   : > { %4262 = vmatpush1.bf16.msra.mxu1 %v13942_v25  ;;  %v13991_v25 = vld [vmem:[%s18738_s7 + $0x3b4] ss:$8 sps:$4 sm:$0xff]  }
 0x879   : > { %4263 = vmatprep.subr.bf16.mxu1 %v13947_v34  ;;  %v13994_v34 = vld [vmem:[%s18738_s7 + $0x3a4] ss:$8 sps:$4 sm:$0xff]  }
 0x87c   : > { %4264 = vmatpush1.bf16.msra.mxu1 %v13945_v36  ;;  %v13992_v36 = vld [vmem:[%s18738_s7 + $0x3a0] ss:$8 sps:$4 sm:$0xff]  }
 0x87d   : > { %4265 = vmatprep.subr.bf16.mxu1 %v13950_v41  ;;  %v13995_v41 = vld [vmem:[%s18738_s7 + $0x390] ss:$8 sps:$4 sm:$0xff]  }
 0x880   : > { %4266 = vmatpush1.bf16.msra.mxu1 %v13948_v35  ;;  %v13997_v35 = vld [vmem:[%s18738_s7 + $0x394] ss:$8 sps:$4 sm:$0xff]  }
 0x881   : > { %13603 = vmatprep.subr.bf16.mxu1 %v14913_v3 }
 0x903   : > { %v3694_v56 = vpop.f32.mrf.mxu0 }
 0x904   : > { %v3703_v43 = vadd.f32 %v3694_v56, %v16063_v4  ;;  %v13998_v56 = vld [vmem:[%s18738_s7 + $0x380] ss:$8 sps:$4 sm:$0xff]  }
 0x905   : > { %v3696_v51 = vpop.f32.mrf.mxu0 }
 0x906   : > { %v3704_v29 = vadd.f32 %v3696_v51, %v16065_v13 }
 0x907   : > { %v3698_v53 = vpop.f32.mrf.mxu0 }
 0x908   : > { %v3705_v59 = vadd.f32 %v3698_v53, %v16067_v30 }
 0x909   : > { %v16202_v15 = vpop.f32.mrf.mxu0 }
 0x913   : > { %v3949_v28 = vpop.f32.mrf.mxu0  ;;  %v3891_v33 = vpop.f32.mrf.mxu1 }
 0x914   : > { %v16204_v1 = vadd.f32 %v3891_v33, %v3703_v43  ;;  %v14000_v43 = vld [vmem:[%s18738_s7 + $0x384] ss:$8 sps:$4 sm:$0xff]  }
 0x915   : > { %v13577_v22 = vpop.f32.mrf.mxu0  ;;  %v3893_v12 = vpop.f32.mrf.mxu1 }
 0x916   : > { %v16206_v50 = vadd.f32 %v3893_v12, %v3704_v29  ;;  %v3508_v29 = vadd.f32 %v16197_v39, %v16069_v62 }
 0x917   : > { %v3952_v7 = vpop.f32.mrf.mxu0  ;;  %v3895_v60 = vpop.f32.mrf.mxu1 }
 0x918   : > { %v3956_v42 = vpack.c.bf16 %v3952_v7, %v3949_v28  ;;  %v16208_v4 = vadd.f32 %v3895_v60, %v3705_v59  ;;  %v3706_v28 = vadd.f32 %v16202_v15, %v3508_v29  ;;  %v14041_v29 = vld [vmem:[%s18741_s10 + $0x2a8] ss:$16 sps:$4 sm:$0xff]  }
 0x919   : > { %v13578_v17 = vpop.f32.mrf.mxu0  ;;  %v16216_v13 = vpop.f32.mrf.mxu1 }
 0x91a   : > { %4087 = vmatmul.mubr.bf16.vlgmr.msra.gmra.mxu0 %v3956_v42  ;;  %v3903_v12 = vadd.f32 %v16216_v13, %v3706_v28  ;;  %v14004_v13 = vld [vmem:[%s18738_s7 + $0x474] ss:$8 sps:$4 sm:$0xff]  }
 0x91b   : > { %13592 = vmatpush3.bf16.msra.mxu0 %v15809_v47  ;;  %13599 = vmatprep.mubr.msk.bf16.mxu0 %vm14914_vm4, %v14913_v3  ;;  %v14055_v28 = vld [vmem:[%s18741_s10 + $0x26c] ss:$16 sps:$4 sm:$0xff]  }
 0x91c   : > { %13593 = vmatprep.subr.bf16.mxu0 %v14913_v3 }
 0x91f   : > { %13594 = vmatpush3.bf16.msra.mxu0 %v15807_v0 }
 0x920   : > { %13595 = vmatprep.subr.bf16.mxu0 %v14913_v3 }
 0x923   : > { %13596 = vmatpush3.bf16.msra.mxu0 %v15811_v46  ;;  %v4146_v30 = vpop.f32.mrf.mxu1 }
 0x924   : > { %13597 = vmatprep.subr.bf16.mxu0 %v14913_v3 }
 0x925   : > { %v13589_v52 = vpop.f32.mrf.mxu1 }
 0x927   : > { %13598 = vmatpush3.bf16.msra.mxu0 %v15813_v54  ;;  %v4149_v57 = vpop.f32.mrf.mxu1 }
 0x928   : > { %v4153_v61 = vpack.c.bf16 %v4149_v57, %v4146_v30  ;;  %4448 = vmatprep.subr.bf16.mxu0 %v13955_v21 }
 0x929   : > { %v13590_v19 = vpop.f32.mrf.mxu1 }
 0x92a   : > { %13600 = vmatmul.mubr.msk.bf16.vlgmr.msra.gmra.mxu0 %vm1203_vm3, %v13951_v20  ;;  %4284 = vmatmul.mubr.bf16.vlgmr.msra.gmra.mxu1 %v4153_v61 }
 0x92b   : > { %13604 = vmatpush3.bf16.msra.mxu1 %v15809_v47  ;;  %13611 = vmatprep.mubr.msk.bf16.mxu1 %vm14914_vm4, %v14913_v3 }
 0x92c   : > { %13605 = vmatprep.subr.bf16.mxu1 %v14913_v3  ;;  %4449 = vmatpush1.bf16.msra.mxu0 %v13953_v49 }
 0x92d   : > { %4450 = vmatprep.subr.bf16.mxu0 %v13958_v37  ;;  %4480 = vmatprep.mubr.bf16.mxu0 %v14915_v16 }
 0x92f   : > { %13606 = vmatpush3.bf16.msra.mxu1 %v15807_v0 }
 0x930   : > { %13607 = vmatprep.subr.bf16.mxu1 %v14913_v3  ;;  %4451 = vmatpush1.bf16.msra.mxu0 %v13956_v44 }
 0x931   : > { %4452 = vmatprep.subr.bf16.mxu0 %v13961_v5  ;;  %v14010_v5 = vld [vmem:[%s18738_s7 + $0x454] ss:$8 sps:$4 sm:$0xff]  }
 0x933   : > { %13608 = vmatpush3.bf16.msra.mxu1 %v15811_v46 }
 0x934   : > { %13609 = vmatprep.subr.bf16.mxu1 %v14913_v3  ;;  %4453 = vmatpush1.bf16.msra.mxu0 %v13959_v8  ;;  %v14008_v8 = vld [vmem:[%s18738_s7 + $0x450] ss:$8 sps:$4 sm:$0xff]  }
 0x935   : > { %4454 = vmatprep.subr.bf16.mxu0 %v13964_v14  ;;  %v14011_v14 = vld [vmem:[%s18738_s7 + $0x440] ss:$8 sps:$4 sm:$0xff]  }
 0x937   : > { %13610 = vmatpush3.bf16.msra.mxu1 %v15813_v54 }
 0x938   : > { %4455 = vmatpush1.bf16.msra.mxu0 %v13962_v38  ;;  %4645 = vmatprep.subr.bf16.mxu1 %v13970_v23  ;;  %v14016_v38 = vld [vmem:[%s18738_s7 + $0x434] ss:$8 sps:$4 sm:$0xff]   ;;  %v14017_v23 = vld [vmem:[%s18738_s7 + $0x420] ss:$8 sps:$4 sm:$0xff]  }
 0x939   : > { %4456 = vmatprep.subr.bf16.mxu0 %v13967_v2  ;;  %v14014_v2 = vld [vmem:[%s18738_s7 + $0x430] ss:$8 sps:$4 sm:$0xff]  }
 0x93a   : > { %13612 = vmatmul.mubr.msk.bf16.vlgmr.msra.gmra.mxu1 %vm1203_vm3, %v13952_v48  ;;  %v14013_v48 = vld [vmem:[%s18738_s7 + $0x444] ss:$8 sps:$4 sm:$0xff]  }
 0x93b   : > { %4677 = vmatprep.mubr.bf16.mxu1 %v14915_v16  ;;  %4646 = vmatpush1.bf16.msra.mxu1 %v13968_v26  ;;  %v14022_v26 = vld [vmem:[%s18738_s7 + $0x414] ss:$8 sps:$4 sm:$0xff]  }
 0x93c   : > { %4457 = vmatpush1.bf16.msra.mxu0 %v13965_v18  ;;  %4647 = vmatprep.subr.bf16.mxu1 %v13976_v24  ;;  %v14019_v18 = vld [vmem:[%s18738_s7 + $0x424] ss:$8 sps:$4 sm:$0xff]  }
 0x93d   : > { %4458 = vmatprep.subr.bf16.mxu0 %v13973_v45  ;;  %v14025_v45 = vld [vmem:[%s18738_s7 + $0x404] ss:$8 sps:$4 sm:$0xff]  }
 0x93f   : > { %4648 = vmatpush1.bf16.msra.mxu1 %v13974_v31  ;;  %v14023_v31 = vld [vmem:[%s18738_s7 + $0x400] ss:$8 sps:$4 sm:$0xff]  }
 0x940   : > { %4459 = vmatpush1.bf16.msra.mxu0 %v13971_v58  ;;  %4649 = vmatprep.subr.bf16.mxu1 %v13982_v11  ;;  %v14020_v58 = vld [vmem:[%s18738_s7 + $0x410] ss:$8 sps:$4 sm:$0xff]  }
 0x941   : > { %4460 = vmatprep.subr.bf16.mxu0 %v13979_v27 }
 0x943   : > { %4650 = vmatpush1.bf16.msra.mxu1 %v13980_v40 }
 0x944   : > { %4461 = vmatpush1.bf16.msra.mxu0 %v13977_v63  ;;  %4651 = vmatprep.subr.bf16.mxu1 %v13988_v6 }
 0x945   : > { %4462 = vmatprep.subr.bf16.mxu0 %v13985_v55 }
 0x947   : > { %4652 = vmatpush1.bf16.msra.mxu1 %v13986_v9 }
 0x948   : > { %4463 = vmatpush1.bf16.msra.mxu0 %v13983_v32  ;;  %4653 = vmatprep.subr.bf16.mxu1 %v13991_v25 }
 0x949   : > { %13615 = vmatprep.subr.bf16.mxu0 %v14913_v3 }
 0x94b   : > { %4654 = vmatpush1.bf16.msra.mxu1 %v13989_v10 }
 0x94c   : > { %4655 = vmatprep.subr.bf16.mxu1 %v13994_v34 }
 0x94f   : > { %4656 = vmatpush1.bf16.msra.mxu1 %v13992_v36 }
 0x950   : > { %4657 = vmatprep.subr.bf16.mxu1 %v13997_v35  ;;  %v14031_v35 = vld [vmem:[%s18741_s10 + $0x2ec] ss:$16 sps:$4 sm:$0xff]  }
 0x953   : > { %4658 = vmatpush1.bf16.msra.mxu1 %v13995_v41  ;;  %v14029_v41 = vld [vmem:[%s18741_s10 + $0x2e8] ss:$16 sps:$4 sm:$0xff]  }
 0x954   : > { %4659 = vmatprep.subr.bf16.mxu1 %v14000_v43  ;;  %v14035_v43 = vld [vmem:[%s18741_s10 + $0x2c8] ss:$16 sps:$4 sm:$0xff]  }
 0x957   : > { %4660 = vmatpush1.bf16.msra.mxu1 %v13998_v56  ;;  %v14037_v56 = vld [vmem:[%s18741_s10 + $0x2cc] ss:$16 sps:$4 sm:$0xff]  }
 0x9da   : > { %v4088_v51 = vpop.f32.mrf.mxu0 }
 0x9db   : > { %v4097_v53 = vadd.f32 %v4088_v51, %v16204_v1  ;;  %v14043_v51 = vld [vmem:[%s18741_s10 + $0x2ac] ss:$16 sps:$4 sm:$0xff]  }
 0x9dc   : > { %v4090_v59 = vpop.f32.mrf.mxu0 }
 0x9dd   : > { %v4098_v33 = vadd.f32 %v4090_v59, %v16206_v50  ;;  %v14047_v59 = vld [vmem:[%s18741_s10 + $0x288] ss:$16 sps:$4 sm:$0xff]  }
 0x9de   : > { %v4092_v22 = vpop.f32.mrf.mxu0 }
 0x9df   : > { %v4099_v7 = vadd.f32 %v4092_v22, %v16208_v4  ;;  %v14061_v22 = vld [vmem:[%s18741_s10 + $0x24c] ss:$16 sps:$4 sm:$0xff]  }
 0x9e0   : > { %v4094_v60 = vpop.f32.mrf.mxu0 }
 0x9e1   : > { %v4100_v42 = vadd.f32 %v4094_v60, %v3903_v12  ;;  %v14059_v12 = vld [vmem:[%s18741_s10 + $0x248] ss:$16 sps:$4 sm:$0xff]  }
 0x9e2   : > { %v14065_v60 = vld [vmem:[%s18741_s10 + $0x228] ss:$16 sps:$4 sm:$0xff]  }
 0x9ea   : > { %v4343_v17 = vpop.f32.mrf.mxu0  ;;  %v4285_v30 = vpop.f32.mrf.mxu1 }
 0x9eb   : > { %v16344_v21 = vadd.f32 %v4285_v30, %v4097_v53  ;;  %v14049_v53 = vld [vmem:[%s18741_s10 + $0x28c] ss:$16 sps:$4 sm:$0xff]  }
 0x9ec   : > { %v13601_v52 = vpop.f32.mrf.mxu0  ;;  %v4287_v62 = vpop.f32.mrf.mxu1  ;;  %v14079_v30 = vld [vmem:[%s18741_s10 + $0x3ec] ss:$16 sps:$4 sm:$0xff]  }
 0x9ed   : > { %v4295_v39 = vadd.f32 %v4287_v62, %v4098_v33  ;;  %v14053_v33 = vld [vmem:[%s18741_s10 + $0x268] ss:$16 sps:$4 sm:$0xff]   ;;  %v14085_v52 = vld [vmem:[%s18741_s10 + $0x3cc] ss:$16 sps:$4 sm:$0xff]  }
 0x9ee   : > { %v4346_v1 = vpop.f32.mrf.mxu0  ;;  %v4289_v20 = vpop.f32.mrf.mxu1  ;;  %v14083_v62 = vld [vmem:[%s18741_s10 + $0x3c8] ss:$16 sps:$4 sm:$0xff]  }
 0x9ef   : > { %v4350_v57 = vpack.c.bf16 %v4346_v1, %v4343_v17  ;;  %v4296_v15 = vadd.f32 %v4289_v20, %v4099_v7  ;;  %v14067_v7 = vld [vmem:[%s18741_s10 + $0x22c] ss:$16 sps:$4 sm:$0xff]   ;;  %v14071_v17 = vld [vmem:[%s18741_s10 + $0x208] ss:$16 sps:$4 sm:$0xff]  }
 0x9f0   : > { %v4291_v61 = vpop.f32.mrf.mxu1  ;;  %v13602_v50 = vpop.f32.mrf.mxu0  ;;  %v14089_v1 = vld [vmem:[%s18741_s10 + $0x3a8] ss:$16 sps:$4 sm:$0xff]   ;;  %v14097_v20 = vld [vmem:[%s18741_s10 + $0x38c] ss:$16 sps:$4 sm:$0xff]  }
 0x9f1   : > { %v4297_v49 = vadd.f32 %v4291_v61, %v4100_v42  ;;  %4481 = vmatmul.mubr.bf16.vlgmr.msra.gmra.mxu0 %v4350_v57  ;;  %v14073_v42 = vld [vmem:[%s18741_s10 + $0x20c] ss:$16 sps:$4 sm:$0xff]   ;;  %v14095_v57 = vld [vmem:[%s18741_s10 + $0x388] ss:$16 sps:$4 sm:$0xff]   ;;  %v4891_v61 = vlaneseq }
 0x9f2   : > { %13616 = vmatpush3.bf16.msra.mxu0 %v15809_v47  ;;  %13623 = vmatprep.mubr.msk.bf16.mxu0 %vm14914_vm4, %v14913_v3  ;;  %v14001_v47 = vld [vmem:[%s18737_s6 + $0x40] sm:$0xff]   ;;  %v14101_v50 = vld [vmem:[%s18741_s10 + $0x368] ss:$16 sps:$4 sm:$0xff]  }
 0x9f3   : > { %13617 = vmatprep.subr.bf16.mxu0 %v14913_v3 }
 0x9f6   : > { %13618 = vmatpush3.bf16.msra.mxu0 %v15807_v0  ;;  %v14002_v0 = vld [vmem:[%s18738_s7 + $0x470] ss:$8 sps:$4 sm:$0xff]  }
 0x9f7   : > { %13619 = vmatprep.subr.bf16.mxu0 %v14913_v3 }
 0x9fa   : > { %13620 = vmatpush3.bf16.msra.mxu0 %v15811_v46  ;;  %v4540_v4 = vpop.f32.mrf.mxu1 }
 0x9fb   : > { %13621 = vmatprep.subr.bf16.mxu0 %v14913_v3  ;;  %v14007_v3 = vld [vmem:[%s18738_s7 + $0x464] ss:$8 sps:$4 sm:$0xff]  }
 0x9fc   : > { %v13613_v37 = vpop.f32.mrf.mxu1 }
 0x9fe   : > { %13622 = vmatpush3.bf16.msra.mxu0 %v15813_v54  ;;  %v4543_v19 = vpop.f32.mrf.mxu1  ;;  %v14005_v54 = vld [vmem:[%s18738_s7 + $0x460] ss:$8 sps:$4 sm:$0xff]  }
 0x9ff   : > { %v4547_v46 = vpack.c.bf16 %v4543_v19, %v4540_v4  ;;  %4842 = vmatprep.subr.bf16.mxu0 %v14004_v13  ;;  %v16496_v4 = vshrl.u32 %v4891_v61, 7 }
 0xa00   : > { %v13614_v44 = vpop.f32.mrf.mxu1 }
 0xa01   : > { %13624 = vmatmul.mubr.msk.bf16.vlgmr.msra.gmra.mxu0 %vm1203_vm3, %v14001_v47  ;;  %4678 = vmatmul.mubr.bf16.vlgmr.msra.gmra.mxu1 %v4547_v46  ;;  %v16499_v37 = vsub.s32 0, %v16496_v4  ;;  %v4889_v47 = vld [vmem:[%s18739_s8] sm:$0x3]  ;;  %v4897_v19 = vsub.s32 1, %v16496_v4 }
 0xa02   : > { %4843 = vmatpush1.bf16.msra.mxu0 %v14002_v0  ;;  %4874 = vmatprep.mubr.bf16.mxu0 %v14915_v16 }
 0xa03   : > { %4844 = vmatprep.subr.bf16.mxu0 %v14007_v3  ;;  %5005 = vmatprep.mubr.bf16.mxu1 %v14915_v16  ;;  %v4894_v3 = vrot.slane %v4889_v47, %v16499_v37 }
 0xa06   : > { %4845 = vmatpush1.bf16.msra.mxu0 %v14005_v54 }
 0xa07   : > { %4846 = vmatprep.subr.bf16.mxu0 %v14010_v5 }
 0xa0a   : > { %4847 = vmatpush1.bf16.msra.mxu0 %v14008_v8  ;;  %v4898_v8 = vrot.slane %v4889_v47, %v4897_v19 }
 0xa0b   : > { %4848 = vmatprep.subr.bf16.mxu0 %v14013_v48 }
 0xa0e   : > { %4849 = vmatpush1.bf16.msra.mxu0 %v14011_v14 }
 0xa0f   : > { %4850 = vmatprep.subr.bf16.mxu0 %v14016_v38 }
 0xa12   : > { %4851 = vmatpush1.bf16.msra.mxu0 %v14014_v2 }
 0xa13   : > { %4852 = vmatprep.subr.bf16.mxu0 %v14019_v18 }
 0xa16   : > { %4853 = vmatpush1.bf16.msra.mxu0 %v14017_v23 }
 0xa17   : > { %4854 = vmatprep.subr.bf16.mxu0 %v14022_v26 }
 0xa1a   : > { %4855 = vmatpush1.bf16.msra.mxu0 %v14020_v58 }
 0xa1b   : > { %4856 = vmatprep.subr.bf16.mxu0 %v14025_v45 }
 0xa1e   : > { %4857 = vmatpush1.bf16.msra.mxu0 %v14023_v31 }
 0xa1f   : > { %5554 = vmatprep.subr.bf16.mxu0 %v14031_v35 }
 0xab1   : > { %v4482_v24 = vpop.f32.mrf.mxu0 }
 0xab2   : > { %v16410_v27 = vadd.f32 %v4482_v24, %v16344_v21  ;;  %v14077_v21 = vld [vmem:[%s18741_s10 + $0x3e8] ss:$16 sps:$4 sm:$0xff]  }
 0xab3   : > { %v4484_v11 = vpop.f32.mrf.mxu0 }
 0xab4   : > { %v16412_v63 = vadd.f32 %v4484_v11, %v4295_v39  ;;  %v14091_v39 = vld [vmem:[%s18741_s10 + $0x3ac] ss:$16 sps:$4 sm:$0xff]  }
 0xab5   : > { %v4486_v40 = vpop.f32.mrf.mxu0 }
 0xab6   : > { %v16414_v55 = vadd.f32 %v4486_v40, %v4296_v15  ;;  %v14103_v15 = vld [vmem:[%s18741_s10 + $0x36c] ss:$16 sps:$4 sm:$0xff]  }
 0xab7   : > { %v4488_v32 = vpop.f32.mrf.mxu0 }
 0xab8   : > { %v16416_v6 = vadd.f32 %v4488_v32, %v4297_v49 }
 0xac1   : > { %v4737_v9 = vpop.f32.mrf.mxu0  ;;  %v4679_v49 = vpop.f32.mrf.mxu1 }
 0xac2   : > { %v4688_v46 = vadd.f32 %v4679_v49, %v16410_v27 }
 0xac3   : > { %v13625_v25 = vpop.f32.mrf.mxu0  ;;  %v4681_v13 = vpop.f32.mrf.mxu1 }
 0xac4   : > { %v4689_v54 = vadd.f32 %v4681_v13, %v16412_v63 }
 0xac5   : > { %v4740_v10 = vpop.f32.mrf.mxu0  ;;  %v4683_v0 = vpop.f32.mrf.mxu1 }
 0xac6   : > { %v4744_v36 = vpack.c.bf16 %v4740_v10, %v4737_v9  ;;  %v4690_v38 = vadd.f32 %v4683_v0, %v16414_v55 }
 0xac7   : > { %v13626_v34 = vpop.f32.mrf.mxu0  ;;  %v4685_v48 = vpop.f32.mrf.mxu1 }
 0xac8   : > { %4875 = vmatmul.mubr.bf16.vlgmr.msra.gmra.mxu0 %v4744_v36  ;;  %v4691_v26 = vadd.f32 %v4685_v48, %v16416_v6 }
 0xac9   : > { %5555 = vmatpush1.bf16.msra.mxu0 %v14029_v41 }
 0xaca   : > { %5556 = vmatprep.subr.bf16.mxu0 %v14037_v56 }
 0xacd   : > { %5557 = vmatpush1.bf16.msra.mxu0 %v14035_v43 }
 0xace   : > { %5558 = vmatprep.subr.bf16.mxu0 %v14043_v51 }
 0xad1   : > { %5559 = vmatpush1.bf16.msra.mxu0 %v14041_v29 }
 0xad2   : > { %5560 = vmatprep.subr.bf16.mxu0 %v14049_v53 }
 0xad5   : > { %5561 = vmatpush1.bf16.msra.mxu0 %v14047_v59 }
 0xad6   : > { %5562 = vmatprep.subr.bf16.mxu0 %v14055_v28 }
 0xad9   : > { %5563 = vmatpush1.bf16.msra.mxu0 %v14053_v33 }
 0xada   : > { %5564 = vmatprep.subr.bf16.mxu0 %v14061_v22 }
 0xadd   : > { %5565 = vmatpush1.bf16.msra.mxu0 %v14059_v12 }
 0xade   : > { %5566 = vmatprep.subr.bf16.mxu0 %v14067_v7 }
 0xae1   : > { %5567 = vmatpush1.bf16.msra.mxu0 %v14065_v60 }
 0xae2   : > { %5568 = vmatprep.subr.bf16.mxu0 %v14073_v42 }
 0xae5   : > { %5569 = vmatpush1.bf16.msra.mxu0 %v14071_v17 }
 0xae6   : > { %5570 = vmatprep.subr.bf16.mxu0 %v14079_v30 }
 0xae9   : > { %5571 = vmatpush2.bf16.msra.mxu0 %v14077_v21 }
 0xaea   : > { %5572 = vmatprep.subr.bf16.mxu0 %v14085_v52 }
 0xaed   : > { %5573 = vmatpush2.bf16.msra.mxu0 %v14083_v62 }
 0xaee   : > { %5574 = vmatprep.subr.bf16.mxu0 %v14091_v39 }
 0xaf1   : > { %5575 = vmatpush2.bf16.msra.mxu0 %v14089_v1 }
 0xaf2   : > { %5576 = vmatprep.subr.bf16.mxu0 %v14097_v20 }
 0xaf5   : > { %5577 = vmatpush2.bf16.msra.mxu0 %v14095_v57 }
 0xaf6   : > { %5578 = vmatprep.subr.bf16.mxu0 %v14103_v15 }
 0xaf9   : > { %5579 = vmatpush2.bf16.msra.mxu0 %v14101_v50 }
 0xb88   : > { %v4876_v44 = vpop.f32.mrf.mxu0 }
 0xb89   : > { %v4885_v5 = vadd.f32 %v4876_v44, %v4688_v46 }
 0xb8a   : > { %v4878_v14 = vpop.f32.mrf.mxu0 }
 0xb8b   : > { %v4901_v2 = vadd.f32 %v4894_v3, %v4885_v5  ;;  %v4886_v18 = vadd.f32 %v4878_v14, %v4689_v54 }
 0xb8c   : > { %v4880_v23 = vpop.f32.mrf.mxu0 }
 0xb8d   : > { %v4905_v58 = vmul.f32 0.2, %v4901_v2  ;;  %v4902_v45 = vadd.f32 %v4898_v8, %v4886_v18  ;;  %v4887_v31 = vadd.f32 %v4880_v23, %v4690_v38 }
 0xb8e   : > { %v4882_v24 = vpop.f32.mrf.mxu0 }
 0xb8f   : > { %v4906_v27 = vmul.f32 0.2, %v4902_v45  ;;  %v4903_v11 = vadd.f32 %v4894_v3, %v4887_v31  ;;  %v4888_v63 = vadd.f32 %v4882_v24, %v4691_v26  ;;  %v4909_v40 = vmax.f32 %v4901_v2, %v4905_v58 }
 0xb91   : > { %v4907_v32 = vmul.f32 0.2, %v4903_v11  ;;  %v4904_v9 = vadd.f32 %v4898_v8, %v4888_v63  ;;  %v4910_v25 = vmax.f32 %v4902_v45, %v4906_v27  ;;  %v4930_v34 = vmul.f32 %v4909_v40, %v4909_v40 }
 0xb93   : > { %v4911_v10 = vmax.f32 %v4903_v11, %v4907_v32  ;;  %v4908_v36 = vmul.f32 0.2, %v4904_v9  ;;  %v4931_v56 = vmul.f32 %v4910_v25, %v4910_v25  ;;  %v4968_v32 = vld [vmem:[%s18740_s9] sm:$0x3] }
 0xb95   : > { %v4913_v55 = vadd.f32 %v4911_v10, %v4909_v40  ;;  %v4932_v41 = vmul.f32 %v4911_v10, %v4911_v10  ;;  %v4912_v35 = vmax.f32 %v4904_v9, %v4908_v36  ;;  %v14028_v9 = vld [vmem:[%s18741_s10 + $0x2e4] ss:$16 sps:$4 sm:$0xff]  }
 0xb96   : > { %v14034_v36 = vld [vmem:[%s18741_s10 + $0x2c4] ss:$16 sps:$4 sm:$0xff]  }
 0xb97   : > { %v4914_v43 = vrot.slane %v4913_v55, 4  ;;  %v4934_v6 = vadd.f32 %v4932_v41, %v4930_v34  ;;  %v4920_v51 = vadd.f32 %v4912_v35, %v4910_v25  ;;  %v4933_v29 = vmul.f32 %v4912_v35, %v4912_v35  ;;  %v14032_v34 = vld [vmem:[%s18741_s10 + $0x2c0] ss:$16 sps:$4 sm:$0xff]  }
 0xb98   : > { %v14038_v41 = vld [vmem:[%s18741_s10 + $0x2a0] ss:$16 sps:$4 sm:$0xff]  }
 0xb99   : > { %v4915_v53 = vadd.f32 %v4914_v43, %v4913_v55  ;;  %v4935_v59 = vrot.slane %v4934_v6, 4  ;;  %v4921_v28 = vrot.slane %v4920_v51, 4  ;;  %v4941_v33 = vadd.f32 %v4933_v29, %v4931_v56  ;;  %v14040_v55 = vld [vmem:[%s18741_s10 + $0x2a4] ss:$16 sps:$4 sm:$0xff]   ;;  %v14044_v56 = vld [vmem:[%s18741_s10 + $0x280] ss:$16 sps:$4 sm:$0xff]  }
 0xb9a   : > { %v14052_v43 = vld [vmem:[%s18741_s10 + $0x264] ss:$16 sps:$4 sm:$0xff]   ;;  %v14056_v29 = vld [vmem:[%s18741_s10 + $0x240] ss:$16 sps:$4 sm:$0xff]  }
 0xb9b   : > { %v4916_v22 = vrot.slane %v4915_v53, 2  ;;  %v4936_v12 = vadd.f32 %v4935_v59, %v4934_v6  ;;  %v4922_v7 = vadd.f32 %v4921_v28, %v4920_v51  ;;  %v4942_v60 = vrot.slane %v4941_v33, 4  ;;  %v14050_v6 = vld [vmem:[%s18741_s10 + $0x260] ss:$16 sps:$4 sm:$0xff]   ;;  %v14058_v51 = vld [vmem:[%s18741_s10 + $0x244] ss:$16 sps:$4 sm:$0xff]  }
 0xb9c   : > { %v14062_v59 = vld [vmem:[%s18741_s10 + $0x220] ss:$16 sps:$4 sm:$0xff]   ;;  %v14070_v28 = vld [vmem:[%s18741_s10 + $0x204] ss:$16 sps:$4 sm:$0xff]  }
 0xb9d   : > { %v4917_v42 = vadd.f32 %v4916_v22, %v4915_v53  ;;  %v4937_v17 = vrot.slane %v4936_v12, 2  ;;  %v4923_v30 = vrot.slane %v4922_v7, 2  ;;  %v4943_v21 = vadd.f32 %v4942_v60, %v4941_v33  ;;  %v14064_v53 = vld [vmem:[%s18741_s10 + $0x224] ss:$16 sps:$4 sm:$0xff]   ;;  %v14068_v33 = vld [vmem:[%s18741_s10 + $0x200] ss:$16 sps:$4 sm:$0xff]  }
 0xb9e   : > { %v14076_v22 = vld [vmem:[%s18741_s10 + $0x3e4] ss:$16 sps:$4 sm:$0xff]   ;;  %v14080_v60 = vld [vmem:[%s18741_s10 + $0x3c0] ss:$16 sps:$4 sm:$0xff]  }
 0xb9f   : > { %v4918_v52 = vrot.slane %v4917_v42, 1  ;;  %v4938_v62 = vadd.f32 %v4937_v17, %v4936_v12  ;;  %v4924_v39 = vadd.f32 %v4923_v30, %v4922_v7  ;;  %v4944_v1 = vrot.slane %v4943_v21, 2  ;;  %v14074_v12 = vld [vmem:[%s18741_s10 + $0x3e0] ss:$16 sps:$4 sm:$0xff]   ;;  %v14082_v7 = vld [vmem:[%s18741_s10 + $0x3c4] ss:$16 sps:$4 sm:$0xff]  }
 0xba0   : > { %v14086_v17 = vld [vmem:[%s18741_s10 + $0x3a0] ss:$16 sps:$4 sm:$0xff]   ;;  %v14094_v30 = vld [vmem:[%s18741_s10 + $0x384] ss:$16 sps:$4 sm:$0xff]  }
 0xba1   : > { %v4919_v20 = vadd.f32 %v4918_v52, %v4917_v42  ;;  %v4939_v57 = vrot.slane %v4938_v62, 1  ;;  %v4925_v15 = vrot.slane %v4924_v39, 1  ;;  %v4945_v61 = vadd.f32 %v4944_v1, %v4943_v21  ;;  %v14088_v42 = vld [vmem:[%s18741_s10 + $0x3a4] ss:$16 sps:$4 sm:$0xff]   ;;  %v14092_v21 = vld [vmem:[%s18741_s10 + $0x380] ss:$16 sps:$4 sm:$0xff]  }
 0xba2   : > { %v14100_v52 = vld [vmem:[%s18741_s10 + $0x364] ss:$16 sps:$4 sm:$0xff]   ;;  %v14109_v1 = vld [vmem:[%s18741_s10 + $0x34c] ss:$16 sps:$4 sm:$0xff]  }
 0xba3   : > { %v4928_v50 = vmul.f32 0.0625, %v4919_v20  ;;  %v4940_v49 = vadd.f32 %v4939_v57, %v4938_v62  ;;  %v4926_v13 = vadd.f32 %v4925_v15, %v4924_v39  ;;  %v4946_v47 = vrot.slane %v4945_v61, 1  ;;  %v14098_v62 = vld [vmem:[%s18741_s10 + $0x360] ss:$16 sps:$4 sm:$0xff]   ;;  %v14106_v39 = vld [vmem:[%s18741_s10 + $0x344] ss:$16 sps:$4 sm:$0xff]   ;;  %5580 = vmatprep.subr.bf16.mxu0 %v14109_v1 }
 0xba4   : > { %v14104_v20 = vld [vmem:[%s18741_s10 + $0x340] ss:$16 sps:$4 sm:$0xff]   ;;  %v14107_v57 = vld [vmem:[%s18741_s10 + $0x348] ss:$16 sps:$4 sm:$0xff]   ;;  %v14112_v15 = vld [vmem:[%s18741_s10 + $0x324] ss:$16 sps:$4 sm:$0xff]  }
 0xba5   : > { %v4948_v0 = vmul.f32 0.0625, %v4940_v49  ;;  %v4950_v46 = vmul.f32 %v4928_v50, %v4928_v50  ;;  %v4954_v3 = vsub.f32 %v4909_v40, %v4928_v50  ;;  %v4956_v44 = vsub.f32 %v4911_v10, %v4928_v50  ;;  %v14026_v10 = vld [vmem:[%s18741_s10 + $0x2e0] ss:$16 sps:$4 sm:$0xff]   ;;  %5581 = vmatpush2.bf16.msra.mxu0 %v14107_v57  ;;  %v14113_v49 = vld [vmem:[%s18741_s10 + $0x328] ss:$16 sps:$4 sm:$0xff]  }
 0xba6   : > { %v4929_v54 = vmul.f32 0.0625, %v4926_v13  ;;  %v4947_v5 = vadd.f32 %v4946_v47, %v4945_v61  ;;  %v14115_v61 = vld [vmem:[%s18741_s10 + $0x32c] ss:$16 sps:$4 sm:$0xff]   ;;  %v14110_v50 = vld [vmem:[%s18741_s10 + $0x320] ss:$16 sps:$4 sm:$0xff]  }
 0xba7   : > { %v4952_v8 = vsub.f32 %v4948_v0, %v4950_v46  ;;  %5582 = vmatprep.subr.bf16.mxu0 %v14115_v61  ;;  %v14118_v13 = vld [vmem:[%s18741_s10 + $0x304] ss:$16 sps:$4 sm:$0xff]   ;;  %v14121_v47 = vld [vmem:[%s18741_s10 + $0x30c] ss:$16 sps:$4 sm:$0xff]   ;;  %v14116_v0 = vld [vmem:[%s18741_s10 + $0x300] ss:$16 sps:$4 sm:$0xff]  }
 0xba8   : > { %v4949_v48 = vmul.f32 0.0625, %v4947_v5  ;;  %v4951_v14 = vmul.f32 %v4929_v54, %v4929_v54  ;;  %v4955_v38 = vsub.f32 %v4910_v25, %v4929_v54  ;;  %v4957_v2 = vsub.f32 %v4912_v35, %v4929_v54  ;;  %v11684_v25 = vld [vmem:[%s18740_s9 + $0x2] sm:$0x3]  ;;  %v14046_v35 = vld [vmem:[%s18741_s10 + $0x284] ss:$16 sps:$4 sm:$0xff]  }
 0xba9   : > { %v4958_v18 = vadd.f32 1e-05, %v4952_v8  ;;  %5583 = vmatpush2.bf16.msra.mxu0 %v14113_v49  ;;  %v14119_v46 = vld [vmem:[%s18741_s10 + $0x308] ss:$16 sps:$4 sm:$0xff]   ;;  %v14178_v1 = vld [vmem:[%s18741_s10 + $0x1c4] ss:$16 sps:$4 sm:$0xff]  }
 0xbaa   : > { %v4953_v23 = vsub.f32 %v4949_v48, %v4951_v14  ;;  %5584 = vmatprep.subr.bf16.mxu0 %v14121_v47  ;;  %v14176_v57 = vld [vmem:[%s18741_s10 + $0x1c0] ss:$16 sps:$4 sm:$0xff]   ;;  %v14184_v61 = vld [vmem:[%s18741_s10 + $0x1a4] ss:$16 sps:$4 sm:$0xff]  }
 0xbab   : > { %14892 = vrsqrt.f32 %v4958_v18  ;;  %v14122_v18 = vld [vmem:[%s18741_s10 + $0xe0] ss:$16 sps:$4 sm:$0xff]   ;;  %v14190_v47 = vld [vmem:[%s18741_s10 + $0x184] ss:$16 sps:$4 sm:$0xff]  }
 0xbac   : > { %v4959_v26 = vadd.f32 1e-05, %v4953_v23  ;;  %v14125_v23 = vld [vmem:[%s18741_s10 + $0xe8] ss:$16 sps:$4 sm:$0xff]   ;;  %v14182_v49 = vld [vmem:[%s18741_s10 + $0x1a0] ss:$16 sps:$4 sm:$0xff]  }
 0xbad   : > { %5585 = vmatpush2.bf16.msra.mxu0 %v14119_v46  ;;  %v14188_v46 = vld [vmem:[%s18741_s10 + $0x180] ss:$16 sps:$4 sm:$0xff]  }
 0xbae   : > { %14894 = vrsqrt.f32 %v4959_v26 }
 0xbb8   : > { %v14893_v58 = vpop.eup %14892 }
 0xbb9   : > { %v4962_v45 = vmul.f32 %v14893_v58, %v4954_v3  ;;  %v4964_v31 = vmul.f32 %v14893_v58, %v4956_v44  ;;  %v14124_v3 = vld [vmem:[%s18741_s10 + $0xe4] ss:$16 sps:$4 sm:$0xff]   ;;  %v14127_v44 = vld [vmem:[%s18741_s10 + $0xec] ss:$16 sps:$4 sm:$0xff]  }
 0xbba   : > { %5956 = vmatprep.subr.bf16.mxu0 %v14127_v44  ;;  %v14196_v44 = vld [vmem:[%s18741_s10 + $0x164] ss:$16 sps:$4 sm:$0xff]  }
 0xbbb   : > { %v14895_v24 = vpop.eup %14894  ;;  %v16512_v27 = vpack.c.bf16 %v4964_v31, %v4962_v45  ;;  %v14130_v45 = vld [vmem:[%s18741_s10 + $0xc4] ss:$16 sps:$4 sm:$0xff]   ;;  %v14133_v31 = vld [vmem:[%s18741_s10 + $0xcc] ss:$16 sps:$4 sm:$0xff]  }
 0xbbc   : > { %v4963_v11 = vmul.f32 %v14895_v24, %v4955_v38  ;;  %v4965_v63 = vmul.f32 %v14895_v24, %v4957_v2 }
 0xbbe   : > { %v16514_v40 = vpack.c.bf16 %v4965_v63, %v4963_v11  ;;  %v14128_v63 = vld [vmem:[%s18741_s10 + $0xc0] ss:$16 sps:$4 sm:$0xff]  }
 0xbc0   : > { %4987 = vmatprep.subr.bf16.mxu1 %v16514_v40 }
 0xbc1   : > { %4988 = vmatpush1.bf16.msra.mxu1 %v16512_v27 }
 0xbc2   : > { %5099 = vmatprep.subr.bf16.mxu1 %v16514_v40 }
 0xbc4   : > { %11683 = vmatmul.mubr.msk.bf16.vlgmr.msra.gmra.mxu1 %vm4969_vm5, %v4968_v32  ;;  %v14131_v32 = vld [vmem:[%s18741_s10 + $0xc8] ss:$16 sps:$4 sm:$0xff]  }
 0xbc5   : > { %5100 = vmatpush1.bf16.msra.mxu1 %v16512_v27  ;;  %5117 = vmatprep.mubr.bf16.mxu1 %v14915_v16 }
 0xbc6   : > { %5513 = vmatprep.subr.bf16.mxu1 %v14028_v9  ;;  %v14136_v9 = vld [vmem:[%s18741_s10 + $0xa4] ss:$16 sps:$4 sm:$0xff]  }
 0xbcc   : > { %11685 = vmatmul.mubr.msk.bf16.vlgmr.msra.gmra.mxu1 %vm4969_vm5, %v11684_v25  ;;  %v14139_v25 = vld [vmem:[%s18741_s10 + $0xac] ss:$16 sps:$4 sm:$0xff]  }
 0xbcd   : > { %5514 = vmatpush1.bf16.msra.mxu1 %v14026_v10  ;;  %v14134_v10 = vld [vmem:[%s18741_s10 + $0xa0] ss:$16 sps:$4 sm:$0xff]  }
 0xbce   : > { %5515 = vmatprep.subr.bf16.mxu1 %v14034_v36  ;;  %v14137_v36 = vld [vmem:[%s18741_s10 + $0xa8] ss:$16 sps:$4 sm:$0xff]  }
 0xbd1   : > { %5516 = vmatpush1.bf16.msra.mxu1 %v14032_v34  ;;  %v14142_v34 = vld [vmem:[%s18741_s10 + $0x84] ss:$16 sps:$4 sm:$0xff]  }
 0xbd2   : > { %5517 = vmatprep.subr.bf16.mxu1 %v14040_v55  ;;  %v14145_v55 = vld [vmem:[%s18741_s10 + $0x8c] ss:$16 sps:$4 sm:$0xff]  }
 0xbd5   : > { %5518 = vmatpush1.bf16.msra.mxu1 %v14038_v41  ;;  %v14140_v41 = vld [vmem:[%s18741_s10 + $0x80] ss:$16 sps:$4 sm:$0xff]  }
 0xbd6   : > { %5519 = vmatprep.subr.bf16.mxu1 %v14046_v35  ;;  %v14143_v35 = vld [vmem:[%s18741_s10 + $0x88] ss:$16 sps:$4 sm:$0xff]  }
 0xbd9   : > { %5520 = vmatpush1.bf16.msra.mxu1 %v14044_v56  ;;  %v14148_v56 = vld [vmem:[%s18741_s10 + $0x64] ss:$16 sps:$4 sm:$0xff]  }
 0xbda   : > { %5521 = vmatprep.subr.bf16.mxu1 %v14052_v43  ;;  %v14151_v43 = vld [vmem:[%s18741_s10 + $0x6c] ss:$16 sps:$4 sm:$0xff]  }
 0xbdd   : > { %5522 = vmatpush1.bf16.msra.mxu1 %v14050_v6  ;;  %v14146_v6 = vld [vmem:[%s18741_s10 + $0x60] ss:$16 sps:$4 sm:$0xff]  }
 0xbde   : > { %5523 = vmatprep.subr.bf16.mxu1 %v14058_v51  ;;  %v14149_v51 = vld [vmem:[%s18741_s10 + $0x68] ss:$16 sps:$4 sm:$0xff]  }
 0xbe1   : > { %5524 = vmatpush1.bf16.msra.mxu1 %v14056_v29  ;;  %v14154_v29 = vld [vmem:[%s18741_s10 + $0x44] ss:$16 sps:$4 sm:$0xff]  }
 0xbe2   : > { %5525 = vmatprep.subr.bf16.mxu1 %v14064_v53  ;;  %v14157_v53 = vld [vmem:[%s18741_s10 + $0x4c] ss:$16 sps:$4 sm:$0xff]  }
 0xbe5   : > { %5526 = vmatpush1.bf16.msra.mxu1 %v14062_v59  ;;  %v14152_v59 = vld [vmem:[%s18741_s10 + $0x40] ss:$16 sps:$4 sm:$0xff]  }
 0xbe6   : > { %5527 = vmatprep.subr.bf16.mxu1 %v14070_v28  ;;  %v14155_v28 = vld [vmem:[%s18741_s10 + $0x48] ss:$16 sps:$4 sm:$0xff]  }
 0xbe9   : > { %5528 = vmatpush1.bf16.msra.mxu1 %v14068_v33  ;;  %v14160_v33 = vld [vmem:[%s18741_s10 + $0x24] ss:$16 sps:$4 sm:$0xff]  }
 0xbea   : > { %5529 = vmatprep.subr.bf16.mxu1 %v14076_v22  ;;  %v14163_v22 = vld [vmem:[%s18741_s10 + $0x2c] ss:$16 sps:$4 sm:$0xff]  }
 0xbed   : > { %5530 = vmatpush2.bf16.msra.mxu1 %v14074_v12  ;;  %v14158_v12 = vld [vmem:[%s18741_s10 + $0x20] ss:$16 sps:$4 sm:$0xff]  }
 0xbee   : > { %5531 = vmatprep.subr.bf16.mxu1 %v14082_v7  ;;  %v14161_v7 = vld [vmem:[%s18741_s10 + $0x28] ss:$16 sps:$4 sm:$0xff]  }
 0xbf1   : > { %5532 = vmatpush2.bf16.msra.mxu1 %v14080_v60  ;;  %v14166_v60 = vld [vmem:[%s18741_s10 + $0x4] ss:$16 sps:$4 sm:$0xff]  }
 0xbf2   : > { %5533 = vmatprep.subr.bf16.mxu1 %v14088_v42  ;;  %v14169_v42 = vld [vmem:[%s18741_s10 + $0xc] ss:$16 sps:$4 sm:$0xff]  }
 0xbf5   : > { %5534 = vmatpush2.bf16.msra.mxu1 %v14086_v17  ;;  %v14164_v17 = vld [vmem:[%s18741_s10] ss:$16 sps:$4 sm:$0xff]  }
 0xbf6   : > { %5535 = vmatprep.subr.bf16.mxu1 %v14094_v30  ;;  %v14167_v30 = vld [vmem:[%s18741_s10 + $0x8] ss:$16 sps:$4 sm:$0xff]  }
 0xbf9   : > { %5536 = vmatpush2.bf16.msra.mxu1 %v14092_v21  ;;  %v14172_v21 = vld [vmem:[%s18741_s10 + $0x1e4] ss:$16 sps:$4 sm:$0xff]  }
 0xbfa   : > { %5537 = vmatprep.subr.bf16.mxu1 %v14100_v52  ;;  %v14175_v52 = vld [vmem:[%s18741_s10 + $0x1ec] ss:$16 sps:$4 sm:$0xff]  }
 0xbfd   : > { %5538 = vmatpush2.bf16.msra.mxu1 %v14098_v62  ;;  %v14170_v62 = vld [vmem:[%s18741_s10 + $0x1e0] ss:$16 sps:$4 sm:$0xff]  }
 0xbfe   : > { %5539 = vmatprep.subr.bf16.mxu1 %v14106_v39  ;;  %v14173_v39 = vld [vmem:[%s18741_s10 + $0x1e8] ss:$16 sps:$4 sm:$0xff]  }
 0xc01   : > { %5540 = vmatpush2.bf16.msra.mxu1 %v14104_v20  ;;  %v14181_v20 = vld [vmem:[%s18741_s10 + $0x1cc] ss:$16 sps:$4 sm:$0xff]  }
 0xc02   : > { %5541 = vmatprep.subr.bf16.mxu1 %v14112_v15  ;;  %v14179_v15 = vld [vmem:[%s18741_s10 + $0x1c8] ss:$16 sps:$4 sm:$0xff]  }
 0xc05   : > { %5542 = vmatpush2.bf16.msra.mxu1 %v14110_v50  ;;  %v14187_v50 = vld [vmem:[%s18741_s10 + $0x1ac] ss:$16 sps:$4 sm:$0xff]  }
 0xc06   : > { %5543 = vmatprep.subr.bf16.mxu1 %v14118_v13  ;;  %v14185_v13 = vld [vmem:[%s18741_s10 + $0x1a8] ss:$16 sps:$4 sm:$0xff]  }
 0xc09   : > { %5544 = vmatpush2.bf16.msra.mxu1 %v14116_v0  ;;  %v14193_v0 = vld [vmem:[%s18741_s10 + $0x18c] ss:$16 sps:$4 sm:$0xff]  }
 0xc0a   : > { %5915 = vmatprep.subr.bf16.mxu1 %v14124_v3  ;;  %v14191_v3 = vld [vmem:[%s18741_s10 + $0x188] ss:$16 sps:$4 sm:$0xff]  }
 0xc84   : > { %v16649_v54 = vpop.f32.mrf.mxu1 }
 0xc86   : > { %v5009_v5 = vpop.f32.mrf.mxu1 }
 0xc87   : > { %v5015_v24 = vpack.c.bf16 %v5009_v5, %v5009_v5  ;;  %v14199_v5 = vld [vmem:[%s18741_s10 + $0x16c] ss:$16 sps:$4 sm:$0xff]  }
 0xc88   : > { %v5011_v8 = vpop.f32.mrf.mxu1 }
 0xc89   : > { %v14194_v8 = vld [vmem:[%s18741_s10 + $0x160] ss:$16 sps:$4 sm:$0xff]  }
 0xc8a   : > { %v5012_v48 = vpop.f32.mrf.mxu1 }
 0xc8b   : > { %v14197_v48 = vld [vmem:[%s18741_s10 + $0x168] ss:$16 sps:$4 sm:$0xff]  }
 0xc8c   : > { %v5119_v14 = vpop.f32.mrf.mxu1 }
 0xc8d   : > { %v5126_v26 = vpack.c.bf16 %v5119_v14, %v5119_v14  ;;  %v14202_v14 = vld [vmem:[%s18741_s10 + $0x144] ss:$16 sps:$4 sm:$0xff]  }
 0xc8e   : > { %v5121_v38 = vpop.f32.mrf.mxu1 }
 0xc8f   : > { %v5127_v2 = vpack.c.bf16 %v5121_v38, %v5121_v38  ;;  %v14205_v38 = vld [vmem:[%s18741_s10 + $0x14c] ss:$16 sps:$4 sm:$0xff]  }
 0xc90   : > { %v5123_v58 = vpop.f32.mrf.mxu1 }
 0xc91   : > { %5545 = vmatprep.mubr.bf16.mxu1 %v5127_v2  ;;  %5586 = vmatprep.mubr.bf16.mxu0 %v5127_v2  ;;  %v14200_v2 = vld [vmem:[%s18741_s10 + $0x140] ss:$16 sps:$4 sm:$0xff]  }
 0xc92   : > { %5546 = vmatmul.mubr.bf16.vlgmr.msra.gmra.mxu1 %v5126_v26  ;;  %5587 = vmatmul.mubr.bf16.vlgmr.msra.gmra.mxu0 %v5126_v26  ;;  %v5124_v11 = vpop.f32.mrf.mxu1  ;;  %v14211_v26 = vld [vmem:[%s18741_s10 + $0x12c] ss:$16 sps:$4 sm:$0xff]   ;;  %v14206_v58 = vld [vmem:[%s18741_s10 + $0x120] ss:$16 sps:$4 sm:$0xff]  }
 0xc93   : > { %5916 = vmatpush1.bf16.msra.mxu1 %v14122_v18  ;;  %5957 = vmatpush1.bf16.msra.mxu0 %v14125_v23  ;;  %v14203_v18 = vld [vmem:[%s18741_s10 + $0x148] ss:$16 sps:$4 sm:$0xff]   ;;  %v14208_v23 = vld [vmem:[%s18741_s10 + $0x124] ss:$16 sps:$4 sm:$0xff]   ;;  %v14212_v11 = vld [vmem:[%s18741_s10 + $0x100] ss:$16 sps:$4 sm:$0xff]  }
 0xc94   : > { %5947 = vmatprep.mubr.bf16.mxu1 %v5015_v24  ;;  %5988 = vmatprep.mubr.bf16.mxu0 %v5015_v24  ;;  %v14217_v24 = vld [vmem:[%s18741_s10 + $0x10c] ss:$16 sps:$4 sm:$0xff]  }
 0xc95   : > { %5917 = vmatprep.subr.bf16.mxu1 %v14130_v45  ;;  %5958 = vmatprep.subr.bf16.mxu0 %v14133_v31  ;;  %v14209_v45 = vld [vmem:[%s18741_s10 + $0x128] ss:$16 sps:$4 sm:$0xff]   ;;  %v14214_v31 = vld [vmem:[%s18741_s10 + $0x104] ss:$16 sps:$4 sm:$0xff]  }
 0xc97   : > { %5918 = vmatpush1.bf16.msra.mxu1 %v14128_v63  ;;  %5959 = vmatpush1.bf16.msra.mxu0 %v14131_v32  ;;  %v14215_v63 = vld [vmem:[%s18741_s10 + $0x108] ss:$16 sps:$4 sm:$0xff]   ;;  %v14220_v32 = vld [vmem:[%s18741_s10 + $0x4e4] ss:$16 sps:$4 sm:$0xff]  }
 0xc98   : > { %5919 = vmatprep.subr.bf16.mxu1 %v14136_v9  ;;  %5960 = vmatprep.subr.bf16.mxu0 %v14139_v25  ;;  %v14218_v9 = vld [vmem:[%s18741_s10 + $0x4e0] ss:$16 sps:$4 sm:$0xff]   ;;  %v5014_v25 = vpack.c.bf16 %v16649_v54, %v16649_v54  ;;  %v14226_v54 = vld [vmem:[%s18741_s10 + $0x4a4] ss:$16 sps:$4 sm:$0xff]  }
 0xc9b   : > { %5920 = vmatpush1.bf16.msra.mxu1 %v14134_v10  ;;  %5961 = vmatpush1.bf16.msra.mxu0 %v14137_v36  ;;  %v14223_v10 = vld [vmem:[%s18741_s10 + $0x4c4] ss:$16 sps:$4 sm:$0xff]   ;;  %v14221_v36 = vld [vmem:[%s18741_s10 + $0x4c0] ss:$16 sps:$4 sm:$0xff]  }
 0xc9c   : > { %5921 = vmatprep.subr.bf16.mxu1 %v14142_v34  ;;  %5962 = vmatprep.subr.bf16.mxu0 %v14145_v55  ;;  %v11878_v34 = vld [vmem:[%s18740_s9 + $0x4] sm:$0x3]  ;;  %v14224_v55 = vld [vmem:[%s18741_s10 + $0x4a0] ss:$16 sps:$4 sm:$0xff]  }
 0xc9f   : > { %5922 = vmatpush1.bf16.msra.mxu1 %v14140_v41  ;;  %5963 = vmatpush1.bf16.msra.mxu0 %v14143_v35  ;;  %v14229_v41 = vld [vmem:[%s18741_s10 + $0x484] ss:$16 sps:$4 sm:$0xff]   ;;  %v14266_v35 = vld [vmem:[%s18741_s10 + $0x4e8] ss:$16 sps:$4 sm:$0xff]  }
 0xca0   : > { %5923 = vmatprep.subr.bf16.mxu1 %v14148_v56  ;;  %5964 = vmatprep.subr.bf16.mxu0 %v14151_v43  ;;  %v14268_v56 = vld [vmem:[%s18741_s10 + $0x4ec] ss:$16 sps:$4 sm:$0xff]  }
 0xca1   : > { %v14271_v43 = vld [vmem:[%s18741_s10 + $0x4cc] ss:$16 sps:$4 sm:$0xff]  }
 0xca3   : > { %5924 = vmatpush1.bf16.msra.mxu1 %v14146_v6  ;;  %5965 = vmatpush1.bf16.msra.mxu0 %v14149_v51  ;;  %v14227_v6 = vld [vmem:[%s18741_s10 + $0x480] ss:$16 sps:$4 sm:$0xff]   ;;  %v14269_v51 = vld [vmem:[%s18741_s10 + $0x4c8] ss:$16 sps:$4 sm:$0xff]  }
 0xca4   : > { %5925 = vmatprep.subr.bf16.mxu1 %v14154_v29  ;;  %5966 = vmatprep.subr.bf16.mxu0 %v14157_v53  ;;  %v14232_v29 = vld [vmem:[%s18741_s10 + $0x464] ss:$16 sps:$4 sm:$0xff]   ;;  %v14274_v53 = vld [vmem:[%s18741_s10 + $0x4ac] ss:$16 sps:$4 sm:$0xff]  }
 0xca7   : > { %5926 = vmatpush1.bf16.msra.mxu1 %v14152_v59  ;;  %5967 = vmatpush1.bf16.msra.mxu0 %v14155_v28  ;;  %v14230_v59 = vld [vmem:[%s18741_s10 + $0x460] ss:$16 sps:$4 sm:$0xff]   ;;  %v14272_v28 = vld [vmem:[%s18741_s10 + $0x4a8] ss:$16 sps:$4 sm:$0xff]  }
 0xca8   : > { %5927 = vmatprep.subr.bf16.mxu1 %v14160_v33  ;;  %5968 = vmatprep.subr.bf16.mxu0 %v14163_v22  ;;  %v14235_v33 = vld [vmem:[%s18741_s10 + $0x444] ss:$16 sps:$4 sm:$0xff]   ;;  %v14277_v22 = vld [vmem:[%s18741_s10 + $0x48c] ss:$16 sps:$4 sm:$0xff]  }
 0xcab   : > { %5928 = vmatpush1.bf16.msra.mxu1 %v14158_v12  ;;  %5969 = vmatpush1.bf16.msra.mxu0 %v14161_v7  ;;  %v14233_v12 = vld [vmem:[%s18741_s10 + $0x440] ss:$16 sps:$4 sm:$0xff]   ;;  %v14275_v7 = vld [vmem:[%s18741_s10 + $0x488] ss:$16 sps:$4 sm:$0xff]  }
 0xcac   : > { %5929 = vmatprep.subr.bf16.mxu1 %v14166_v60  ;;  %5970 = vmatprep.subr.bf16.mxu0 %v14169_v42  ;;  %v14238_v60 = vld [vmem:[%s18741_s10 + $0x424] ss:$16 sps:$4 sm:$0xff]   ;;  %v14280_v42 = vld [vmem:[%s18741_s10 + $0x46c] ss:$16 sps:$4 sm:$0xff]  }
 0xcaf   : > { %5930 = vmatpush1.bf16.msra.mxu1 %v14164_v17  ;;  %5971 = vmatpush1.bf16.msra.mxu0 %v14167_v30  ;;  %v14236_v17 = vld [vmem:[%s18741_s10 + $0x420] ss:$16 sps:$4 sm:$0xff]   ;;  %v14278_v30 = vld [vmem:[%s18741_s10 + $0x468] ss:$16 sps:$4 sm:$0xff]  }
 0xcb0   : > { %5931 = vmatprep.subr.bf16.mxu1 %v14172_v21  ;;  %5972 = vmatprep.subr.bf16.mxu0 %v14175_v52  ;;  %v14241_v21 = vld [vmem:[%s18741_s10 + $0x404] ss:$16 sps:$4 sm:$0xff]   ;;  %v14283_v52 = vld [vmem:[%s18741_s10 + $0x44c] ss:$16 sps:$4 sm:$0xff]  }
 0xcb3   : > { %5932 = vmatpush2.bf16.msra.mxu1 %v14170_v62  ;;  %5973 = vmatpush2.bf16.msra.mxu0 %v14173_v39  ;;  %v14239_v62 = vld [vmem:[%s18741_s10 + $0x400] ss:$16 sps:$4 sm:$0xff]   ;;  %v14281_v39 = vld [vmem:[%s18741_s10 + $0x448] ss:$16 sps:$4 sm:$0xff]  }
 0xcb4   : > { %5933 = vmatprep.subr.bf16.mxu1 %v14178_v1  ;;  %5974 = vmatprep.subr.bf16.mxu0 %v14181_v20  ;;  %v14244_v1 = vld [vmem:[%s18741_s10 + $0x5e4] ss:$16 sps:$4 sm:$0xff]   ;;  %v14286_v20 = vld [vmem:[%s18741_s10 + $0x42c] ss:$16 sps:$4 sm:$0xff]  }
 0xcb7   : > { %5934 = vmatpush2.bf16.msra.mxu1 %v14176_v57  ;;  %5975 = vmatpush2.bf16.msra.mxu0 %v14179_v15  ;;  %v14242_v57 = vld [vmem:[%s18741_s10 + $0x5e0] ss:$16 sps:$4 sm:$0xff]   ;;  %v14284_v15 = vld [vmem:[%s18741_s10 + $0x428] ss:$16 sps:$4 sm:$0xff]  }
 0xcb8   : > { %5935 = vmatprep.subr.bf16.mxu1 %v14184_v61  ;;  %5976 = vmatprep.subr.bf16.mxu0 %v14187_v50  ;;  %v14247_v61 = vld [vmem:[%s18741_s10 + $0x5c4] ss:$16 sps:$4 sm:$0xff]   ;;  %v14289_v50 = vld [vmem:[%s18741_s10 + $0x40c] ss:$16 sps:$4 sm:$0xff]  }
 0xcbb   : > { %5936 = vmatpush2.bf16.msra.mxu1 %v14182_v49  ;;  %5977 = vmatpush2.bf16.msra.mxu0 %v14185_v13  ;;  %v14245_v49 = vld [vmem:[%s18741_s10 + $0x5c0] ss:$16 sps:$4 sm:$0xff]   ;;  %v14287_v13 = vld [vmem:[%s18741_s10 + $0x408] ss:$16 sps:$4 sm:$0xff]  }
 0xcbc   : > { %5937 = vmatprep.subr.bf16.mxu1 %v14190_v47  ;;  %5978 = vmatprep.subr.bf16.mxu0 %v14193_v0  ;;  %v14250_v47 = vld [vmem:[%s18741_s10 + $0x5a4] ss:$16 sps:$4 sm:$0xff]   ;;  %v14292_v0 = vld [vmem:[%s18741_s10 + $0x5ec] ss:$16 sps:$4 sm:$0xff]  }
 0xcbf   : > { %5938 = vmatpush2.bf16.msra.mxu1 %v14188_v46  ;;  %5979 = vmatpush2.bf16.msra.mxu0 %v14191_v3  ;;  %v14248_v46 = vld [vmem:[%s18741_s10 + $0x5a0] ss:$16 sps:$4 sm:$0xff]   ;;  %v14290_v3 = vld [vmem:[%s18741_s10 + $0x5e8] ss:$16 sps:$4 sm:$0xff]  }
 0xcc0   : > { %5939 = vmatprep.subr.bf16.mxu1 %v14196_v44  ;;  %5980 = vmatprep.subr.bf16.mxu0 %v14199_v5  ;;  %v14253_v44 = vld [vmem:[%s18741_s10 + $0x584] ss:$16 sps:$4 sm:$0xff]   ;;  %v14295_v5 = vld [vmem:[%s18741_s10 + $0x5cc] ss:$16 sps:$4 sm:$0xff]  }
 0xcc3   : > { %5940 = vmatpush2.bf16.msra.mxu1 %v14194_v8  ;;  %5981 = vmatpush2.bf16.msra.mxu0 %v14197_v48  ;;  %v14251_v8 = vld [vmem:[%s18741_s10 + $0x580] ss:$16 sps:$4 sm:$0xff]   ;;  %v14293_v48 = vld [vmem:[%s18741_s10 + $0x5c8] ss:$16 sps:$4 sm:$0xff]  }
 0xcc4   : > { %5941 = vmatprep.subr.bf16.mxu1 %v14202_v14  ;;  %5982 = vmatprep.subr.bf16.mxu0 %v14205_v38  ;;  %v14256_v14 = vld [vmem:[%s18741_s10 + $0x564] ss:$16 sps:$4 sm:$0xff]   ;;  %v14298_v38 = vld [vmem:[%s18741_s10 + $0x5ac] ss:$16 sps:$4 sm:$0xff]  }
 0xcc7   : > { %5942 = vmatpush2.bf16.msra.mxu1 %v14200_v2  ;;  %5983 = vmatpush2.bf16.msra.mxu0 %v14203_v18  ;;  %v14254_v2 = vld [vmem:[%s18741_s10 + $0x560] ss:$16 sps:$4 sm:$0xff]   ;;  %v14296_v18 = vld [vmem:[%s18741_s10 + $0x5a8] ss:$16 sps:$4 sm:$0xff]  }
 0xcc8   : > { %5943 = vmatprep.subr.bf16.mxu1 %v14208_v23  ;;  %5984 = vmatprep.subr.bf16.mxu0 %v14211_v26  ;;  %v14259_v23 = vld [vmem:[%s18741_s10 + $0x544] ss:$16 sps:$4 sm:$0xff]   ;;  %v14301_v26 = vld [vmem:[%s18741_s10 + $0x58c] ss:$16 sps:$4 sm:$0xff]  }
 0xccb   : > { %5944 = vmatpush2.bf16.msra.mxu1 %v14206_v58  ;;  %5985 = vmatpush2.bf16.msra.mxu0 %v14209_v45  ;;  %v14257_v58 = vld [vmem:[%s18741_s10 + $0x540] ss:$16 sps:$4 sm:$0xff]   ;;  %v14299_v45 = vld [vmem:[%s18741_s10 + $0x588] ss:$16 sps:$4 sm:$0xff]  }
 0xccc   : > { %5945 = vmatprep.subr.bf16.mxu1 %v14214_v31  ;;  %5986 = vmatprep.subr.bf16.mxu0 %v14217_v24  ;;  %v14262_v31 = vld [vmem:[%s18741_s10 + $0x524] ss:$16 sps:$4 sm:$0xff]   ;;  %v14304_v24 = vld [vmem:[%s18741_s10 + $0x56c] ss:$16 sps:$4 sm:$0xff]  }
 0xccf   : > { %5946 = vmatpush2.bf16.msra.mxu1 %v14212_v11  ;;  %5987 = vmatpush2.bf16.msra.mxu0 %v14215_v63  ;;  %v14260_v11 = vld [vmem:[%s18741_s10 + $0x520] ss:$16 sps:$4 sm:$0xff]   ;;  %v14302_v63 = vld [vmem:[%s18741_s10 + $0x568] ss:$16 sps:$4 sm:$0xff]  }
 0xcd0   : > { %6016 = vmatprep.subr.bf16.mxu1 %v16514_v40  ;;  %6430 = vmatprep.subr.bf16.mxu0 %v14220_v32  ;;  %v14265_v32 = vld [vmem:[%s18741_s10 + $0x504] ss:$16 sps:$4 sm:$0xff]  }
 0xcd2   : > { %5948 = vmatmul.mubr.bf16.vlgmr.msra.gmra.mxu1 %v5014_v25  ;;  %5989 = vmatmul.mubr.bf16.vlgmr.msra.gmra.mxu0 %v5014_v25  ;;  %v14307_v25 = vld [vmem:[%s18741_s10 + $0x54c] ss:$16 sps:$4 sm:$0xff]  }
 0xcd3   : > { %6017 = vmatpush1.bf16.msra.mxu1 %v16512_v27  ;;  %6431 = vmatpush1.bf16.msra.mxu0 %v14218_v9  ;;  %v14263_v9 = vld [vmem:[%s18741_s10 + $0x500] ss:$16 sps:$4 sm:$0xff]  }
 0xcd4   : > { %6432 = vmatprep.subr.bf16.mxu0 %v14223_v10  ;;  %6034 = vmatprep.mubr.bf16.mxu1 %v14915_v16  ;;  %v14305_v10 = vld [vmem:[%s18741_s10 + $0x548] ss:$16 sps:$4 sm:$0xff]  }
 0xcd5   : > { %6471 = vmatprep.subr.bf16.mxu1 %v14268_v56 }
 0xcd7   : > { %6433 = vmatpush1.bf16.msra.mxu0 %v14221_v36  ;;  %v14310_v36 = vld [vmem:[%s18741_s10 + $0x52c] ss:$16 sps:$4 sm:$0xff]  }
 0xcd8   : > { %6434 = vmatprep.subr.bf16.mxu0 %v14226_v54  ;;  %v14308_v54 = vld [vmem:[%s18741_s10 + $0x528] ss:$16 sps:$4 sm:$0xff]  }
 0xcda   : > { %11879 = vmatmul.mubr.msk.bf16.vlgmr.msra.gmra.mxu1 %vm4969_vm5, %v11878_v34  ;;  %v14313_v34 = vld [vmem:[%s18741_s10 + $0x50c] ss:$16 sps:$4 sm:$0xff]  }
 0xcdb   : > { %6435 = vmatpush1.bf16.msra.mxu0 %v14224_v55  ;;  %6472 = vmatpush1.bf16.msra.mxu1 %v14266_v35  ;;  %v14311_v55 = vld [vmem:[%s18741_s10 + $0x508] ss:$16 sps:$4 sm:$0xff]  }
 0xcdc   : > { %6436 = vmatprep.subr.bf16.mxu0 %v14229_v41  ;;  %6473 = vmatprep.subr.bf16.mxu1 %v14271_v43  ;;  %v14316_v41 = vld [vmem:[%s18741_s10 + $0x6e4] ss:$16 sps:$4 sm:$0xff]  }
 0xcdf   : > { %6437 = vmatpush1.bf16.msra.mxu0 %v14227_v6  ;;  %6474 = vmatpush1.bf16.msra.mxu1 %v14269_v51 }
 0xce0   : > { %6438 = vmatprep.subr.bf16.mxu0 %v14232_v29  ;;  %6475 = vmatprep.subr.bf16.mxu1 %v14274_v53 }
 0xce3   : > { %6439 = vmatpush1.bf16.msra.mxu0 %v14230_v59  ;;  %6476 = vmatpush1.bf16.msra.mxu1 %v14272_v28 }
 0xce4   : > { %6440 = vmatprep.subr.bf16.mxu0 %v14235_v33  ;;  %6477 = vmatprep.subr.bf16.mxu1 %v14277_v22 }
 0xce7   : > { %6441 = vmatpush1.bf16.msra.mxu0 %v14233_v12  ;;  %6478 = vmatpush1.bf16.msra.mxu1 %v14275_v7 }
 0xce8   : > { %6442 = vmatprep.subr.bf16.mxu0 %v14238_v60  ;;  %6479 = vmatprep.subr.bf16.mxu1 %v14280_v42 }
 0xceb   : > { %6443 = vmatpush1.bf16.msra.mxu0 %v14236_v17  ;;  %6480 = vmatpush1.bf16.msra.mxu1 %v14278_v30 }
 0xcec   : > { %6444 = vmatprep.subr.bf16.mxu0 %v14241_v21  ;;  %6481 = vmatprep.subr.bf16.mxu1 %v14283_v52 }
 0xcef   : > { %6445 = vmatpush1.bf16.msra.mxu0 %v14239_v62  ;;  %6482 = vmatpush1.bf16.msra.mxu1 %v14281_v39 }
 0xcf0   : > { %6446 = vmatprep.subr.bf16.mxu0 %v14244_v1  ;;  %6483 = vmatprep.subr.bf16.mxu1 %v14286_v20 }
 0xcf3   : > { %6447 = vmatpush2.bf16.msra.mxu0 %v14242_v57  ;;  %6484 = vmatpush1.bf16.msra.mxu1 %v14284_v15  ;;  %v14314_v57 = vld [vmem:[%s18741_s10 + $0x6e0] ss:$16 sps:$4 sm:$0xff]  }
 0xcf4   : > { %6448 = vmatprep.subr.bf16.mxu0 %v14247_v61  ;;  %6485 = vmatprep.subr.bf16.mxu1 %v14289_v50  ;;  %v14319_v61 = vld [vmem:[%s18741_s10 + $0x6c4] ss:$16 sps:$4 sm:$0xff]  }
 0xcf7   : > { %6449 = vmatpush2.bf16.msra.mxu0 %v14245_v49  ;;  %6486 = vmatpush1.bf16.msra.mxu1 %v14287_v13  ;;  %v14364_v49 = vld [vmem:[%s18741_s10 + $0x6ec] ss:$16 sps:$4 sm:$0xff]  }
 0xcf8   : > { %6450 = vmatprep.subr.bf16.mxu0 %v14250_v47  ;;  %6487 = vmatprep.subr.bf16.mxu1 %v14292_v0  ;;  %v14317_v47 = vld [vmem:[%s18741_s10 + $0x6c0] ss:$16 sps:$4 sm:$0xff]   ;;  %v14322_v0 = vld [vmem:[%s18741_s10 + $0x6a4] ss:$16 sps:$4 sm:$0xff]  }
 0xcfb   : > { %6451 = vmatpush2.bf16.msra.mxu0 %v14248_v46  ;;  %6488 = vmatpush2.bf16.msra.mxu1 %v14290_v3  ;;  %v14320_v46 = vld [vmem:[%s18741_s10 + $0x6a0] ss:$16 sps:$4 sm:$0xff]   ;;  %v12008_v3 = vld [vmem:[%s18740_s9 + $0x6] sm:$0x3] }
 0xcfc   : > { %6452 = vmatprep.subr.bf16.mxu0 %v14253_v44  ;;  %6489 = vmatprep.subr.bf16.mxu1 %v14295_v5  ;;  %v14362_v44 = vld [vmem:[%s18741_s10 + $0x6e8] ss:$16 sps:$4 sm:$0xff]   ;;  %v14325_v5 = vld [vmem:[%s18741_s10 + $0x684] ss:$16 sps:$4 sm:$0xff]  }
 0xcff   : > { %6453 = vmatpush2.bf16.msra.mxu0 %v14251_v8  ;;  %6490 = vmatpush2.bf16.msra.mxu1 %v14293_v48  ;;  %v14367_v8 = vld [vmem:[%s18741_s10 + $0x6cc] ss:$16 sps:$4 sm:$0xff]   ;;  %v14323_v48 = vld [vmem:[%s18741_s10 + $0x680] ss:$16 sps:$4 sm:$0xff]  }
 0xd00   : > { %6454 = vmatprep.subr.bf16.mxu0 %v14256_v14  ;;  %6491 = vmatprep.subr.bf16.mxu1 %v14298_v38  ;;  %v14365_v14 = vld [vmem:[%s18741_s10 + $0x6c8] ss:$16 sps:$4 sm:$0xff]   ;;  %v14328_v38 = vld [vmem:[%s18741_s10 + $0x664] ss:$16 sps:$4 sm:$0xff]  }
 0xd03   : > { %6455 = vmatpush2.bf16.msra.mxu0 %v14254_v2  ;;  %6492 = vmatpush2.bf16.msra.mxu1 %v14296_v18  ;;  %v14370_v2 = vld [vmem:[%s18741_s10 + $0x6ac] ss:$16 sps:$4 sm:$0xff]   ;;  %v14326_v18 = vld [vmem:[%s18741_s10 + $0x660] ss:$16 sps:$4 sm:$0xff]  }
 0xd04   : > { %6456 = vmatprep.subr.bf16.mxu0 %v14259_v23  ;;  %6493 = vmatprep.subr.bf16.mxu1 %v14301_v26  ;;  %v14368_v23 = vld [vmem:[%s18741_s10 + $0x6a8] ss:$16 sps:$4 sm:$0xff]   ;;  %v14331_v26 = vld [vmem:[%s18741_s10 + $0x644] ss:$16 sps:$4 sm:$0xff]  }
 0xd07   : > { %6457 = vmatpush2.bf16.msra.mxu0 %v14257_v58  ;;  %6494 = vmatpush2.bf16.msra.mxu1 %v14299_v45  ;;  %v14373_v58 = vld [vmem:[%s18741_s10 + $0x68c] ss:$16 sps:$4 sm:$0xff]   ;;  %v14329_v45 = vld [vmem:[%s18741_s10 + $0x640] ss:$16 sps:$4 sm:$0xff]  }
 0xd08   : > { %6458 = vmatprep.subr.bf16.mxu0 %v14262_v31  ;;  %6495 = vmatprep.subr.bf16.mxu1 %v14304_v24  ;;  %v14371_v31 = vld [vmem:[%s18741_s10 + $0x688] ss:$16 sps:$4 sm:$0xff]   ;;  %v14334_v24 = vld [vmem:[%s18741_s10 + $0x624] ss:$16 sps:$4 sm:$0xff]  }
 0xd0b   : > { %6459 = vmatpush2.bf16.msra.mxu0 %v14260_v11  ;;  %6496 = vmatpush2.bf16.msra.mxu1 %v14302_v63  ;;  %v14376_v11 = vld [vmem:[%s18741_s10 + $0x66c] ss:$16 sps:$4 sm:$0xff]   ;;  %v14332_v63 = vld [vmem:[%s18741_s10 + $0x620] ss:$16 sps:$4 sm:$0xff]  }
 0xd0c   : > { %6460 = vmatprep.subr.bf16.mxu0 %v14265_v32  ;;  %6497 = vmatprep.subr.bf16.mxu1 %v14307_v25  ;;  %v14374_v32 = vld [vmem:[%s18741_s10 + $0x668] ss:$16 sps:$4 sm:$0xff]   ;;  %v14379_v25 = vld [vmem:[%s18741_s10 + $0x64c] ss:$16 sps:$4 sm:$0xff]  }
 0xd0f   : > { %6461 = vmatpush2.bf16.msra.mxu0 %v14263_v9  ;;  %6498 = vmatpush2.bf16.msra.mxu1 %v14305_v10  ;;  %v14337_v9 = vld [vmem:[%s18741_s10 + $0x604] ss:$16 sps:$4 sm:$0xff]   ;;  %v14335_v10 = vld [vmem:[%s18741_s10 + $0x600] ss:$16 sps:$4 sm:$0xff]  }
 0xd10   : > { %6535 = vmatprep.subr.bf16.mxu0 %v16514_v40  ;;  %6499 = vmatprep.subr.bf16.mxu1 %v14310_v36  ;;  %v14377_v36 = vld [vmem:[%s18741_s10 + $0x648] ss:$16 sps:$4 sm:$0xff]  }
 0xd13   : > { %6500 = vmatpush2.bf16.msra.mxu1 %v14308_v54  ;;  %v14340_v54 = vld [vmem:[%s18741_s10 + $0x7e4] ss:$16 sps:$4 sm:$0xff]  }
 0xd14   : > { %6501 = vmatprep.subr.bf16.mxu1 %v14313_v34  ;;  %v14382_v34 = vld [vmem:[%s18741_s10 + $0x62c] ss:$16 sps:$4 sm:$0xff]  }
 0xd17   : > { %6502 = vmatpush2.bf16.msra.mxu1 %v14311_v55  ;;  %v14338_v55 = vld [vmem:[%s18741_s10 + $0x7e0] ss:$16 sps:$4 sm:$0xff]  }
 0xd18   : > { %6949 = vmatprep.subr.bf16.mxu1 %v14316_v41  ;;  %v14380_v41 = vld [vmem:[%s18741_s10 + $0x628] ss:$16 sps:$4 sm:$0xff]  }
 0xd52   : > { %v5547_v35 = vpop.f32.mrf.mxu1  ;;  %v5588_v56 = vpop.f32.mrf.mxu0 }
 0xd54   : > { %v5549_v43 = vpop.f32.mrf.mxu1  ;;  %v5590_v6 = vpop.f32.mrf.mxu0 }
 0xd56   : > { %v5551_v51 = vpop.f32.mrf.mxu1  ;;  %v5592_v29 = vpop.f32.mrf.mxu0 }
 0xd57   : > { %v14346_v51 = vld [vmem:[%s18741_s10 + $0x7a4] ss:$16 sps:$4 sm:$0xff]   ;;  %v14388_v29 = vld [vmem:[%s18741_s10 + $0x7ec] ss:$16 sps:$4 sm:$0xff]  }
 0xd58   : > { %v5552_v53 = vpop.f32.mrf.mxu1  ;;  %v5593_v59 = vpop.f32.mrf.mxu0 }
 0xd59   : > { %v14344_v53 = vld [vmem:[%s18741_s10 + $0x7a0] ss:$16 sps:$4 sm:$0xff]   ;;  %v14386_v59 = vld [vmem:[%s18741_s10 + $0x7e8] ss:$16 sps:$4 sm:$0xff]  }
 0xd92   : > { %v5949_v28 = vpop.f32.mrf.mxu1  ;;  %v5990_v33 = vpop.f32.mrf.mxu0 }
 0xd93   : > { %v17042_v22 = vadd.f32 %v5949_v28, %v5547_v35  ;;  %v17044_v12 = vadd.f32 %v5990_v33, %v5588_v56  ;;  %v14343_v35 = vld [vmem:[%s18741_s10 + $0x7c4] ss:$16 sps:$4 sm:$0xff]   ;;  %v14385_v56 = vld [vmem:[%s18741_s10 + $0x60c] ss:$16 sps:$4 sm:$0xff]  }
 0xd94   : > { %v5951_v7 = vpop.f32.mrf.mxu1  ;;  %v5992_v60 = vpop.f32.mrf.mxu0  ;;  %v14349_v28 = vld [vmem:[%s18741_s10 + $0x784] ss:$16 sps:$4 sm:$0xff]   ;;  %v14391_v33 = vld [vmem:[%s18741_s10 + $0x7cc] ss:$16 sps:$4 sm:$0xff]  }
 0xd95   : > { %v17046_v42 = vadd.f32 %v5951_v7, %v5549_v43  ;;  %v17048_v17 = vadd.f32 %v5992_v60, %v5590_v6  ;;  %v14341_v43 = vld [vmem:[%s18741_s10 + $0x7c0] ss:$16 sps:$4 sm:$0xff]   ;;  %v14383_v6 = vld [vmem:[%s18741_s10 + $0x608] ss:$16 sps:$4 sm:$0xff]  }
 0xd96   : > { %v5953_v30 = vpop.f32.mrf.mxu1  ;;  %v5994_v21 = vpop.f32.mrf.mxu0  ;;  %v14347_v7 = vld [vmem:[%s18741_s10 + $0x780] ss:$16 sps:$4 sm:$0xff]   ;;  %v14389_v60 = vld [vmem:[%s18741_s10 + $0x7c8] ss:$16 sps:$4 sm:$0xff]  }
 0xd97   : > { %v14352_v30 = vld [vmem:[%s18741_s10 + $0x764] ss:$16 sps:$4 sm:$0xff]   ;;  %v14394_v21 = vld [vmem:[%s18741_s10 + $0x7ac] ss:$16 sps:$4 sm:$0xff]  }
 0xd98   : > { %v5954_v52 = vpop.f32.mrf.mxu1  ;;  %v5995_v62 = vpop.f32.mrf.mxu0 }
 0xd99   : > { %v14350_v52 = vld [vmem:[%s18741_s10 + $0x760] ss:$16 sps:$4 sm:$0xff]   ;;  %v14392_v62 = vld [vmem:[%s18741_s10 + $0x7a8] ss:$16 sps:$4 sm:$0xff]  }
 0xd9a   : > { %v6036_v39 = vpop.f32.mrf.mxu1 }
 0xd9b   : > { %v6043_v15 = vpack.c.bf16 %v6036_v39, %v6036_v39  ;;  %v14355_v39 = vld [vmem:[%s18741_s10 + $0x744] ss:$16 sps:$4 sm:$0xff]  }
 0xd9c   : > { %v6038_v1 = vpop.f32.mrf.mxu1 }
 0xd9d   : > { %v6044_v20 = vpack.c.bf16 %v6038_v1, %v6038_v1  ;;  %v14397_v1 = vld [vmem:[%s18741_s10 + $0x78c] ss:$16 sps:$4 sm:$0xff]  }
 0xd9e   : > { %v6040_v50 = vpop.f32.mrf.mxu1 }
 0xd9f   : > { %6462 = vmatprep.mubr.bf16.mxu0 %v6044_v20  ;;  %6503 = vmatprep.mubr.bf16.mxu1 %v6044_v20  ;;  %v14353_v20 = vld [vmem:[%s18741_s10 + $0x740] ss:$16 sps:$4 sm:$0xff]  }
 0xda0   : > { %6463 = vmatmul.mubr.bf16.vlgmr.msra.gmra.mxu0 %v6043_v15  ;;  %6504 = vmatmul.mubr.bf16.vlgmr.msra.gmra.mxu1 %v6043_v15  ;;  %v6041_v13 = vpop.f32.mrf.mxu1  ;;  %v14358_v15 = vld [vmem:[%s18741_s10 + $0x724] ss:$16 sps:$4 sm:$0xff]   ;;  %v14356_v50 = vld [vmem:[%s18741_s10 + $0x720] ss:$16 sps:$4 sm:$0xff]  }
 0xda1   : > { %6536 = vmatpush1.bf16.msra.mxu0 %v16512_v27  ;;  %6950 = vmatpush1.bf16.msra.mxu1 %v14314_v57  ;;  %v14395_v57 = vld [vmem:[%s18741_s10 + $0x788] ss:$16 sps:$4 sm:$0xff]   ;;  %v14361_v13 = vld [vmem:[%s18741_s10 + $0x704] ss:$16 sps:$4 sm:$0xff]  }
 0xda2   : > { %6951 = vmatprep.subr.bf16.mxu1 %v14319_v61  ;;  %6553 = vmatprep.mubr.bf16.mxu0 %v14915_v16  ;;  %v14400_v61 = vld [vmem:[%s18741_s10 + $0x76c] ss:$16 sps:$4 sm:$0xff]  }
 0xda3   : > { %6990 = vmatprep.subr.bf16.mxu0 %v14364_v49  ;;  %v14398_v49 = vld [vmem:[%s18741_s10 + $0x768] ss:$16 sps:$4 sm:$0xff]  }
 0xda5   : > { %6952 = vmatpush1.bf16.msra.mxu1 %v14317_v47  ;;  %v14359_v47 = vld [vmem:[%s18741_s10 + $0x700] ss:$16 sps:$4 sm:$0xff]  }
 0xda6   : > { %6953 = vmatprep.subr.bf16.mxu1 %v14322_v0  ;;  %v14403_v0 = vld [vmem:[%s18741_s10 + $0x74c] ss:$16 sps:$4 sm:$0xff]  }
 0xda8   : > { %12009 = vmatmul.mubr.msk.bf16.vlgmr.msra.gmra.mxu0 %vm4969_vm5, %v12008_v3  ;;  %v14404_v3 = vld [vmem:[%s18741_s10 + $0x728] ss:$16 sps:$4 sm:$0xff]  }
 0xda9   : > { %6954 = vmatpush1.bf16.msra.mxu1 %v14320_v46  ;;  %6991 = vmatpush1.bf16.msra.mxu0 %v14362_v44  ;;  %v14401_v46 = vld [vmem:[%s18741_s10 + $0x748] ss:$16 sps:$4 sm:$0xff]   ;;  %v14406_v44 = vld [vmem:[%s18741_s10 + $0x72c] ss:$16 sps:$4 sm:$0xff]  }
 0xdaa   : > { %6955 = vmatprep.subr.bf16.mxu1 %v14325_v5  ;;  %6992 = vmatprep.subr.bf16.mxu0 %v14367_v8  ;;  %v14409_v5 = vld [vmem:[%s18741_s10 + $0x70c] ss:$16 sps:$4 sm:$0xff]   ;;  %v14407_v8 = vld [vmem:[%s18741_s10 + $0x708] ss:$16 sps:$4 sm:$0xff]  }
 0xdad   : > { %6956 = vmatpush1.bf16.msra.mxu1 %v14323_v48  ;;  %6993 = vmatpush1.bf16.msra.mxu0 %v14365_v14  ;;  %v14412_v48 = vld [vmem:[%s18741_s10 + $0x8e4] ss:$16 sps:$4 sm:$0xff]  }
 0xdae   : > { %6957 = vmatprep.subr.bf16.mxu1 %v14328_v38  ;;  %6994 = vmatprep.subr.bf16.mxu0 %v14370_v2 }
 0xdb1   : > { %6958 = vmatpush1.bf16.msra.mxu1 %v14326_v18  ;;  %6995 = vmatpush1.bf16.msra.mxu0 %v14368_v23 }
 0xdb2   : > { %6959 = vmatprep.subr.bf16.mxu1 %v14331_v26  ;;  %6996 = vmatprep.subr.bf16.mxu0 %v14373_v58 }
 0xdb5   : > { %6960 = vmatpush1.bf16.msra.mxu1 %v14329_v45  ;;  %6997 = vmatpush1.bf16.msra.mxu0 %v14371_v31 }
 0xdb6   : > { %6961 = vmatprep.subr.bf16.mxu1 %v14334_v24  ;;  %6998 = vmatprep.subr.bf16.mxu0 %v14376_v11 }
 0xdb9   : > { %6962 = vmatpush1.bf16.msra.mxu1 %v14332_v63  ;;  %6999 = vmatpush1.bf16.msra.mxu0 %v14374_v32 }
 0xdba   : > { %6963 = vmatprep.subr.bf16.mxu1 %v14337_v9  ;;  %7000 = vmatprep.subr.bf16.mxu0 %v14379_v25 }
 0xdbd   : > { %6964 = vmatpush1.bf16.msra.mxu1 %v14335_v10  ;;  %7001 = vmatpush1.bf16.msra.mxu0 %v14377_v36 }
 0xdbe   : > { %6965 = vmatprep.subr.bf16.mxu1 %v14340_v54  ;;  %7002 = vmatprep.subr.bf16.mxu0 %v14382_v34  ;;  %v14413_v54 = vld [vmem:[%s18741_s10 + $0x8c0] ss:$16 sps:$4 sm:$0xff]   ;;  %v14418_v34 = vld [vmem:[%s18741_s10 + $0x8a4] ss:$16 sps:$4 sm:$0xff]  }
 0xdc1   : > { %6966 = vmatpush2.bf16.msra.mxu1 %v14338_v55  ;;  %7003 = vmatpush1.bf16.msra.mxu0 %v14380_v41  ;;  %v14416_v55 = vld [vmem:[%s18741_s10 + $0x8a0] ss:$16 sps:$4 sm:$0xff]   ;;  %v12138_v41 = vld [vmem:[%s18740_s9 + $0x8] sm:$0x3] }
 0xdc2   : > { %6967 = vmatprep.subr.bf16.mxu1 %v14343_v35  ;;  %7004 = vmatprep.subr.bf16.mxu0 %v14385_v56  ;;  %v14458_v35 = vld [vmem:[%s18741_s10 + $0x8e8] ss:$16 sps:$4 sm:$0xff]   ;;  %v14421_v56 = vld [vmem:[%s18741_s10 + $0x884] ss:$16 sps:$4 sm:$0xff]  }
 0xdc5   : > { %6968 = vmatpush2.bf16.msra.mxu1 %v14341_v43  ;;  %7005 = vmatpush1.bf16.msra.mxu0 %v14383_v6  ;;  %v14463_v43 = vld [vmem:[%s18741_s10 + $0x8cc] ss:$16 sps:$4 sm:$0xff]   ;;  %v14419_v6 = vld [vmem:[%s18741_s10 + $0x880] ss:$16 sps:$4 sm:$0xff]  }
 0xdc6   : > { %6969 = vmatprep.subr.bf16.mxu1 %v14346_v51  ;;  %7006 = vmatprep.subr.bf16.mxu0 %v14388_v29  ;;  %v14461_v51 = vld [vmem:[%s18741_s10 + $0x8c8] ss:$16 sps:$4 sm:$0xff]   ;;  %v14424_v29 = vld [vmem:[%s18741_s10 + $0x864] ss:$16 sps:$4 sm:$0xff]  }
 0xdc9   : > { %6970 = vmatpush2.bf16.msra.mxu1 %v14344_v53  ;;  %7007 = vmatpush2.bf16.msra.mxu0 %v14386_v59  ;;  %v14466_v53 = vld [vmem:[%s18741_s10 + $0x8ac] ss:$16 sps:$4 sm:$0xff]   ;;  %v14422_v59 = vld [vmem:[%s18741_s10 + $0x860] ss:$16 sps:$4 sm:$0xff]  }
 0xdca   : > { %6971 = vmatprep.subr.bf16.mxu1 %v14349_v28  ;;  %7008 = vmatprep.subr.bf16.mxu0 %v14391_v33  ;;  %v14464_v28 = vld [vmem:[%s18741_s10 + $0x8a8] ss:$16 sps:$4 sm:$0xff]   ;;  %v14427_v33 = vld [vmem:[%s18741_s10 + $0x844] ss:$16 sps:$4 sm:$0xff]  }
 0xdcd   : > { %6972 = vmatpush2.bf16.msra.mxu1 %v14347_v7  ;;  %7009 = vmatpush2.bf16.msra.mxu0 %v14389_v60  ;;  %v14469_v7 = vld [vmem:[%s18741_s10 + $0x88c] ss:$16 sps:$4 sm:$0xff]   ;;  %v14425_v60 = vld [vmem:[%s18741_s10 + $0x840] ss:$16 sps:$4 sm:$0xff]  }
 0xdce   : > { %6973 = vmatprep.subr.bf16.mxu1 %v14352_v30  ;;  %7010 = vmatprep.subr.bf16.mxu0 %v14394_v21  ;;  %v14467_v30 = vld [vmem:[%s18741_s10 + $0x888] ss:$16 sps:$4 sm:$0xff]   ;;  %v14430_v21 = vld [vmem:[%s18741_s10 + $0x824] ss:$16 sps:$4 sm:$0xff]  }
 0xdd1   : > { %6974 = vmatpush2.bf16.msra.mxu1 %v14350_v52  ;;  %7011 = vmatpush2.bf16.msra.mxu0 %v14392_v62  ;;  %v14472_v52 = vld [vmem:[%s18741_s10 + $0x86c] ss:$16 sps:$4 sm:$0xff]   ;;  %v14428_v62 = vld [vmem:[%s18741_s10 + $0x820] ss:$16 sps:$4 sm:$0xff]  }
 0xdd2   : > { %6975 = vmatprep.subr.bf16.mxu1 %v14355_v39  ;;  %7012 = vmatprep.subr.bf16.mxu0 %v14397_v1  ;;  %v14470_v39 = vld [vmem:[%s18741_s10 + $0x868] ss:$16 sps:$4 sm:$0xff]   ;;  %v14433_v1 = vld [vmem:[%s18741_s10 + $0x804] ss:$16 sps:$4 sm:$0xff]  }
 0xdd5   : > { %6976 = vmatpush2.bf16.msra.mxu1 %v14353_v20  ;;  %7013 = vmatpush2.bf16.msra.mxu0 %v14395_v57  ;;  %v14475_v20 = vld [vmem:[%s18741_s10 + $0x84c] ss:$16 sps:$4 sm:$0xff]   ;;  %v14431_v57 = vld [vmem:[%s18741_s10 + $0x800] ss:$16 sps:$4 sm:$0xff]  }
 0xdd6   : > { %6977 = vmatprep.subr.bf16.mxu1 %v14358_v15  ;;  %7014 = vmatprep.subr.bf16.mxu0 %v14400_v61  ;;  %v14473_v15 = vld [vmem:[%s18741_s10 + $0x848] ss:$16 sps:$4 sm:$0xff]   ;;  %v14436_v61 = vld [vmem:[%s18741_s10 + $0x9e4] ss:$16 sps:$4 sm:$0xff]  }
 0xdd9   : > { %6978 = vmatpush2.bf16.msra.mxu1 %v14356_v50  ;;  %7015 = vmatpush2.bf16.msra.mxu0 %v14398_v49  ;;  %v14478_v50 = vld [vmem:[%s18741_s10 + $0x82c] ss:$16 sps:$4 sm:$0xff]   ;;  %v14434_v49 = vld [vmem:[%s18741_s10 + $0x9e0] ss:$16 sps:$4 sm:$0xff]  }
 0xdda   : > { %6979 = vmatprep.subr.bf16.mxu1 %v14361_v13  ;;  %7016 = vmatprep.subr.bf16.mxu0 %v14403_v0  ;;  %v14476_v13 = vld [vmem:[%s18741_s10 + $0x828] ss:$16 sps:$4 sm:$0xff]   ;;  %v14481_v0 = vld [vmem:[%s18741_s10 + $0x80c] ss:$16 sps:$4 sm:$0xff]  }
 0xddd   : > { %6980 = vmatpush2.bf16.msra.mxu1 %v14359_v47  ;;  %7017 = vmatpush2.bf16.msra.mxu0 %v14401_v46  ;;  %v14439_v47 = vld [vmem:[%s18741_s10 + $0x9c4] ss:$16 sps:$4 sm:$0xff]   ;;  %v14437_v46 = vld [vmem:[%s18741_s10 + $0x9c0] ss:$16 sps:$4 sm:$0xff]  }
 0xdde   : > { %7054 = vmatprep.subr.bf16.mxu1 %v16514_v40  ;;  %7018 = vmatprep.subr.bf16.mxu0 %v14406_v44  ;;  %v14442_v44 = vld [vmem:[%s18741_s10 + $0x9a4] ss:$16 sps:$4 sm:$0xff]  }
 0xde1   : > { %7019 = vmatpush2.bf16.msra.mxu0 %v14404_v3  ;;  %v14479_v3 = vld [vmem:[%s18741_s10 + $0x808] ss:$16 sps:$4 sm:$0xff]  }
 0xde2   : > { %7020 = vmatprep.subr.bf16.mxu0 %v14409_v5  ;;  %v14484_v5 = vld [vmem:[%s18741_s10 + $0x9ec] ss:$16 sps:$4 sm:$0xff]  }
 0xde5   : > { %7021 = vmatpush2.bf16.msra.mxu0 %v14407_v8  ;;  %v14440_v8 = vld [vmem:[%s18741_s10 + $0x9a0] ss:$16 sps:$4 sm:$0xff]  }
 0xde6   : > { %7468 = vmatprep.subr.bf16.mxu0 %v14412_v48  ;;  %v14482_v48 = vld [vmem:[%s18741_s10 + $0x9e8] ss:$16 sps:$4 sm:$0xff]  }
 0xe60   : > { %v6464_v14 = vpop.f32.mrf.mxu0  ;;  %v6505_v38 = vpop.f32.mrf.mxu1 }
 0xe61   : > { %v17250_v2 = vadd.f32 %v6464_v14, %v17042_v22  ;;  %v17253_v18 = vadd.f32 %v6505_v38, %v17044_v12  ;;  %v14410_v22 = vld [vmem:[%s18741_s10 + $0x8e0] ss:$16 sps:$4 sm:$0xff]   ;;  %v14445_v14 = vld [vmem:[%s18741_s10 + $0x984] ss:$16 sps:$4 sm:$0xff]   ;;  %v14487_v38 = vld [vmem:[%s18741_s10 + $0x9cc] ss:$16 sps:$4 sm:$0xff]  }
 0xe62   : > { %v6466_v23 = vpop.f32.mrf.mxu0  ;;  %v6507_v26 = vpop.f32.mrf.mxu1 }
 0xe63   : > { %v17256_v58 = vadd.f32 %v6466_v23, %v17046_v42  ;;  %v17259_v45 = vadd.f32 %v6507_v26, %v17048_v17  ;;  %v14415_v42 = vld [vmem:[%s18741_s10 + $0x8c4] ss:$16 sps:$4 sm:$0xff]   ;;  %v14460_v17 = vld [vmem:[%s18741_s10 + $0x8ec] ss:$16 sps:$4 sm:$0xff]   ;;  %v14443_v23 = vld [vmem:[%s18741_s10 + $0x980] ss:$16 sps:$4 sm:$0xff]  }
 0xe64   : > { %v6468_v31 = vpop.f32.mrf.mxu0  ;;  %v6509_v24 = vpop.f32.mrf.mxu1  ;;  %v14485_v26 = vld [vmem:[%s18741_s10 + $0x9c8] ss:$16 sps:$4 sm:$0xff]  }
 0xe65   : > { %v14448_v31 = vld [vmem:[%s18741_s10 + $0x964] ss:$16 sps:$4 sm:$0xff]   ;;  %v14490_v24 = vld [vmem:[%s18741_s10 + $0x9ac] ss:$16 sps:$4 sm:$0xff]  }
 0xe66   : > { %v6469_v11 = vpop.f32.mrf.mxu0  ;;  %v6510_v63 = vpop.f32.mrf.mxu1 }
 0xe67   : > { %v14446_v11 = vld [vmem:[%s18741_s10 + $0x960] ss:$16 sps:$4 sm:$0xff]   ;;  %v14488_v63 = vld [vmem:[%s18741_s10 + $0x9a8] ss:$16 sps:$4 sm:$0xff]  }
 0xe68   : > { %v6555_v32 = vpop.f32.mrf.mxu0 }
 0xe69   : > { %v6562_v12 = vpack.c.bf16 %v6555_v32, %v6555_v32  ;;  %v14451_v32 = vld [vmem:[%s18741_s10 + $0x944] ss:$16 sps:$4 sm:$0xff]  }
 0xe6a   : > { %v6557_v9 = vpop.f32.mrf.mxu0 }
 0xe6b   : > { %v6563_v25 = vpack.c.bf16 %v6557_v9, %v6557_v9  ;;  %v14493_v9 = vld [vmem:[%s18741_s10 + $0x98c] ss:$16 sps:$4 sm:$0xff]  }
 0xe6c   : > { %v6559_v10 = vpop.f32.mrf.mxu0 }
 0xe6d   : > { %6981 = vmatprep.mubr.bf16.mxu1 %v6563_v25  ;;  %7022 = vmatprep.mubr.bf16.mxu0 %v6563_v25  ;;  %v14449_v25 = vld [vmem:[%s18741_s10 + $0x940] ss:$16 sps:$4 sm:$0xff]  }
 0xe6e   : > { %6982 = vmatmul.mubr.bf16.vlgmr.msra.gmra.mxu1 %v6562_v12  ;;  %7023 = vmatmul.mubr.bf16.vlgmr.msra.gmra.mxu0 %v6562_v12  ;;  %v6560_v36 = vpop.f32.mrf.mxu0  ;;  %v14454_v12 = vld [vmem:[%s18741_s10 + $0x924] ss:$16 sps:$4 sm:$0xff]   ;;  %v14452_v10 = vld [vmem:[%s18741_s10 + $0x920] ss:$16 sps:$4 sm:$0xff]  }
 0xe6f   : > { %7055 = vmatpush1.bf16.msra.mxu1 %v16512_v27  ;;  %7469 = vmatpush1.bf16.msra.mxu0 %v14410_v22  ;;  %v14491_v22 = vld [vmem:[%s18741_s10 + $0x988] ss:$16 sps:$4 sm:$0xff]   ;;  %v14457_v36 = vld [vmem:[%s18741_s10 + $0x904] ss:$16 sps:$4 sm:$0xff]  }
 0xe70   : > { %7470 = vmatprep.subr.bf16.mxu0 %v14415_v42  ;;  %7072 = vmatprep.mubr.bf16.mxu1 %v14915_v16  ;;  %v14496_v42 = vld [vmem:[%s18741_s10 + $0x96c] ss:$16 sps:$4 sm:$0xff]  }
 0xe71   : > { %7509 = vmatprep.subr.bf16.mxu1 %v14460_v17  ;;  %v14494_v17 = vld [vmem:[%s18741_s10 + $0x968] ss:$16 sps:$4 sm:$0xff]  }
 0xe73   : > { %7471 = vmatpush1.bf16.msra.mxu0 %v14413_v54  ;;  %v14455_v54 = vld [vmem:[%s18741_s10 + $0x900] ss:$16 sps:$4 sm:$0xff]  }
 0xe74   : > { %7472 = vmatprep.subr.bf16.mxu0 %v14418_v34  ;;  %v14499_v34 = vld [vmem:[%s18741_s10 + $0x94c] ss:$16 sps:$4 sm:$0xff]  }
 0xe76   : > { %12139 = vmatmul.mubr.msk.bf16.vlgmr.msra.gmra.mxu1 %vm4969_vm5, %v12138_v41  ;;  %v14500_v41 = vld [vmem:[%s18741_s10 + $0x928] ss:$16 sps:$4 sm:$0xff]  }
 0xe77   : > { %7473 = vmatpush1.bf16.msra.mxu0 %v14416_v55  ;;  %7510 = vmatpush1.bf16.msra.mxu1 %v14458_v35  ;;  %v14497_v55 = vld [vmem:[%s18741_s10 + $0x948] ss:$16 sps:$4 sm:$0xff]   ;;  %v14502_v35 = vld [vmem:[%s18741_s10 + $0x92c] ss:$16 sps:$4 sm:$0xff]  }
 0xe78   : > { %7474 = vmatprep.subr.bf16.mxu0 %v14421_v56  ;;  %7511 = vmatprep.subr.bf16.mxu1 %v14463_v43  ;;  %v14505_v56 = vld [vmem:[%s18741_s10 + $0x90c] ss:$16 sps:$4 sm:$0xff]   ;;  %v14503_v43 = vld [vmem:[%s18741_s10 + $0x908] ss:$16 sps:$4 sm:$0xff]  }
 0xe7b   : > { %7475 = vmatpush1.bf16.msra.mxu0 %v14419_v6  ;;  %7512 = vmatpush1.bf16.msra.mxu1 %v14461_v51  ;;  %v14508_v6 = vld [vmem:[%s18741_s10 + $0xae4] ss:$16 sps:$4 sm:$0xff]  }
 0xe7c   : > { %7476 = vmatprep.subr.bf16.mxu0 %v14424_v29  ;;  %7513 = vmatprep.subr.bf16.mxu1 %v14466_v53 }
 0xe7f   : > { %7477 = vmatpush1.bf16.msra.mxu0 %v14422_v59  ;;  %7514 = vmatpush1.bf16.msra.mxu1 %v14464_v28 }
 0xe80   : > { %7478 = vmatprep.subr.bf16.mxu0 %v14427_v33  ;;  %7515 = vmatprep.subr.bf16.mxu1 %v14469_v7 }
 0xe83   : > { %7479 = vmatpush1.bf16.msra.mxu0 %v14425_v60  ;;  %7516 = vmatpush1.bf16.msra.mxu1 %v14467_v30 }
 0xe84   : > { %7480 = vmatprep.subr.bf16.mxu0 %v14430_v21  ;;  %7517 = vmatprep.subr.bf16.mxu1 %v14472_v52 }
 0xe87   : > { %7481 = vmatpush1.bf16.msra.mxu0 %v14428_v62  ;;  %7518 = vmatpush1.bf16.msra.mxu1 %v14470_v39 }
 0xe88   : > { %7482 = vmatprep.subr.bf16.mxu0 %v14433_v1  ;;  %7519 = vmatprep.subr.bf16.mxu1 %v14475_v20 }
 0xe8b   : > { %7483 = vmatpush1.bf16.msra.mxu0 %v14431_v57  ;;  %7520 = vmatpush1.bf16.msra.mxu1 %v14473_v15 }
 0xe8c   : > { %7484 = vmatprep.subr.bf16.mxu0 %v14436_v61  ;;  %7521 = vmatprep.subr.bf16.mxu1 %v14478_v50  ;;  %v14509_v61 = vld [vmem:[%s18741_s10 + $0xac0] ss:$16 sps:$4 sm:$0xff]   ;;  %v14514_v50 = vld [vmem:[%s18741_s10 + $0xaa4] ss:$16 sps:$4 sm:$0xff]  }
 0xe8f   : > { %7485 = vmatpush2.bf16.msra.mxu0 %v14434_v49  ;;  %7522 = vmatpush1.bf16.msra.mxu1 %v14476_v13  ;;  %v14512_v49 = vld [vmem:[%s18741_s10 + $0xaa0] ss:$16 sps:$4 sm:$0xff]   ;;  %v12268_v13 = vld [vmem:[%s18740_s9 + $0xa] sm:$0x3] }
 0xe90   : > { %7486 = vmatprep.subr.bf16.mxu0 %v14439_v47  ;;  %7523 = vmatprep.subr.bf16.mxu1 %v14481_v0  ;;  %v14554_v47 = vld [vmem:[%s18741_s10 + $0xae8] ss:$16 sps:$4 sm:$0xff]   ;;  %v14517_v0 = vld [vmem:[%s18741_s10 + $0xa84] ss:$16 sps:$4 sm:$0xff]  }
 0xe93   : > { %7487 = vmatpush2.bf16.msra.mxu0 %v14437_v46  ;;  %7524 = vmatpush1.bf16.msra.mxu1 %v14479_v3  ;;  %v14559_v46 = vld [vmem:[%s18741_s10 + $0xacc] ss:$16 sps:$4 sm:$0xff]   ;;  %v14515_v3 = vld [vmem:[%s18741_s10 + $0xa80] ss:$16 sps:$4 sm:$0xff]  }
 0xe94   : > { %7488 = vmatprep.subr.bf16.mxu0 %v14442_v44  ;;  %7525 = vmatprep.subr.bf16.mxu1 %v14484_v5  ;;  %v14557_v44 = vld [vmem:[%s18741_s10 + $0xac8] ss:$16 sps:$4 sm:$0xff]   ;;  %v14520_v5 = vld [vmem:[%s18741_s10 + $0xa64] ss:$16 sps:$4 sm:$0xff]  }
 0xe97   : > { %7489 = vmatpush2.bf16.msra.mxu0 %v14440_v8  ;;  %7526 = vmatpush2.bf16.msra.mxu1 %v14482_v48  ;;  %v14562_v8 = vld [vmem:[%s18741_s10 + $0xaac] ss:$16 sps:$4 sm:$0xff]   ;;  %v14518_v48 = vld [vmem:[%s18741_s10 + $0xa60] ss:$16 sps:$4 sm:$0xff]  }
 0xe98   : > { %7490 = vmatprep.subr.bf16.mxu0 %v14445_v14  ;;  %7527 = vmatprep.subr.bf16.mxu1 %v14487_v38  ;;  %v14560_v14 = vld [vmem:[%s18741_s10 + $0xaa8] ss:$16 sps:$4 sm:$0xff]   ;;  %v14523_v38 = vld [vmem:[%s18741_s10 + $0xa44] ss:$16 sps:$4 sm:$0xff]  }
 0xe9b   : > { %7491 = vmatpush2.bf16.msra.mxu0 %v14443_v23  ;;  %7528 = vmatpush2.bf16.msra.mxu1 %v14485_v26  ;;  %v14565_v23 = vld [vmem:[%s18741_s10 + $0xa8c] ss:$16 sps:$4 sm:$0xff]   ;;  %v14521_v26 = vld [vmem:[%s18741_s10 + $0xa40] ss:$16 sps:$4 sm:$0xff]  }
 0xe9c   : > { %7492 = vmatprep.subr.bf16.mxu0 %v14448_v31  ;;  %7529 = vmatprep.subr.bf16.mxu1 %v14490_v24  ;;  %v14563_v31 = vld [vmem:[%s18741_s10 + $0xa88] ss:$16 sps:$4 sm:$0xff]   ;;  %v14526_v24 = vld [vmem:[%s18741_s10 + $0xa24] ss:$16 sps:$4 sm:$0xff]  }
 0xe9f   : > { %7493 = vmatpush2.bf16.msra.mxu0 %v14446_v11  ;;  %7530 = vmatpush2.bf16.msra.mxu1 %v14488_v63  ;;  %v14568_v11 = vld [vmem:[%s18741_s10 + $0xa6c] ss:$16 sps:$4 sm:$0xff]   ;;  %v14524_v63 = vld [vmem:[%s18741_s10 + $0xa20] ss:$16 sps:$4 sm:$0xff]  }
 0xea0   : > { %7494 = vmatprep.subr.bf16.mxu0 %v14451_v32  ;;  %7531 = vmatprep.subr.bf16.mxu1 %v14493_v9  ;;  %v14566_v32 = vld [vmem:[%s18741_s10 + $0xa68] ss:$16 sps:$4 sm:$0xff]   ;;  %v14529_v9 = vld [vmem:[%s18741_s10 + $0xa04] ss:$16 sps:$4 sm:$0xff]  }
 0xea3   : > { %7495 = vmatpush2.bf16.msra.mxu0 %v14449_v25  ;;  %7532 = vmatpush2.bf16.msra.mxu1 %v14491_v22  ;;  %v14571_v25 = vld [vmem:[%s18741_s10 + $0xa4c] ss:$16 sps:$4 sm:$0xff]   ;;  %v14527_v22 = vld [vmem:[%s18741_s10 + $0xa00] ss:$16 sps:$4 sm:$0xff]  }
 0xea4   : > { %7496 = vmatprep.subr.bf16.mxu0 %v14454_v12  ;;  %7533 = vmatprep.subr.bf16.mxu1 %v14496_v42  ;;  %v14569_v12 = vld [vmem:[%s18741_s10 + $0xa48] ss:$16 sps:$4 sm:$0xff]   ;;  %v14532_v42 = vld [vmem:[%s18741_s10 + $0xbe4] ss:$16 sps:$4 sm:$0xff]  }
 0xea7   : > { %7497 = vmatpush2.bf16.msra.mxu0 %v14452_v10  ;;  %7534 = vmatpush2.bf16.msra.mxu1 %v14494_v17  ;;  %v14574_v10 = vld [vmem:[%s18741_s10 + $0xa2c] ss:$16 sps:$4 sm:$0xff]   ;;  %v14530_v17 = vld [vmem:[%s18741_s10 + $0xbe0] ss:$16 sps:$4 sm:$0xff]  }
 0xea8   : > { %7498 = vmatprep.subr.bf16.mxu0 %v14457_v36  ;;  %7535 = vmatprep.subr.bf16.mxu1 %v14499_v34  ;;  %v14572_v36 = vld [vmem:[%s18741_s10 + $0xa28] ss:$16 sps:$4 sm:$0xff]   ;;  %v14577_v34 = vld [vmem:[%s18741_s10 + $0xa0c] ss:$16 sps:$4 sm:$0xff]  }
 0xeab   : > { %7499 = vmatpush2.bf16.msra.mxu0 %v14455_v54  ;;  %7536 = vmatpush2.bf16.msra.mxu1 %v14497_v55  ;;  %v14535_v54 = vld [vmem:[%s18741_s10 + $0xbc4] ss:$16 sps:$4 sm:$0xff]   ;;  %v14533_v55 = vld [vmem:[%s18741_s10 + $0xbc0] ss:$16 sps:$4 sm:$0xff]  }
 0xeac   : > { %7573 = vmatprep.subr.bf16.mxu0 %v16514_v40  ;;  %7537 = vmatprep.subr.bf16.mxu1 %v14502_v35  ;;  %v14538_v35 = vld [vmem:[%s18741_s10 + $0xba4] ss:$16 sps:$4 sm:$0xff]  }
 0xeaf   : > { %7538 = vmatpush2.bf16.msra.mxu1 %v14500_v41  ;;  %v14575_v41 = vld [vmem:[%s18741_s10 + $0xa08] ss:$16 sps:$4 sm:$0xff]  }
 0xeb0   : > { %7539 = vmatprep.subr.bf16.mxu1 %v14505_v56  ;;  %v14580_v56 = vld [vmem:[%s18741_s10 + $0xbec] ss:$16 sps:$4 sm:$0xff]  }
 0xeb3   : > { %7540 = vmatpush2.bf16.msra.mxu1 %v14503_v43  ;;  %v14536_v43 = vld [vmem:[%s18741_s10 + $0xba0] ss:$16 sps:$4 sm:$0xff]  }
 0xeb4   : > { %7987 = vmatprep.subr.bf16.mxu1 %v14508_v6  ;;  %v14578_v6 = vld [vmem:[%s18741_s10 + $0xbe8] ss:$16 sps:$4 sm:$0xff]  }
 0xf2e   : > { %v6983_v51 = vpop.f32.mrf.mxu1  ;;  %v7024_v29 = vpop.f32.mrf.mxu0 }
 0xf2f   : > { %v17461_v53 = vadd.f32 %v6983_v51, %v17250_v2  ;;  %v17464_v59 = vadd.f32 %v7024_v29, %v17253_v18  ;;  %v14506_v2 = vld [vmem:[%s18741_s10 + $0xae0] ss:$16 sps:$4 sm:$0xff]   ;;  %v14541_v51 = vld [vmem:[%s18741_s10 + $0xb84] ss:$16 sps:$4 sm:$0xff]   ;;  %v14583_v29 = vld [vmem:[%s18741_s10 + $0xbcc] ss:$16 sps:$4 sm:$0xff]  }
 0xf30   : > { %v6985_v28 = vpop.f32.mrf.mxu1  ;;  %v7026_v33 = vpop.f32.mrf.mxu0 }
 0xf31   : > { %v17467_v7 = vadd.f32 %v6985_v28, %v17256_v58  ;;  %v17470_v60 = vadd.f32 %v7026_v33, %v17259_v45  ;;  %v14511_v58 = vld [vmem:[%s18741_s10 + $0xac4] ss:$16 sps:$4 sm:$0xff]   ;;  %v14556_v45 = vld [vmem:[%s18741_s10 + $0xaec] ss:$16 sps:$4 sm:$0xff]   ;;  %v14539_v28 = vld [vmem:[%s18741_s10 + $0xb80] ss:$16 sps:$4 sm:$0xff]  }
 0xf32   : > { %v6987_v30 = vpop.f32.mrf.mxu1  ;;  %v7028_v21 = vpop.f32.mrf.mxu0  ;;  %v14581_v33 = vld [vmem:[%s18741_s10 + $0xbc8] ss:$16 sps:$4 sm:$0xff]  }
 0xf33   : > { %v14544_v30 = vld [vmem:[%s18741_s10 + $0xb64] ss:$16 sps:$4 sm:$0xff]   ;;  %v14586_v21 = vld [vmem:[%s18741_s10 + $0xbac] ss:$16 sps:$4 sm:$0xff]  }
 0xf34   : > { %v6988_v52 = vpop.f32.mrf.mxu1  ;;  %v7029_v62 = vpop.f32.mrf.mxu0 }
 0xf35   : > { %v14542_v52 = vld [vmem:[%s18741_s10 + $0xb60] ss:$16 sps:$4 sm:$0xff]   ;;  %v14584_v62 = vld [vmem:[%s18741_s10 + $0xba8] ss:$16 sps:$4 sm:$0xff]  }
 0xf36   : > { %v7074_v39 = vpop.f32.mrf.mxu1 }
 0xf37   : > { %v7081_v18 = vpack.c.bf16 %v7074_v39, %v7074_v39  ;;  %v14547_v39 = vld [vmem:[%s18741_s10 + $0xb44] ss:$16 sps:$4 sm:$0xff]  }
 0xf38   : > { %v7076_v1 = vpop.f32.mrf.mxu1 }
 0xf39   : > { %v7082_v20 = vpack.c.bf16 %v7076_v1, %v7076_v1  ;;  %v14589_v1 = vld [vmem:[%s18741_s10 + $0xb8c] ss:$16 sps:$4 sm:$0xff]  }
 0xf3a   : > { %v7078_v57 = vpop.f32.mrf.mxu1 }
 0xf3b   : > { %7500 = vmatprep.mubr.bf16.mxu0 %v7082_v20  ;;  %7541 = vmatprep.mubr.bf16.mxu1 %v7082_v20  ;;  %v14545_v20 = vld [vmem:[%s18741_s10 + $0xb40] ss:$16 sps:$4 sm:$0xff]  }
 0xf3c   : > { %7501 = vmatmul.mubr.bf16.vlgmr.msra.gmra.mxu0 %v7081_v18  ;;  %7542 = vmatmul.mubr.bf16.vlgmr.msra.gmra.mxu1 %v7081_v18  ;;  %v7079_v15 = vpop.f32.mrf.mxu1  ;;  %v14550_v18 = vld [vmem:[%s18741_s10 + $0xb24] ss:$16 sps:$4 sm:$0xff]   ;;  %v14548_v57 = vld [vmem:[%s18741_s10 + $0xb20] ss:$16 sps:$4 sm:$0xff]  }
 0xf3d   : > { %7574 = vmatpush1.bf16.msra.mxu0 %v16512_v27  ;;  %7988 = vmatpush1.bf16.msra.mxu1 %v14506_v2  ;;  %v14587_v2 = vld [vmem:[%s18741_s10 + $0xb88] ss:$16 sps:$4 sm:$0xff]   ;;  %v14553_v15 = vld [vmem:[%s18741_s10 + $0xb04] ss:$16 sps:$4 sm:$0xff]  }
 0xf3e   : > { %7989 = vmatprep.subr.bf16.mxu1 %v14511_v58  ;;  %7591 = vmatprep.mubr.bf16.mxu0 %v14915_v16  ;;  %v14592_v58 = vld [vmem:[%s18741_s10 + $0xb6c] ss:$16 sps:$4 sm:$0xff]  }
 0xf3f   : > { %8028 = vmatprep.subr.bf16.mxu0 %v14556_v45  ;;  %v14590_v45 = vld [vmem:[%s18741_s10 + $0xb68] ss:$16 sps:$4 sm:$0xff]  }
 0xf41   : > { %7990 = vmatpush1.bf16.msra.mxu1 %v14509_v61  ;;  %v14551_v61 = vld [vmem:[%s18741_s10 + $0xb00] ss:$16 sps:$4 sm:$0xff]  }
 0xf42   : > { %7991 = vmatprep.subr.bf16.mxu1 %v14514_v50  ;;  %v14595_v50 = vld [vmem:[%s18741_s10 + $0xb4c] ss:$16 sps:$4 sm:$0xff]  }
 0xf44   : > { %12269 = vmatmul.mubr.msk.bf16.vlgmr.msra.gmra.mxu0 %vm4969_vm5, %v12268_v13  ;;  %v14596_v13 = vld [vmem:[%s18741_s10 + $0xb28] ss:$16 sps:$4 sm:$0xff]  }
 0xf45   : > { %7992 = vmatpush1.bf16.msra.mxu1 %v14512_v49  ;;  %8029 = vmatpush1.bf16.msra.mxu0 %v14554_v47  ;;  %v14593_v49 = vld [vmem:[%s18741_s10 + $0xb48] ss:$16 sps:$4 sm:$0xff]   ;;  %v14598_v47 = vld [vmem:[%s18741_s10 + $0xb2c] ss:$16 sps:$4 sm:$0xff]  }
 0xf46   : > { %7993 = vmatprep.subr.bf16.mxu1 %v14517_v0  ;;  %8030 = vmatprep.subr.bf16.mxu0 %v14559_v46  ;;  %v14601_v0 = vld [vmem:[%s18741_s10 + $0xb0c] ss:$16 sps:$4 sm:$0xff]   ;;  %v14599_v46 = vld [vmem:[%s18741_s10 + $0xb08] ss:$16 sps:$4 sm:$0xff]  }
 0xf49   : > { %7994 = vmatpush1.bf16.msra.mxu1 %v14515_v3  ;;  %8031 = vmatpush1.bf16.msra.mxu0 %v14557_v44  ;;  %v14604_v3 = vld [vmem:[%s18741_s10 + $0xce4] ss:$16 sps:$4 sm:$0xff]  }
 0xf4a   : > { %7995 = vmatprep.subr.bf16.mxu1 %v14520_v5  ;;  %8032 = vmatprep.subr.bf16.mxu0 %v14562_v8 }
 0xf4d   : > { %7996 = vmatpush1.bf16.msra.mxu1 %v14518_v48  ;;  %8033 = vmatpush1.bf16.msra.mxu0 %v14560_v14 }
 0xf4e   : > { %7997 = vmatprep.subr.bf16.mxu1 %v14523_v38  ;;  %8034 = vmatprep.subr.bf16.mxu0 %v14565_v23 }
 0xf51   : > { %7998 = vmatpush1.bf16.msra.mxu1 %v14521_v26  ;;  %8035 = vmatpush1.bf16.msra.mxu0 %v14563_v31 }
 0xf52   : > { %7999 = vmatprep.subr.bf16.mxu1 %v14526_v24  ;;  %8036 = vmatprep.subr.bf16.mxu0 %v14568_v11 }
 0xf55   : > { %8000 = vmatpush1.bf16.msra.mxu1 %v14524_v63  ;;  %8037 = vmatpush1.bf16.msra.mxu0 %v14566_v32 }
 0xf56   : > { %8001 = vmatprep.subr.bf16.mxu1 %v14529_v9  ;;  %8038 = vmatprep.subr.bf16.mxu0 %v14571_v25 }
 0xf59   : > { %8002 = vmatpush1.bf16.msra.mxu1 %v14527_v22  ;;  %8039 = vmatpush1.bf16.msra.mxu0 %v14569_v12 }
 0xf5a   : > { %8003 = vmatprep.subr.bf16.mxu1 %v14532_v42  ;;  %8040 = vmatprep.subr.bf16.mxu0 %v14574_v10  ;;  %v14605_v42 = vld [vmem:[%s18741_s10 + $0xcc0] ss:$16 sps:$4 sm:$0xff]   ;;  %v14610_v10 = vld [vmem:[%s18741_s10 + $0xca4] ss:$16 sps:$4 sm:$0xff]  }
 0xf5d   : > { %8004 = vmatpush2.bf16.msra.mxu1 %v14530_v17  ;;  %8041 = vmatpush1.bf16.msra.mxu0 %v14572_v36  ;;  %v14608_v17 = vld [vmem:[%s18741_s10 + $0xca0] ss:$16 sps:$4 sm:$0xff]   ;;  %v12398_v36 = vld [vmem:[%s18740_s9 + $0xc] sm:$0x3] }
 0xf5e   : > { %8005 = vmatprep.subr.bf16.mxu1 %v14535_v54  ;;  %8042 = vmatprep.subr.bf16.mxu0 %v14577_v34  ;;  %v14650_v54 = vld [vmem:[%s18741_s10 + $0xce8] ss:$16 sps:$4 sm:$0xff]   ;;  %v14613_v34 = vld [vmem:[%s18741_s10 + $0xc84] ss:$16 sps:$4 sm:$0xff]  }
 0xf61   : > { %8006 = vmatpush2.bf16.msra.mxu1 %v14533_v55  ;;  %8043 = vmatpush1.bf16.msra.mxu0 %v14575_v41  ;;  %v14655_v55 = vld [vmem:[%s18741_s10 + $0xccc] ss:$16 sps:$4 sm:$0xff]   ;;  %v14611_v41 = vld [vmem:[%s18741_s10 + $0xc80] ss:$16 sps:$4 sm:$0xff]  }
 0xf62   : > { %8007 = vmatprep.subr.bf16.mxu1 %v14538_v35  ;;  %8044 = vmatprep.subr.bf16.mxu0 %v14580_v56  ;;  %v14653_v35 = vld [vmem:[%s18741_s10 + $0xcc8] ss:$16 sps:$4 sm:$0xff]   ;;  %v14616_v56 = vld [vmem:[%s18741_s10 + $0xc64] ss:$16 sps:$4 sm:$0xff]  }
 0xf65   : > { %8008 = vmatpush2.bf16.msra.mxu1 %v14536_v43  ;;  %8045 = vmatpush2.bf16.msra.mxu0 %v14578_v6  ;;  %v14658_v43 = vld [vmem:[%s18741_s10 + $0xcac] ss:$16 sps:$4 sm:$0xff]   ;;  %v14614_v6 = vld [vmem:[%s18741_s10 + $0xc60] ss:$16 sps:$4 sm:$0xff]  }
 0xf66   : > { %8009 = vmatprep.subr.bf16.mxu1 %v14541_v51  ;;  %8046 = vmatprep.subr.bf16.mxu0 %v14583_v29  ;;  %v14656_v51 = vld [vmem:[%s18741_s10 + $0xca8] ss:$16 sps:$4 sm:$0xff]   ;;  %v14619_v29 = vld [vmem:[%s18741_s10 + $0xc44] ss:$16 sps:$4 sm:$0xff]  }
 0xf69   : > { %8010 = vmatpush2.bf16.msra.mxu1 %v14539_v28  ;;  %8047 = vmatpush2.bf16.msra.mxu0 %v14581_v33  ;;  %v14661_v28 = vld [vmem:[%s18741_s10 + $0xc8c] ss:$16 sps:$4 sm:$0xff]   ;;  %v14617_v33 = vld [vmem:[%s18741_s10 + $0xc40] ss:$16 sps:$4 sm:$0xff]  }
 0xf6a   : > { %8011 = vmatprep.subr.bf16.mxu1 %v14544_v30  ;;  %8048 = vmatprep.subr.bf16.mxu0 %v14586_v21  ;;  %v14659_v30 = vld [vmem:[%s18741_s10 + $0xc88] ss:$16 sps:$4 sm:$0xff]   ;;  %v14622_v21 = vld [vmem:[%s18741_s10 + $0xc24] ss:$16 sps:$4 sm:$0xff]  }
 0xf6d   : > { %8012 = vmatpush2.bf16.msra.mxu1 %v14542_v52  ;;  %8049 = vmatpush2.bf16.msra.mxu0 %v14584_v62  ;;  %v14664_v52 = vld [vmem:[%s18741_s10 + $0xc6c] ss:$16 sps:$4 sm:$0xff]   ;;  %v14620_v62 = vld [vmem:[%s18741_s10 + $0xc20] ss:$16 sps:$4 sm:$0xff]  }
 0xf6e   : > { %8013 = vmatprep.subr.bf16.mxu1 %v14547_v39  ;;  %8050 = vmatprep.subr.bf16.mxu0 %v14589_v1  ;;  %v14662_v39 = vld [vmem:[%s18741_s10 + $0xc68] ss:$16 sps:$4 sm:$0xff]   ;;  %v14625_v1 = vld [vmem:[%s18741_s10 + $0xc04] ss:$16 sps:$4 sm:$0xff]  }
 0xf71   : > { %8014 = vmatpush2.bf16.msra.mxu1 %v14545_v20  ;;  %8051 = vmatpush2.bf16.msra.mxu0 %v14587_v2  ;;  %v14667_v20 = vld [vmem:[%s18741_s10 + $0xc4c] ss:$16 sps:$4 sm:$0xff]   ;;  %v14623_v2 = vld [vmem:[%s18741_s10 + $0xc00] ss:$16 sps:$4 sm:$0xff]  }
 0xf72   : > { %8015 = vmatprep.subr.bf16.mxu1 %v14550_v18  ;;  %8052 = vmatprep.subr.bf16.mxu0 %v14592_v58  ;;  %v14665_v18 = vld [vmem:[%s18741_s10 + $0xc48] ss:$16 sps:$4 sm:$0xff]   ;;  %v14628_v58 = vld [vmem:[%s18741_s10 + $0xde4] ss:$16 sps:$4 sm:$0xff]  }
 0xf75   : > { %8016 = vmatpush2.bf16.msra.mxu1 %v14548_v57  ;;  %8053 = vmatpush2.bf16.msra.mxu0 %v14590_v45  ;;  %v14670_v57 = vld [vmem:[%s18741_s10 + $0xc2c] ss:$16 sps:$4 sm:$0xff]   ;;  %v14626_v45 = vld [vmem:[%s18741_s10 + $0xde0] ss:$16 sps:$4 sm:$0xff]  }
 0xf76   : > { %8017 = vmatprep.subr.bf16.mxu1 %v14553_v15  ;;  %8054 = vmatprep.subr.bf16.mxu0 %v14595_v50  ;;  %v14668_v15 = vld [vmem:[%s18741_s10 + $0xc28] ss:$16 sps:$4 sm:$0xff]   ;;  %v14673_v50 = vld [vmem:[%s18741_s10 + $0xc0c] ss:$16 sps:$4 sm:$0xff]  }
 0xf79   : > { %8018 = vmatpush2.bf16.msra.mxu1 %v14551_v61  ;;  %8055 = vmatpush2.bf16.msra.mxu0 %v14593_v49  ;;  %v14631_v61 = vld [vmem:[%s18741_s10 + $0xdc4] ss:$16 sps:$4 sm:$0xff]   ;;  %v14629_v49 = vld [vmem:[%s18741_s10 + $0xdc0] ss:$16 sps:$4 sm:$0xff]  }
 0xf7a   : > { %8092 = vmatprep.subr.bf16.mxu1 %v16514_v40  ;;  %8056 = vmatprep.subr.bf16.mxu0 %v14598_v47  ;;  %v14634_v47 = vld [vmem:[%s18741_s10 + $0xda4] ss:$16 sps:$4 sm:$0xff]  }
 0xf7d   : > { %8057 = vmatpush2.bf16.msra.mxu0 %v14596_v13  ;;  %v14671_v13 = vld [vmem:[%s18741_s10 + $0xc08] ss:$16 sps:$4 sm:$0xff]  }
 0xf7e   : > { %8058 = vmatprep.subr.bf16.mxu0 %v14601_v0  ;;  %v14676_v0 = vld [vmem:[%s18741_s10 + $0xdec] ss:$16 sps:$4 sm:$0xff]  }
 0xf81   : > { %8059 = vmatpush2.bf16.msra.mxu0 %v14599_v46  ;;  %v14632_v46 = vld [vmem:[%s18741_s10 + $0xda0] ss:$16 sps:$4 sm:$0xff]  }
 0xf82   : > { %8506 = vmatprep.subr.bf16.mxu0 %v14604_v3  ;;  %v14674_v3 = vld [vmem:[%s18741_s10 + $0xde8] ss:$16 sps:$4 sm:$0xff]  }
 0xffc   : > { %v7502_v44 = vpop.f32.mrf.mxu0  ;;  %v7543_v5 = vpop.f32.mrf.mxu1 }
 0xffd   : > { %v17672_v8 = vadd.f32 %v7502_v44, %v17461_v53  ;;  %v17675_v48 = vadd.f32 %v7543_v5, %v17464_v59  ;;  %v14602_v53 = vld [vmem:[%s18741_s10 + $0xce0] ss:$16 sps:$4 sm:$0xff]   ;;  %v14637_v44 = vld [vmem:[%s18741_s10 + $0xd84] ss:$16 sps:$4 sm:$0xff]   ;;  %v14679_v5 = vld [vmem:[%s18741_s10 + $0xdcc] ss:$16 sps:$4 sm:$0xff]  }
 0xffe   : > { %v7504_v14 = vpop.f32.mrf.mxu0  ;;  %v7545_v38 = vpop.f32.mrf.mxu1 }
 0xfff   : > { %v17678_v23 = vadd.f32 %v7504_v14, %v17467_v7  ;;  %v17681_v26 = vadd.f32 %v7545_v38, %v17470_v60  ;;  %v14607_v7 = vld [vmem:[%s18741_s10 + $0xcc4] ss:$16 sps:$4 sm:$0xff]   ;;  %v14652_v60 = vld [vmem:[%s18741_s10 + $0xcec] ss:$16 sps:$4 sm:$0xff]   ;;  %v14635_v14 = vld [vmem:[%s18741_s10 + $0xd80] ss:$16 sps:$4 sm:$0xff]  }
0x1000   : > { %v7506_v31 = vpop.f32.mrf.mxu0  ;;  %v7547_v24 = vpop.f32.mrf.mxu1  ;;  %v14677_v38 = vld [vmem:[%s18741_s10 + $0xdc8] ss:$16 sps:$4 sm:$0xff]  }
0x1001   : > { %v14640_v31 = vld [vmem:[%s18741_s10 + $0xd64] ss:$16 sps:$4 sm:$0xff]   ;;  %v14682_v24 = vld [vmem:[%s18741_s10 + $0xdac] ss:$16 sps:$4 sm:$0xff]  }
0x1002   : > { %v7507_v11 = vpop.f32.mrf.mxu0  ;;  %v7548_v63 = vpop.f32.mrf.mxu1 }
0x1003   : > { %v14638_v11 = vld [vmem:[%s18741_s10 + $0xd60] ss:$16 sps:$4 sm:$0xff]   ;;  %v14680_v63 = vld [vmem:[%s18741_s10 + $0xda8] ss:$16 sps:$4 sm:$0xff]  }
0x1004   : > { %v7593_v32 = vpop.f32.mrf.mxu0 }
0x1005   : > { %v7600_v59 = vpack.c.bf16 %v7593_v32, %v7593_v32  ;;  %v14643_v32 = vld [vmem:[%s18741_s10 + $0xd44] ss:$16 sps:$4 sm:$0xff]  }
0x1006   : > { %v7595_v9 = vpop.f32.mrf.mxu0 }
0x1007   : > { %v7601_v25 = vpack.c.bf16 %v7595_v9, %v7595_v9  ;;  %v14685_v9 = vld [vmem:[%s18741_s10 + $0xd8c] ss:$16 sps:$4 sm:$0xff]  }
0x1008   : > { %v7597_v22 = vpop.f32.mrf.mxu0 }
0x1009   : > { %8019 = vmatprep.mubr.bf16.mxu1 %v7601_v25  ;;  %8060 = vmatprep.mubr.bf16.mxu0 %v7601_v25  ;;  %v14641_v25 = vld [vmem:[%s18741_s10 + $0xd40] ss:$16 sps:$4 sm:$0xff]  }
0x100a   : > { %8020 = vmatmul.mubr.bf16.vlgmr.msra.gmra.mxu1 %v7600_v59  ;;  %8061 = vmatmul.mubr.bf16.vlgmr.msra.gmra.mxu0 %v7600_v59  ;;  %v7598_v12 = vpop.f32.mrf.mxu0  ;;  %v14646_v59 = vld [vmem:[%s18741_s10 + $0xd24] ss:$16 sps:$4 sm:$0xff]   ;;  %v14644_v22 = vld [vmem:[%s18741_s10 + $0xd20] ss:$16 sps:$4 sm:$0xff]  }
0x100b   : > { %8093 = vmatpush1.bf16.msra.mxu1 %v16512_v27  ;;  %8507 = vmatpush1.bf16.msra.mxu0 %v14602_v53  ;;  %v14683_v53 = vld [vmem:[%s18741_s10 + $0xd88] ss:$16 sps:$4 sm:$0xff]   ;;  %v14649_v12 = vld [vmem:[%s18741_s10 + $0xd04] ss:$16 sps:$4 sm:$0xff]  }
0x100c   : > { %8508 = vmatprep.subr.bf16.mxu0 %v14607_v7  ;;  %8110 = vmatprep.mubr.bf16.mxu1 %v14915_v16  ;;  %v14688_v7 = vld [vmem:[%s18741_s10 + $0xd6c] ss:$16 sps:$4 sm:$0xff]  }
0x100d   : > { %8547 = vmatprep.subr.bf16.mxu1 %v14652_v60  ;;  %v14686_v60 = vld [vmem:[%s18741_s10 + $0xd68] ss:$16 sps:$4 sm:$0xff]  }
0x100f   : > { %8509 = vmatpush1.bf16.msra.mxu0 %v14605_v42  ;;  %v14647_v42 = vld [vmem:[%s18741_s10 + $0xd00] ss:$16 sps:$4 sm:$0xff]  }
0x1010   : > { %8510 = vmatprep.subr.bf16.mxu0 %v14610_v10  ;;  %v14691_v10 = vld [vmem:[%s18741_s10 + $0xd4c] ss:$16 sps:$4 sm:$0xff]  }
0x1012   : > { %12399 = vmatmul.mubr.msk.bf16.vlgmr.msra.gmra.mxu1 %vm4969_vm5, %v12398_v36  ;;  %v14692_v36 = vld [vmem:[%s18741_s10 + $0xd28] ss:$16 sps:$4 sm:$0xff]  }
0x1013   : > { %8511 = vmatpush1.bf16.msra.mxu0 %v14608_v17  ;;  %8548 = vmatpush1.bf16.msra.mxu1 %v14650_v54  ;;  %v14689_v17 = vld [vmem:[%s18741_s10 + $0xd48] ss:$16 sps:$4 sm:$0xff]   ;;  %v14694_v54 = vld [vmem:[%s18741_s10 + $0xd2c] ss:$16 sps:$4 sm:$0xff]  }
0x1014   : > { %8512 = vmatprep.subr.bf16.mxu0 %v14613_v34  ;;  %8549 = vmatprep.subr.bf16.mxu1 %v14655_v55  ;;  %v14697_v34 = vld [vmem:[%s18741_s10 + $0xd0c] ss:$16 sps:$4 sm:$0xff]   ;;  %v14695_v55 = vld [vmem:[%s18741_s10 + $0xd08] ss:$16 sps:$4 sm:$0xff]  }
0x1017   : > { %8513 = vmatpush1.bf16.msra.mxu0 %v14611_v41  ;;  %8550 = vmatpush1.bf16.msra.mxu1 %v14653_v35  ;;  %v14700_v41 = vld [vmem:[%s18741_s10 + $0xee4] ss:$16 sps:$4 sm:$0xff]  }
0x1018   : > { %8514 = vmatprep.subr.bf16.mxu0 %v14616_v56  ;;  %8551 = vmatprep.subr.bf16.mxu1 %v14658_v43 }
0x101b   : > { %8515 = vmatpush1.bf16.msra.mxu0 %v14614_v6  ;;  %8552 = vmatpush1.bf16.msra.mxu1 %v14656_v51 }
0x101c   : > { %8516 = vmatprep.subr.bf16.mxu0 %v14619_v29  ;;  %8553 = vmatprep.subr.bf16.mxu1 %v14661_v28 }
0x101f   : > { %8517 = vmatpush1.bf16.msra.mxu0 %v14617_v33  ;;  %8554 = vmatpush1.bf16.msra.mxu1 %v14659_v30 }
0x1020   : > { %8518 = vmatprep.subr.bf16.mxu0 %v14622_v21  ;;  %8555 = vmatprep.subr.bf16.mxu1 %v14664_v52 }
0x1023   : > { %8519 = vmatpush1.bf16.msra.mxu0 %v14620_v62  ;;  %8556 = vmatpush1.bf16.msra.mxu1 %v14662_v39 }
0x1024   : > { %8520 = vmatprep.subr.bf16.mxu0 %v14625_v1  ;;  %8557 = vmatprep.subr.bf16.mxu1 %v14667_v20 }
0x1027   : > { %8521 = vmatpush1.bf16.msra.mxu0 %v14623_v2  ;;  %8558 = vmatpush1.bf16.msra.mxu1 %v14665_v18 }
0x1028   : > { %8522 = vmatprep.subr.bf16.mxu0 %v14628_v58  ;;  %8559 = vmatprep.subr.bf16.mxu1 %v14670_v57  ;;  %v14701_v58 = vld [vmem:[%s18741_s10 + $0xec0] ss:$16 sps:$4 sm:$0xff]   ;;  %v14706_v57 = vld [vmem:[%s18741_s10 + $0xea4] ss:$16 sps:$4 sm:$0xff]  }
0x102b   : > { %8523 = vmatpush2.bf16.msra.mxu0 %v14626_v45  ;;  %8560 = vmatpush1.bf16.msra.mxu1 %v14668_v15  ;;  %v14704_v45 = vld [vmem:[%s18741_s10 + $0xea0] ss:$16 sps:$4 sm:$0xff]   ;;  %v12528_v15 = vld [vmem:[%s18740_s9 + $0xe] sm:$0x3] }
0x102c   : > { %8524 = vmatprep.subr.bf16.mxu0 %v14631_v61  ;;  %8561 = vmatprep.subr.bf16.mxu1 %v14673_v50  ;;  %v14746_v61 = vld [vmem:[%s18741_s10 + $0xee8] ss:$16 sps:$4 sm:$0xff]   ;;  %v14709_v50 = vld [vmem:[%s18741_s10 + $0xe84] ss:$16 sps:$4 sm:$0xff]  }
0x102f   : > { %8525 = vmatpush2.bf16.msra.mxu0 %v14629_v49  ;;  %8562 = vmatpush1.bf16.msra.mxu1 %v14671_v13  ;;  %v14751_v49 = vld [vmem:[%s18741_s10 + $0xecc] ss:$16 sps:$4 sm:$0xff]   ;;  %v14707_v13 = vld [vmem:[%s18741_s10 + $0xe80] ss:$16 sps:$4 sm:$0xff]  }
0x1030   : > { %8526 = vmatprep.subr.bf16.mxu0 %v14634_v47  ;;  %8563 = vmatprep.subr.bf16.mxu1 %v14676_v0  ;;  %v14749_v47 = vld [vmem:[%s18741_s10 + $0xec8] ss:$16 sps:$4 sm:$0xff]   ;;  %v14712_v0 = vld [vmem:[%s18741_s10 + $0xe64] ss:$16 sps:$4 sm:$0xff]  }
0x1033   : > { %8527 = vmatpush2.bf16.msra.mxu0 %v14632_v46  ;;  %8564 = vmatpush2.bf16.msra.mxu1 %v14674_v3  ;;  %v14754_v46 = vld [vmem:[%s18741_s10 + $0xeac] ss:$16 sps:$4 sm:$0xff]   ;;  %v14710_v3 = vld [vmem:[%s18741_s10 + $0xe60] ss:$16 sps:$4 sm:$0xff]  }
0x1034   : > { %8528 = vmatprep.subr.bf16.mxu0 %v14637_v44  ;;  %8565 = vmatprep.subr.bf16.mxu1 %v14679_v5  ;;  %v14752_v44 = vld [vmem:[%s18741_s10 + $0xea8] ss:$16 sps:$4 sm:$0xff]   ;;  %v14715_v5 = vld [vmem:[%s18741_s10 + $0xe44] ss:$16 sps:$4 sm:$0xff]  }
0x1037   : > { %8529 = vmatpush2.bf16.msra.mxu0 %v14635_v14  ;;  %8566 = vmatpush2.bf16.msra.mxu1 %v14677_v38  ;;  %v14757_v14 = vld [vmem:[%s18741_s10 + $0xe8c] ss:$16 sps:$4 sm:$0xff]   ;;  %v14713_v38 = vld [vmem:[%s18741_s10 + $0xe40] ss:$16 sps:$4 sm:$0xff]  }
0x1038   : > { %8530 = vmatprep.subr.bf16.mxu0 %v14640_v31  ;;  %8567 = vmatprep.subr.bf16.mxu1 %v14682_v24  ;;  %v14755_v31 = vld [vmem:[%s18741_s10 + $0xe88] ss:$16 sps:$4 sm:$0xff]   ;;  %v14718_v24 = vld [vmem:[%s18741_s10 + $0xe24] ss:$16 sps:$4 sm:$0xff]  }
0x103b   : > { %8531 = vmatpush2.bf16.msra.mxu0 %v14638_v11  ;;  %8568 = vmatpush2.bf16.msra.mxu1 %v14680_v63  ;;  %v14760_v11 = vld [vmem:[%s18741_s10 + $0xe6c] ss:$16 sps:$4 sm:$0xff]   ;;  %v14716_v63 = vld [vmem:[%s18741_s10 + $0xe20] ss:$16 sps:$4 sm:$0xff]  }
0x103c   : > { %8532 = vmatprep.subr.bf16.mxu0 %v14643_v32  ;;  %8569 = vmatprep.subr.bf16.mxu1 %v14685_v9  ;;  %v14758_v32 = vld [vmem:[%s18741_s10 + $0xe68] ss:$16 sps:$4 sm:$0xff]   ;;  %v14721_v9 = vld [vmem:[%s18741_s10 + $0xe04] ss:$16 sps:$4 sm:$0xff]  }
0x103f   : > { %8533 = vmatpush2.bf16.msra.mxu0 %v14641_v25  ;;  %8570 = vmatpush2.bf16.msra.mxu1 %v14683_v53  ;;  %v14763_v25 = vld [vmem:[%s18741_s10 + $0xe4c] ss:$16 sps:$4 sm:$0xff]   ;;  %v14719_v53 = vld [vmem:[%s18741_s10 + $0xe00] ss:$16 sps:$4 sm:$0xff]  }
0x1040   : > { %8534 = vmatprep.subr.bf16.mxu0 %v14646_v59  ;;  %8571 = vmatprep.subr.bf16.mxu1 %v14688_v7  ;;  %v14761_v59 = vld [vmem:[%s18741_s10 + $0xe48] ss:$16 sps:$4 sm:$0xff]   ;;  %v14724_v7 = vld [vmem:[%s18741_s10 + $0xfe4] ss:$16 sps:$4 sm:$0xff]  }
0x1043   : > { %8535 = vmatpush2.bf16.msra.mxu0 %v14644_v22  ;;  %8572 = vmatpush2.bf16.msra.mxu1 %v14686_v60  ;;  %v14766_v22 = vld [vmem:[%s18741_s10 + $0xe2c] ss:$16 sps:$4 sm:$0xff]   ;;  %v14722_v60 = vld [vmem:[%s18741_s10 + $0xfe0] ss:$16 sps:$4 sm:$0xff]  }
0x1044   : > { %8536 = vmatprep.subr.bf16.mxu0 %v14649_v12  ;;  %8573 = vmatprep.subr.bf16.mxu1 %v14691_v10  ;;  %v14764_v12 = vld [vmem:[%s18741_s10 + $0xe28] ss:$16 sps:$4 sm:$0xff]   ;;  %v14769_v10 = vld [vmem:[%s18741_s10 + $0xe0c] ss:$16 sps:$4 sm:$0xff]  }
0x1047   : > { %8537 = vmatpush2.bf16.msra.mxu0 %v14647_v42  ;;  %8574 = vmatpush2.bf16.msra.mxu1 %v14689_v17  ;;  %v14727_v42 = vld [vmem:[%s18741_s10 + $0xfc4] ss:$16 sps:$4 sm:$0xff]   ;;  %v14725_v17 = vld [vmem:[%s18741_s10 + $0xfc0] ss:$16 sps:$4 sm:$0xff]  }
0x1048   : > { %8611 = vmatprep.subr.bf16.mxu0 %v16514_v40  ;;  %8575 = vmatprep.subr.bf16.mxu1 %v14694_v54  ;;  %v14730_v54 = vld [vmem:[%s18741_s10 + $0xfa4] ss:$16 sps:$4 sm:$0xff]  }
0x104b   : > { %8576 = vmatpush2.bf16.msra.mxu1 %v14692_v36  ;;  %v14767_v36 = vld [vmem:[%s18741_s10 + $0xe08] ss:$16 sps:$4 sm:$0xff]  }
0x104c   : > { %8577 = vmatprep.subr.bf16.mxu1 %v14697_v34  ;;  %v14772_v34 = vld [vmem:[%s18741_s10 + $0xfec] ss:$16 sps:$4 sm:$0xff]  }
0x104f   : > { %8578 = vmatpush2.bf16.msra.mxu1 %v14695_v55  ;;  %v14728_v55 = vld [vmem:[%s18741_s10 + $0xfa0] ss:$16 sps:$4 sm:$0xff]  }
0x1050   : > { %9025 = vmatprep.subr.bf16.mxu1 %v14700_v41  ;;  %v14770_v41 = vld [vmem:[%s18741_s10 + $0xfe8] ss:$16 sps:$4 sm:$0xff]  }
0x10ca   : > { %v8021_v35 = vpop.f32.mrf.mxu1  ;;  %v8062_v56 = vpop.f32.mrf.mxu0 }
0x10cb   : > { %v17883_v43 = vadd.f32 %v8021_v35, %v17672_v8  ;;  %v17886_v6 = vadd.f32 %v8062_v56, %v17675_v48  ;;  %v14698_v8 = vld [vmem:[%s18741_s10 + $0xee0] ss:$16 sps:$4 sm:$0xff]   ;;  %v14733_v35 = vld [vmem:[%s18741_s10 + $0xf84] ss:$16 sps:$4 sm:$0xff]   ;;  %v14775_v56 = vld [vmem:[%s18741_s10 + $0xfcc] ss:$16 sps:$4 sm:$0xff]  }
0x10cc   : > { %v8023_v51 = vpop.f32.mrf.mxu1  ;;  %v8064_v29 = vpop.f32.mrf.mxu0 }
0x10cd   : > { %v17889_v28 = vadd.f32 %v8023_v51, %v17678_v23  ;;  %v17892_v33 = vadd.f32 %v8064_v29, %v17681_v26  ;;  %v14703_v23 = vld [vmem:[%s18741_s10 + $0xec4] ss:$16 sps:$4 sm:$0xff]   ;;  %v14748_v26 = vld [vmem:[%s18741_s10 + $0xeec] ss:$16 sps:$4 sm:$0xff]   ;;  %v14731_v51 = vld [vmem:[%s18741_s10 + $0xf80] ss:$16 sps:$4 sm:$0xff]  }
0x10ce   : > { %v8025_v30 = vpop.f32.mrf.mxu1  ;;  %v8066_v21 = vpop.f32.mrf.mxu0  ;;  %v14773_v29 = vld [vmem:[%s18741_s10 + $0xfc8] ss:$16 sps:$4 sm:$0xff]  }
0x10cf   : > { %v14736_v30 = vld [vmem:[%s18741_s10 + $0xf64] ss:$16 sps:$4 sm:$0xff]   ;;  %v14778_v21 = vld [vmem:[%s18741_s10 + $0xfac] ss:$16 sps:$4 sm:$0xff]  }
0x10d0   : > { %v8026_v52 = vpop.f32.mrf.mxu1  ;;  %v8067_v62 = vpop.f32.mrf.mxu0 }
0x10d1   : > { %v14734_v52 = vld [vmem:[%s18741_s10 + $0xf60] ss:$16 sps:$4 sm:$0xff]   ;;  %v14776_v62 = vld [vmem:[%s18741_s10 + $0xfa8] ss:$16 sps:$4 sm:$0xff]  }
0x10d2   : > { %v8112_v39 = vpop.f32.mrf.mxu1 }
0x10d3   : > { %v8119_v48 = vpack.c.bf16 %v8112_v39, %v8112_v39  ;;  %v14739_v39 = vld [vmem:[%s18741_s10 + $0xf44] ss:$16 sps:$4 sm:$0xff]  }
0x10d4   : > { %v8114_v1 = vpop.f32.mrf.mxu1 }
0x10d5   : > { %v8120_v20 = vpack.c.bf16 %v8114_v1, %v8114_v1  ;;  %v14781_v1 = vld [vmem:[%s18741_s10 + $0xf8c] ss:$16 sps:$4 sm:$0xff]  }
0x10d6   : > { %v8116_v2 = vpop.f32.mrf.mxu1 }
0x10d7   : > { %8538 = vmatprep.mubr.bf16.mxu0 %v8120_v20  ;;  %8579 = vmatprep.mubr.bf16.mxu1 %v8120_v20  ;;  %v14737_v20 = vld [vmem:[%s18741_s10 + $0xf40] ss:$16 sps:$4 sm:$0xff]  }
0x10d8   : > { %8539 = vmatmul.mubr.bf16.vlgmr.msra.gmra.mxu0 %v8119_v48  ;;  %8580 = vmatmul.mubr.bf16.vlgmr.msra.gmra.mxu1 %v8119_v48  ;;  %v8117_v18 = vpop.f32.mrf.mxu1  ;;  %v14742_v48 = vld [vmem:[%s18741_s10 + $0xf24] ss:$16 sps:$4 sm:$0xff]   ;;  %v14740_v2 = vld [vmem:[%s18741_s10 + $0xf20] ss:$16 sps:$4 sm:$0xff]  }
0x10d9   : > { %8612 = vmatpush1.bf16.msra.mxu0 %v16512_v27  ;;  %9026 = vmatpush1.bf16.msra.mxu1 %v14698_v8  ;;  %v14779_v8 = vld [vmem:[%s18741_s10 + $0xf88] ss:$16 sps:$4 sm:$0xff]   ;;  %v14745_v18 = vld [vmem:[%s18741_s10 + $0xf04] ss:$16 sps:$4 sm:$0xff]  }
0x10da   : > { %9027 = vmatprep.subr.bf16.mxu1 %v14703_v23  ;;  %8629 = vmatprep.mubr.bf16.mxu0 %v14915_v16  ;;  %v14784_v23 = vld [vmem:[%s18741_s10 + $0xf6c] ss:$16 sps:$4 sm:$0xff]  }
0x10db   : > { %9066 = vmatprep.subr.bf16.mxu0 %v14748_v26  ;;  %v14782_v26 = vld [vmem:[%s18741_s10 + $0xf68] ss:$16 sps:$4 sm:$0xff]  }
0x10dd   : > { %9028 = vmatpush1.bf16.msra.mxu1 %v14701_v58  ;;  %v14743_v58 = vld [vmem:[%s18741_s10 + $0xf00] ss:$16 sps:$4 sm:$0xff]  }
0x10de   : > { %9029 = vmatprep.subr.bf16.mxu1 %v14706_v57  ;;  %v14787_v57 = vld [vmem:[%s18741_s10 + $0xf4c] ss:$16 sps:$4 sm:$0xff]  }
0x10e0   : > { %12529 = vmatmul.mubr.msk.bf16.vlgmr.msra.gmra.mxu0 %vm4969_vm5, %v12528_v15  ;;  %v14790_v15 = vld [vmem:[%s18741_s10 + $0xf2c] ss:$16 sps:$4 sm:$0xff]  }
0x10e1   : > { %9030 = vmatpush1.bf16.msra.mxu1 %v14704_v45  ;;  %9067 = vmatpush1.bf16.msra.mxu0 %v14746_v61  ;;  %v14785_v45 = vld [vmem:[%s18741_s10 + $0xf48] ss:$16 sps:$4 sm:$0xff]  }
0x10e2   : > { %9031 = vmatprep.subr.bf16.mxu1 %v14709_v50  ;;  %9068 = vmatprep.subr.bf16.mxu0 %v14751_v49  ;;  %v14788_v61 = vld [vmem:[%s18741_s10 + $0xf28] ss:$16 sps:$4 sm:$0xff]   ;;  %v14796_v49 = vld [vmem:[%s18741_s10 + $0x10e4] ss:$16 sps:$4 sm:$0xff]  }
0x10e3   : > { %v14791_v50 = vld [vmem:[%s18741_s10 + $0xf08] ss:$16 sps:$4 sm:$0xff]  }
0x10e5   : > { %9032 = vmatpush1.bf16.msra.mxu1 %v14707_v13  ;;  %9069 = vmatpush1.bf16.msra.mxu0 %v14749_v47 }
0x10e6   : > { %9033 = vmatprep.subr.bf16.mxu1 %v14712_v0  ;;  %9070 = vmatprep.subr.bf16.mxu0 %v14754_v46 }
0x10e9   : > { %9034 = vmatpush1.bf16.msra.mxu1 %v14710_v3  ;;  %9071 = vmatpush1.bf16.msra.mxu0 %v14752_v44 }
0x10ea   : > { %9035 = vmatprep.subr.bf16.mxu1 %v14715_v5  ;;  %9072 = vmatprep.subr.bf16.mxu0 %v14757_v14 }
0x10ed   : > { %9036 = vmatpush1.bf16.msra.mxu1 %v14713_v38  ;;  %9073 = vmatpush1.bf16.msra.mxu0 %v14755_v31 }
0x10ee   : > { %9037 = vmatprep.subr.bf16.mxu1 %v14718_v24  ;;  %9074 = vmatprep.subr.bf16.mxu0 %v14760_v11 }
0x10f1   : > { %9038 = vmatpush1.bf16.msra.mxu1 %v14716_v63  ;;  %9075 = vmatpush1.bf16.msra.mxu0 %v14758_v32 }
0x10f2   : > { %9039 = vmatprep.subr.bf16.mxu1 %v14721_v9  ;;  %9076 = vmatprep.subr.bf16.mxu0 %v14763_v25 }
0x10f5   : > { %9040 = vmatpush1.bf16.msra.mxu1 %v14719_v53  ;;  %9077 = vmatpush1.bf16.msra.mxu0 %v14761_v59  ;;  %v14800_v59 = vld [vmem:[%s18741_s10 + $0x10c0] ss:$16 sps:$4 sm:$0xff]  }
0x10f6   : > { %9041 = vmatprep.subr.bf16.mxu1 %v14724_v7  ;;  %9078 = vmatprep.subr.bf16.mxu0 %v14766_v22  ;;  %v14808_v7 = vld [vmem:[%s18741_s10 + $0x10a4] ss:$16 sps:$4 sm:$0xff]   ;;  %v12658_v22 = vld [vmem:[%s18740_s9 + $0x10] sm:$0x3] }
0x10f9   : > { %9042 = vmatpush2.bf16.msra.mxu1 %v14722_v60  ;;  %9079 = vmatpush1.bf16.msra.mxu0 %v14764_v12  ;;  %v14805_v60 = vld [vmem:[%s18741_s10 + $0x10cc] ss:$16 sps:$4 sm:$0xff]   ;;  %v14806_v12 = vld [vmem:[%s18741_s10 + $0x10a0] ss:$16 sps:$4 sm:$0xff]  }
0x10fa   : > { %9043 = vmatprep.subr.bf16.mxu1 %v14727_v42  ;;  %9080 = vmatprep.subr.bf16.mxu0 %v14769_v10  ;;  %v14814_v42 = vld [vmem:[%s18741_s10 + $0x1084] ss:$16 sps:$4 sm:$0xff]   ;;  %v14803_v10 = vld [vmem:[%s18741_s10 + $0x10c8] ss:$16 sps:$4 sm:$0xff]  }
0x10fd   : > { %9044 = vmatpush2.bf16.msra.mxu1 %v14725_v17  ;;  %9081 = vmatpush1.bf16.msra.mxu0 %v14767_v36  ;;  %v14811_v17 = vld [vmem:[%s18741_s10 + $0x10ac] ss:$16 sps:$4 sm:$0xff]   ;;  %v14812_v36 = vld [vmem:[%s18741_s10 + $0x1080] ss:$16 sps:$4 sm:$0xff]  }
0x10fe   : > { %9045 = vmatprep.subr.bf16.mxu1 %v14730_v54  ;;  %9082 = vmatprep.subr.bf16.mxu0 %v14772_v34  ;;  %v14820_v54 = vld [vmem:[%s18741_s10 + $0x1064] ss:$16 sps:$4 sm:$0xff]   ;;  %v14809_v34 = vld [vmem:[%s18741_s10 + $0x10a8] ss:$16 sps:$4 sm:$0xff]  }
0x1101   : > { %9046 = vmatpush2.bf16.msra.mxu1 %v14728_v55  ;;  %9083 = vmatpush2.bf16.msra.mxu0 %v14770_v41  ;;  %v14817_v55 = vld [vmem:[%s18741_s10 + $0x108c] ss:$16 sps:$4 sm:$0xff]   ;;  %v14818_v41 = vld [vmem:[%s18741_s10 + $0x1060] ss:$16 sps:$4 sm:$0xff]  }
0x1102   : > { %9047 = vmatprep.subr.bf16.mxu1 %v14733_v35  ;;  %9084 = vmatprep.subr.bf16.mxu0 %v14775_v56  ;;  %v14826_v35 = vld [vmem:[%s18741_s10 + $0x1044] ss:$16 sps:$4 sm:$0xff]   ;;  %v14815_v56 = vld [vmem:[%s18741_s10 + $0x1088] ss:$16 sps:$4 sm:$0xff]  }
0x1105   : > { %9048 = vmatpush2.bf16.msra.mxu1 %v14731_v51  ;;  %9085 = vmatpush2.bf16.msra.mxu0 %v14773_v29  ;;  %v14823_v51 = vld [vmem:[%s18741_s10 + $0x106c] ss:$16 sps:$4 sm:$0xff]   ;;  %v14824_v29 = vld [vmem:[%s18741_s10 + $0x1040] ss:$16 sps:$4 sm:$0xff]  }
0x1106   : > { %9049 = vmatprep.subr.bf16.mxu1 %v14736_v30  ;;  %9086 = vmatprep.subr.bf16.mxu0 %v14778_v21  ;;  %v14832_v30 = vld [vmem:[%s18741_s10 + $0x1024] ss:$16 sps:$4 sm:$0xff]   ;;  %v14821_v21 = vld [vmem:[%s18741_s10 + $0x1068] ss:$16 sps:$4 sm:$0xff]  }
0x1109   : > { %9050 = vmatpush2.bf16.msra.mxu1 %v14734_v52  ;;  %9087 = vmatpush2.bf16.msra.mxu0 %v14776_v62  ;;  %v14829_v52 = vld [vmem:[%s18741_s10 + $0x104c] ss:$16 sps:$4 sm:$0xff]   ;;  %v14830_v62 = vld [vmem:[%s18741_s10 + $0x1020] ss:$16 sps:$4 sm:$0xff]  }
0x110a   : > { %9051 = vmatprep.subr.bf16.mxu1 %v14739_v39  ;;  %9088 = vmatprep.subr.bf16.mxu0 %v14781_v1  ;;  %v14838_v39 = vld [vmem:[%s18741_s10 + $0x1004] ss:$16 sps:$4 sm:$0xff]   ;;  %v14827_v1 = vld [vmem:[%s18741_s10 + $0x1048] ss:$16 sps:$4 sm:$0xff]  }
0x110d   : > { %9052 = vmatpush2.bf16.msra.mxu1 %v14737_v20  ;;  %9089 = vmatpush2.bf16.msra.mxu0 %v14779_v8  ;;  %v14835_v20 = vld [vmem:[%s18741_s10 + $0x102c] ss:$16 sps:$4 sm:$0xff]   ;;  %v14836_v8 = vld [vmem:[%s18741_s10 + $0x1000] ss:$16 sps:$4 sm:$0xff]  }
0x110e   : > { %9053 = vmatprep.subr.bf16.mxu1 %v14742_v48  ;;  %9090 = vmatprep.subr.bf16.mxu0 %v14784_v23  ;;  %v14844_v48 = vld [vmem:[%s18741_s10 + $0x11e4] ss:$16 sps:$4 sm:$0xff]   ;;  %v14833_v23 = vld [vmem:[%s18741_s10 + $0x1028] ss:$16 sps:$4 sm:$0xff]  }
0x1111   : > { %9054 = vmatpush2.bf16.msra.mxu1 %v14740_v2  ;;  %9091 = vmatpush2.bf16.msra.mxu0 %v14782_v26  ;;  %v14841_v2 = vld [vmem:[%s18741_s10 + $0x100c] ss:$16 sps:$4 sm:$0xff]   ;;  %v14842_v26 = vld [vmem:[%s18741_s10 + $0x11e0] ss:$16 sps:$4 sm:$0xff]  }
0x1112   : > { %9055 = vmatprep.subr.bf16.mxu1 %v14745_v18  ;;  %9092 = vmatprep.subr.bf16.mxu0 %v14787_v57  ;;  %v14850_v18 = vld [vmem:[%s18741_s10 + $0x11c4] ss:$16 sps:$4 sm:$0xff]   ;;  %v14847_v57 = vld [vmem:[%s18741_s10 + $0x11ec] ss:$16 sps:$4 sm:$0xff]  }
0x1115   : > { %9056 = vmatpush2.bf16.msra.mxu1 %v14743_v58  ;;  %9093 = vmatpush2.bf16.msra.mxu0 %v14785_v45  ;;  %v14839_v58 = vld [vmem:[%s18741_s10 + $0x1008] ss:$16 sps:$4 sm:$0xff]   ;;  %v14848_v45 = vld [vmem:[%s18741_s10 + $0x11c0] ss:$16 sps:$4 sm:$0xff]  }
0x1116   : > { %9130 = vmatprep.subr.bf16.mxu1 %v16514_v40  ;;  %9094 = vmatprep.subr.bf16.mxu0 %v14790_v15  ;;  %v14793_v40 = vld [vmem:[%s18741_s10 + $0xf0c] ss:$16 sps:$4 sm:$0xff]   ;;  %v14856_v15 = vld [vmem:[%s18741_s10 + $0x11a4] ss:$16 sps:$4 sm:$0xff]  }
0x1119   : > { %9095 = vmatpush2.bf16.msra.mxu0 %v14788_v61  ;;  %v14845_v61 = vld [vmem:[%s18741_s10 + $0x11e8] ss:$16 sps:$4 sm:$0xff]  }
0x111a   : > { %9096 = vmatprep.subr.bf16.mxu0 %v14793_v40  ;;  %v14853_v40 = vld [vmem:[%s18741_s10 + $0x11cc] ss:$16 sps:$4 sm:$0xff]  }
0x111d   : > { %9097 = vmatpush2.bf16.msra.mxu0 %v14791_v50  ;;  %v14854_v50 = vld [vmem:[%s18741_s10 + $0x11a0] ss:$16 sps:$4 sm:$0xff]  }
0x111e   : > { %9544 = vmatprep.subr.bf16.mxu0 %v14796_v49  ;;  %v14862_v49 = vld [vmem:[%s18741_s10 + $0x1184] ss:$16 sps:$4 sm:$0xff]  }
0x1198   : > { %v8540_v13 = vpop.f32.mrf.mxu0  ;;  %v8581_v47 = vpop.f32.mrf.mxu1 }
0x1199   : > { %v18094_v0 = vadd.f32 %v8540_v13, %v17883_v43  ;;  %v18097_v46 = vadd.f32 %v8581_v47, %v17886_v6  ;;  %v14794_v6 = vld [vmem:[%s18741_s10 + $0x10e0] ss:$16 sps:$4 sm:$0xff]   ;;  %v14851_v13 = vld [vmem:[%s18741_s10 + $0x11c8] ss:$16 sps:$4 sm:$0xff]   ;;  %v14859_v47 = vld [vmem:[%s18741_s10 + $0x11ac] ss:$16 sps:$4 sm:$0xff]  }
0x119a   : > { %v8542_v3 = vpop.f32.mrf.mxu0  ;;  %v8583_v44 = vpop.f32.mrf.mxu1 }
0x119b   : > { %v18100_v5 = vadd.f32 %v8542_v3, %v17889_v28  ;;  %v18103_v14 = vadd.f32 %v8583_v44, %v17892_v33  ;;  %v14799_v28 = vld [vmem:[%s18741_s10 + $0x10ec] ss:$16 sps:$4 sm:$0xff]   ;;  %v14802_v33 = vld [vmem:[%s18741_s10 + $0x10c4] ss:$16 sps:$4 sm:$0xff]   ;;  %v14860_v3 = vld [vmem:[%s18741_s10 + $0x1180] ss:$16 sps:$4 sm:$0xff]  }
0x119c   : > { %v8544_v38 = vpop.f32.mrf.mxu0  ;;  %v8585_v31 = vpop.f32.mrf.mxu1  ;;  %v14868_v44 = vld [vmem:[%s18741_s10 + $0x1164] ss:$16 sps:$4 sm:$0xff]  }
0x119d   : > { %v14857_v38 = vld [vmem:[%s18741_s10 + $0x11a8] ss:$16 sps:$4 sm:$0xff]   ;;  %v14865_v31 = vld [vmem:[%s18741_s10 + $0x118c] ss:$16 sps:$4 sm:$0xff]  }
0x119e   : > { %v8545_v24 = vpop.f32.mrf.mxu0  ;;  %v8586_v11 = vpop.f32.mrf.mxu1 }
0x119f   : > { %v14866_v24 = vld [vmem:[%s18741_s10 + $0x1160] ss:$16 sps:$4 sm:$0xff]   ;;  %v14863_v11 = vld [vmem:[%s18741_s10 + $0x1188] ss:$16 sps:$4 sm:$0xff]  }
0x11a0   : > { %v8631_v63 = vpop.f32.mrf.mxu0 }
0x11a1   : > { %v8638_v43 = vpack.c.bf16 %v8631_v63, %v8631_v63  ;;  %v14871_v63 = vld [vmem:[%s18741_s10 + $0x116c] ss:$16 sps:$4 sm:$0xff]  }
0x11a2   : > { %v8633_v32 = vpop.f32.mrf.mxu0 }
0x11a3   : > { %v8639_v9 = vpack.c.bf16 %v8633_v32, %v8633_v32  ;;  %v14869_v32 = vld [vmem:[%s18741_s10 + $0x1168] ss:$16 sps:$4 sm:$0xff]  }
0x11a4   : > { %v8635_v25 = vpop.f32.mrf.mxu0 }
0x11a5   : > { %9057 = vmatprep.mubr.bf16.mxu1 %v8639_v9  ;;  %9098 = vmatprep.mubr.bf16.mxu0 %v8639_v9  ;;  %v14874_v9 = vld [vmem:[%s18741_s10 + $0x1144] ss:$16 sps:$4 sm:$0xff]   ;;  %v14872_v25 = vld [vmem:[%s18741_s10 + $0x1140] ss:$16 sps:$4 sm:$0xff]  }
0x11a6   : > { %9058 = vmatmul.mubr.bf16.vlgmr.msra.gmra.mxu1 %v8638_v43  ;;  %9099 = vmatmul.mubr.bf16.vlgmr.msra.gmra.mxu0 %v8638_v43  ;;  %v8636_v53 = vpop.f32.mrf.mxu0  ;;  %v14877_v43 = vld [vmem:[%s18741_s10 + $0x114c] ss:$16 sps:$4 sm:$0xff]  }
0x11a7   : > { %9131 = vmatpush1.bf16.msra.mxu1 %v16512_v27  ;;  %9148 = vmatprep.mubr.bf16.mxu1 %v14915_v16  ;;  %v14797_v27 = vld [vmem:[%s18741_s10 + $0x10e8] ss:$16 sps:$4 sm:$0xff]   ;;  %v14878_v53 = vld [vmem:[%s18741_s10 + $0x1120] ss:$16 sps:$4 sm:$0xff]  }
0x11a8   : > { %9585 = vmatprep.subr.bf16.mxu1 %v14799_v28  ;;  %9545 = vmatpush1.bf16.msra.mxu0 %v14794_v6  ;;  %v14875_v6 = vld [vmem:[%s18741_s10 + $0x1148] ss:$16 sps:$4 sm:$0xff]   ;;  %v14880_v28 = vld [vmem:[%s18741_s10 + $0x1124] ss:$16 sps:$4 sm:$0xff]  }
0x11a9   : > { %9546 = vmatprep.subr.bf16.mxu0 %v14802_v33  ;;  %v14883_v33 = vld [vmem:[%s18741_s10 + $0x112c] ss:$16 sps:$4 sm:$0xff]  }
0x11ac   : > { %9547 = vmatpush1.bf16.msra.mxu0 %v14800_v59  ;;  %v14881_v59 = vld [vmem:[%s18741_s10 + $0x1128] ss:$16 sps:$4 sm:$0xff]  }
0x11ad   : > { %9548 = vmatprep.subr.bf16.mxu0 %v14808_v7  ;;  %v14886_v7 = vld [vmem:[%s18741_s10 + $0x1104] ss:$16 sps:$4 sm:$0xff]  }
0x11ae   : > { %12659 = vmatmul.mubr.msk.bf16.vlgmr.msra.gmra.mxu1 %vm4969_vm5, %v12658_v22  ;;  %v14889_v22 = vld [vmem:[%s18741_s10 + $0x110c] ss:$16 sps:$4 sm:$0xff]  }
0x11af   : > { %9586 = vmatpush1.bf16.msra.mxu1 %v14797_v27  ;;  %v14884_v27 = vld [vmem:[%s18741_s10 + $0x1100] ss:$16 sps:$4 sm:$0xff]  }
0x11b0   : > { %9587 = vmatprep.subr.bf16.mxu1 %v14805_v60  ;;  %9549 = vmatpush1.bf16.msra.mxu0 %v14806_v12  ;;  %v14887_v60 = vld [vmem:[%s18741_s10 + $0x1108] ss:$16 sps:$4 sm:$0xff]  }
0x11b1   : > { %9550 = vmatprep.subr.bf16.mxu0 %v14814_v42 }
0x11b3   : > { %9588 = vmatpush1.bf16.msra.mxu1 %v14803_v10 }
0x11b4   : > { %9589 = vmatprep.subr.bf16.mxu1 %v14811_v17  ;;  %9551 = vmatpush1.bf16.msra.mxu0 %v14812_v36 }
0x11b5   : > { %9552 = vmatprep.subr.bf16.mxu0 %v14820_v54 }
0x11b7   : > { %9590 = vmatpush1.bf16.msra.mxu1 %v14809_v34 }
0x11b8   : > { %9591 = vmatprep.subr.bf16.mxu1 %v14817_v55  ;;  %9553 = vmatpush1.bf16.msra.mxu0 %v14818_v41 }
0x11b9   : > { %9554 = vmatprep.subr.bf16.mxu0 %v14826_v35 }
0x11bb   : > { %9592 = vmatpush1.bf16.msra.mxu1 %v14815_v56 }
0x11bc   : > { %9593 = vmatprep.subr.bf16.mxu1 %v14823_v51  ;;  %9555 = vmatpush1.bf16.msra.mxu0 %v14824_v29 }
0x11bd   : > { %9556 = vmatprep.subr.bf16.mxu0 %v14832_v30 }
0x11bf   : > { %9594 = vmatpush1.bf16.msra.mxu1 %v14821_v21 }
0x11c0   : > { %9595 = vmatprep.subr.bf16.mxu1 %v14829_v52  ;;  %9557 = vmatpush1.bf16.msra.mxu0 %v14830_v62 }
0x11c1   : > { %9558 = vmatprep.subr.bf16.mxu0 %v14838_v39 }
0x11c3   : > { %9596 = vmatpush1.bf16.msra.mxu1 %v14827_v1 }
0x11c4   : > { %9597 = vmatprep.subr.bf16.mxu1 %v14835_v20  ;;  %9559 = vmatpush1.bf16.msra.mxu0 %v14836_v8 }
0x11c5   : > { %9560 = vmatprep.subr.bf16.mxu0 %v14844_v48 }
0x11c7   : > { %9598 = vmatpush1.bf16.msra.mxu1 %v14833_v23 }
0x11c8   : > { %9599 = vmatprep.subr.bf16.mxu1 %v14841_v2  ;;  %9561 = vmatpush2.bf16.msra.mxu0 %v14842_v26 }
0x11c9   : > { %9562 = vmatprep.subr.bf16.mxu0 %v14850_v18 }
0x11cb   : > { %9600 = vmatpush1.bf16.msra.mxu1 %v14839_v58 }
0x11cc   : > { %9601 = vmatprep.subr.bf16.mxu1 %v14847_v57  ;;  %9563 = vmatpush2.bf16.msra.mxu0 %v14848_v45 }
0x11cd   : > { %9564 = vmatprep.subr.bf16.mxu0 %v14856_v15 }
0x11cf   : > { %9602 = vmatpush2.bf16.msra.mxu1 %v14845_v61 }
0x11d0   : > { %9603 = vmatprep.subr.bf16.mxu1 %v14853_v40  ;;  %9565 = vmatpush2.bf16.msra.mxu0 %v14854_v50 }
0x11d1   : > { %9566 = vmatprep.subr.bf16.mxu0 %v14862_v49 }
0x11d3   : > { %9604 = vmatpush2.bf16.msra.mxu1 %v14851_v13 }
0x11d4   : > { %9605 = vmatprep.subr.bf16.mxu1 %v14859_v47  ;;  %9567 = vmatpush2.bf16.msra.mxu0 %v14860_v3 }
0x11d5   : > { %9568 = vmatprep.subr.bf16.mxu0 %v14868_v44 }
0x11d7   : > { %9606 = vmatpush2.bf16.msra.mxu1 %v14857_v38 }
0x11d8   : > { %9607 = vmatprep.subr.bf16.mxu1 %v14865_v31  ;;  %9569 = vmatpush2.bf16.msra.mxu0 %v14866_v24 }
0x11d9   : > { %9570 = vmatprep.subr.bf16.mxu0 %v14874_v9 }
0x11db   : > { %9608 = vmatpush2.bf16.msra.mxu1 %v14863_v11 }
0x11dc   : > { %9609 = vmatprep.subr.bf16.mxu1 %v14871_v63  ;;  %9571 = vmatpush2.bf16.msra.mxu0 %v14872_v25 }
0x11dd   : > { %9572 = vmatprep.subr.bf16.mxu0 %v14880_v28 }
0x11df   : > { %9610 = vmatpush2.bf16.msra.mxu1 %v14869_v32 }
0x11e0   : > { %9611 = vmatprep.subr.bf16.mxu1 %v14877_v43  ;;  %9573 = vmatpush2.bf16.msra.mxu0 %v14878_v53 }
0x11e1   : > { %9574 = vmatprep.subr.bf16.mxu0 %v14886_v7 }
0x11e3   : > { %9612 = vmatpush2.bf16.msra.mxu1 %v14875_v6 }
0x11e4   : > { %9613 = vmatprep.subr.bf16.mxu1 %v14883_v33  ;;  %9575 = vmatpush2.bf16.msra.mxu0 %v14884_v27 }
0x11e7   : > { %9614 = vmatpush2.bf16.msra.mxu1 %v14881_v59 }
0x11e8   : > { %9615 = vmatprep.subr.bf16.mxu1 %v14889_v22 }
0x11eb   : > { %9616 = vmatpush2.bf16.msra.mxu1 %v14887_v60 }
0x1266   : > { %v9059_v12 = vpop.f32.mrf.mxu1  ;;  %v9100_v42 = vpop.f32.mrf.mxu0 }
0x1267   : > { %v9107_v10 = vadd.f32 %v9059_v12, %v18094_v0  ;;  %v9109_v17 = vadd.f32 %v9100_v42, %v18097_v46  ;;  %v18307_v46 = vsub.s32 2, %v16496_v4 }
0x1268   : > { %v9061_v36 = vpop.f32.mrf.mxu1  ;;  %v9102_v54 = vpop.f32.mrf.mxu0 }
0x1269   : > { %v9108_v34 = vadd.f32 %v9061_v36, %v18100_v5  ;;  %v9110_v55 = vadd.f32 %v9102_v54, %v18103_v14  ;;  %v9630_v5 = vld [vmem:[%s18742_s11] sm:$0xf]  ;;  %v9646_v14 = vsub.s32 3, %v16496_v4 }
0x126a   : > { %v9063_v41 = vpop.f32.mrf.mxu1  ;;  %v9104_v35 = vpop.f32.mrf.mxu0  ;;  %v9635_v39 = vrot.slane %v9630_v5, %v16499_v37  ;;  %v9643_v1 = vrot.slane %v9630_v5, %v18307_v46  ;;  %v9639_v2 = vrot.slane %v9630_v5, %v4897_v19 }
0x126b   : > { %v9647_v26 = vrot.slane %v9630_v5, %v9646_v14 }
0x126c   : > { %v9064_v56 = vpop.f32.mrf.mxu1  ;;  %v9105_v51 = vpop.f32.mrf.mxu0 }
0x126e   : > { %v9150_v29 = vpop.f32.mrf.mxu1 }
0x126f   : > { %v9157_v52 = vpack.c.bf16 %v9150_v29, %v9150_v29 }
0x1270   : > { %v9152_v30 = vpop.f32.mrf.mxu1 }
0x1271   : > { %v9158_v21 = vpack.c.bf16 %v9152_v30, %v9152_v30 }
0x1272   : > { %v9154_v62 = vpop.f32.mrf.mxu1 }
0x1273   : > { %9576 = vmatprep.mubr.bf16.mxu0 %v9158_v21  ;;  %9617 = vmatprep.mubr.bf16.mxu1 %v9158_v21 }
0x1274   : > { %9577 = vmatmul.mubr.bf16.vlgmr.msra.gmra.mxu0 %v9157_v52  ;;  %9618 = vmatmul.mubr.bf16.vlgmr.msra.gmra.mxu1 %v9157_v52  ;;  %v9155_v0 = vpop.f32.mrf.mxu1 }
0x1275   : > { %9812 = vmatprep.mubr.bf16.mxu0 %v14915_v16  ;;  %9853 = vmatprep.mubr.bf16.mxu1 %v14915_v16 }
0x1334   : > { %v9578_v20 = vpop.f32.mrf.mxu0  ;;  %v9619_v8 = vpop.f32.mrf.mxu1 }
0x1335   : > { %v9626_v48 = vadd.f32 %v9578_v20, %v9107_v10  ;;  %v9628_v23 = vadd.f32 %v9619_v8, %v9109_v17 }
0x1336   : > { %v9580_v18 = vpop.f32.mrf.mxu0  ;;  %v9621_v58 = vpop.f32.mrf.mxu1 }
0x1337   : > { %v9652_v57 = vadd.f32 %v9635_v39, %v9626_v48  ;;  %v9654_v45 = vadd.f32 %v9643_v1, %v9628_v23  ;;  %v9627_v15 = vadd.f32 %v9580_v18, %v9108_v34  ;;  %v9629_v61 = vadd.f32 %v9621_v58, %v9110_v55 }
0x1338   : > { %v9582_v40 = vpop.f32.mrf.mxu0  ;;  %v9623_v50 = vpop.f32.mrf.mxu1 }
0x1339   : > { %v9656_v49 = vmul.f32 0.2, %v9652_v57  ;;  %v9658_v13 = vmul.f32 0.2, %v9654_v45  ;;  %v9653_v47 = vadd.f32 %v9639_v2, %v9627_v15  ;;  %v9655_v3 = vadd.f32 %v9647_v26, %v9629_v61 }
0x133a   : > { %v9583_v44 = vpop.f32.mrf.mxu0  ;;  %v9624_v38 = vpop.f32.mrf.mxu1 }
0x133b   : > { %v18317_v31 = vmax.f32 %v9652_v57, %v9656_v49  ;;  %v18319_v24 = vmax.f32 %v9654_v45, %v9658_v13  ;;  %v9657_v19 = vmul.f32 0.2, %v9653_v47  ;;  %v9659_v11 = vmul.f32 0.2, %v9655_v3 }
0x133d   : > { %v9665_v63 = vsel %vm9664_vm6, %v18317_v31, 0.0  ;;  %v9698_v32 = vmul.f32 %v18317_v31, %v18317_v31  ;;  %v9679_v9 = vsel %vm9664_vm6, %v18319_v24, 0.0  ;;  %v9700_v43 = vmul.f32 %v18319_v24, %v18319_v24 }
0x133e   : > { %v9666_v25 = vrot.slane %v9665_v63, 4  ;;  %v9680_v6 = vrot.slane %v9679_v9, 4  ;;  %v18329_v28 = vmax.f32 %v9653_v47, %v9657_v19  ;;  %v18331_v33 = vmax.f32 %v9655_v3, %v9659_v11 }
0x133f   : > { %v9702_v53 = vsel %vm9664_vm6, %v9698_v32, 0.0  ;;  %v9716_v59 = vsel %vm9664_vm6, %v9700_v43, 0.0 }
0x1340   : > { %v9667_v7 = vadd.f32 %v9666_v25, %v9665_v63  ;;  %v9703_v22 = vrot.slane %v9702_v53, 4  ;;  %v9681_v27 = vadd.f32 %v9680_v6, %v9679_v9  ;;  %v9717_v60 = vrot.slane %v9716_v59, 4 }
0x1341   : > { %v9672_v12 = vsel %vm9664_vm6, %v18329_v28, 0.0  ;;  %v9699_v42 = vmul.f32 %v18329_v28, %v18329_v28  ;;  %v9686_v10 = vsel %vm9664_vm6, %v18331_v33, 0.0  ;;  %v9701_v17 = vmul.f32 %v18331_v33, %v18331_v33 }
0x1342   : > { %v9668_v36 = vrot.slane %v9667_v7, 2  ;;  %v9704_v54 = vadd.f32 %v9703_v22, %v9702_v53  ;;  %v9682_v34 = vrot.slane %v9681_v27, 2  ;;  %v9718_v55 = vadd.f32 %v9717_v60, %v9716_v59 }
0x1343   : > { %v9673_v41 = vrot.slane %v9672_v12, 4  ;;  %v9709_v35 = vsel %vm9664_vm6, %v9699_v42, 0.0  ;;  %v9687_v56 = vrot.slane %v9686_v10, 4  ;;  %v9723_v51 = vsel %vm9664_vm6, %v9701_v17, 0.0 }
0x1344   : > { %v9669_v29 = vadd.f32 %v9668_v36, %v9667_v7  ;;  %v9705_v30 = vrot.slane %v9704_v54, 2  ;;  %v9683_v21 = vadd.f32 %v9682_v34, %v9681_v27  ;;  %v9719_v52 = vrot.slane %v9718_v55, 2 }
0x1345   : > { %v9674_v62 = vadd.f32 %v9673_v41, %v9672_v12  ;;  %v9710_v0 = vrot.slane %v9709_v35, 4  ;;  %v9688_v5 = vadd.f32 %v9687_v56, %v9686_v10  ;;  %v9724_v14 = vrot.slane %v9723_v51, 4 }
0x1346   : > { %v9670_v39 = vrot.slane %v9669_v29, 1  ;;  %v9706_v1 = vadd.f32 %v9705_v30, %v9704_v54  ;;  %v9684_v20 = vrot.slane %v9683_v21, 1  ;;  %v9720_v8 = vadd.f32 %v9719_v52, %v9718_v55 }
0x1347   : > { %v9675_v48 = vrot.slane %v9674_v62, 2  ;;  %v9711_v23 = vadd.f32 %v9710_v0, %v9709_v35  ;;  %v9689_v2 = vrot.slane %v9688_v5, 2  ;;  %v9725_v26 = vadd.f32 %v9724_v14, %v9723_v51 }
0x1348   : > { %v9671_v18 = vadd.f32 %v9670_v39, %v9669_v29  ;;  %v9707_v58 = vrot.slane %v9706_v1, 1  ;;  %v9685_v57 = vadd.f32 %v9684_v20, %v9683_v21  ;;  %v9721_v45 = vrot.slane %v9720_v8, 1 }
0x1349   : > { %v9676_v15 = vadd.f32 %v9675_v48, %v9674_v62  ;;  %v9712_v61 = vrot.slane %v9711_v23, 2  ;;  %v9690_v40 = vadd.f32 %v9689_v2, %v9688_v5  ;;  %v9726_v50 = vrot.slane %v9725_v26, 2 }
0x134a   : > { %v9694_v49 = vmul.f32 0.25, %v9671_v18  ;;  %v9708_v13 = vadd.f32 %v9707_v58, %v9706_v1  ;;  %v9696_v47 = vmul.f32 0.25, %v9685_v57  ;;  %v9722_v3 = vadd.f32 %v9721_v45, %v9720_v8  ;;  %v12798_v18 = vld [vmem:[%s18743_s12 + $0x4] sm:$0x3]  ;;  %v12804_v58 = vld [vmem:[%s18743_s12 + $0x6] sm:$0x3] }
0x134b   : > { %v9677_v44 = vrot.slane %v9676_v15, 1  ;;  %v9713_v38 = vadd.f32 %v9712_v61, %v9711_v23  ;;  %v9691_v19 = vrot.slane %v9690_v40, 1  ;;  %v9727_v11 = vadd.f32 %v9726_v50, %v9725_v26  ;;  %v12810_v57 = vld [vmem:[%s18743_s12 + $0x8] sm:$0x3]  ;;  %v12816_v45 = vld [vmem:[%s18743_s12 + $0xa] sm:$0x3] }
0x134c   : > { %v9730_v63 = vmul.f32 0.25, %v9708_v13  ;;  %v9734_v32 = vmul.f32 %v9694_v49, %v9694_v49  ;;  %v9732_v9 = vmul.f32 0.25, %v9722_v3  ;;  %v9736_v43 = vmul.f32 %v9696_v47, %v9696_v47  ;;  %v12828_v61 = vld [vmem:[%s18743_s12 + $0xe] sm:$0x3] }
0x134d   : > { %v9678_v25 = vadd.f32 %v9677_v44, %v9676_v15  ;;  %v9714_v6 = vrot.slane %v9713_v38, 1  ;;  %v9692_v59 = vadd.f32 %v9691_v19, %v9690_v40  ;;  %v9728_v7 = vrot.slane %v9727_v11, 1  ;;  %v12822_v15 = vld [vmem:[%s18743_s12 + $0xc] sm:$0x3]  ;;  %v12834_v40 = vld [vmem:[%s18743_s12 + $0x10] sm:$0x3] }
0x134e   : > { %v9738_v53 = vsub.f32 %v9730_v63, %v9734_v32  ;;  %v9740_v22 = vsub.f32 %v9732_v9, %v9736_v43  ;;  %v9742_v30 = vsub.f32 %v18317_v31, %v9694_v49  ;;  %v9744_v52 = vsub.f32 %v18319_v24, %v9696_v47 }
0x134f   : > { %v9695_v27 = vmul.f32 0.25, %v9678_v25  ;;  %v9715_v60 = vadd.f32 %v9714_v6, %v9713_v38  ;;  %v9697_v42 = vmul.f32 0.25, %v9692_v59  ;;  %v9729_v10 = vadd.f32 %v9728_v7, %v9727_v11 }
0x1350   : > { %v9746_v12 = vadd.f32 1e-05, %v9738_v53  ;;  %v9748_v17 = vadd.f32 1e-05, %v9740_v22 }
0x1351   : > { %v9731_v36 = vmul.f32 0.25, %v9715_v60  ;;  %v9735_v54 = vmul.f32 %v9695_v27, %v9695_v27  ;;  %v9733_v34 = vmul.f32 0.25, %v9729_v10  ;;  %v9737_v55 = vmul.f32 %v9697_v42, %v9697_v42 }
0x1352   : > { %14896 = vrsqrt.f32 %v9746_v12  ;;  %v9743_v5 = vsub.f32 %v18329_v28, %v9695_v27  ;;  %v9745_v39 = vsub.f32 %v18331_v33, %v9697_v42  ;;  %v9762_v28 = vld [vmem:[%s18743_s12] sm:$0x3]  ;;  %v12792_v33 = vld [vmem:[%s18743_s12 + $0x2] sm:$0x3] }
0x1353   : > { %14898 = vrsqrt.f32 %v9748_v17  ;;  %v9739_v41 = vsub.f32 %v9731_v36, %v9735_v54  ;;  %v9741_v35 = vsub.f32 %v9733_v34, %v9737_v55  ;;  %v9862_v12 = vld [vmem:[%s18744_s13] sm:$0xff]   ;;  %v18506_v34 = vsub.s32 4, %v16496_v4 }
0x1354   : > { %v9863_v36 = vunpack.c.l.bf16 %v9862_v12 }
0x1355   : > { %v9747_v56 = vadd.f32 1e-05, %v9739_v41  ;;  %v9749_v51 = vadd.f32 1e-05, %v9741_v35  ;;  %v18513_v35 = vsub.s32 6, %v16496_v4  ;;  %v12815_v4 = vld [vmem:[%s18744_s13 + $0x10] sm:$0xff]  }
0x1357   : > { %14900 = vrsqrt.f32 %v9747_v56  ;;  %v12803_v56 = vld [vmem:[%s18744_s13 + $0x8] sm:$0xff]  }
0x1358   : > { %14902 = vrsqrt.f32 %v9749_v51 }
0x135f   : > { %v14897_v29 = vpop.eup %14896 }
0x1360   : > { %v14899_v21 = vpop.eup %14898  ;;  %v9754_v62 = vmul.f32 %v14897_v29, %v9742_v30  ;;  %v9868_v29 = vrot.slane %v9863_v36, %v16499_v37  ;;  %v9998_v30 = vunpack.c.h.bf16 %v9862_v12 }
0x1361   : > { %v9756_v0 = vmul.f32 %v14899_v21, %v9744_v52  ;;  %v9876_v52 = vrot.slane %v9863_v36, %v18506_v34 }
0x1362   : > { %v9758_v20 = vpack.c.bf16 %v9754_v62, %v9754_v62 }
0x1363   : > { %v9760_v48 = vpack.c.bf16 %v9756_v0, %v9756_v0  ;;  %v9872_v0 = vrot.slane %v9863_v36, %v18307_v46 }
0x1364   : > { %v14901_v14 = vpop.eup %14900  ;;  %v18354_v31 = vsel %vm9767_vm7, %v9758_v20, 0 }
0x1365   : > { %v14903_v1 = vpop.eup %14902  ;;  %v9755_v8 = vmul.f32 %v14901_v14, %v9743_v5  ;;  %v18359_v24 = vsel %vm9767_vm7, %v9760_v48, 0  ;;  %v10133_v5 = vunpack.c.l.bf16 %v12803_v56  ;;  %v10003_v48 = vrot.slane %v9998_v30, %v16499_v37 }
0x1366   : > { %v9757_v23 = vmul.f32 %v14903_v1, %v9745_v39  ;;  %v9880_v39 = vrot.slane %v9863_v36, %v18513_v35  ;;  %v10268_v1 = vunpack.c.h.bf16 %v12803_v56 }
0x1367   : > { %v18349_v2 = vpack.c.bf16 %v9755_v8, %v9755_v8  ;;  %v18528_v8 = vrot.slane %v9868_v29, %v16499_v37 }
0x1368   : > { %v18351_v26 = vpack.c.bf16 %v9757_v23, %v9757_v23  ;;  %v10011_v23 = vrot.slane %v9998_v30, %v18506_v34 }
0x1369   : > { %12788 = vmatprep.subr.msk.bf16.mxu0 %vm9767_vm7, %v18349_v2 }
0x136a   : > { %12790 = vmatprep.subr.msk.bf16.mxu1 %vm9767_vm7, %v18351_v26  ;;  %9795 = vmatpush1.bf16.msra.mxu0 %v18354_v31 }
0x136b   : > { %9836 = vmatpush1.bf16.msra.mxu1 %v18359_v24  ;;  %12793 = vmatprep.subr.msk.bf16.mxu0 %vm9767_vm7, %v18349_v2 }
0x136c   : > { %12795 = vmatprep.subr.msk.bf16.mxu1 %vm9767_vm7, %v18351_v26 }
0x136d   : > { %12789 = vmatmul.mubr.msk.bf16.vlgmr.msra.gmra.mxu0 %vm9763_vm8, %v9762_v28 }
0x136e   : > { %12791 = vmatmul.mubr.msk.bf16.vlgmr.msra.gmra.mxu1 %vm9763_vm8, %v9762_v28  ;;  %9929 = vmatpush1.bf16.msra.mxu0 %v18354_v31  ;;  %v10403_v28 = vunpack.c.l.bf16 %v12815_v4 }
0x136f   : > { %9970 = vmatpush1.bf16.msra.mxu1 %v18359_v24  ;;  %12799 = vmatprep.subr.msk.bf16.mxu0 %vm9767_vm7, %v18349_v2 }
0x1370   : > { %12801 = vmatprep.subr.msk.bf16.mxu1 %vm9767_vm7, %v18351_v26  ;;  %9946 = vmatprep.mubr.bf16.mxu0 %v14915_v16 }
0x1371   : > { %9987 = vmatprep.mubr.bf16.mxu1 %v14915_v16 }
0x1375   : > { %12794 = vmatmul.mubr.msk.bf16.vlgmr.msra.gmra.mxu0 %vm9763_vm8, %v12792_v33 }
0x1376   : > { %12796 = vmatmul.mubr.msk.bf16.vlgmr.msra.gmra.mxu1 %vm9763_vm8, %v12792_v33  ;;  %10064 = vmatpush1.bf16.msra.mxu0 %v18354_v31 }
0x1377   : > { %10105 = vmatpush1.bf16.msra.mxu1 %v18359_v24  ;;  %12805 = vmatprep.subr.msk.bf16.mxu0 %vm9767_vm7, %v18349_v2 }
0x1378   : > { %12807 = vmatprep.subr.msk.bf16.mxu1 %vm9767_vm7, %v18351_v26  ;;  %10081 = vmatprep.mubr.bf16.mxu0 %v14915_v16 }
0x1379   : > { %10122 = vmatprep.mubr.bf16.mxu1 %v14915_v16 }
0x137d   : > { %12800 = vmatmul.mubr.msk.bf16.vlgmr.msra.gmra.mxu0 %vm9763_vm8, %v12798_v18 }
0x137e   : > { %12802 = vmatmul.mubr.msk.bf16.vlgmr.msra.gmra.mxu1 %vm9763_vm8, %v12798_v18  ;;  %10199 = vmatpush1.bf16.msra.mxu0 %v18354_v31  ;;  %v18542_v18 = vrot.slane %v9872_v0, %v16499_v37 }
0x137f   : > { %10240 = vmatpush1.bf16.msra.mxu1 %v18359_v24  ;;  %12811 = vmatprep.subr.msk.bf16.mxu0 %vm9767_vm7, %v18349_v2 }
0x1380   : > { %12813 = vmatprep.subr.msk.bf16.mxu1 %vm9767_vm7, %v18351_v26  ;;  %10216 = vmatprep.mubr.bf16.mxu0 %v14915_v16 }
0x1381   : > { %10257 = vmatprep.mubr.bf16.mxu1 %v14915_v16 }
0x1385   : > { %12806 = vmatmul.mubr.msk.bf16.vlgmr.msra.gmra.mxu0 %vm9763_vm8, %v12804_v58 }
0x1386   : > { %12808 = vmatmul.mubr.msk.bf16.vlgmr.msra.gmra.mxu1 %vm9763_vm8, %v12804_v58  ;;  %10334 = vmatpush1.bf16.msra.mxu0 %v18354_v31  ;;  %v10138_v58 = vrot.slane %v10133_v5, %v16499_v37 }
0x1387   : > { %10375 = vmatpush1.bf16.msra.mxu1 %v18359_v24  ;;  %12817 = vmatprep.subr.msk.bf16.mxu0 %vm9767_vm7, %v18349_v2 }
0x1388   : > { %12819 = vmatprep.subr.msk.bf16.mxu1 %vm9767_vm7, %v18351_v26  ;;  %10351 = vmatprep.mubr.bf16.mxu0 %v14915_v16  ;;  %v18573_v56 = vrot.slane %v10138_v58, %v16499_v37 }
0x1389   : > { %10392 = vmatprep.mubr.bf16.mxu1 %v14915_v16 }
0x138d   : > { %12812 = vmatmul.mubr.msk.bf16.vlgmr.msra.gmra.mxu0 %vm9763_vm8, %v12810_v57 }
0x138e   : > { %12814 = vmatmul.mubr.msk.bf16.vlgmr.msra.gmra.mxu1 %vm9763_vm8, %v12810_v57  ;;  %10469 = vmatpush1.bf16.msra.mxu0 %v18354_v31  ;;  %v10146_v57 = vrot.slane %v10133_v5, %v18506_v34 }
0x138f   : > { %10510 = vmatpush1.bf16.msra.mxu1 %v18359_v24  ;;  %12823 = vmatprep.subr.msk.bf16.mxu0 %vm9767_vm7, %v18349_v2 }
0x1390   : > { %12825 = vmatprep.subr.msk.bf16.mxu1 %vm9767_vm7, %v18351_v26  ;;  %10486 = vmatprep.mubr.bf16.mxu0 %v14915_v16 }
0x1391   : > { %10527 = vmatprep.mubr.bf16.mxu1 %v14915_v16 }
0x1395   : > { %12818 = vmatmul.mubr.msk.bf16.vlgmr.msra.gmra.mxu0 %vm9763_vm8, %v12816_v45 }
0x1396   : > { %12820 = vmatmul.mubr.msk.bf16.vlgmr.msra.gmra.mxu1 %vm9763_vm8, %v12816_v45  ;;  %10604 = vmatpush1.bf16.msra.mxu0 %v18354_v31  ;;  %v10142_v45 = vrot.slane %v10133_v5, %v18307_v46 }
0x1397   : > { %10645 = vmatpush1.bf16.msra.mxu1 %v18359_v24  ;;  %12829 = vmatprep.subr.msk.bf16.mxu0 %vm9767_vm7, %v18349_v2 }
0x1398   : > { %12831 = vmatprep.subr.msk.bf16.mxu1 %vm9767_vm7, %v18351_v26  ;;  %10621 = vmatprep.mubr.bf16.mxu0 %v14915_v16  ;;  %v18579_v29 = vrot.slane %v10142_v45, %v16499_v37 }
0x1399   : > { %10662 = vmatprep.mubr.bf16.mxu1 %v14915_v16 }
0x139d   : > { %12824 = vmatmul.mubr.msk.bf16.vlgmr.msra.gmra.mxu0 %vm9763_vm8, %v12822_v15 }
0x139e   : > { %12826 = vmatmul.mubr.msk.bf16.vlgmr.msra.gmra.mxu1 %vm9763_vm8, %v12822_v15  ;;  %10739 = vmatpush1.bf16.msra.mxu0 %v18354_v31 }
0x139f   : > { %10780 = vmatpush1.bf16.msra.mxu1 %v18359_v24  ;;  %12835 = vmatprep.subr.msk.bf16.mxu0 %vm9767_vm7, %v18349_v2 }
0x13a0   : > { %12837 = vmatprep.subr.msk.bf16.mxu1 %vm9767_vm7, %v18351_v26  ;;  %10756 = vmatprep.mubr.bf16.mxu0 %v14915_v16  ;;  %v18535_v26 = vrot.slane %v9876_v52, %v16499_v37  ;;  %v12839_v52 = vld [vmem:[%s18744_s13 + $0x20] sm:$0xf] }
0x13a1   : > { %10797 = vmatprep.mubr.bf16.mxu1 %v14915_v16 }
0x13a5   : > { %12830 = vmatmul.mubr.msk.bf16.vlgmr.msra.gmra.mxu0 %vm9763_vm8, %v12828_v61 }
0x13a6   : > { %12832 = vmatmul.mubr.msk.bf16.vlgmr.msra.gmra.mxu1 %vm9763_vm8, %v12828_v61  ;;  %10874 = vmatpush1.bf16.msra.mxu0 %v18354_v31  ;;  %v10007_v31 = vrot.slane %v9998_v30, %v18307_v46  ;;  %v18550_v61 = vrot.slane %v9880_v39, %v16499_v37 }
0x13a7   : > { %10915 = vmatpush1.bf16.msra.mxu1 %v18359_v24  ;;  %10891 = vmatprep.mubr.bf16.mxu0 %v14915_v16  ;;  %v10015_v24 = vrot.slane %v9998_v30, %v18513_v35 }
0x13a8   : > { %10932 = vmatprep.mubr.bf16.mxu1 %v14915_v16 }
0x13a9   : > { %v18568_v12 = vrot.slane %v10015_v24, %v16499_v37 }
0x13ad   : > { %12836 = vmatmul.mubr.msk.bf16.vlgmr.msra.gmra.mxu0 %vm9763_vm8, %v12834_v40 }
0x13ae   : > { %12838 = vmatmul.mubr.msk.bf16.vlgmr.msra.gmra.mxu1 %vm9763_vm8, %v12834_v40  ;;  %v10150_v40 = vrot.slane %v10133_v5, %v18513_v35 }
0x142d   : > { %v18474_v50 = vpop.f32.mrf.mxu0 }
0x142e   : > { %v18476_v49 = vpop.f32.mrf.mxu1 }
0x142f   : > { %v18478_v13 = vpop.f32.mrf.mxu0 }
0x1430   : > { %v18480_v47 = vpop.f32.mrf.mxu1 }
0x1431   : > { %v9818_v3 = vpop.f32.mrf.mxu0 }
0x1432   : > { %v9859_v44 = vpop.f32.mrf.mxu1  ;;  %v10273_v3 = vrot.slane %v10268_v1, %v16499_v37 }
0x1433   : > { %v9819_v38 = vpop.f32.mrf.mxu0  ;;  %v10281_v44 = vrot.slane %v10268_v1, %v18506_v34 }
0x1434   : > { %v9860_v16 = vpop.f32.mrf.mxu1  ;;  %v18588_v0 = vrot.slane %v10273_v3, %v16499_v37 }
0x1435   : > { %v18482_v19 = vpop.f32.mrf.mxu0  ;;  %v10023_v16 = vrot.slane %v10003_v48, %v16499_v37  ;;  %v18591_v5 = vrot.slane %v10281_v44, %v16499_v37  ;;  %v10412_v48 = vrot.slane %v10403_v28, %v18307_v46 }
0x1436   : > { %v18484_v11 = vpop.f32.mrf.mxu1 }
0x1437   : > { %v18486_v63 = vpop.f32.mrf.mxu0 }
0x1438   : > { %v18488_v32 = vpop.f32.mrf.mxu1 }
0x1439   : > { %v9952_v9 = vpop.f32.mrf.mxu0 }
0x143a   : > { %v9993_v43 = vpop.f32.mrf.mxu1  ;;  %v18557_v9 = vrot.slane %v10011_v23, %v16499_v37 }
0x143b   : > { %v9953_v25 = vpop.f32.mrf.mxu0  ;;  %v10277_v43 = vrot.slane %v10268_v1, %v18307_v46 }
0x143c   : > { %v9994_v6 = vpop.f32.mrf.mxu1  ;;  %v10285_v25 = vrot.slane %v10268_v1, %v18513_v35 }
0x143d   : > { %v18490_v53 = vpop.f32.mrf.mxu0  ;;  %v18596_v1 = vrot.slane %v10277_v43, %v16499_v37 }
0x143e   : > { %v18492_v59 = vpop.f32.mrf.mxu1 }
0x143f   : > { %v18494_v7 = vpop.f32.mrf.mxu0 }
0x1440   : > { %v18496_v22 = vpop.f32.mrf.mxu1 }
0x1441   : > { %v10087_v27 = vpop.f32.mrf.mxu0 }
0x1442   : > { %v10128_v60 = vpop.f32.mrf.mxu1  ;;  %v12827_v27 = vld [vmem:[%s18744_s13 + $0x18] sm:$0xff]  }
0x1443   : > { %v10088_v42 = vpop.f32.mrf.mxu0  ;;  %v18565_v60 = vrot.slane %v10007_v31, %v16499_v37  ;;  %v10673_v39 = vunpack.c.l.bf16 %v12827_v27  ;;  %v10808_v31 = vunpack.c.h.bf16 %v12827_v27 }
0x1444   : > { %v10129_v10 = vpop.f32.mrf.mxu1  ;;  %v10408_v42 = vrot.slane %v10403_v28, %v16499_v37 }
0x1445   : > { %v18501_v17 = vpop.f32.mrf.mxu0  ;;  %v10416_v10 = vrot.slane %v10403_v28, %v18506_v34  ;;  %v10678_v27 = vrot.slane %v10673_v39, %v16499_v37 }
0x1446   : > { %v18503_v54 = vpop.f32.mrf.mxu1  ;;  %v18605_v24 = vrot.slane %v10408_v42, %v16499_v37  ;;  %v10686_v42 = vrot.slane %v10673_v39, %v18506_v34 }
0x1447   : > { %v18508_v55 = vpop.f32.mrf.mxu0  ;;  %v18608_v58 = vrot.slane %v10416_v10, %v16499_v37  ;;  %v10690_v10 = vrot.slane %v10673_v39, %v18513_v35 }
0x1448   : > { %v18510_v41 = vpop.f32.mrf.mxu1 }
0x1449   : > { %v10222_v51 = vpop.f32.mrf.mxu0  ;;  %18752 = vst [vmem:[#allocation8_spill] sm:$0xff] %v18608_v58 }
0x144a   : > { %v10263_v21 = vpop.f32.mrf.mxu1  ;;  %v18576_v51 = vrot.slane %v10146_v57, %v16499_v37  ;;  %v10420_v57 = vrot.slane %v10403_v28, %v18513_v35  ;;  %v10682_v28 = vrot.slane %v10673_v39, %v18307_v46 }
0x144b   : > { %v10223_v62 = vpop.f32.mrf.mxu0  ;;  %v10538_v21 = vunpack.c.h.bf16 %v12815_v4  ;;  %v18599_v4 = vrot.slane %v10285_v25, %v16499_v37 }
0x144c   : > { %v10264_v14 = vpop.f32.mrf.mxu1  ;;  %v18585_v62 = vrot.slane %v10150_v40, %v16499_v37  ;;  %v18613_v40 = vunpack.c.l.bf16 %v12839_v52  ;;  %v10813_v52 = vrot.slane %v10808_v31, %v16499_v37 }
0x144d   : > { %v18525_v20 = vpop.f32.mrf.mxu0  ;;  %v10543_v3 = vrot.slane %v10538_v21, %v16499_v37  ;;  %v10551_v44 = vrot.slane %v10538_v21, %v18506_v34  ;;  %v10555_v25 = vrot.slane %v10538_v21, %v18513_v35 }
0x144e   : > { %v18532_v2 = vpop.f32.mrf.mxu1  ;;  %v10956_v39 = vrot.slane %v18613_v40, %v18506_v34 }
0x144f   : > { %18747 = vst [vmem:[#allocation3_spill] sm:$0xff] %v18532_v2  ;;  %v18539_v33 = vpop.f32.mrf.mxu0  ;;  %v18644_v2 = vrot.slane %v10682_v28, %v16499_v37 }
0x1450   : > { %18748 = vst [vmem:[#allocation4_spill] sm:$0xff] %v18539_v33  ;;  %v18547_v15 = vpop.f32.mrf.mxu1  ;;  %v18639_v33 = vrot.slane %v10555_v25, %v16499_v37 }
0x1451   : > { %18749 = vst [vmem:[#allocation5_spill] sm:$0xff] %v18547_v15  ;;  %v10357_v38 = vpop.f32.mrf.mxu0  ;;  %v10948_v15 = vrot.slane %v18613_v40, %v16499_v37 }
0x1452   : > { %v10398_v6 = vpop.f32.mrf.mxu1  ;;  %v10547_v38 = vrot.slane %v10538_v21, %v18307_v46  ;;  %v10440_v21 = vrot.slane %v10420_v57, %v16499_v37 }
0x1453   : > { %v10358_v36 = vpop.f32.mrf.mxu0 }
0x1454   : > { %v10399_v30 = vpop.f32.mrf.mxu1  ;;  %v10432_v36 = vrot.slane %v10412_v48, %v16499_v37  ;;  %v10563_v48 = vrot.slane %v10543_v3, %v16499_v37  ;;  %v10036_v3 = vmul.f32 %v10023_v16, %v18482_v19  ;;  %v18666_v19 = vrot.slane %v10956_v39, %v16499_v37 }
0x1455   : > { %v18593_v14 = vpop.f32.mrf.mxu0  ;;  %v9901_v16 = vmul.f32 %v18528_v8, %v18474_v50 }
0x1456   : > { %18750 = vst [vmem:[#allocation6_spill] sm:$0xff] %v18593_v14  ;;  %v18602_v23 = vpop.f32.mrf.mxu1  ;;  %v10567_v14 = vrot.slane %v10547_v38, %v16499_v37  ;;  %v10833_v38 = vrot.slane %v10813_v52, %v16499_v37  ;;  %v10173_v52 = vmul.f32 %v18576_v51, %v18492_v59  ;;  %v10174_v59 = vmul.f32 %v18585_v62, %v18496_v22  ;;  %v18756_v22 = vld [vmem:[#allocation8_spill] sm:$0xff] }
0x1457   : > { %18751 = vst [vmem:[#allocation7_spill] sm:$0xff] %v18602_v23  ;;  %v18611_v45 = vpop.f32.mrf.mxu0  ;;  %v10825_v23 = vrot.slane %v10808_v31, %v18513_v35  ;;  %v10040_v8 = vadd.f32 %v10036_v3, %v9901_v16 }
0x1458   : > { %18753 = vst [vmem:[#allocation9_spill] sm:$0xff] %v18611_v45  ;;  %v18618_v43 = vpop.f32.mrf.mxu1  ;;  %v10821_v45 = vrot.slane %v10808_v31, %v18506_v34  ;;  %v18647_v34 = vrot.slane %v10690_v10, %v16499_v37  ;;  %v18663_v10 = vrot.slane %v10948_v15, %v16499_v37  ;;  %v9903_v15 = vmul.f32 %v18535_v26, %v18476_v49 }
0x1459   : > { %18754 = vst [vmem:[#allocation10_spill] sm:$0xff] %v18618_v43  ;;  %v10492_v6 = vpop.f32.mrf.mxu0  ;;  %v10817_v43 = vrot.slane %v10808_v31, %v18307_v46  ;;  %v10706_v31 = vrot.slane %v10686_v42, %v16499_v37  ;;  %v18660_v28 = vrot.slane %v10825_v23, %v16499_v37  ;;  %v10039_v23 = vmul.f32 %v18568_v12, %v18488_v32 }
0x145a   : > { %v10533_v30 = vpop.f32.mrf.mxu1  ;;  %v18652_v25 = vrot.slane %v10821_v45, %v16499_v37  ;;  %v10037_v45 = vmul.f32 %v18565_v60, %v18486_v63  ;;  %v10960_v63 = vrot.slane %v18613_v40, %v18513_v35  ;;  %v10306_v49 = vmul.f32 %v18588_v0, %v18501_v17 }
0x145b   : > { %v10493_v6 = vpop.f32.mrf.mxu0  ;;  %v10571_v30 = vrot.slane %v10551_v44, %v16499_v37  ;;  %v9904_v32 = vmul.f32 %v18550_v61, %v18480_v47  ;;  %v10308_v35 = vmul.f32 %v18591_v5, %v18503_v54  ;;  %v10441_v17 = vmul.f32 %v18605_v24, %v18525_v20  ;;  %v18755_v61 = vld [vmem:[#allocation3_spill] sm:$0xff]  ;;  %v18759_v20 = vld [vmem:[#allocation5_spill] sm:$0xff] }
0x145c   : > { %v10534_v58 = vpop.f32.mrf.mxu1  ;;  %v10698_v6 = vrot.slane %v10678_v27, %v16499_v37  ;;  %v10038_v27 = vmul.f32 %v18557_v9, %v18484_v11  ;;  %v10952_v9 = vrot.slane %v18613_v40, %v18307_v46  ;;  %v10172_v46 = vmul.f32 %v18579_v29, %v18494_v7  ;;  %v18757_v40 = vld [vmem:[#allocation4_spill] sm:$0xff] }
0x145d   : > { %v10623_v57 = vpop.f32.mrf.mxu0  ;;  %v18655_v58 = vrot.slane %v10817_v43, %v16499_v37  ;;  %v10171_v43 = vmul.f32 %v18573_v56, %v18490_v53  ;;  %v9902_v53 = vmul.f32 %v18542_v18, %v18478_v13  ;;  %v10307_v7 = vmul.f32 %v18596_v1, %v18508_v55  ;;  %v18758_v3 = vld [vmem:[#allocation6_spill] sm:$0xff] }
0x145e   : > { %v10664_v44 = vpop.f32.mrf.mxu1  ;;  %v10042_v60 = vadd.f32 %v10038_v27, %v9903_v15  ;;  %v10043_v51 = vadd.f32 %v10039_v23, %v9904_v32  ;;  %v10309_v47 = vmul.f32 %v18599_v4, %v18510_v41  ;;  %v10443_v62 = vmul.f32 %v18756_v22, %v18755_v61 }
0x145f   : > { %v10625_v42 = vpop.f32.mrf.mxu0  ;;  %v10041_v13 = vadd.f32 %v10037_v45, %v9902_v53  ;;  %v10175_v18 = vadd.f32 %v10171_v43, %v10040_v8  ;;  %v10442_v39 = vmul.f32 %v10432_v36, %v18757_v40  ;;  %v10576_v27 = vmul.f32 %v10563_v48, %v18758_v3  ;;  %v18760_v45 = vld [vmem:[#allocation7_spill] sm:$0xff]  ;;  %v18761_v4 = vld [vmem:[#allocation9_spill] sm:$0xff] }
0x1460   : > { %v10666_v11 = vpop.f32.mrf.mxu1  ;;  %v10177_v29 = vadd.f32 %v10173_v52, %v10042_v60  ;;  %v10178_v1 = vadd.f32 %v10174_v59, %v10043_v51  ;;  %v10444_v24 = vmul.f32 %v10440_v21, %v18759_v20  ;;  %v10578_v43 = vmul.f32 %v10571_v30, %v18760_v45 }
0x1461   : > { %v10627_v50 = vpop.f32.mrf.mxu0  ;;  %v10176_v54 = vadd.f32 %v10172_v46, %v10041_v13  ;;  %v10310_v5 = vadd.f32 %v10306_v49, %v10175_v18  ;;  %v10577_v52 = vmul.f32 %v10567_v14, %v18761_v4  ;;  %v18762_v49 = vld [vmem:[#allocation10_spill] sm:$0xff]  ;;  %v10713_v48 = vmul.f32 %v10706_v31, %v10664_v44 }
0x1462   : > { %v10668_v26 = vpop.f32.mrf.mxu1  ;;  %v10312_v16 = vadd.f32 %v10308_v35, %v10177_v29  ;;  %v10711_v50 = vmul.f32 %v10698_v6, %v10623_v57  ;;  %v10313_v8 = vadd.f32 %v10309_v47, %v10178_v1  ;;  %v10579_v36 = vmul.f32 %v18639_v33, %v18762_v49 }
0x1463   : > { %v10628_v12 = vpop.f32.mrf.mxu0  ;;  %v10311_v23 = vadd.f32 %v10307_v7, %v10176_v54  ;;  %v10445_v41 = vadd.f32 %v10441_v17, %v10310_v5  ;;  %v10712_v21 = vmul.f32 %v18644_v2, %v10625_v42  ;;  %v10714_v13 = vmul.f32 %v18647_v34, %v10666_v11 }
0x1464   : > { %v10669_v56 = vpop.f32.mrf.mxu1  ;;  %v10447_v46 = vadd.f32 %v10443_v62, %v10312_v16  ;;  %v10448_v35 = vadd.f32 %v10444_v24, %v10313_v8  ;;  %v10972_v57 = vrot.slane %v10952_v9, %v16499_v37  ;;  %v10980_v2 = vrot.slane %v10960_v63, %v16499_v37  ;;  %v12840_v24 = vld [vmem:[#allocation2] ss:$0 sm:$0xff] }
0x1465   : > { %v10758_v0 = vpop.f32.mrf.mxu0  ;;  %v10446_v32 = vadd.f32 %v10442_v39, %v10311_v23  ;;  %v10580_v60 = vadd.f32 %v10576_v27, %v10445_v41 }
0x1466   : > { %v10799_v55 = vpop.f32.mrf.mxu1  ;;  %v10846_v59 = vmul.f32 %v10833_v38, %v10758_v0  ;;  %v10582_v12 = vadd.f32 %v10578_v43, %v10447_v46  ;;  %v10583_v44 = vadd.f32 %v10579_v36, %v10448_v35 }
0x1467   : > { %v10760_v15 = vpop.f32.mrf.mxu0  ;;  %v10581_v6 = vadd.f32 %v10577_v52, %v10446_v32  ;;  %v10715_v18 = vadd.f32 %v10711_v50, %v10580_v60  ;;  %v10848_v7 = vmul.f32 %v18652_v25, %v10799_v55 }
0x1468   : > { %v10801_v53 = vpop.f32.mrf.mxu1  ;;  %v10847_v33 = vmul.f32 %v18655_v58, %v10760_v15  ;;  %v10717_v17 = vadd.f32 %v10713_v48, %v10582_v12  ;;  %v10718_v9 = vadd.f32 %v10714_v13, %v10583_v44 }
0x1469   : > { %v10762_v26 = vpop.f32.mrf.mxu0  ;;  %v10716_v38 = vadd.f32 %v10712_v21, %v10581_v6  ;;  %v10850_v42 = vadd.f32 %v10846_v59, %v10715_v18  ;;  %v10849_v51 = vmul.f32 %v18660_v28, %v10801_v53 }
0x146a   : > { %v10803_v30 = vpop.f32.mrf.mxu1  ;;  %v10852_v25 = vadd.f32 %v10848_v7, %v10717_v17 }
0x146b   : > { %v10763_v14 = vpop.f32.mrf.mxu0  ;;  %v10851_v61 = vadd.f32 %v10847_v33, %v10716_v38  ;;  %v10853_v37 = vadd.f32 %v10849_v51, %v10718_v9 }
0x146c   : > { %v10804_v31 = vpop.f32.mrf.mxu1 }
0x146d   : > { %v10893_v56 = vpop.f32.mrf.mxu0 }
0x146e   : > { %v10981_v34 = vmul.f32 %v18663_v10, %v10893_v56  ;;  %v10934_v11 = vpop.f32.mrf.mxu1 }
0x146f   : > { %v10983_v29 = vmul.f32 %v18666_v19, %v10934_v11  ;;  %v10895_v47 = vpop.f32.mrf.mxu0 }
0x1470   : > { %v10985_v58 = vadd.f32 %v10981_v34, %v10850_v42  ;;  %v10982_v22 = vmul.f32 %v10972_v57, %v10895_v47  ;;  %v10936_v62 = vpop.f32.mrf.mxu1 }
0x1471   : > { %v10984_v0 = vmul.f32 %v10980_v2, %v10936_v62  ;;  %v10897_v54 = vpop.f32.mrf.mxu0  ;;  %v10987_v63 = vadd.f32 %v10983_v29, %v10852_v25 }
0x1472   : > { %v10986_v5 = vadd.f32 %v10982_v22, %v10851_v61  ;;  %v10938_v40 = vpop.f32.mrf.mxu1  ;;  %v10989_v10 = vsel %vm9664_vm6, %v10985_v58, 0.0 }
0x1473   : > { %v10898_v28 = vpop.f32.mrf.mxu0  ;;  %v10988_v3 = vadd.f32 %v10984_v0, %v10853_v37  ;;  %v10992_v55 = vsel %vm9664_vm6, %v10987_v63, 0.0 }
0x1474   : > { %v10990_v39 = vsel %vm9664_vm6, %v10986_v5, 0.0  ;;  %v10939_v19 = vpop.f32.mrf.mxu1 }
0x1475   : > { %v10991_v27 = vadd.f32 %v10990_v39, %v10989_v10  ;;  %v10994_v16 = vsel %vm9664_vm6, %v10988_v3, 0.0 }
0x1477   : > { %v10993_v1 = vadd.f32 %v10992_v55, %v10991_v27 }
0x1479   : > { %v10995_v20 = vadd.f32 %v10994_v16, %v10993_v1 }
0x147b   : > { %10996 = vadd.xlane.f32.xlu0 %v10995_v20 }
0x1504   : > { %v10997_v45 = vpop.xlane.xlu0 %10996 }
0x1505   : > { %v11005_v43 = vadd.f32 %v12840_v24, %v10997_v45 }
0x1507   : > { %11007 = vst.msk [vmem:[%s494_s24] sm:$0xf] %vm11006_vm9, %v11005_v43 }
0x1508 PF: > { %s27_s20 = sadd.s32 1, %s14910_s20  }
0x1509   : > { %p24_p4 = scmp.ge.s32.totalorder %s27_s20, 4  }
0x150b   :  { %26 = sbr.rel (!%p24_p4) target bundleno = 3 (0x3), region = 174 }

</bundles_post_ra>
